<compile_context>
chip_gen: v7x
topology: tpu7x:2x2x1
jax: 0.10.0
libtpu: 0.0.40
codegen_flags: <defaults>
</compile_context>

<pallas_src>
import functools

import jax
import jax.numpy as jnp
from jax.experimental import pallas as pl
from jax.experimental.pallas import tpu as pltpu

LANE = 128
BN_EPS = 1e-5
NEG_SLOPE = 0.2


def _pad_to(n, m=LANE):
    return ((n + m - 1) // m) * m


# ----------------------------------------------------------------------------
# Fused ConvBlock kernel:
#   conv1 (kxk, dilated, im2col-free) -> BN1(train) -> LeakyReLU(0.2)
#   -> conv2 (1x1) -> BN2(train)
# Grid: 128-wide tiles of conv1's output channels (conv2's contraction axis).
# ----------------------------------------------------------------------------
def _conv_block_kernel(x_ref, w1_ref, g1_ref, be1_ref, w2_ref, g2_ref, be2_ref,
                       o_ref, y1_ref, acc2_ref, *,
                       B, H, W, Ho, Wo, kh, kw, dil):
    k1 = pl.program_id(0)
    n_taps = kh * kw
    # conv1 for this Cout1 tile: tap-accumulated matmuls over contiguous row
    # windows of the flattened (B*H*W, Cin_p) bf16 input (no im2col in HBM).
    for b in range(B):
        for ho in range(Ho):
            orow = (b * Ho + ho) * Wo
            acc = jnp.zeros((Wo, y1_ref.shape[1]), jnp.float32)
            for t in range(n_taps):
                ti, tj = t // kw, t % kw
                irow = (b * H + ho + ti * dil) * W + tj * dil
                xs = x_ref[pl.ds(irow, Wo), :]          # (Wo, Cin_p) bf16
                acc = acc + jnp.dot(xs, w1_ref[t],
                                    preferred_element_type=jnp.float32)
            y1_ref[pl.ds(orow, Wo), :] = acc
    # BN1: training-mode batch statistics over all B*Ho*Wo rows, biased
    # variance, eps=1e-5.  The conv1 bias cancels exactly under BN -> dropped.
    y1 = y1_ref[...]
    m1 = jnp.mean(y1, axis=0, keepdims=True)
    d1 = y1 - m1
    v1 = jnp.mean(d1 * d1, axis=0, keepdims=True)
    a1 = d1 * jax.lax.rsqrt(v1 + BN_EPS) * g1_ref[...] + be1_ref[...]
    a1 = jnp.where(a1 > 0, a1, NEG_SLOPE * a1)          # LeakyReLU(0.2)
    # conv2 (1x1): accumulate this Cout1 tile's contribution to every Cout2.
    @pl.when(k1 == 0)
    def _():
        acc2_ref[...] = jnp.zeros_like(acc2_ref)
    acc2_ref[...] += jnp.dot(a1.astype(jnp.bfloat16), w2_ref[...],
                             preferred_element_type=jnp.float32)
    # BN2 + store once every Cout1 tile has been accumulated (conv2 bias also
    # cancels under BN2 -> dropped).
    @pl.when(k1 == pl.num_programs(0) - 1)
    def _():
        y2 = acc2_ref[...]
        m2 = jnp.mean(y2, axis=0, keepdims=True)
        d2 = y2 - m2
        v2 = jnp.mean(d2 * d2, axis=0, keepdims=True)
        o_ref[...] = (d2 * jax.lax.rsqrt(v2 + BN_EPS) * g2_ref[...]
                      + be2_ref[...]).astype(o_ref.dtype)


def conv_block(rows, B, H, W, bp):
    """One ConvBlock as a single pallas_call.

    rows: (B*H*W, Cin_p) bf16 channel-last flattened activation.
    Returns ((B*Ho*Wo, Cout2_p) bf16, Ho, Wo).
    """
    kh, kw, dil = bp['kh'], bp['kw'], bp['dil']
    Ho = H - (kh - 1) * dil
    Wo = W - (kw - 1) * dil
    cin_p, c1_p, c2_p = bp['cin_p'], bp['c1_p'], bp['c2_p']
    M = B * Ho * Wo
    TN1 = LANE
    n1 = c1_p // TN1
    kernel = functools.partial(_conv_block_kernel, B=B, H=H, W=W, Ho=Ho, Wo=Wo,
                               kh=kh, kw=kw, dil=dil)
    out = pl.pallas_call(
        kernel,
        out_shape=jax.ShapeDtypeStruct((M, c2_p), jnp.bfloat16),
        grid=(n1,),
        in_specs=[
            pl.BlockSpec((B * H * W, cin_p), lambda k: (0, 0)),       # x resident
            pl.BlockSpec((kh * kw, cin_p, TN1), lambda k: (0, 0, k)),  # w1 tile
            pl.BlockSpec((1, TN1), lambda k: (0, k)),                  # gamma1
            pl.BlockSpec((1, TN1), lambda k: (0, k)),                  # beta1
            pl.BlockSpec((TN1, c2_p), lambda k: (k, 0)),               # w2 tile
            pl.BlockSpec((1, c2_p), lambda k: (0, 0)),                 # gamma2
            pl.BlockSpec((1, c2_p), lambda k: (0, 0)),                 # beta2
        ],
        out_specs=pl.BlockSpec((M, c2_p), lambda k: (0, 0)),           # resident acc
        scratch_shapes=[pltpu.VMEM((M, TN1), jnp.float32),             # y1 tile
                        pltpu.VMEM((M, c2_p), jnp.float32)],           # y2 accumulator
        compiler_params=pltpu.CompilerParams(
            dimension_semantics=("arbitrary",)),  # Cout1 axis = conv2 contraction
    )(rows, bp['w1'], bp['g1'], bp['be1'], bp['w2'], bp['g2'], bp['be2'])
    return out, Ho, Wo


# ----------------------------------------------------------------------------
# Plain conv + bias (tail).  "parallel" grid over 128-wide output-channel tiles.
# ----------------------------------------------------------------------------
def _conv_bias_kernel(x_ref, w_ref, bias_ref, o_ref, *,
                      B, H, W, Ho, Wo, kh, kw, dil):
    n_taps = kh * kw
    for b in range(B):
        for ho in range(Ho):
            orow = (b * Ho + ho) * Wo
            acc = jnp.zeros((Wo, o_ref.shape[1]), jnp.float32)
            for t in range(n_taps):
                ti, tj = t // kw, t % kw
                irow = (b * H + ho + ti * dil) * W + tj * dil
                acc = acc + jnp.dot(x_ref[pl.ds(irow, Wo), :], w_ref[t],
                                    preferred_element_type=jnp.float32)
            o_ref[pl.ds(orow, Wo), :] = (acc + bias_ref[...]).astype(o_ref.dtype)


def conv_plain(rows, B, H, W, cp):
    kh, kw, dil = cp['kh'], cp['kw'], cp['dil']
    Ho = H - (kh - 1) * dil
    Wo = W - (kw - 1) * dil
    cin_p, cout_p = cp['cin_p'], cp['cout_p']
    M = B * Ho * Wo
    TN = LANE
    kernel = functools.partial(_conv_bias_kernel, B=B, H=H, W=W, Ho=Ho, Wo=Wo,
                               kh=kh, kw=kw, dil=dil)
    out = pl.pallas_call(
        kernel,
        out_shape=jax.ShapeDtypeStruct((M, cout_p), jnp.bfloat16),
        grid=(cout_p // TN,),
        in_specs=[
            pl.BlockSpec((B * H * W, cin_p), lambda j: (0, 0)),        # x resident
            pl.BlockSpec((kh * kw, cin_p, TN), lambda j: (0, 0, j)),   # weight tile
            pl.BlockSpec((1, TN), lambda j: (0, j)),                   # bias tile
        ],
        out_specs=pl.BlockSpec((M, TN), lambda j: (0, j)),
        compiler_params=pltpu.CompilerParams(
            dimension_semantics=("parallel",)),   # independent tiles -> megacore
    )(rows, cp['w'], cp['b'])
    return out, Ho, Wo


# ----------------------------------------------------------------------------
# Fused linear(512->120) + to_z(120->120), 128-lane padded, single tiny kernel.
# ----------------------------------------------------------------------------
def _double_linear_kernel(x_ref, w1_ref, b1_ref, w2_ref, b2_ref, o_ref):
    y1 = jnp.dot(x_ref[...], w1_ref[...],
                 preferred_element_type=jnp.float32) + b1_ref[...]
    o_ref[...] = jnp.dot(y1.astype(jnp.bfloat16), w2_ref[...],
                         preferred_element_type=jnp.float32) + b2_ref[...]


def double_linear(x, lp):
    B = x.shape[0]
    vmem = pl.BlockSpec(memory_space=pltpu.MemorySpace.VMEM)
    return pl.pallas_call(
        _double_linear_kernel,
        out_shape=jax.ShapeDtypeStruct((B, lp['n_p']), jnp.float32),
        in_specs=[vmem] * 5,
        out_specs=vmem,
    )(x, lp['w1'], lp['b1'], lp['w2'], lp['b2'])


# ----------------------------------------------------------------------------
# Deterministic parameters (PyTorch layout) + one-time kernel-layout packing
# ----------------------------------------------------------------------------
def _uniform(key, shape, fan_in):
    s = 1.0 / jnp.sqrt(jnp.float32(fan_in))
    return jax.random.uniform(key, shape, jnp.float32, -s, s)


def _convblock_raw(key, cin, cout, k):
    ks = jax.random.split(key, 4)
    return dict(
        w1=_uniform(ks[0], (cout, cin, k, k), cin * k * k),
        b1=_uniform(ks[1], (cout,), cin * k * k),   # cancels under BN1
        g1=jnp.ones((cout,), jnp.float32),
        be1=jnp.zeros((cout,), jnp.float32),
        w2=_uniform(ks[2], (cout, cout, 1, 1), cout),
        b2=_uniform(ks[3], (cout,), cout),          # cancels under BN2
        g2=jnp.ones((cout,), jnp.float32),
        be2=jnp.zeros((cout,), jnp.float32),
        # conv3 / norm3 exist in ConvBlock.__init__ but are unused in forward.
    )


def make_masked_net_e_params(key, ratio, mask_width):
    N = 32
    keys = jax.random.split(key, 16)
    params = {'ratio': ratio, 'mask_width': mask_width}
    head = _convblock_raw(keys[0], 3, N, ratio)
    # MaskednetE.forward re-zeroes head.conv1.weight[:, :, 1:-1, 1:-1] every
    # call; weights are static here, so apply it once.
    if ratio > 2:
        head['w1'] = head['w1'].at[:, :, 1:-1, 1:-1].set(0.0)
    params['head'] = head
    body = []
    num_layers = int(mask_width / 2) - 1
    for i in range(num_layers):
        ker = 3 if i < num_layers - 1 else 2
        cout = 2 * N if N < 1024 else N
        body.append(_convblock_raw(keys[1 + i], N, cout, ker))
        N = cout if N < 1024 else 1024
    params['body'] = body
    params['tail'] = dict(w=_uniform(keys[10], (512, N, 3, 3), N * 9),
                          b=_uniform(keys[11], (512,), N * 9))
    params['linear'] = dict(w=_uniform(keys[12], (120, 512), 512),
                            b=_uniform(keys[13], (120,), 512))
    # TODO(synk): netE.to_z is an externally injected module of unknown
    # architecture; modeled as a single deterministic Linear(120, 120).
    params['to_z'] = dict(w=_uniform(keys[14], (120, 120), 120),
                          b=_uniform(keys[15], (120,), 120))
    return params


def _pad_vec(v, n, fill=0.0):
    return jnp.pad(v, (0, n - v.shape[0]),
                   constant_values=fill).reshape(1, n).astype(jnp.float32)


def _prep_convblock(raw, dil):
    w1 = raw['w1']                                   # (c1, cin, kh, kw)
    c1, cin, kh, kw = w1.shape
    w2 = raw['w2'][:, :, 0, 0]                       # (c2, c1)
    c2 = w2.shape[0]
    cin_p, c1_p, c2_p = _pad_to(cin), _pad_to(c1), _pad_to(c2)
    w1k = jnp.transpose(w1, (2, 3, 1, 0)).reshape(kh * kw, cin, c1)
    w1k = jnp.pad(w1k, ((0, 0), (0, cin_p - cin),
                        (0, c1_p - c1))).astype(jnp.bfloat16)
    w2k = jnp.pad(w2.T, ((0, c1_p - c1), (0, c2_p - c2))).astype(jnp.bfloat16)
    return dict(kh=kh, kw=kw, dil=dil, cin_p=cin_p, c1_p=c1_p, c2_p=c2_p,
                w1=w1k, g1=_pad_vec(raw['g1'], c1_p, 1.0),
                be1=_pad_vec(raw['be1'], c1_p),
                w2=w2k, g2=_pad_vec(raw['g2'], c2_p, 1.0),
                be2=_pad_vec(raw['be2'], c2_p))


def prepare_params(params):
    p = {'mask_width': params['mask_width']}
    p['head'] = _prep_convblock(params['head'], dil=params['mask_width'])
    p['body'] = [_prep_convblock(b, dil=1) for b in params['body']]
    tw = params['tail']['w']                          # (512, cin, 3, 3)
    cout, cin, kh, kw = tw.shape
    cin_p, cout_p = _pad_to(cin), _pad_to(cout)
    twk = jnp.transpose(tw, (2, 3, 1, 0)).reshape(kh * kw, cin, cout)
    twk = jnp.pad(twk, ((0, 0), (0, cin_p - cin),
                        (0, cout_p - cout))).astype(jnp.bfloat16)
    p['tail'] = dict(kh=kh, kw=kw, dil=1, cin_p=cin_p, cout_p=cout_p, cout=cout,
                     w=twk, b=_pad_vec(params['tail']['b'], cout_p))
    lw, lb = params['linear']['w'], params['linear']['b']   # (120,512), (120,)
    zw, zb = params['to_z']['w'], params['to_z']['b']       # (120,120), (120,)
    n_p = _pad_to(lw.shape[0])                               # 128
    w1k = jnp.pad(lw.T, ((0, 0), (0, n_p - lw.shape[0]))).astype(jnp.bfloat16)
    w2k = jnp.pad(zw.T, ((0, n_p - zw.shape[1]),
                         (0, n_p - zw.shape[0]))).astype(jnp.bfloat16)
    p['linears'] = dict(n_out=zw.shape[0], n_p=n_p,
                        w1=w1k, b1=_pad_vec(lb, n_p),
                        w2=w2k, b2=_pad_vec(zb, n_p))
    return p


# ----------------------------------------------------------------------------
# MaskednetE.forward
# ----------------------------------------------------------------------------
def masked_net_e_forward(prepared, x, mask, GAN='BigGAN'):
    B, C, H, W = x.shape
    x = x * mask                                   # elementwise masking (glue)
    # NCHW -> channel-last, pad channels to 128 lanes, bf16, flatten rows once.
    xh = jnp.transpose(x, (0, 2, 3, 1))
    cin_p = prepared['head']['cin_p']
    xh = jnp.pad(xh, ((0, 0), (0, 0), (0, 0),
                      (0, cin_p - C))).astype(jnp.bfloat16)
    rows = xh.reshape(B * H * W, cin_p)

    rows, H, W = conv_block(rows, B, H, W, prepared['head'])
    for blk in prepared['body']:
        rows, H, W = conv_block(rows, B, H, W, blk)
    rows, H, W = conv_plain(rows, B, H, W, prepared['tail'])

    if 'BigGAN' in GAN:
        # PyTorch's x.reshape(B, C) requires a 1x1 spatial tail output.
        assert H == 1 and W == 1, f"tail output must be 1x1 spatial, got {H}x{W}"
        feat = rows.reshape(B, prepared['tail']['cout_p'])[:, :prepared['tail']['cout']]
        out = double_linear(feat, prepared['linears'])
        return out[:, :prepared['linears']['n_out']]
    # non-BigGAN path: return the tail activation in NCHW float32.
    cout = prepared['tail']['cout']
    y = rows.reshape(B, H, W, prepared['tail']['cout_p'])[..., :cout]
    return jnp.transpose(y.astype(jnp.float32), (0, 3, 1, 2))


if __name__ == "__main__":
    ratio = 3        # head kernel size
    mask_width = 4   # head dilation; num body layers = mask_width // 2 - 1 = 1
    B, H, W = 2, 12, 12   # 12 -> head:4x4 -> body(k=2):3x3 -> tail(k=3):1x1

    key = jax.random.PRNGKey(0)
    kp, kx, km = jax.random.split(key, 3)
    raw = make_masked_net_e_params(kp, ratio, mask_width)
    prepared = prepare_params(raw)

    x = jax.random.normal(kx, (B, 3, H, W), jnp.float32)
    mask = (jax.random.uniform(km, (B, 1, H, W)) > 0.3).astype(jnp.float32)

    fwd = jax.jit(lambda xi, mi: masked_net_e_forward(prepared, xi, mi,
                                                      GAN='BigGAN'))
    out = jax.block_until_ready(fwd(x, mask))
    assert out.shape == (B, 120), out.shape
    print("KERNEL_OK")
</pallas_src>

<mosaic_0001>
module attributes {stable_mosaic.version = 11 : i64} {
  func.func @_conv_block_kernel(%arg0: i32, %arg1: memref<32x128xbf16, #tpu.memory_space<vmem>>, %arg2: memref<4x128x128xbf16, #tpu.memory_space<vmem>>, %arg3: memref<1x128xf32, #tpu.memory_space<vmem>>, %arg4: memref<1x128xf32, #tpu.memory_space<vmem>>, %arg5: memref<128x128xbf16, #tpu.memory_space<vmem>>, %arg6: memref<1x128xf32, #tpu.memory_space<vmem>>, %arg7: memref<1x128xf32, #tpu.memory_space<vmem>>, %arg8: memref<18x128xbf16, #tpu.memory_space<vmem>>, %arg9: memref<18x128xf32, #tpu.memory_space<vmem>>, %arg10: memref<18x128xf32, #tpu.memory_space<vmem>>) attributes {dimension_semantics = [#tpu.dimension_semantics<arbitrary>], iteration_bounds = array<i64: 1>, scalar_prefetch = 0 : i64, scratch_operands = 2 : i64, tpu.core_type = #tpu.core_type<tc>, window_params = [{pipeline_mode = #tpu.pipeline_mode<synchronous>, transform_indices = @transform_0, window_bounds = array<i64: 32, 128>}, {transform_indices = @transform_1, window_bounds = array<i64: 4, 128, 128>}, {transform_indices = @transform_2, window_bounds = array<i64: 1, 128>}, {transform_indices = @transform_3, window_bounds = array<i64: 1, 128>}, {transform_indices = @transform_4, window_bounds = array<i64: 128, 128>}, {pipeline_mode = #tpu.pipeline_mode<synchronous>, transform_indices = @transform_5, window_bounds = array<i64: 1, 128>}, {pipeline_mode = #tpu.pipeline_mode<synchronous>, transform_indices = @transform_6, window_bounds = array<i64: 1, 128>}, {pipeline_mode = #tpu.pipeline_mode<synchronous>, transform_indices = @transform_7, window_bounds = array<i64: 18, 128>}]} {
    %cst = arith.constant 0.000000e+00 : f32
    %0 = vector.broadcast %cst : f32 to vector<3x128xf32>
    %c0 = arith.constant 0 : index
    %c0_0 = arith.constant 0 : index
    %1 = vector.load %arg1[%c0, %c0_0] : memref<32x128xbf16, #tpu.memory_space<vmem>>, vector<3x128xbf16>
    %c0_1 = arith.constant 0 : index
    %c0_2 = arith.constant 0 : index
    %c0_3 = arith.constant 0 : index
    %2 = vector.load %arg2[%c0_1, %c0_2, %c0_3] : memref<4x128x128xbf16, #tpu.memory_space<vmem>>, vector<1x128x128xbf16>
    %3 = vector.shape_cast %2 : vector<1x128x128xbf16> to vector<128x128xbf16>
    %cst_4 = arith.constant dense<0.000000e+00> : vector<3x128xf32>
    %4 = tpu.matmul %1, %3, %cst_4 {dimension_numbers = #tpu.dot_dimension_numbers<[1], [0], [0], [1], [0, 0, 1, 1], [], []>} : vector<3x128xbf16>, vector<128x128xbf16>, vector<3x128xf32> -> vector<3x128xf32>
    %5 = arith.addf %0, %4 : vector<3x128xf32>
    %c1 = arith.constant 1 : index
    %c0_5 = arith.constant 0 : index
    %6 = vector.load %arg1[%c1, %c0_5] : memref<32x128xbf16, #tpu.memory_space<vmem>>, vector<3x128xbf16>
    %c1_6 = arith.constant 1 : index
    %c0_7 = arith.constant 0 : index
    %c0_8 = arith.constant 0 : index
    %7 = vector.load %arg2[%c1_6, %c0_7, %c0_8] : memref<4x128x128xbf16, #tpu.memory_space<vmem>>, vector<1x128x128xbf16>
    %8 = vector.shape_cast %7 : vector<1x128x128xbf16> to vector<128x128xbf16>
    %cst_9 = arith.constant dense<0.000000e+00> : vector<3x128xf32>
    %9 = tpu.matmul %6, %8, %cst_9 {dimension_numbers = #tpu.dot_dimension_numbers<[1], [0], [0], [1], [0, 0, 1, 1], [], []>} : vector<3x128xbf16>, vector<128x128xbf16>, vector<3x128xf32> -> vector<3x128xf32>
    %10 = arith.addf %5, %9 : vector<3x128xf32>
    %c4 = arith.constant 4 : index
    %c0_10 = arith.constant 0 : index
    %11 = vector.load %arg1[%c4, %c0_10] : memref<32x128xbf16, #tpu.memory_space<vmem>>, vector<3x128xbf16>
    %c2 = arith.constant 2 : index
    %c0_11 = arith.constant 0 : index
    %c0_12 = arith.constant 0 : index
    %12 = vector.load %arg2[%c2, %c0_11, %c0_12] : memref<4x128x128xbf16, #tpu.memory_space<vmem>>, vector<1x128x128xbf16>
    %13 = vector.shape_cast %12 : vector<1x128x128xbf16> to vector<128x128xbf16>
    %cst_13 = arith.constant dense<0.000000e+00> : vector<3x128xf32>
    %14 = tpu.matmul %11, %13, %cst_13 {dimension_numbers = #tpu.dot_dimension_numbers<[1], [0], [0], [1], [0, 0, 1, 1], [], []>} : vector<3x128xbf16>, vector<128x128xbf16>, vector<3x128xf32> -> vector<3x128xf32>
    %15 = arith.addf %10, %14 : vector<3x128xf32>
    %c5 = arith.constant 5 : index
    %c0_14 = arith.constant 0 : index
    %16 = vector.load %arg1[%c5, %c0_14] : memref<32x128xbf16, #tpu.memory_space<vmem>>, vector<3x128xbf16>
    %c3 = arith.constant 3 : index
    %c0_15 = arith.constant 0 : index
    %c0_16 = arith.constant 0 : index
    %17 = vector.load %arg2[%c3, %c0_15, %c0_16] : memref<4x128x128xbf16, #tpu.memory_space<vmem>>, vector<1x128x128xbf16>
    %18 = vector.shape_cast %17 : vector<1x128x128xbf16> to vector<128x128xbf16>
    %cst_17 = arith.constant dense<0.000000e+00> : vector<3x128xf32>
    %19 = tpu.matmul %16, %18, %cst_17 {dimension_numbers = #tpu.dot_dimension_numbers<[1], [0], [0], [1], [0, 0, 1, 1], [], []>} : vector<3x128xbf16>, vector<128x128xbf16>, vector<3x128xf32> -> vector<3x128xf32>
    %20 = arith.addf %15, %19 : vector<3x128xf32>
    %c0_18 = arith.constant 0 : index
    %c0_19 = arith.constant 0 : index
    %21 = vector.load %arg9[%c0_18, %c0_19] : memref<18x128xf32, #tpu.memory_space<vmem>>, vector<3x128xf32>
    tpu.vector_store %arg9[%c0_18, %c0_19], %20 {strides = array<i32>} : memref<18x128xf32, #tpu.memory_space<vmem>>, vector<3x128xf32>,
    %cst_20 = arith.constant 0.000000e+00 : f32
    %22 = vector.broadcast %cst_20 : f32 to vector<3x128xf32>
    %c4_21 = arith.constant 4 : index
    %c0_22 = arith.constant 0 : index
    %23 = vector.load %arg1[%c4_21, %c0_22] : memref<32x128xbf16, #tpu.memory_space<vmem>>, vector<3x128xbf16>
    %c0_23 = arith.constant 0 : index
    %c0_24 = arith.constant 0 : index
    %c0_25 = arith.constant 0 : index
    %24 = vector.load %arg2[%c0_23, %c0_24, %c0_25] : memref<4x128x128xbf16, #tpu.memory_space<vmem>>, vector<1x128x128xbf16>
    %25 = vector.shape_cast %24 : vector<1x128x128xbf16> to vector<128x128xbf16>
    %cst_26 = arith.constant dense<0.000000e+00> : vector<3x128xf32>
    %26 = tpu.matmul %23, %25, %cst_26 {dimension_numbers = #tpu.dot_dimension_numbers<[1], [0], [0], [1], [0, 0, 1, 1], [], []>} : vector<3x128xbf16>, vector<128x128xbf16>, vector<3x128xf32> -> vector<3x128xf32>
    %27 = arith.addf %22, %26 : vector<3x128xf32>
    %c5_27 = arith.constant 5 : index
    %c0_28 = arith.constant 0 : index
    %28 = vector.load %arg1[%c5_27, %c0_28] : memref<32x128xbf16, #tpu.memory_space<vmem>>, vector<3x128xbf16>
    %c1_29 = arith.constant 1 : index
    %c0_30 = arith.constant 0 : index
    %c0_31 = arith.constant 0 : index
    %29 = vector.load %arg2[%c1_29, %c0_30, %c0_31] : memref<4x128x128xbf16, #tpu.memory_space<vmem>>, vector<1x128x128xbf16>
    %30 = vector.shape_cast %29 : vector<1x128x128xbf16> to vector<128x128xbf16>
    %cst_32 = arith.constant dense<0.000000e+00> : vector<3x128xf32>
    %31 = tpu.matmul %28, %30, %cst_32 {dimension_numbers = #tpu.dot_dimension_numbers<[1], [0], [0], [1], [0, 0, 1, 1], [], []>} : vector<3x128xbf16>, vector<128x128xbf16>, vector<3x128xf32> -> vector<3x128xf32>
    %32 = arith.addf %27, %31 : vector<3x128xf32>
    %c8 = arith.constant 8 : index
    %c0_33 = arith.constant 0 : index
    %33 = vector.load %arg1[%c8, %c0_33] : memref<32x128xbf16, #tpu.memory_space<vmem>>, vector<3x128xbf16>
    %c2_34 = arith.constant 2 : index
    %c0_35 = arith.constant 0 : index
    %c0_36 = arith.constant 0 : index
    %34 = vector.load %arg2[%c2_34, %c0_35, %c0_36] : memref<4x128x128xbf16, #tpu.memory_space<vmem>>, vector<1x128x128xbf16>
    %35 = vector.shape_cast %34 : vector<1x128x128xbf16> to vector<128x128xbf16>
    %cst_37 = arith.constant dense<0.000000e+00> : vector<3x128xf32>
    %36 = tpu.matmul %33, %35, %cst_37 {dimension_numbers = #tpu.dot_dimension_numbers<[1], [0], [0], [1], [0, 0, 1, 1], [], []>} : vector<3x128xbf16>, vector<128x128xbf16>, vector<3x128xf32> -> vector<3x128xf32>
    %37 = arith.addf %32, %36 : vector<3x128xf32>
    %c9 = arith.constant 9 : index
    %c0_38 = arith.constant 0 : index
    %38 = vector.load %arg1[%c9, %c0_38] : memref<32x128xbf16, #tpu.memory_space<vmem>>, vector<3x128xbf16>
    %c3_39 = arith.constant 3 : index
    %c0_40 = arith.constant 0 : index
    %c0_41 = arith.constant 0 : index
    %39 = vector.load %arg2[%c3_39, %c0_40, %c0_41] : memref<4x128x128xbf16, #tpu.memory_space<vmem>>, vector<1x128x128xbf16>
    %40 = vector.shape_cast %39 : vector<1x128x128xbf16> to vector<128x128xbf16>
    %cst_42 = arith.constant dense<0.000000e+00> : vector<3x128xf32>
    %41 = tpu.matmul %38, %40, %cst_42 {dimension_numbers = #tpu.dot_dimension_numbers<[1], [0], [0], [1], [0, 0, 1, 1], [], []>} : vector<3x128xbf16>, vector<128x128xbf16>, vector<3x128xf32> -> vector<3x128xf32>
    %42 = arith.addf %37, %41 : vector<3x128xf32>
    %c3_43 = arith.constant 3 : index
    %c0_44 = arith.constant 0 : index
    %43 = vector.load %arg9[%c3_43, %c0_44] : memref<18x128xf32, #tpu.memory_space<vmem>>, vector<3x128xf32>
    tpu.vector_store %arg9[%c3_43, %c0_44], %42 {strides = array<i32>} : memref<18x128xf32, #tpu.memory_space<vmem>>, vector<3x128xf32>,
    %cst_45 = arith.constant 0.000000e+00 : f32
    %44 = vector.broadcast %cst_45 : f32 to vector<3x128xf32>
    %c8_46 = arith.constant 8 : index
    %c0_47 = arith.constant 0 : index
    %45 = vector.load %arg1[%c8_46, %c0_47] : memref<32x128xbf16, #tpu.memory_space<vmem>>, vector<3x128xbf16>
    %c0_48 = arith.constant 0 : index
    %c0_49 = arith.constant 0 : index
    %c0_50 = arith.constant 0 : index
    %46 = vector.load %arg2[%c0_48, %c0_49, %c0_50] : memref<4x128x128xbf16, #tpu.memory_space<vmem>>, vector<1x128x128xbf16>
    %47 = vector.shape_cast %46 : vector<1x128x128xbf16> to vector<128x128xbf16>
    %cst_51 = arith.constant dense<0.000000e+00> : vector<3x128xf32>
    %48 = tpu.matmul %45, %47, %cst_51 {dimension_numbers = #tpu.dot_dimension_numbers<[1], [0], [0], [1], [0, 0, 1, 1], [], []>} : vector<3x128xbf16>, vector<128x128xbf16>, vector<3x128xf32> -> vector<3x128xf32>
    %49 = arith.addf %44, %48 : vector<3x128xf32>
    %c9_52 = arith.constant 9 : index
    %c0_53 = arith.constant 0 : index
    %50 = vector.load %arg1[%c9_52, %c0_53] : memref<32x128xbf16, #tpu.memory_space<vmem>>, vector<3x128xbf16>
    %c1_54 = arith.constant 1 : index
    %c0_55 = arith.constant 0 : index
    %c0_56 = arith.constant 0 : index
    %51 = vector.load %arg2[%c1_54, %c0_55, %c0_56] : memref<4x128x128xbf16, #tpu.memory_space<vmem>>, vector<1x128x128xbf16>
    %52 = vector.shape_cast %51 : vector<1x128x128xbf16> to vector<128x128xbf16>
    %cst_57 = arith.constant dense<0.000000e+00> : vector<3x128xf32>
    %53 = tpu.matmul %50, %52, %cst_57 {dimension_numbers = #tpu.dot_dimension_numbers<[1], [0], [0], [1], [0, 0, 1, 1], [], []>} : vector<3x128xbf16>, vector<128x128xbf16>, vector<3x128xf32> -> vector<3x128xf32>
    %54 = arith.addf %49, %53 : vector<3x128xf32>
    %c12 = arith.constant 12 : index
    %c0_58 = arith.constant 0 : index
    %55 = vector.load %arg1[%c12, %c0_58] : memref<32x128xbf16, #tpu.memory_space<vmem>>, vector<3x128xbf16>
    %c2_59 = arith.constant 2 : index
    %c0_60 = arith.constant 0 : index
    %c0_61 = arith.constant 0 : index
    %56 = vector.load %arg2[%c2_59, %c0_60, %c0_61] : memref<4x128x128xbf16, #tpu.memory_space<vmem>>, vector<1x128x128xbf16>
    %57 = vector.shape_cast %56 : vector<1x128x128xbf16> to vector<128x128xbf16>
    %cst_62 = arith.constant dense<0.000000e+00> : vector<3x128xf32>
    %58 = tpu.matmul %55, %57, %cst_62 {dimension_numbers = #tpu.dot_dimension_numbers<[1], [0], [0], [1], [0, 0, 1, 1], [], []>} : vector<3x128xbf16>, vector<128x128xbf16>, vector<3x128xf32> -> vector<3x128xf32>
    %59 = arith.addf %54, %58 : vector<3x128xf32>
    %c13 = arith.constant 13 : index
    %c0_63 = arith.constant 0 : index
    %60 = vector.load %arg1[%c13, %c0_63] : memref<32x128xbf16, #tpu.memory_space<vmem>>, vector<3x128xbf16>
    %c3_64 = arith.constant 3 : index
    %c0_65 = arith.constant 0 : index
    %c0_66 = arith.constant 0 : index
    %61 = vector.load %arg2[%c3_64, %c0_65, %c0_66] : memref<4x128x128xbf16, #tpu.memory_space<vmem>>, vector<1x128x128xbf16>
    %62 = vector.shape_cast %61 : vector<1x128x128xbf16> to vector<128x128xbf16>
    %cst_67 = arith.constant dense<0.000000e+00> : vector<3x128xf32>
    %63 = tpu.matmul %60, %62, %cst_67 {dimension_numbers = #tpu.dot_dimension_numbers<[1], [0], [0], [1], [0, 0, 1, 1], [], []>} : vector<3x128xbf16>, vector<128x128xbf16>, vector<3x128xf32> -> vector<3x128xf32>
    %64 = arith.addf %59, %63 : vector<3x128xf32>
    %c6 = arith.constant 6 : index
    %c0_68 = arith.constant 0 : index
    %65 = vector.load %arg9[%c6, %c0_68] : memref<18x128xf32, #tpu.memory_space<vmem>>, vector<3x128xf32>
    tpu.vector_store %arg9[%c6, %c0_68], %64 {strides = array<i32>} : memref<18x128xf32, #tpu.memory_space<vmem>>, vector<3x128xf32>,
    %cst_69 = arith.constant 0.000000e+00 : f32
    %66 = vector.broadcast %cst_69 : f32 to vector<3x128xf32>
    %c16 = arith.constant 16 : index
    %c0_70 = arith.constant 0 : index
    %67 = vector.load %arg1[%c16, %c0_70] : memref<32x128xbf16, #tpu.memory_space<vmem>>, vector<3x128xbf16>
    %c0_71 = arith.constant 0 : index
    %c0_72 = arith.constant 0 : index
    %c0_73 = arith.constant 0 : index
    %68 = vector.load %arg2[%c0_71, %c0_72, %c0_73] : memref<4x128x128xbf16, #tpu.memory_space<vmem>>, vector<1x128x128xbf16>
    %69 = vector.shape_cast %68 : vector<1x128x128xbf16> to vector<128x128xbf16>
    %cst_74 = arith.constant dense<0.000000e+00> : vector<3x128xf32>
    %70 = tpu.matmul %67, %69, %cst_74 {dimension_numbers = #tpu.dot_dimension_numbers<[1], [0], [0], [1], [0, 0, 1, 1], [], []>} : vector<3x128xbf16>, vector<128x128xbf16>, vector<3x128xf32> -> vector<3x128xf32>
    %71 = arith.addf %66, %70 : vector<3x128xf32>
    %c17 = arith.constant 17 : index
    %c0_75 = arith.constant 0 : index
    %72 = vector.load %arg1[%c17, %c0_75] : memref<32x128xbf16, #tpu.memory_space<vmem>>, vector<3x128xbf16>
    %c1_76 = arith.constant 1 : index
    %c0_77 = arith.constant 0 : index
    %c0_78 = arith.constant 0 : index
    %73 = vector.load %arg2[%c1_76, %c0_77, %c0_78] : memref<4x128x128xbf16, #tpu.memory_space<vmem>>, vector<1x128x128xbf16>
    %74 = vector.shape_cast %73 : vector<1x128x128xbf16> to vector<128x128xbf16>
    %cst_79 = arith.constant dense<0.000000e+00> : vector<3x128xf32>
    %75 = tpu.matmul %72, %74, %cst_79 {dimension_numbers = #tpu.dot_dimension_numbers<[1], [0], [0], [1], [0, 0, 1, 1], [], []>} : vector<3x128xbf16>, vector<128x128xbf16>, vector<3x128xf32> -> vector<3x128xf32>
    %76 = arith.addf %71, %75 : vector<3x128xf32>
    %c20 = arith.constant 20 : index
    %c0_80 = arith.constant 0 : index
    %77 = vector.load %arg1[%c20, %c0_80] : memref<32x128xbf16, #tpu.memory_space<vmem>>, vector<3x128xbf16>
    %c2_81 = arith.constant 2 : index
    %c0_82 = arith.constant 0 : index
    %c0_83 = arith.constant 0 : index
    %78 = vector.load %arg2[%c2_81, %c0_82, %c0_83] : memref<4x128x128xbf16, #tpu.memory_space<vmem>>, vector<1x128x128xbf16>
    %79 = vector.shape_cast %78 : vector<1x128x128xbf16> to vector<128x128xbf16>
    %cst_84 = arith.constant dense<0.000000e+00> : vector<3x128xf32>
    %80 = tpu.matmul %77, %79, %cst_84 {dimension_numbers = #tpu.dot_dimension_numbers<[1], [0], [0], [1], [0, 0, 1, 1], [], []>} : vector<3x128xbf16>, vector<128x128xbf16>, vector<3x128xf32> -> vector<3x128xf32>
    %81 = arith.addf %76, %80 : vector<3x128xf32>
    %c21 = arith.constant 21 : index
    %c0_85 = arith.constant 0 : index
    %82 = vector.load %arg1[%c21, %c0_85] : memref<32x128xbf16, #tpu.memory_space<vmem>>, vector<3x128xbf16>
    %c3_86 = arith.constant 3 : index
    %c0_87 = arith.constant 0 : index
    %c0_88 = arith.constant 0 : index
    %83 = vector.load %arg2[%c3_86, %c0_87, %c0_88] : memref<4x128x128xbf16, #tpu.memory_space<vmem>>, vector<1x128x128xbf16>
    %84 = vector.shape_cast %83 : vector<1x128x128xbf16> to vector<128x128xbf16>
    %cst_89 = arith.constant dense<0.000000e+00> : vector<3x128xf32>
    %85 = tpu.matmul %82, %84, %cst_89 {dimension_numbers = #tpu.dot_dimension_numbers<[1], [0], [0], [1], [0, 0, 1, 1], [], []>} : vector<3x128xbf16>, vector<128x128xbf16>, vector<3x128xf32> -> vector<3x128xf32>
    %86 = arith.addf %81, %85 : vector<3x128xf32>
    %c9_90 = arith.constant 9 : index
    %c0_91 = arith.constant 0 : index
    %87 = vector.load %arg9[%c9_90, %c0_91] : memref<18x128xf32, #tpu.memory_space<vmem>>, vector<3x128xf32>
    tpu.vector_store %arg9[%c9_90, %c0_91], %86 {strides = array<i32>} : memref<18x128xf32, #tpu.memory_space<vmem>>, vector<3x128xf32>,
    %cst_92 = arith.constant 0.000000e+00 : f32
    %88 = vector.broadcast %cst_92 : f32 to vector<3x128xf32>
    %c20_93 = arith.constant 20 : index
    %c0_94 = arith.constant 0 : index
    %89 = vector.load %arg1[%c20_93, %c0_94] : memref<32x128xbf16, #tpu.memory_space<vmem>>, vector<3x128xbf16>
    %c0_95 = arith.constant 0 : index
    %c0_96 = arith.constant 0 : index
    %c0_97 = arith.constant 0 : index
    %90 = vector.load %arg2[%c0_95, %c0_96, %c0_97] : memref<4x128x128xbf16, #tpu.memory_space<vmem>>, vector<1x128x128xbf16>
    %91 = vector.shape_cast %90 : vector<1x128x128xbf16> to vector<128x128xbf16>
    %cst_98 = arith.constant dense<0.000000e+00> : vector<3x128xf32>
    %92 = tpu.matmul %89, %91, %cst_98 {dimension_numbers = #tpu.dot_dimension_numbers<[1], [0], [0], [1], [0, 0, 1, 1], [], []>} : vector<3x128xbf16>, vector<128x128xbf16>, vector<3x128xf32> -> vector<3x128xf32>
    %93 = arith.addf %88, %92 : vector<3x128xf32>
    %c21_99 = arith.constant 21 : index
    %c0_100 = arith.constant 0 : index
    %94 = vector.load %arg1[%c21_99, %c0_100] : memref<32x128xbf16, #tpu.memory_space<vmem>>, vector<3x128xbf16>
    %c1_101 = arith.constant 1 : index
    %c0_102 = arith.constant 0 : index
    %c0_103 = arith.constant 0 : index
    %95 = vector.load %arg2[%c1_101, %c0_102, %c0_103] : memref<4x128x128xbf16, #tpu.memory_space<vmem>>, vector<1x128x128xbf16>
    %96 = vector.shape_cast %95 : vector<1x128x128xbf16> to vector<128x128xbf16>
    %cst_104 = arith.constant dense<0.000000e+00> : vector<3x128xf32>
    %97 = tpu.matmul %94, %96, %cst_104 {dimension_numbers = #tpu.dot_dimension_numbers<[1], [0], [0], [1], [0, 0, 1, 1], [], []>} : vector<3x128xbf16>, vector<128x128xbf16>, vector<3x128xf32> -> vector<3x128xf32>
    %98 = arith.addf %93, %97 : vector<3x128xf32>
    %c24 = arith.constant 24 : index
    %c0_105 = arith.constant 0 : index
    %99 = vector.load %arg1[%c24, %c0_105] : memref<32x128xbf16, #tpu.memory_space<vmem>>, vector<3x128xbf16>
    %c2_106 = arith.constant 2 : index
    %c0_107 = arith.constant 0 : index
    %c0_108 = arith.constant 0 : index
    %100 = vector.load %arg2[%c2_106, %c0_107, %c0_108] : memref<4x128x128xbf16, #tpu.memory_space<vmem>>, vector<1x128x128xbf16>
    %101 = vector.shape_cast %100 : vector<1x128x128xbf16> to vector<128x128xbf16>
    %cst_109 = arith.constant dense<0.000000e+00> : vector<3x128xf32>
    %102 = tpu.matmul %99, %101, %cst_109 {dimension_numbers = #tpu.dot_dimension_numbers<[1], [0], [0], [1], [0, 0, 1, 1], [], []>} : vector<3x128xbf16>, vector<128x128xbf16>, vector<3x128xf32> -> vector<3x128xf32>
    %103 = arith.addf %98, %102 : vector<3x128xf32>
    %c25 = arith.constant 25 : index
    %c0_110 = arith.constant 0 : index
    %104 = vector.load %arg1[%c25, %c0_110] : memref<32x128xbf16, #tpu.memory_space<vmem>>, vector<3x128xbf16>
    %c3_111 = arith.constant 3 : index
    %c0_112 = arith.constant 0 : index
    %c0_113 = arith.constant 0 : index
    %105 = vector.load %arg2[%c3_111, %c0_112, %c0_113] : memref<4x128x128xbf16, #tpu.memory_space<vmem>>, vector<1x128x128xbf16>
    %106 = vector.shape_cast %105 : vector<1x128x128xbf16> to vector<128x128xbf16>
    %cst_114 = arith.constant dense<0.000000e+00> : vector<3x128xf32>
    %107 = tpu.matmul %104, %106, %cst_114 {dimension_numbers = #tpu.dot_dimension_numbers<[1], [0], [0], [1], [0, 0, 1, 1], [], []>} : vector<3x128xbf16>, vector<128x128xbf16>, vector<3x128xf32> -> vector<3x128xf32>
    %108 = arith.addf %103, %107 : vector<3x128xf32>
    %c12_115 = arith.constant 12 : index
    %c0_116 = arith.constant 0 : index
    %109 = vector.load %arg9[%c12_115, %c0_116] : memref<18x128xf32, #tpu.memory_space<vmem>>, vector<3x128xf32>
    tpu.vector_store %arg9[%c12_115, %c0_116], %108 {strides = array<i32>} : memref<18x128xf32, #tpu.memory_space<vmem>>, vector<3x128xf32>,
    %cst_117 = arith.constant 0.000000e+00 : f32
    %110 = vector.broadcast %cst_117 : f32 to vector<3x128xf32>
    %c24_118 = arith.constant 24 : index
    %c0_119 = arith.constant 0 : index
    %111 = vector.load %arg1[%c24_118, %c0_119] : memref<32x128xbf16, #tpu.memory_space<vmem>>, vector<3x128xbf16>
    %c0_120 = arith.constant 0 : index
    %c0_121 = arith.constant 0 : index
    %c0_122 = arith.constant 0 : index
    %112 = vector.load %arg2[%c0_120, %c0_121, %c0_122] : memref<4x128x128xbf16, #tpu.memory_space<vmem>>, vector<1x128x128xbf16>
    %113 = vector.shape_cast %112 : vector<1x128x128xbf16> to vector<128x128xbf16>
    %cst_123 = arith.constant dense<0.000000e+00> : vector<3x128xf32>
    %114 = tpu.matmul %111, %113, %cst_123 {dimension_numbers = #tpu.dot_dimension_numbers<[1], [0], [0], [1], [0, 0, 1, 1], [], []>} : vector<3x128xbf16>, vector<128x128xbf16>, vector<3x128xf32> -> vector<3x128xf32>
    %115 = arith.addf %110, %114 : vector<3x128xf32>
    %c25_124 = arith.constant 25 : index
    %c0_125 = arith.constant 0 : index
    %116 = vector.load %arg1[%c25_124, %c0_125] : memref<32x128xbf16, #tpu.memory_space<vmem>>, vector<3x128xbf16>
    %c1_126 = arith.constant 1 : index
    %c0_127 = arith.constant 0 : index
    %c0_128 = arith.constant 0 : index
    %117 = vector.load %arg2[%c1_126, %c0_127, %c0_128] : memref<4x128x128xbf16, #tpu.memory_space<vmem>>, vector<1x128x128xbf16>
    %118 = vector.shape_cast %117 : vector<1x128x128xbf16> to vector<128x128xbf16>
    %cst_129 = arith.constant dense<0.000000e+00> : vector<3x128xf32>
    %119 = tpu.matmul %116, %118, %cst_129 {dimension_numbers = #tpu.dot_dimension_numbers<[1], [0], [0], [1], [0, 0, 1, 1], [], []>} : vector<3x128xbf16>, vector<128x128xbf16>, vector<3x128xf32> -> vector<3x128xf32>
    %120 = arith.addf %115, %119 : vector<3x128xf32>
    %c28 = arith.constant 28 : index
    %c0_130 = arith.constant 0 : index
    %121 = vector.load %arg1[%c28, %c0_130] : memref<32x128xbf16, #tpu.memory_space<vmem>>, vector<3x128xbf16>
    %c2_131 = arith.constant 2 : index
    %c0_132 = arith.constant 0 : index
    %c0_133 = arith.constant 0 : index
    %122 = vector.load %arg2[%c2_131, %c0_132, %c0_133] : memref<4x128x128xbf16, #tpu.memory_space<vmem>>, vector<1x128x128xbf16>
    %123 = vector.shape_cast %122 : vector<1x128x128xbf16> to vector<128x128xbf16>
    %cst_134 = arith.constant dense<0.000000e+00> : vector<3x128xf32>
    %124 = tpu.matmul %121, %123, %cst_134 {dimension_numbers = #tpu.dot_dimension_numbers<[1], [0], [0], [1], [0, 0, 1, 1], [], []>} : vector<3x128xbf16>, vector<128x128xbf16>, vector<3x128xf32> -> vector<3x128xf32>
    %125 = arith.addf %120, %124 : vector<3x128xf32>
    %c29 = arith.constant 29 : index
    %c0_135 = arith.constant 0 : index
    %126 = vector.load %arg1[%c29, %c0_135] : memref<32x128xbf16, #tpu.memory_space<vmem>>, vector<3x128xbf16>
    %c3_136 = arith.constant 3 : index
    %c0_137 = arith.constant 0 : index
    %c0_138 = arith.constant 0 : index
    %127 = vector.load %arg2[%c3_136, %c0_137, %c0_138] : memref<4x128x128xbf16, #tpu.memory_space<vmem>>, vector<1x128x128xbf16>
    %128 = vector.shape_cast %127 : vector<1x128x128xbf16> to vector<128x128xbf16>
    %cst_139 = arith.constant dense<0.000000e+00> : vector<3x128xf32>
    %129 = tpu.matmul %126, %128, %cst_139 {dimension_numbers = #tpu.dot_dimension_numbers<[1], [0], [0], [1], [0, 0, 1, 1], [], []>} : vector<3x128xbf16>, vector<128x128xbf16>, vector<3x128xf32> -> vector<3x128xf32>
    %130 = arith.addf %125, %129 : vector<3x128xf32>
    %c15 = arith.constant 15 : index
    %c0_140 = arith.constant 0 : index
    %131 = vector.load %arg9[%c15, %c0_140] : memref<18x128xf32, #tpu.memory_space<vmem>>, vector<3x128xf32>
    tpu.vector_store %arg9[%c15, %c0_140], %130 {strides = array<i32>} : memref<18x128xf32, #tpu.memory_space<vmem>>, vector<3x128xf32>,
    %c0_141 = arith.constant 0 : index
    %c0_142 = arith.constant 0 : index
    %132 = vector.load %arg9[%c0_141, %c0_142] : memref<18x128xf32, #tpu.memory_space<vmem>>, vector<18x128xf32>
    %cst_143 = arith.constant dense<0.000000e+00> : vector<128xf32>
    %133 = vector.multi_reduction <add>, %132, %cst_143 [0] : vector<18x128xf32> to vector<128xf32>
    %134 = vector.shape_cast %133 : vector<128xf32> to vector<1x128xf32>
    %cst_144 = arith.constant 1.800000e+01 : f32
    %135 = vector.broadcast %cst_144 : f32 to vector<1x128xf32>
    %136 = arith.divf %134, %135 : vector<1x128xf32>
    %137 = vector.broadcast %136 : vector<1x128xf32> to vector<18x128xf32>
    %138 = arith.subf %132, %137 : vector<18x128xf32>
    %139 = arith.mulf %138, %138 : vector<18x128xf32>
    %cst_145 = arith.constant dense<0.000000e+00> : vector<128xf32>
    %140 = vector.multi_reduction <add>, %139, %cst_145 [0] : vector<18x128xf32> to vector<128xf32>
    %141 = vector.shape_cast %140 : vector<128xf32> to vector<1x128xf32>
    %cst_146 = arith.constant 1.800000e+01 : f32
    %142 = vector.broadcast %cst_146 : f32 to vector<1x128xf32>
    %143 = arith.divf %141, %142 : vector<1x128xf32>
    %cst_147 = arith.constant 9.99999974E-6 : f32
    %144 = vector.broadcast %cst_147 : f32 to vector<1x128xf32>
    %145 = arith.addf %143, %144 : vector<1x128xf32>
    %146 = math.rsqrt %145 : vector<1x128xf32>
    %147 = vector.broadcast %146 : vector<1x128xf32> to vector<18x128xf32>
    %148 = arith.mulf %138, %147 : vector<18x128xf32>
    %c0_148 = arith.constant 0 : index
    %c0_149 = arith.constant 0 : index
    %149 = vector.load %arg3[%c0_148, %c0_149] : memref<1x128xf32, #tpu.memory_space<vmem>>, vector<1x128xf32>
    %150 = vector.broadcast %149 : vector<1x128xf32> to vector<18x128xf32>
    %151 = arith.mulf %148, %150 : vector<18x128xf32>
    %c0_150 = arith.constant 0 : index
    %c0_151 = arith.constant 0 : index
    %152 = vector.load %arg4[%c0_150, %c0_151] : memref<1x128xf32, #tpu.memory_space<vmem>>, vector<1x128xf32>
    %153 = vector.broadcast %152 : vector<1x128xf32> to vector<18x128xf32>
    %154 = arith.addf %151, %153 : vector<18x128xf32>
    %cst_152 = arith.constant 0.000000e+00 : f32
    %155 = vector.broadcast %cst_152 : f32 to vector<18x128xf32>
    %156 = arith.cmpf ogt, %154, %155 : vector<18x128xf32>
    %cst_153 = arith.constant 2.000000e-01 : f32
    %157 = vector.broadcast %cst_153 : f32 to vector<18x128xf32>
    %158 = arith.mulf %157, %154 : vector<18x128xf32>
    %159 = arith.select %156, %154, %158 : vector<18x128xi1>, vector<18x128xf32>
    %c0_i32 = arith.constant 0 : i32
    %160 = arith.cmpi eq, %arg0, %c0_i32 : i32
    %161 = arith.extui %160 : i1 to i32
    %c0_i32_154 = arith.constant 0 : i32
    %162 = arith.cmpi ne, %161, %c0_i32_154 : i32
    scf.if %162 {
      %cst_164 = arith.constant 0.000000e+00 : f32
      %172 = vector.broadcast %cst_164 : f32 to vector<18x128xf32>
      %c0_165 = arith.constant 0 : index
      %c0_166 = arith.constant 0 : index
      %173 = vector.load %arg10[%c0_165, %c0_166] : memref<18x128xf32, #tpu.memory_space<vmem>>, vector<18x128xf32>
      tpu.vector_store %arg10[%c0_165, %c0_166], %172 {strides = array<i32>} : memref<18x128xf32, #tpu.memory_space<vmem>>, vector<18x128xf32>,
    } else {
    }
    %c0_155 = arith.constant 0 : index
    %c0_156 = arith.constant 0 : index
    %163 = vector.load %arg10[%c0_155, %c0_156] : memref<18x128xf32, #tpu.memory_space<vmem>>, vector<18x128xf32>
    %164 = arith.truncf %159 : vector<18x128xf32> to vector<18x128xbf16>
    %c0_157 = arith.constant 0 : index
    %c0_158 = arith.constant 0 : index
    %165 = vector.load %arg5[%c0_157, %c0_158] : memref<128x128xbf16, #tpu.memory_space<vmem>>, vector<128x128xbf16>
    %cst_159 = arith.constant dense<0.000000e+00> : vector<18x128xf32>
    %166 = tpu.matmul %164, %165, %cst_159 {dimension_numbers = #tpu.dot_dimension_numbers<[1], [0], [0], [1], [0, 0, 1, 1], [], []>} : vector<18x128xbf16>, vector<128x128xbf16>, vector<18x128xf32> -> vector<18x128xf32>
    %167 = arith.addf %163, %166 : vector<18x128xf32>
    %c0_160 = arith.constant 0 : index
    %c0_161 = arith.constant 0 : index
    %168 = vector.load %arg10[%c0_160, %c0_161] : memref<18x128xf32, #tpu.memory_space<vmem>>, vector<18x128xf32>
    tpu.vector_store %arg10[%c0_160, %c0_161], %167 {strides = array<i32>} : memref<18x128xf32, #tpu.memory_space<vmem>>, vector<18x128xf32>,
    %c0_i32_162 = arith.constant 0 : i32
    %169 = arith.cmpi eq, %arg0, %c0_i32_162 : i32
    %170 = arith.extui %169 : i1 to i32
    %c0_i32_163 = arith.constant 0 : i32
    %171 = arith.cmpi ne, %170, %c0_i32_163 : i32
    scf.if %171 {
      %c0_164 = arith.constant 0 : index
      %c0_165 = arith.constant 0 : index
      %172 = vector.load %arg10[%c0_164, %c0_165] : memref<18x128xf32, #tpu.memory_space<vmem>>, vector<18x128xf32>
      %cst_166 = arith.constant dense<0.000000e+00> : vector<128xf32>
      %173 = vector.multi_reduction <add>, %172, %cst_166 [0] : vector<18x128xf32> to vector<128xf32>
      %174 = vector.shape_cast %173 : vector<128xf32> to vector<1x128xf32>
      %cst_167 = arith.constant 1.800000e+01 : f32
      %175 = vector.broadcast %cst_167 : f32 to vector<1x128xf32>
      %176 = arith.divf %174, %175 : vector<1x128xf32>
      %177 = vector.broadcast %176 : vector<1x128xf32> to vector<18x128xf32>
      %178 = arith.subf %172, %177 : vector<18x128xf32>
      %179 = arith.mulf %178, %178 : vector<18x128xf32>
      %cst_168 = arith.constant dense<0.000000e+00> : vector<128xf32>
      %180 = vector.multi_reduction <add>, %179, %cst_168 [0] : vector<18x128xf32> to vector<128xf32>
      %181 = vector.shape_cast %180 : vector<128xf32> to vector<1x128xf32>
      %cst_169 = arith.constant 1.800000e+01 : f32
      %182 = vector.broadcast %cst_169 : f32 to vector<1x128xf32>
      %183 = arith.divf %181, %182 : vector<1x128xf32>
      %cst_170 = arith.constant 9.99999974E-6 : f32
      %184 = vector.broadcast %cst_170 : f32 to vector<1x128xf32>
      %185 = arith.addf %183, %184 : vector<1x128xf32>
      %186 = math.rsqrt %185 : vector<1x128xf32>
      %187 = vector.broadcast %186 : vector<1x128xf32> to vector<18x128xf32>
      %188 = arith.mulf %178, %187 : vector<18x128xf32>
      %c0_171 = arith.constant 0 : index
      %c0_172 = arith.constant 0 : index
      %189 = vector.load %arg6[%c0_171, %c0_172] : memref<1x128xf32, #tpu.memory_space<vmem>>, vector<1x128xf32>
      %190 = vector.broadcast %189 : vector<1x128xf32> to vector<18x128xf32>
      %191 = arith.mulf %188, %190 : vector<18x128xf32>
      %c0_173 = arith.constant 0 : index
      %c0_174 = arith.constant 0 : index
      %192 = vector.load %arg7[%c0_173, %c0_174] : memref<1x128xf32, #tpu.memory_space<vmem>>, vector<1x128xf32>
      %193 = vector.broadcast %192 : vector<1x128xf32> to vector<18x128xf32>
      %194 = arith.addf %191, %193 : vector<18x128xf32>
      %195 = arith.truncf %194 : vector<18x128xf32> to vector<18x128xbf16>
      %c0_175 = arith.constant 0 : index
      %c0_176 = arith.constant 0 : index
      %196 = vector.load %arg8[%c0_175, %c0_176] : memref<18x128xbf16, #tpu.memory_space<vmem>>, vector<18x128xbf16>
      tpu.vector_store %arg8[%c0_175, %c0_176], %195 {strides = array<i32>} : memref<18x128xbf16, #tpu.memory_space<vmem>>, vector<18x128xbf16>,
    } else {
    }
    return
  }
  func.func @transform_0(%arg0: i32) -> (i32, i32) {
    %c0_i32 = arith.constant 0 : i32
    %c0_i32_0 = arith.constant 0 : i32
    %c0_i32_1 = arith.constant 0 : i32
    return %c0_i32, %c0_i32_0 : i32, i32
  }
  func.func @transform_1(%arg0: i32) -> (i32, i32, i32) {
    %c0_i32 = arith.constant 0 : i32
    %c0_i32_0 = arith.constant 0 : i32
    %c0_i32_1 = arith.constant 0 : i32
    return %c0_i32, %c0_i32_0, %arg0 : i32, i32, i32
  }
  func.func @transform_2(%arg0: i32) -> (i32, i32) {
    %c0_i32 = arith.constant 0 : i32
    %c0_i32_0 = arith.constant 0 : i32
    return %c0_i32, %arg0 : i32, i32
  }
  func.func @transform_3(%arg0: i32) -> (i32, i32) {
    %c0_i32 = arith.constant 0 : i32
    %c0_i32_0 = arith.constant 0 : i32
    return %c0_i32, %arg0 : i32, i32
  }
  func.func @transform_4(%arg0: i32) -> (i32, i32) {
    %c0_i32 = arith.constant 0 : i32
    %c0_i32_0 = arith.constant 0 : i32
    return %arg0, %c0_i32 : i32, i32
  }
  func.func @transform_5(%arg0: i32) -> (i32, i32) {
    %c0_i32 = arith.constant 0 : i32
    %c0_i32_0 = arith.constant 0 : i32
    %c0_i32_1 = arith.constant 0 : i32
    return %c0_i32, %c0_i32_0 : i32, i32
  }
  func.func @transform_6(%arg0: i32) -> (i32, i32) {
    %c0_i32 = arith.constant 0 : i32
    %c0_i32_0 = arith.constant 0 : i32
    %c0_i32_1 = arith.constant 0 : i32
    return %c0_i32, %c0_i32_0 : i32, i32
  }
  func.func @transform_7(%arg0: i32) -> (i32, i32) {
    %c0_i32 = arith.constant 0 : i32
    %c0_i32_0 = arith.constant 0 : i32
    %c0_i32_1 = arith.constant 0 : i32
    return %c0_i32, %c0_i32_0 : i32, i32
  }
}

module attributes {stable_mosaic.version = 11 : i64} {
  func.func @_conv_block_kernel(%arg0: i32, %arg1: memref<288x128xbf16, #tpu.memory_space<vmem>>, %arg2: memref<9x128x128xbf16, #tpu.memory_space<vmem>>, %arg3: memref<1x128xf32, #tpu.memory_space<vmem>>, %arg4: memref<1x128xf32, #tpu.memory_space<vmem>>, %arg5: memref<128x128xbf16, #tpu.memory_space<vmem>>, %arg6: memref<1x128xf32, #tpu.memory_space<vmem>>, %arg7: memref<1x128xf32, #tpu.memory_space<vmem>>, %arg8: memref<32x128xbf16, #tpu.memory_space<vmem>>, %arg9: memref<32x128xf32, #tpu.memory_space<vmem>>, %arg10: memref<32x128xf32, #tpu.memory_space<vmem>>) attributes {dimension_semantics = [#tpu.dimension_semantics<arbitrary>], iteration_bounds = array<i64: 1>, scalar_prefetch = 0 : i64, scratch_operands = 2 : i64, tpu.core_type = #tpu.core_type<tc>, window_params = [{pipeline_mode = #tpu.pipeline_mode<synchronous>, transform_indices = @transform_0, window_bounds = array<i64: 288, 128>}, {transform_indices = @transform_1, window_bounds = array<i64: 9, 128, 128>}, {transform_indices = @transform_2, window_bounds = array<i64: 1, 128>}, {transform_indices = @transform_3, window_bounds = array<i64: 1, 128>}, {transform_indices = @transform_4, window_bounds = array<i64: 128, 128>}, {pipeline_mode = #tpu.pipeline_mode<synchronous>, transform_indices = @transform_5, window_bounds = array<i64: 1, 128>}, {pipeline_mode = #tpu.pipeline_mode<synchronous>, transform_indices = @transform_6, window_bounds = array<i64: 1, 128>}, {pipeline_mode = #tpu.pipeline_mode<synchronous>, transform_indices = @transform_7, window_bounds = array<i64: 32, 128>}]} {
    %cst = arith.constant 0.000000e+00 : f32
    %0 = vector.broadcast %cst : f32 to vector<4x128xf32>
    %c0 = arith.constant 0 : index
    %c0_0 = arith.constant 0 : index
    %1 = vector.load %arg1[%c0, %c0_0] : memref<288x128xbf16, #tpu.memory_space<vmem>>, vector<4x128xbf16>
    %c0_1 = arith.constant 0 : index
    %c0_2 = arith.constant 0 : index
    %c0_3 = arith.constant 0 : index
    %2 = vector.load %arg2[%c0_1, %c0_2, %c0_3] : memref<9x128x128xbf16, #tpu.memory_space<vmem>>, vector<1x128x128xbf16>
    %3 = vector.shape_cast %2 : vector<1x128x128xbf16> to vector<128x128xbf16>
    %cst_4 = arith.constant dense<0.000000e+00> : vector<4x128xf32>
    %4 = tpu.matmul %1, %3, %cst_4 {dimension_numbers = #tpu.dot_dimension_numbers<[1], [0], [0], [1], [0, 0, 1, 1], [], []>} : vector<4x128xbf16>, vector<128x128xbf16>, vector<4x128xf32> -> vector<4x128xf32>
    %5 = arith.addf %0, %4 : vector<4x128xf32>
    %c4 = arith.constant 4 : index
    %c0_5 = arith.constant 0 : index
    %6 = vector.load %arg1[%c4, %c0_5] : memref<288x128xbf16, #tpu.memory_space<vmem>>, vector<4x128xbf16>
    %c1 = arith.constant 1 : index
    %c0_6 = arith.constant 0 : index
    %c0_7 = arith.constant 0 : index
    %7 = vector.load %arg2[%c1, %c0_6, %c0_7] : memref<9x128x128xbf16, #tpu.memory_space<vmem>>, vector<1x128x128xbf16>
    %8 = vector.shape_cast %7 : vector<1x128x128xbf16> to vector<128x128xbf16>
    %cst_8 = arith.constant dense<0.000000e+00> : vector<4x128xf32>
    %9 = tpu.matmul %6, %8, %cst_8 {dimension_numbers = #tpu.dot_dimension_numbers<[1], [0], [0], [1], [0, 0, 1, 1], [], []>} : vector<4x128xbf16>, vector<128x128xbf16>, vector<4x128xf32> -> vector<4x128xf32>
    %10 = arith.addf %5, %9 : vector<4x128xf32>
    %c8 = arith.constant 8 : index
    %c0_9 = arith.constant 0 : index
    %11 = vector.load %arg1[%c8, %c0_9] : memref<288x128xbf16, #tpu.memory_space<vmem>>, vector<4x128xbf16>
    %c2 = arith.constant 2 : index
    %c0_10 = arith.constant 0 : index
    %c0_11 = arith.constant 0 : index
    %12 = vector.load %arg2[%c2, %c0_10, %c0_11] : memref<9x128x128xbf16, #tpu.memory_space<vmem>>, vector<1x128x128xbf16>
    %13 = vector.shape_cast %12 : vector<1x128x128xbf16> to vector<128x128xbf16>
    %cst_12 = arith.constant dense<0.000000e+00> : vector<4x128xf32>
    %14 = tpu.matmul %11, %13, %cst_12 {dimension_numbers = #tpu.dot_dimension_numbers<[1], [0], [0], [1], [0, 0, 1, 1], [], []>} : vector<4x128xbf16>, vector<128x128xbf16>, vector<4x128xf32> -> vector<4x128xf32>
    %15 = arith.addf %10, %14 : vector<4x128xf32>
    %c48 = arith.constant 48 : index
    %c0_13 = arith.constant 0 : index
    %16 = vector.load %arg1[%c48, %c0_13] : memref<288x128xbf16, #tpu.memory_space<vmem>>, vector<4x128xbf16>
    %c3 = arith.constant 3 : index
    %c0_14 = arith.constant 0 : index
    %c0_15 = arith.constant 0 : index
    %17 = vector.load %arg2[%c3, %c0_14, %c0_15] : memref<9x128x128xbf16, #tpu.memory_space<vmem>>, vector<1x128x128xbf16>
    %18 = vector.shape_cast %17 : vector<1x128x128xbf16> to vector<128x128xbf16>
    %cst_16 = arith.constant dense<0.000000e+00> : vector<4x128xf32>
    %19 = tpu.matmul %16, %18, %cst_16 {dimension_numbers = #tpu.dot_dimension_numbers<[1], [0], [0], [1], [0, 0, 1, 1], [], []>} : vector<4x128xbf16>, vector<128x128xbf16>, vector<4x128xf32> -> vector<4x128xf32>
    %20 = arith.addf %15, %19 : vector<4x128xf32>
    %c52 = arith.constant 52 : index
    %c0_17 = arith.constant 0 : index
    %21 = vector.load %arg1[%c52, %c0_17] : memref<288x128xbf16, #tpu.memory_space<vmem>>, vector<4x128xbf16>
    %c4_18 = arith.constant 4 : index
    %c0_19 = arith.constant 0 : index
    %c0_20 = arith.constant 0 : index
    %22 = vector.load %arg2[%c4_18, %c0_19, %c0_20] : memref<9x128x128xbf16, #tpu.memory_space<vmem>>, vector<1x128x128xbf16>
    %23 = vector.shape_cast %22 : vector<1x128x128xbf16> to vector<128x128xbf16>
    %cst_21 = arith.constant dense<0.000000e+00> : vector<4x128xf32>
    %24 = tpu.matmul %21, %23, %cst_21 {dimension_numbers = #tpu.dot_dimension_numbers<[1], [0], [0], [1], [0, 0, 1, 1], [], []>} : vector<4x128xbf16>, vector<128x128xbf16>, vector<4x128xf32> -> vector<4x128xf32>
    %25 = arith.addf %20, %24 : vector<4x128xf32>
    %c56 = arith.constant 56 : index
    %c0_22 = arith.constant 0 : index
    %26 = vector.load %arg1[%c56, %c0_22] : memref<288x128xbf16, #tpu.memory_space<vmem>>, vector<4x128xbf16>
    %c5 = arith.constant 5 : index
    %c0_23 = arith.constant 0 : index
    %c0_24 = arith.constant 0 : index
    %27 = vector.load %arg2[%c5, %c0_23, %c0_24] : memref<9x128x128xbf16, #tpu.memory_space<vmem>>, vector<1x128x128xbf16>
    %28 = vector.shape_cast %27 : vector<1x128x128xbf16> to vector<128x128xbf16>
    %cst_25 = arith.constant dense<0.000000e+00> : vector<4x128xf32>
    %29 = tpu.matmul %26, %28, %cst_25 {dimension_numbers = #tpu.dot_dimension_numbers<[1], [0], [0], [1], [0, 0, 1, 1], [], []>} : vector<4x128xbf16>, vector<128x128xbf16>, vector<4x128xf32> -> vector<4x128xf32>
    %30 = arith.addf %25, %29 : vector<4x128xf32>
    %c96 = arith.constant 96 : index
    %c0_26 = arith.constant 0 : index
    %31 = vector.load %arg1[%c96, %c0_26] : memref<288x128xbf16, #tpu.memory_space<vmem>>, vector<4x128xbf16>
    %c6 = arith.constant 6 : index
    %c0_27 = arith.constant 0 : index
    %c0_28 = arith.constant 0 : index
    %32 = vector.load %arg2[%c6, %c0_27, %c0_28] : memref<9x128x128xbf16, #tpu.memory_space<vmem>>, vector<1x128x128xbf16>
    %33 = vector.shape_cast %32 : vector<1x128x128xbf16> to vector<128x128xbf16>
    %cst_29 = arith.constant dense<0.000000e+00> : vector<4x128xf32>
    %34 = tpu.matmul %31, %33, %cst_29 {dimension_numbers = #tpu.dot_dimension_numbers<[1], [0], [0], [1], [0, 0, 1, 1], [], []>} : vector<4x128xbf16>, vector<128x128xbf16>, vector<4x128xf32> -> vector<4x128xf32>
    %35 = arith.addf %30, %34 : vector<4x128xf32>
    %c100 = arith.constant 100 : index
    %c0_30 = arith.constant 0 : index
    %36 = vector.load %arg1[%c100, %c0_30] : memref<288x128xbf16, #tpu.memory_space<vmem>>, vector<4x128xbf16>
    %c7 = arith.constant 7 : index
    %c0_31 = arith.constant 0 : index
    %c0_32 = arith.constant 0 : index
    %37 = vector.load %arg2[%c7, %c0_31, %c0_32] : memref<9x128x128xbf16, #tpu.memory_space<vmem>>, vector<1x128x128xbf16>
    %38 = vector.shape_cast %37 : vector<1x128x128xbf16> to vector<128x128xbf16>
    %cst_33 = arith.constant dense<0.000000e+00> : vector<4x128xf32>
    %39 = tpu.matmul %36, %38, %cst_33 {dimension_numbers = #tpu.dot_dimension_numbers<[1], [0], [0], [1], [0, 0, 1, 1], [], []>} : vector<4x128xbf16>, vector<128x128xbf16>, vector<4x128xf32> -> vector<4x128xf32>
    %40 = arith.addf %35, %39 : vector<4x128xf32>
    %c104 = arith.constant 104 : index
    %c0_34 = arith.constant 0 : index
    %41 = vector.load %arg1[%c104, %c0_34] : memref<288x128xbf16, #tpu.memory_space<vmem>>, vector<4x128xbf16>
    %c8_35 = arith.constant 8 : index
    %c0_36 = arith.constant 0 : index
    %c0_37 = arith.constant 0 : index
    %42 = vector.load %arg2[%c8_35, %c0_36, %c0_37] : memref<9x128x128xbf16, #tpu.memory_space<vmem>>, vector<1x128x128xbf16>
    %43 = vector.shape_cast %42 : vector<1x128x128xbf16> to vector<128x128xbf16>
    %cst_38 = arith.constant dense<0.000000e+00> : vector<4x128xf32>
    %44 = tpu.matmul %41, %43, %cst_38 {dimension_numbers = #tpu.dot_dimension_numbers<[1], [0], [0], [1], [0, 0, 1, 1], [], []>} : vector<4x128xbf16>, vector<128x128xbf16>, vector<4x128xf32> -> vector<4x128xf32>
    %45 = arith.addf %40, %44 : vector<4x128xf32>
    %c0_39 = arith.constant 0 : index
    %c0_40 = arith.constant 0 : index
    %46 = vector.load %arg9[%c0_39, %c0_40] : memref<32x128xf32, #tpu.memory_space<vmem>>, vector<4x128xf32>
    tpu.vector_store %arg9[%c0_39, %c0_40], %45 {strides = array<i32>} : memref<32x128xf32, #tpu.memory_space<vmem>>, vector<4x128xf32>,
    %cst_41 = arith.constant 0.000000e+00 : f32
    %47 = vector.broadcast %cst_41 : f32 to vector<4x128xf32>
    %c12 = arith.constant 12 : index
    %c0_42 = arith.constant 0 : index
    %48 = vector.load %arg1[%c12, %c0_42] : memref<288x128xbf16, #tpu.memory_space<vmem>>, vector<4x128xbf16>
    %c0_43 = arith.constant 0 : index
    %c0_44 = arith.constant 0 : index
    %c0_45 = arith.constant 0 : index
    %49 = vector.load %arg2[%c0_43, %c0_44, %c0_45] : memref<9x128x128xbf16, #tpu.memory_space<vmem>>, vector<1x128x128xbf16>
    %50 = vector.shape_cast %49 : vector<1x128x128xbf16> to vector<128x128xbf16>
    %cst_46 = arith.constant dense<0.000000e+00> : vector<4x128xf32>
    %51 = tpu.matmul %48, %50, %cst_46 {dimension_numbers = #tpu.dot_dimension_numbers<[1], [0], [0], [1], [0, 0, 1, 1], [], []>} : vector<4x128xbf16>, vector<128x128xbf16>, vector<4x128xf32> -> vector<4x128xf32>
    %52 = arith.addf %47, %51 : vector<4x128xf32>
    %c16 = arith.constant 16 : index
    %c0_47 = arith.constant 0 : index
    %53 = vector.load %arg1[%c16, %c0_47] : memref<288x128xbf16, #tpu.memory_space<vmem>>, vector<4x128xbf16>
    %c1_48 = arith.constant 1 : index
    %c0_49 = arith.constant 0 : index
    %c0_50 = arith.constant 0 : index
    %54 = vector.load %arg2[%c1_48, %c0_49, %c0_50] : memref<9x128x128xbf16, #tpu.memory_space<vmem>>, vector<1x128x128xbf16>
    %55 = vector.shape_cast %54 : vector<1x128x128xbf16> to vector<128x128xbf16>
    %cst_51 = arith.constant dense<0.000000e+00> : vector<4x128xf32>
    %56 = tpu.matmul %53, %55, %cst_51 {dimension_numbers = #tpu.dot_dimension_numbers<[1], [0], [0], [1], [0, 0, 1, 1], [], []>} : vector<4x128xbf16>, vector<128x128xbf16>, vector<4x128xf32> -> vector<4x128xf32>
    %57 = arith.addf %52, %56 : vector<4x128xf32>
    %c20 = arith.constant 20 : index
    %c0_52 = arith.constant 0 : index
    %58 = vector.load %arg1[%c20, %c0_52] : memref<288x128xbf16, #tpu.memory_space<vmem>>, vector<4x128xbf16>
    %c2_53 = arith.constant 2 : index
    %c0_54 = arith.constant 0 : index
    %c0_55 = arith.constant 0 : index
    %59 = vector.load %arg2[%c2_53, %c0_54, %c0_55] : memref<9x128x128xbf16, #tpu.memory_space<vmem>>, vector<1x128x128xbf16>
    %60 = vector.shape_cast %59 : vector<1x128x128xbf16> to vector<128x128xbf16>
    %cst_56 = arith.constant dense<0.000000e+00> : vector<4x128xf32>
    %61 = tpu.matmul %58, %60, %cst_56 {dimension_numbers = #tpu.dot_dimension_numbers<[1], [0], [0], [1], [0, 0, 1, 1], [], []>} : vector<4x128xbf16>, vector<128x128xbf16>, vector<4x128xf32> -> vector<4x128xf32>
    %62 = arith.addf %57, %61 : vector<4x128xf32>
    %c60 = arith.constant 60 : index
    %c0_57 = arith.constant 0 : index
    %63 = vector.load %arg1[%c60, %c0_57] : memref<288x128xbf16, #tpu.memory_space<vmem>>, vector<4x128xbf16>
    %c3_58 = arith.constant 3 : index
    %c0_59 = arith.constant 0 : index
    %c0_60 = arith.constant 0 : index
    %64 = vector.load %arg2[%c3_58, %c0_59, %c0_60] : memref<9x128x128xbf16, #tpu.memory_space<vmem>>, vector<1x128x128xbf16>
    %65 = vector.shape_cast %64 : vector<1x128x128xbf16> to vector<128x128xbf16>
    %cst_61 = arith.constant dense<0.000000e+00> : vector<4x128xf32>
    %66 = tpu.matmul %63, %65, %cst_61 {dimension_numbers = #tpu.dot_dimension_numbers<[1], [0], [0], [1], [0, 0, 1, 1], [], []>} : vector<4x128xbf16>, vector<128x128xbf16>, vector<4x128xf32> -> vector<4x128xf32>
    %67 = arith.addf %62, %66 : vector<4x128xf32>
    %c64 = arith.constant 64 : index
    %c0_62 = arith.constant 0 : index
    %68 = vector.load %arg1[%c64, %c0_62] : memref<288x128xbf16, #tpu.memory_space<vmem>>, vector<4x128xbf16>
    %c4_63 = arith.constant 4 : index
    %c0_64 = arith.constant 0 : index
    %c0_65 = arith.constant 0 : index
    %69 = vector.load %arg2[%c4_63, %c0_64, %c0_65] : memref<9x128x128xbf16, #tpu.memory_space<vmem>>, vector<1x128x128xbf16>
    %70 = vector.shape_cast %69 : vector<1x128x128xbf16> to vector<128x128xbf16>
    %cst_66 = arith.constant dense<0.000000e+00> : vector<4x128xf32>
    %71 = tpu.matmul %68, %70, %cst_66 {dimension_numbers = #tpu.dot_dimension_numbers<[1], [0], [0], [1], [0, 0, 1, 1], [], []>} : vector<4x128xbf16>, vector<128x128xbf16>, vector<4x128xf32> -> vector<4x128xf32>
    %72 = arith.addf %67, %71 : vector<4x128xf32>
    %c68 = arith.constant 68 : index
    %c0_67 = arith.constant 0 : index
    %73 = vector.load %arg1[%c68, %c0_67] : memref<288x128xbf16, #tpu.memory_space<vmem>>, vector<4x128xbf16>
    %c5_68 = arith.constant 5 : index
    %c0_69 = arith.constant 0 : index
    %c0_70 = arith.constant 0 : index
    %74 = vector.load %arg2[%c5_68, %c0_69, %c0_70] : memref<9x128x128xbf16, #tpu.memory_space<vmem>>, vector<1x128x128xbf16>
    %75 = vector.shape_cast %74 : vector<1x128x128xbf16> to vector<128x128xbf16>
    %cst_71 = arith.constant dense<0.000000e+00> : vector<4x128xf32>
    %76 = tpu.matmul %73, %75, %cst_71 {dimension_numbers = #tpu.dot_dimension_numbers<[1], [0], [0], [1], [0, 0, 1, 1], [], []>} : vector<4x128xbf16>, vector<128x128xbf16>, vector<4x128xf32> -> vector<4x128xf32>
    %77 = arith.addf %72, %76 : vector<4x128xf32>
    %c108 = arith.constant 108 : index
    %c0_72 = arith.constant 0 : index
    %78 = vector.load %arg1[%c108, %c0_72] : memref<288x128xbf16, #tpu.memory_space<vmem>>, vector<4x128xbf16>
    %c6_73 = arith.constant 6 : index
    %c0_74 = arith.constant 0 : index
    %c0_75 = arith.constant 0 : index
    %79 = vector.load %arg2[%c6_73, %c0_74, %c0_75] : memref<9x128x128xbf16, #tpu.memory_space<vmem>>, vector<1x128x128xbf16>
    %80 = vector.shape_cast %79 : vector<1x128x128xbf16> to vector<128x128xbf16>
    %cst_76 = arith.constant dense<0.000000e+00> : vector<4x128xf32>
    %81 = tpu.matmul %78, %80, %cst_76 {dimension_numbers = #tpu.dot_dimension_numbers<[1], [0], [0], [1], [0, 0, 1, 1], [], []>} : vector<4x128xbf16>, vector<128x128xbf16>, vector<4x128xf32> -> vector<4x128xf32>
    %82 = arith.addf %77, %81 : vector<4x128xf32>
    %c112 = arith.constant 112 : index
    %c0_77 = arith.constant 0 : index
    %83 = vector.load %arg1[%c112, %c0_77] : memref<288x128xbf16, #tpu.memory_space<vmem>>, vector<4x128xbf16>
    %c7_78 = arith.constant 7 : index
    %c0_79 = arith.constant 0 : index
    %c0_80 = arith.constant 0 : index
    %84 = vector.load %arg2[%c7_78, %c0_79, %c0_80] : memref<9x128x128xbf16, #tpu.memory_space<vmem>>, vector<1x128x128xbf16>
    %85 = vector.shape_cast %84 : vector<1x128x128xbf16> to vector<128x128xbf16>
    %cst_81 = arith.constant dense<0.000000e+00> : vector<4x128xf32>
    %86 = tpu.matmul %83, %85, %cst_81 {dimension_numbers = #tpu.dot_dimension_numbers<[1], [0], [0], [1], [0, 0, 1, 1], [], []>} : vector<4x128xbf16>, vector<128x128xbf16>, vector<4x128xf32> -> vector<4x128xf32>
    %87 = arith.addf %82, %86 : vector<4x128xf32>
    %c116 = arith.constant 116 : index
    %c0_82 = arith.constant 0 : index
    %88 = vector.load %arg1[%c116, %c0_82] : memref<288x128xbf16, #tpu.memory_space<vmem>>, vector<4x128xbf16>
    %c8_83 = arith.constant 8 : index
    %c0_84 = arith.constant 0 : index
    %c0_85 = arith.constant 0 : index
    %89 = vector.load %arg2[%c8_83, %c0_84, %c0_85] : memref<9x128x128xbf16, #tpu.memory_space<vmem>>, vector<1x128x128xbf16>
    %90 = vector.shape_cast %89 : vector<1x128x128xbf16> to vector<128x128xbf16>
    %cst_86 = arith.constant dense<0.000000e+00> : vector<4x128xf32>
    %91 = tpu.matmul %88, %90, %cst_86 {dimension_numbers = #tpu.dot_dimension_numbers<[1], [0], [0], [1], [0, 0, 1, 1], [], []>} : vector<4x128xbf16>, vector<128x128xbf16>, vector<4x128xf32> -> vector<4x128xf32>
    %92 = arith.addf %87, %91 : vector<4x128xf32>
    %c4_87 = arith.constant 4 : index
    %c0_88 = arith.constant 0 : index
    %93 = vector.load %arg9[%c4_87, %c0_88] : memref<32x128xf32, #tpu.memory_space<vmem>>, vector<4x128xf32>
    tpu.vector_store %arg9[%c4_87, %c0_88], %92 {strides = array<i32>} : memref<32x128xf32, #tpu.memory_space<vmem>>, vector<4x128xf32>,
    %cst_89 = arith.constant 0.000000e+00 : f32
    %94 = vector.broadcast %cst_89 : f32 to vector<4x128xf32>
    %c24 = arith.constant 24 : index
    %c0_90 = arith.constant 0 : index
    %95 = vector.load %arg1[%c24, %c0_90] : memref<288x128xbf16, #tpu.memory_space<vmem>>, vector<4x128xbf16>
    %c0_91 = arith.constant 0 : index
    %c0_92 = arith.constant 0 : index
    %c0_93 = arith.constant 0 : index
    %96 = vector.load %arg2[%c0_91, %c0_92, %c0_93] : memref<9x128x128xbf16, #tpu.memory_space<vmem>>, vector<1x128x128xbf16>
    %97 = vector.shape_cast %96 : vector<1x128x128xbf16> to vector<128x128xbf16>
    %cst_94 = arith.constant dense<0.000000e+00> : vector<4x128xf32>
    %98 = tpu.matmul %95, %97, %cst_94 {dimension_numbers = #tpu.dot_dimension_numbers<[1], [0], [0], [1], [0, 0, 1, 1], [], []>} : vector<4x128xbf16>, vector<128x128xbf16>, vector<4x128xf32> -> vector<4x128xf32>
    %99 = arith.addf %94, %98 : vector<4x128xf32>
    %c28 = arith.constant 28 : index
    %c0_95 = arith.constant 0 : index
    %100 = vector.load %arg1[%c28, %c0_95] : memref<288x128xbf16, #tpu.memory_space<vmem>>, vector<4x128xbf16>
    %c1_96 = arith.constant 1 : index
    %c0_97 = arith.constant 0 : index
    %c0_98 = arith.constant 0 : index
    %101 = vector.load %arg2[%c1_96, %c0_97, %c0_98] : memref<9x128x128xbf16, #tpu.memory_space<vmem>>, vector<1x128x128xbf16>
    %102 = vector.shape_cast %101 : vector<1x128x128xbf16> to vector<128x128xbf16>
    %cst_99 = arith.constant dense<0.000000e+00> : vector<4x128xf32>
    %103 = tpu.matmul %100, %102, %cst_99 {dimension_numbers = #tpu.dot_dimension_numbers<[1], [0], [0], [1], [0, 0, 1, 1], [], []>} : vector<4x128xbf16>, vector<128x128xbf16>, vector<4x128xf32> -> vector<4x128xf32>
    %104 = arith.addf %99, %103 : vector<4x128xf32>
    %c32 = arith.constant 32 : index
    %c0_100 = arith.constant 0 : index
    %105 = vector.load %arg1[%c32, %c0_100] : memref<288x128xbf16, #tpu.memory_space<vmem>>, vector<4x128xbf16>
    %c2_101 = arith.constant 2 : index
    %c0_102 = arith.constant 0 : index
    %c0_103 = arith.constant 0 : index
    %106 = vector.load %arg2[%c2_101, %c0_102, %c0_103] : memref<9x128x128xbf16, #tpu.memory_space<vmem>>, vector<1x128x128xbf16>
    %107 = vector.shape_cast %106 : vector<1x128x128xbf16> to vector<128x128xbf16>
    %cst_104 = arith.constant dense<0.000000e+00> : vector<4x128xf32>
    %108 = tpu.matmul %105, %107, %cst_104 {dimension_numbers = #tpu.dot_dimension_numbers<[1], [0], [0], [1], [0, 0, 1, 1], [], []>} : vector<4x128xbf16>, vector<128x128xbf16>, vector<4x128xf32> -> vector<4x128xf32>
    %109 = arith.addf %104, %108 : vector<4x128xf32>
    %c72 = arith.constant 72 : index
    %c0_105 = arith.constant 0 : index
    %110 = vector.load %arg1[%c72, %c0_105] : memref<288x128xbf16, #tpu.memory_space<vmem>>, vector<4x128xbf16>
    %c3_106 = arith.constant 3 : index
    %c0_107 = arith.constant 0 : index
    %c0_108 = arith.constant 0 : index
    %111 = vector.load %arg2[%c3_106, %c0_107, %c0_108] : memref<9x128x128xbf16, #tpu.memory_space<vmem>>, vector<1x128x128xbf16>
    %112 = vector.shape_cast %111 : vector<1x128x128xbf16> to vector<128x128xbf16>
    %cst_109 = arith.constant dense<0.000000e+00> : vector<4x128xf32>
    %113 = tpu.matmul %110, %112, %cst_109 {dimension_numbers = #tpu.dot_dimension_numbers<[1], [0], [0], [1], [0, 0, 1, 1], [], []>} : vector<4x128xbf16>, vector<128x128xbf16>, vector<4x128xf32> -> vector<4x128xf32>
    %114 = arith.addf %109, %113 : vector<4x128xf32>
    %c76 = arith.constant 76 : index
    %c0_110 = arith.constant 0 : index
    %115 = vector.load %arg1[%c76, %c0_110] : memref<288x128xbf16, #tpu.memory_space<vmem>>, vector<4x128xbf16>
    %c4_111 = arith.constant 4 : index
    %c0_112 = arith.constant 0 : index
    %c0_113 = arith.constant 0 : index
    %116 = vector.load %arg2[%c4_111, %c0_112, %c0_113] : memref<9x128x128xbf16, #tpu.memory_space<vmem>>, vector<1x128x128xbf16>
    %117 = vector.shape_cast %116 : vector<1x128x128xbf16> to vector<128x128xbf16>
    %cst_114 = arith.constant dense<0.000000e+00> : vector<4x128xf32>
    %118 = tpu.matmul %115, %117, %cst_114 {dimension_numbers = #tpu.dot_dimension_numbers<[1], [0], [0], [1], [0, 0, 1, 1], [], []>} : vector<4x128xbf16>, vector<128x128xbf16>, vector<4x128xf32> -> vector<4x128xf32>
    %119 = arith.addf %114, %118 : vector<4x128xf32>
    %c80 = arith.constant 80 : index
    %c0_115 = arith.constant 0 : index
    %120 = vector.load %arg1[%c80, %c0_115] : memref<288x128xbf16, #tpu.memory_space<vmem>>, vector<4x128xbf16>
    %c5_116 = arith.constant 5 : index
    %c0_117 = arith.constant 0 : index
    %c0_118 = arith.constant 0 : index
    %121 = vector.load %arg2[%c5_116, %c0_117, %c0_118] : memref<9x128x128xbf16, #tpu.memory_space<vmem>>, vector<1x128x128xbf16>
    %122 = vector.shape_cast %121 : vector<1x128x128xbf16> to vector<128x128xbf16>
    %cst_119 = arith.constant dense<0.000000e+00> : vector<4x128xf32>
    %123 = tpu.matmul %120, %122, %cst_119 {dimension_numbers = #tpu.dot_dimension_numbers<[1], [0], [0], [1], [0, 0, 1, 1], [], []>} : vector<4x128xbf16>, vector<128x128xbf16>, vector<4x128xf32> -> vector<4x128xf32>
    %124 = arith.addf %119, %123 : vector<4x128xf32>
    %c120 = arith.constant 120 : index
    %c0_120 = arith.constant 0 : index
    %125 = vector.load %arg1[%c120, %c0_120] : memref<288x128xbf16, #tpu.memory_space<vmem>>, vector<4x128xbf16>
    %c6_121 = arith.constant 6 : index
    %c0_122 = arith.constant 0 : index
    %c0_123 = arith.constant 0 : index
    %126 = vector.load %arg2[%c6_121, %c0_122, %c0_123] : memref<9x128x128xbf16, #tpu.memory_space<vmem>>, vector<1x128x128xbf16>
    %127 = vector.shape_cast %126 : vector<1x128x128xbf16> to vector<128x128xbf16>
    %cst_124 = arith.constant dense<0.000000e+00> : vector<4x128xf32>
    %128 = tpu.matmul %125, %127, %cst_124 {dimension_numbers = #tpu.dot_dimension_numbers<[1], [0], [0], [1], [0, 0, 1, 1], [], []>} : vector<4x128xbf16>, vector<128x128xbf16>, vector<4x128xf32> -> vector<4x128xf32>
    %129 = arith.addf %124, %128 : vector<4x128xf32>
    %c124 = arith.constant 124 : index
    %c0_125 = arith.constant 0 : index
    %130 = vector.load %arg1[%c124, %c0_125] : memref<288x128xbf16, #tpu.memory_space<vmem>>, vector<4x128xbf16>
    %c7_126 = arith.constant 7 : index
    %c0_127 = arith.constant 0 : index
    %c0_128 = arith.constant 0 : index
    %131 = vector.load %arg2[%c7_126, %c0_127, %c0_128] : memref<9x128x128xbf16, #tpu.memory_space<vmem>>, vector<1x128x128xbf16>
    %132 = vector.shape_cast %131 : vector<1x128x128xbf16> to vector<128x128xbf16>
    %cst_129 = arith.constant dense<0.000000e+00> : vector<4x128xf32>
    %133 = tpu.matmul %130, %132, %cst_129 {dimension_numbers = #tpu.dot_dimension_numbers<[1], [0], [0], [1], [0, 0, 1, 1], [], []>} : vector<4x128xbf16>, vector<128x128xbf16>, vector<4x128xf32> -> vector<4x128xf32>
    %134 = arith.addf %129, %133 : vector<4x128xf32>
    %c128 = arith.constant 128 : index
    %c0_130 = arith.constant 0 : index
    %135 = vector.load %arg1[%c128, %c0_130] : memref<288x128xbf16, #tpu.memory_space<vmem>>, vector<4x128xbf16>
    %c8_131 = arith.constant 8 : index
    %c0_132 = arith.constant 0 : index
    %c0_133 = arith.constant 0 : index
    %136 = vector.load %arg2[%c8_131, %c0_132, %c0_133] : memref<9x128x128xbf16, #tpu.memory_space<vmem>>, vector<1x128x128xbf16>
    %137 = vector.shape_cast %136 : vector<1x128x128xbf16> to vector<128x128xbf16>
    %cst_134 = arith.constant dense<0.000000e+00> : vector<4x128xf32>
    %138 = tpu.matmul %135, %137, %cst_134 {dimension_numbers = #tpu.dot_dimension_numbers<[1], [0], [0], [1], [0, 0, 1, 1], [], []>} : vector<4x128xbf16>, vector<128x128xbf16>, vector<4x128xf32> -> vector<4x128xf32>
    %139 = arith.addf %134, %138 : vector<4x128xf32>
    %c8_135 = arith.constant 8 : index
    %c0_136 = arith.constant 0 : index
    %140 = vector.load %arg9[%c8_135, %c0_136] : memref<32x128xf32, #tpu.memory_space<vmem>>, vector<4x128xf32>
    tpu.vector_store %arg9[%c8_135, %c0_136], %139 {strides = array<i32>} : memref<32x128xf32, #tpu.memory_space<vmem>>, vector<4x128xf32>,
    %cst_137 = arith.constant 0.000000e+00 : f32
    %141 = vector.broadcast %cst_137 : f32 to vector<4x128xf32>
    %c36 = arith.constant 36 : index
    %c0_138 = arith.constant 0 : index
    %142 = vector.load %arg1[%c36, %c0_138] : memref<288x128xbf16, #tpu.memory_space<vmem>>, vector<4x128xbf16>
    %c0_139 = arith.constant 0 : index
    %c0_140 = arith.constant 0 : index
    %c0_141 = arith.constant 0 : index
    %143 = vector.load %arg2[%c0_139, %c0_140, %c0_141] : memref<9x128x128xbf16, #tpu.memory_space<vmem>>, vector<1x128x128xbf16>
    %144 = vector.shape_cast %143 : vector<1x128x128xbf16> to vector<128x128xbf16>
    %cst_142 = arith.constant dense<0.000000e+00> : vector<4x128xf32>
    %145 = tpu.matmul %142, %144, %cst_142 {dimension_numbers = #tpu.dot_dimension_numbers<[1], [0], [0], [1], [0, 0, 1, 1], [], []>} : vector<4x128xbf16>, vector<128x128xbf16>, vector<4x128xf32> -> vector<4x128xf32>
    %146 = arith.addf %141, %145 : vector<4x128xf32>
    %c40 = arith.constant 40 : index
    %c0_143 = arith.constant 0 : index
    %147 = vector.load %arg1[%c40, %c0_143] : memref<288x128xbf16, #tpu.memory_space<vmem>>, vector<4x128xbf16>
    %c1_144 = arith.constant 1 : index
    %c0_145 = arith.constant 0 : index
    %c0_146 = arith.constant 0 : index
    %148 = vector.load %arg2[%c1_144, %c0_145, %c0_146] : memref<9x128x128xbf16, #tpu.memory_space<vmem>>, vector<1x128x128xbf16>
    %149 = vector.shape_cast %148 : vector<1x128x128xbf16> to vector<128x128xbf16>
    %cst_147 = arith.constant dense<0.000000e+00> : vector<4x128xf32>
    %150 = tpu.matmul %147, %149, %cst_147 {dimension_numbers = #tpu.dot_dimension_numbers<[1], [0], [0], [1], [0, 0, 1, 1], [], []>} : vector<4x128xbf16>, vector<128x128xbf16>, vector<4x128xf32> -> vector<4x128xf32>
    %151 = arith.addf %146, %150 : vector<4x128xf32>
    %c44 = arith.constant 44 : index
    %c0_148 = arith.constant 0 : index
    %152 = vector.load %arg1[%c44, %c0_148] : memref<288x128xbf16, #tpu.memory_space<vmem>>, vector<4x128xbf16>
    %c2_149 = arith.constant 2 : index
    %c0_150 = arith.constant 0 : index
    %c0_151 = arith.constant 0 : index
    %153 = vector.load %arg2[%c2_149, %c0_150, %c0_151] : memref<9x128x128xbf16, #tpu.memory_space<vmem>>, vector<1x128x128xbf16>
    %154 = vector.shape_cast %153 : vector<1x128x128xbf16> to vector<128x128xbf16>
    %cst_152 = arith.constant dense<0.000000e+00> : vector<4x128xf32>
    %155 = tpu.matmul %152, %154, %cst_152 {dimension_numbers = #tpu.dot_dimension_numbers<[1], [0], [0], [1], [0, 0, 1, 1], [], []>} : vector<4x128xbf16>, vector<128x128xbf16>, vector<4x128xf32> -> vector<4x128xf32>
    %156 = arith.addf %151, %155 : vector<4x128xf32>
    %c84 = arith.constant 84 : index
    %c0_153 = arith.constant 0 : index
    %157 = vector.load %arg1[%c84, %c0_153] : memref<288x128xbf16, #tpu.memory_space<vmem>>, vector<4x128xbf16>
    %c3_154 = arith.constant 3 : index
    %c0_155 = arith.constant 0 : index
    %c0_156 = arith.constant 0 : index
    %158 = vector.load %arg2[%c3_154, %c0_155, %c0_156] : memref<9x128x128xbf16, #tpu.memory_space<vmem>>, vector<1x128x128xbf16>
    %159 = vector.shape_cast %158 : vector<1x128x128xbf16> to vector<128x128xbf16>
    %cst_157 = arith.constant dense<0.000000e+00> : vector<4x128xf32>
    %160 = tpu.matmul %157, %159, %cst_157 {dimension_numbers = #tpu.dot_dimension_numbers<[1], [0], [0], [1], [0, 0, 1, 1], [], []>} : vector<4x128xbf16>, vector<128x128xbf16>, vector<4x128xf32> -> vector<4x128xf32>
    %161 = arith.addf %156, %160 : vector<4x128xf32>
    %c88 = arith.constant 88 : index
    %c0_158 = arith.constant 0 : index
    %162 = vector.load %arg1[%c88, %c0_158] : memref<288x128xbf16, #tpu.memory_space<vmem>>, vector<4x128xbf16>
    %c4_159 = arith.constant 4 : index
    %c0_160 = arith.constant 0 : index
    %c0_161 = arith.constant 0 : index
    %163 = vector.load %arg2[%c4_159, %c0_160, %c0_161] : memref<9x128x128xbf16, #tpu.memory_space<vmem>>, vector<1x128x128xbf16>
    %164 = vector.shape_cast %163 : vector<1x128x128xbf16> to vector<128x128xbf16>
    %cst_162 = arith.constant dense<0.000000e+00> : vector<4x128xf32>
    %165 = tpu.matmul %162, %164, %cst_162 {dimension_numbers = #tpu.dot_dimension_numbers<[1], [0], [0], [1], [0, 0, 1, 1], [], []>} : vector<4x128xbf16>, vector<128x128xbf16>, vector<4x128xf32> -> vector<4x128xf32>
    %166 = arith.addf %161, %165 : vector<4x128xf32>
    %c92 = arith.constant 92 : index
    %c0_163 = arith.constant 0 : index
    %167 = vector.load %arg1[%c92, %c0_163] : memref<288x128xbf16, #tpu.memory_space<vmem>>, vector<4x128xbf16>
    %c5_164 = arith.constant 5 : index
    %c0_165 = arith.constant 0 : index
    %c0_166 = arith.constant 0 : index
    %168 = vector.load %arg2[%c5_164, %c0_165, %c0_166] : memref<9x128x128xbf16, #tpu.memory_space<vmem>>, vector<1x128x128xbf16>
    %169 = vector.shape_cast %168 : vector<1x128x128xbf16> to vector<128x128xbf16>
    %cst_167 = arith.constant dense<0.000000e+00> : vector<4x128xf32>
    %170 = tpu.matmul %167, %169, %cst_167 {dimension_numbers = #tpu.dot_dimension_numbers<[1], [0], [0], [1], [0, 0, 1, 1], [], []>} : vector<4x128xbf16>, vector<128x128xbf16>, vector<4x128xf32> -> vector<4x128xf32>
    %171 = arith.addf %166, %170 : vector<4x128xf32>
    %c132 = arith.constant 132 : index
    %c0_168 = arith.constant 0 : index
    %172 = vector.load %arg1[%c132, %c0_168] : memref<288x128xbf16, #tpu.memory_space<vmem>>, vector<4x128xbf16>
    %c6_169 = arith.constant 6 : index
    %c0_170 = arith.constant 0 : index
    %c0_171 = arith.constant 0 : index
    %173 = vector.load %arg2[%c6_169, %c0_170, %c0_171] : memref<9x128x128xbf16, #tpu.memory_space<vmem>>, vector<1x128x128xbf16>
    %174 = vector.shape_cast %173 : vector<1x128x128xbf16> to vector<128x128xbf16>
    %cst_172 = arith.constant dense<0.000000e+00> : vector<4x128xf32>
    %175 = tpu.matmul %172, %174, %cst_172 {dimension_numbers = #tpu.dot_dimension_numbers<[1], [0], [0], [1], [0, 0, 1, 1], [], []>} : vector<4x128xbf16>, vector<128x128xbf16>, vector<4x128xf32> -> vector<4x128xf32>
    %176 = arith.addf %171, %175 : vector<4x128xf32>
    %c136 = arith.constant 136 : index
    %c0_173 = arith.constant 0 : index
    %177 = vector.load %arg1[%c136, %c0_173] : memref<288x128xbf16, #tpu.memory_space<vmem>>, vector<4x128xbf16>
    %c7_174 = arith.constant 7 : index
    %c0_175 = arith.constant 0 : index
    %c0_176 = arith.constant 0 : index
    %178 = vector.load %arg2[%c7_174, %c0_175, %c0_176] : memref<9x128x128xbf16, #tpu.memory_space<vmem>>, vector<1x128x128xbf16>
    %179 = vector.shape_cast %178 : vector<1x128x128xbf16> to vector<128x128xbf16>
    %cst_177 = arith.constant dense<0.000000e+00> : vector<4x128xf32>
    %180 = tpu.matmul %177, %179, %cst_177 {dimension_numbers = #tpu.dot_dimension_numbers<[1], [0], [0], [1], [0, 0, 1, 1], [], []>} : vector<4x128xbf16>, vector<128x128xbf16>, vector<4x128xf32> -> vector<4x128xf32>
    %181 = arith.addf %176, %180 : vector<4x128xf32>
    %c140 = arith.constant 140 : index
    %c0_178 = arith.constant 0 : index
    %182 = vector.load %arg1[%c140, %c0_178] : memref<288x128xbf16, #tpu.memory_space<vmem>>, vector<4x128xbf16>
    %c8_179 = arith.constant 8 : index
    %c0_180 = arith.constant 0 : index
    %c0_181 = arith.constant 0 : index
    %183 = vector.load %arg2[%c8_179, %c0_180, %c0_181] : memref<9x128x128xbf16, #tpu.memory_space<vmem>>, vector<1x128x128xbf16>
    %184 = vector.shape_cast %183 : vector<1x128x128xbf16> to vector<128x128xbf16>
    %cst_182 = arith.constant dense<0.000000e+00> : vector<4x128xf32>
    %185 = tpu.matmul %182, %184, %cst_182 {dimension_numbers = #tpu.dot_dimension_numbers<[1], [0], [0], [1], [0, 0, 1, 1], [], []>} : vector<4x128xbf16>, vector<128x128xbf16>, vector<4x128xf32> -> vector<4x128xf32>
    %186 = arith.addf %181, %185 : vector<4x128xf32>
    %c12_183 = arith.constant 12 : index
    %c0_184 = arith.constant 0 : index
    %187 = vector.load %arg9[%c12_183, %c0_184] : memref<32x128xf32, #tpu.memory_space<vmem>>, vector<4x128xf32>
    tpu.vector_store %arg9[%c12_183, %c0_184], %186 {strides = array<i32>} : memref<32x128xf32, #tpu.memory_space<vmem>>, vector<4x128xf32>,
    %cst_185 = arith.constant 0.000000e+00 : f32
    %188 = vector.broadcast %cst_185 : f32 to vector<4x128xf32>
    %c144 = arith.constant 144 : index
    %c0_186 = arith.constant 0 : index
    %189 = vector.load %arg1[%c144, %c0_186] : memref<288x128xbf16, #tpu.memory_space<vmem>>, vector<4x128xbf16>
    %c0_187 = arith.constant 0 : index
    %c0_188 = arith.constant 0 : index
    %c0_189 = arith.constant 0 : index
    %190 = vector.load %arg2[%c0_187, %c0_188, %c0_189] : memref<9x128x128xbf16, #tpu.memory_space<vmem>>, vector<1x128x128xbf16>
    %191 = vector.shape_cast %190 : vector<1x128x128xbf16> to vector<128x128xbf16>
    %cst_190 = arith.constant dense<0.000000e+00> : vector<4x128xf32>
    %192 = tpu.matmul %189, %191, %cst_190 {dimension_numbers = #tpu.dot_dimension_numbers<[1], [0], [0], [1], [0, 0, 1, 1], [], []>} : vector<4x128xbf16>, vector<128x128xbf16>, vector<4x128xf32> -> vector<4x128xf32>
    %193 = arith.addf %188, %192 : vector<4x128xf32>
    %c148 = arith.constant 148 : index
    %c0_191 = arith.constant 0 : index
    %194 = vector.load %arg1[%c148, %c0_191] : memref<288x128xbf16, #tpu.memory_space<vmem>>, vector<4x128xbf16>
    %c1_192 = arith.constant 1 : index
    %c0_193 = arith.constant 0 : index
    %c0_194 = arith.constant 0 : index
    %195 = vector.load %arg2[%c1_192, %c0_193, %c0_194] : memref<9x128x128xbf16, #tpu.memory_space<vmem>>, vector<1x128x128xbf16>
    %196 = vector.shape_cast %195 : vector<1x128x128xbf16> to vector<128x128xbf16>
    %cst_195 = arith.constant dense<0.000000e+00> : vector<4x128xf32>
    %197 = tpu.matmul %194, %196, %cst_195 {dimension_numbers = #tpu.dot_dimension_numbers<[1], [0], [0], [1], [0, 0, 1, 1], [], []>} : vector<4x128xbf16>, vector<128x128xbf16>, vector<4x128xf32> -> vector<4x128xf32>
    %198 = arith.addf %193, %197 : vector<4x128xf32>
    %c152 = arith.constant 152 : index
    %c0_196 = arith.constant 0 : index
    %199 = vector.load %arg1[%c152, %c0_196] : memref<288x128xbf16, #tpu.memory_space<vmem>>, vector<4x128xbf16>
    %c2_197 = arith.constant 2 : index
    %c0_198 = arith.constant 0 : index
    %c0_199 = arith.constant 0 : index
    %200 = vector.load %arg2[%c2_197, %c0_198, %c0_199] : memref<9x128x128xbf16, #tpu.memory_space<vmem>>, vector<1x128x128xbf16>
    %201 = vector.shape_cast %200 : vector<1x128x128xbf16> to vector<128x128xbf16>
    %cst_200 = arith.constant dense<0.000000e+00> : vector<4x128xf32>
    %202 = tpu.matmul %199, %201, %cst_200 {dimension_numbers = #tpu.dot_dimension_numbers<[1], [0], [0], [1], [0, 0, 1, 1], [], []>} : vector<4x128xbf16>, vector<128x128xbf16>, vector<4x128xf32> -> vector<4x128xf32>
    %203 = arith.addf %198, %202 : vector<4x128xf32>
    %c192 = arith.constant 192 : index
    %c0_201 = arith.constant 0 : index
    %204 = vector.load %arg1[%c192, %c0_201] : memref<288x128xbf16, #tpu.memory_space<vmem>>, vector<4x128xbf16>
    %c3_202 = arith.constant 3 : index
    %c0_203 = arith.constant 0 : index
    %c0_204 = arith.constant 0 : index
    %205 = vector.load %arg2[%c3_202, %c0_203, %c0_204] : memref<9x128x128xbf16, #tpu.memory_space<vmem>>, vector<1x128x128xbf16>
    %206 = vector.shape_cast %205 : vector<1x128x128xbf16> to vector<128x128xbf16>
    %cst_205 = arith.constant dense<0.000000e+00> : vector<4x128xf32>
    %207 = tpu.matmul %204, %206, %cst_205 {dimension_numbers = #tpu.dot_dimension_numbers<[1], [0], [0], [1], [0, 0, 1, 1], [], []>} : vector<4x128xbf16>, vector<128x128xbf16>, vector<4x128xf32> -> vector<4x128xf32>
    %208 = arith.addf %203, %207 : vector<4x128xf32>
    %c196 = arith.constant 196 : index
    %c0_206 = arith.constant 0 : index
    %209 = vector.load %arg1[%c196, %c0_206] : memref<288x128xbf16, #tpu.memory_space<vmem>>, vector<4x128xbf16>
    %c4_207 = arith.constant 4 : index
    %c0_208 = arith.constant 0 : index
    %c0_209 = arith.constant 0 : index
    %210 = vector.load %arg2[%c4_207, %c0_208, %c0_209] : memref<9x128x128xbf16, #tpu.memory_space<vmem>>, vector<1x128x128xbf16>
    %211 = vector.shape_cast %210 : vector<1x128x128xbf16> to vector<128x128xbf16>
    %cst_210 = arith.constant dense<0.000000e+00> : vector<4x128xf32>
    %212 = tpu.matmul %209, %211, %cst_210 {dimension_numbers = #tpu.dot_dimension_numbers<[1], [0], [0], [1], [0, 0, 1, 1], [], []>} : vector<4x128xbf16>, vector<128x128xbf16>, vector<4x128xf32> -> vector<4x128xf32>
    %213 = arith.addf %208, %212 : vector<4x128xf32>
    %c200 = arith.constant 200 : index
    %c0_211 = arith.constant 0 : index
    %214 = vector.load %arg1[%c200, %c0_211] : memref<288x128xbf16, #tpu.memory_space<vmem>>, vector<4x128xbf16>
    %c5_212 = arith.constant 5 : index
    %c0_213 = arith.constant 0 : index
    %c0_214 = arith.constant 0 : index
    %215 = vector.load %arg2[%c5_212, %c0_213, %c0_214] : memref<9x128x128xbf16, #tpu.memory_space<vmem>>, vector<1x128x128xbf16>
    %216 = vector.shape_cast %215 : vector<1x128x128xbf16> to vector<128x128xbf16>
    %cst_215 = arith.constant dense<0.000000e+00> : vector<4x128xf32>
    %217 = tpu.matmul %214, %216, %cst_215 {dimension_numbers = #tpu.dot_dimension_numbers<[1], [0], [0], [1], [0, 0, 1, 1], [], []>} : vector<4x128xbf16>, vector<128x128xbf16>, vector<4x128xf32> -> vector<4x128xf32>
    %218 = arith.addf %213, %217 : vector<4x128xf32>
    %c240 = arith.constant 240 : index
    %c0_216 = arith.constant 0 : index
    %219 = vector.load %arg1[%c240, %c0_216] : memref<288x128xbf16, #tpu.memory_space<vmem>>, vector<4x128xbf16>
    %c6_217 = arith.constant 6 : index
    %c0_218 = arith.constant 0 : index
    %c0_219 = arith.constant 0 : index
    %220 = vector.load %arg2[%c6_217, %c0_218, %c0_219] : memref<9x128x128xbf16, #tpu.memory_space<vmem>>, vector<1x128x128xbf16>
    %221 = vector.shape_cast %220 : vector<1x128x128xbf16> to vector<128x128xbf16>
    %cst_220 = arith.constant dense<0.000000e+00> : vector<4x128xf32>
    %222 = tpu.matmul %219, %221, %cst_220 {dimension_numbers = #tpu.dot_dimension_numbers<[1], [0], [0], [1], [0, 0, 1, 1], [], []>} : vector<4x128xbf16>, vector<128x128xbf16>, vector<4x128xf32> -> vector<4x128xf32>
    %223 = arith.addf %218, %222 : vector<4x128xf32>
    %c244 = arith.constant 244 : index
    %c0_221 = arith.constant 0 : index
    %224 = vector.load %arg1[%c244, %c0_221] : memref<288x128xbf16, #tpu.memory_space<vmem>>, vector<4x128xbf16>
    %c7_222 = arith.constant 7 : index
    %c0_223 = arith.constant 0 : index
    %c0_224 = arith.constant 0 : index
    %225 = vector.load %arg2[%c7_222, %c0_223, %c0_224] : memref<9x128x128xbf16, #tpu.memory_space<vmem>>, vector<1x128x128xbf16>
    %226 = vector.shape_cast %225 : vector<1x128x128xbf16> to vector<128x128xbf16>
    %cst_225 = arith.constant dense<0.000000e+00> : vector<4x128xf32>
    %227 = tpu.matmul %224, %226, %cst_225 {dimension_numbers = #tpu.dot_dimension_numbers<[1], [0], [0], [1], [0, 0, 1, 1], [], []>} : vector<4x128xbf16>, vector<128x128xbf16>, vector<4x128xf32> -> vector<4x128xf32>
    %228 = arith.addf %223, %227 : vector<4x128xf32>
    %c248 = arith.constant 248 : index
    %c0_226 = arith.constant 0 : index
    %229 = vector.load %arg1[%c248, %c0_226] : memref<288x128xbf16, #tpu.memory_space<vmem>>, vector<4x128xbf16>
    %c8_227 = arith.constant 8 : index
    %c0_228 = arith.constant 0 : index
    %c0_229 = arith.constant 0 : index
    %230 = vector.load %arg2[%c8_227, %c0_228, %c0_229] : memref<9x128x128xbf16, #tpu.memory_space<vmem>>, vector<1x128x128xbf16>
    %231 = vector.shape_cast %230 : vector<1x128x128xbf16> to vector<128x128xbf16>
    %cst_230 = arith.constant dense<0.000000e+00> : vector<4x128xf32>
    %232 = tpu.matmul %229, %231, %cst_230 {dimension_numbers = #tpu.dot_dimension_numbers<[1], [0], [0], [1], [0, 0, 1, 1], [], []>} : vector<4x128xbf16>, vector<128x128xbf16>, vector<4x128xf32> -> vector<4x128xf32>
    %233 = arith.addf %228, %232 : vector<4x128xf32>
    %c16_231 = arith.constant 16 : index
    %c0_232 = arith.constant 0 : index
    %234 = vector.load %arg9[%c16_231, %c0_232] : memref<32x128xf32, #tpu.memory_space<vmem>>, vector<4x128xf32>
    tpu.vector_store %arg9[%c16_231, %c0_232], %233 {strides = array<i32>} : memref<32x128xf32, #tpu.memory_space<vmem>>, vector<4x128xf32>,
    %cst_233 = arith.constant 0.000000e+00 : f32
    %235 = vector.broadcast %cst_233 : f32 to vector<4x128xf32>
    %c156 = arith.constant 156 : index
    %c0_234 = arith.constant 0 : index
    %236 = vector.load %arg1[%c156, %c0_234] : memref<288x128xbf16, #tpu.memory_space<vmem>>, vector<4x128xbf16>
    %c0_235 = arith.constant 0 : index
    %c0_236 = arith.constant 0 : index
    %c0_237 = arith.constant 0 : index
    %237 = vector.load %arg2[%c0_235, %c0_236, %c0_237] : memref<9x128x128xbf16, #tpu.memory_space<vmem>>, vector<1x128x128xbf16>
    %238 = vector.shape_cast %237 : vector<1x128x128xbf16> to vector<128x128xbf16>
    %cst_238 = arith.constant dense<0.000000e+00> : vector<4x128xf32>
    %239 = tpu.matmul %236, %238, %cst_238 {dimension_numbers = #tpu.dot_dimension_numbers<[1], [0], [0], [1], [0, 0, 1, 1], [], []>} : vector<4x128xbf16>, vector<128x128xbf16>, vector<4x128xf32> -> vector<4x128xf32>
    %240 = arith.addf %235, %239 : vector<4x128xf32>
    %c160 = arith.constant 160 : index
    %c0_239 = arith.constant 0 : index
    %241 = vector.load %arg1[%c160, %c0_239] : memref<288x128xbf16, #tpu.memory_space<vmem>>, vector<4x128xbf16>
    %c1_240 = arith.constant 1 : index
    %c0_241 = arith.constant 0 : index
    %c0_242 = arith.constant 0 : index
    %242 = vector.load %arg2[%c1_240, %c0_241, %c0_242] : memref<9x128x128xbf16, #tpu.memory_space<vmem>>, vector<1x128x128xbf16>
    %243 = vector.shape_cast %242 : vector<1x128x128xbf16> to vector<128x128xbf16>
    %cst_243 = arith.constant dense<0.000000e+00> : vector<4x128xf32>
    %244 = tpu.matmul %241, %243, %cst_243 {dimension_numbers = #tpu.dot_dimension_numbers<[1], [0], [0], [1], [0, 0, 1, 1], [], []>} : vector<4x128xbf16>, vector<128x128xbf16>, vector<4x128xf32> -> vector<4x128xf32>
    %245 = arith.addf %240, %244 : vector<4x128xf32>
    %c164 = arith.constant 164 : index
    %c0_244 = arith.constant 0 : index
    %246 = vector.load %arg1[%c164, %c0_244] : memref<288x128xbf16, #tpu.memory_space<vmem>>, vector<4x128xbf16>
    %c2_245 = arith.constant 2 : index
    %c0_246 = arith.constant 0 : index
    %c0_247 = arith.constant 0 : index
    %247 = vector.load %arg2[%c2_245, %c0_246, %c0_247] : memref<9x128x128xbf16, #tpu.memory_space<vmem>>, vector<1x128x128xbf16>
    %248 = vector.shape_cast %247 : vector<1x128x128xbf16> to vector<128x128xbf16>
    %cst_248 = arith.constant dense<0.000000e+00> : vector<4x128xf32>
    %249 = tpu.matmul %246, %248, %cst_248 {dimension_numbers = #tpu.dot_dimension_numbers<[1], [0], [0], [1], [0, 0, 1, 1], [], []>} : vector<4x128xbf16>, vector<128x128xbf16>, vector<4x128xf32> -> vector<4x128xf32>
    %250 = arith.addf %245, %249 : vector<4x128xf32>
    %c204 = arith.constant 204 : index
    %c0_249 = arith.constant 0 : index
    %251 = vector.load %arg1[%c204, %c0_249] : memref<288x128xbf16, #tpu.memory_space<vmem>>, vector<4x128xbf16>
    %c3_250 = arith.constant 3 : index
    %c0_251 = arith.constant 0 : index
    %c0_252 = arith.constant 0 : index
    %252 = vector.load %arg2[%c3_250, %c0_251, %c0_252] : memref<9x128x128xbf16, #tpu.memory_space<vmem>>, vector<1x128x128xbf16>
    %253 = vector.shape_cast %252 : vector<1x128x128xbf16> to vector<128x128xbf16>
    %cst_253 = arith.constant dense<0.000000e+00> : vector<4x128xf32>
    %254 = tpu.matmul %251, %253, %cst_253 {dimension_numbers = #tpu.dot_dimension_numbers<[1], [0], [0], [1], [0, 0, 1, 1], [], []>} : vector<4x128xbf16>, vector<128x128xbf16>, vector<4x128xf32> -> vector<4x128xf32>
    %255 = arith.addf %250, %254 : vector<4x128xf32>
    %c208 = arith.constant 208 : index
    %c0_254 = arith.constant 0 : index
    %256 = vector.load %arg1[%c208, %c0_254] : memref<288x128xbf16, #tpu.memory_space<vmem>>, vector<4x128xbf16>
    %c4_255 = arith.constant 4 : index
    %c0_256 = arith.constant 0 : index
    %c0_257 = arith.constant 0 : index
    %257 = vector.load %arg2[%c4_255, %c0_256, %c0_257] : memref<9x128x128xbf16, #tpu.memory_space<vmem>>, vector<1x128x128xbf16>
    %258 = vector.shape_cast %257 : vector<1x128x128xbf16> to vector<128x128xbf16>
    %cst_258 = arith.constant dense<0.000000e+00> : vector<4x128xf32>
    %259 = tpu.matmul %256, %258, %cst_258 {dimension_numbers = #tpu.dot_dimension_numbers<[1], [0], [0], [1], [0, 0, 1, 1], [], []>} : vector<4x128xbf16>, vector<128x128xbf16>, vector<4x128xf32> -> vector<4x128xf32>
    %260 = arith.addf %255, %259 : vector<4x128xf32>
    %c212 = arith.constant 212 : index
    %c0_259 = arith.constant 0 : index
    %261 = vector.load %arg1[%c212, %c0_259] : memref<288x128xbf16, #tpu.memory_space<vmem>>, vector<4x128xbf16>
    %c5_260 = arith.constant 5 : index
    %c0_261 = arith.constant 0 : index
    %c0_262 = arith.constant 0 : index
    %262 = vector.load %arg2[%c5_260, %c0_261, %c0_262] : memref<9x128x128xbf16, #tpu.memory_space<vmem>>, vector<1x128x128xbf16>
    %263 = vector.shape_cast %262 : vector<1x128x128xbf16> to vector<128x128xbf16>
    %cst_263 = arith.constant dense<0.000000e+00> : vector<4x128xf32>
    %264 = tpu.matmul %261, %263, %cst_263 {dimension_numbers = #tpu.dot_dimension_numbers<[1], [0], [0], [1], [0, 0, 1, 1], [], []>} : vector<4x128xbf16>, vector<128x128xbf16>, vector<4x128xf32> -> vector<4x128xf32>
    %265 = arith.addf %260, %264 : vector<4x128xf32>
    %c252 = arith.constant 252 : index
    %c0_264 = arith.constant 0 : index
    %266 = vector.load %arg1[%c252, %c0_264] : memref<288x128xbf16, #tpu.memory_space<vmem>>, vector<4x128xbf16>
    %c6_265 = arith.constant 6 : index
    %c0_266 = arith.constant 0 : index
    %c0_267 = arith.constant 0 : index
    %267 = vector.load %arg2[%c6_265, %c0_266, %c0_267] : memref<9x128x128xbf16, #tpu.memory_space<vmem>>, vector<1x128x128xbf16>
    %268 = vector.shape_cast %267 : vector<1x128x128xbf16> to vector<128x128xbf16>
    %cst_268 = arith.constant dense<0.000000e+00> : vector<4x128xf32>
    %269 = tpu.matmul %266, %268, %cst_268 {dimension_numbers = #tpu.dot_dimension_numbers<[1], [0], [0], [1], [0, 0, 1, 1], [], []>} : vector<4x128xbf16>, vector<128x128xbf16>, vector<4x128xf32> -> vector<4x128xf32>
    %270 = arith.addf %265, %269 : vector<4x128xf32>
    %c256 = arith.constant 256 : index
    %c0_269 = arith.constant 0 : index
    %271 = vector.load %arg1[%c256, %c0_269] : memref<288x128xbf16, #tpu.memory_space<vmem>>, vector<4x128xbf16>
    %c7_270 = arith.constant 7 : index
    %c0_271 = arith.constant 0 : index
    %c0_272 = arith.constant 0 : index
    %272 = vector.load %arg2[%c7_270, %c0_271, %c0_272] : memref<9x128x128xbf16, #tpu.memory_space<vmem>>, vector<1x128x128xbf16>
    %273 = vector.shape_cast %272 : vector<1x128x128xbf16> to vector<128x128xbf16>
    %cst_273 = arith.constant dense<0.000000e+00> : vector<4x128xf32>
    %274 = tpu.matmul %271, %273, %cst_273 {dimension_numbers = #tpu.dot_dimension_numbers<[1], [0], [0], [1], [0, 0, 1, 1], [], []>} : vector<4x128xbf16>, vector<128x128xbf16>, vector<4x128xf32> -> vector<4x128xf32>
    %275 = arith.addf %270, %274 : vector<4x128xf32>
    %c260 = arith.constant 260 : index
    %c0_274 = arith.constant 0 : index
    %276 = vector.load %arg1[%c260, %c0_274] : memref<288x128xbf16, #tpu.memory_space<vmem>>, vector<4x128xbf16>
    %c8_275 = arith.constant 8 : index
    %c0_276 = arith.constant 0 : index
    %c0_277 = arith.constant 0 : index
    %277 = vector.load %arg2[%c8_275, %c0_276, %c0_277] : memref<9x128x128xbf16, #tpu.memory_space<vmem>>, vector<1x128x128xbf16>
    %278 = vector.shape_cast %277 : vector<1x128x128xbf16> to vector<128x128xbf16>
    %cst_278 = arith.constant dense<0.000000e+00> : vector<4x128xf32>
    %279 = tpu.matmul %276, %278, %cst_278 {dimension_numbers = #tpu.dot_dimension_numbers<[1], [0], [0], [1], [0, 0, 1, 1], [], []>} : vector<4x128xbf16>, vector<128x128xbf16>, vector<4x128xf32> -> vector<4x128xf32>
    %280 = arith.addf %275, %279 : vector<4x128xf32>
    %c20_279 = arith.constant 20 : index
    %c0_280 = arith.constant 0 : index
    %281 = vector.load %arg9[%c20_279, %c0_280] : memref<32x128xf32, #tpu.memory_space<vmem>>, vector<4x128xf32>
    tpu.vector_store %arg9[%c20_279, %c0_280], %280 {strides = array<i32>} : memref<32x128xf32, #tpu.memory_space<vmem>>, vector<4x128xf32>,
    %cst_281 = arith.constant 0.000000e+00 : f32
    %282 = vector.broadcast %cst_281 : f32 to vector<4x128xf32>
    %c168 = arith.constant 168 : index
    %c0_282 = arith.constant 0 : index
    %283 = vector.load %arg1[%c168, %c0_282] : memref<288x128xbf16, #tpu.memory_space<vmem>>, vector<4x128xbf16>
    %c0_283 = arith.constant 0 : index
    %c0_284 = arith.constant 0 : index
    %c0_285 = arith.constant 0 : index
    %284 = vector.load %arg2[%c0_283, %c0_284, %c0_285] : memref<9x128x128xbf16, #tpu.memory_space<vmem>>, vector<1x128x128xbf16>
    %285 = vector.shape_cast %284 : vector<1x128x128xbf16> to vector<128x128xbf16>
    %cst_286 = arith.constant dense<0.000000e+00> : vector<4x128xf32>
    %286 = tpu.matmul %283, %285, %cst_286 {dimension_numbers = #tpu.dot_dimension_numbers<[1], [0], [0], [1], [0, 0, 1, 1], [], []>} : vector<4x128xbf16>, vector<128x128xbf16>, vector<4x128xf32> -> vector<4x128xf32>
    %287 = arith.addf %282, %286 : vector<4x128xf32>
    %c172 = arith.constant 172 : index
    %c0_287 = arith.constant 0 : index
    %288 = vector.load %arg1[%c172, %c0_287] : memref<288x128xbf16, #tpu.memory_space<vmem>>, vector<4x128xbf16>
    %c1_288 = arith.constant 1 : index
    %c0_289 = arith.constant 0 : index
    %c0_290 = arith.constant 0 : index
    %289 = vector.load %arg2[%c1_288, %c0_289, %c0_290] : memref<9x128x128xbf16, #tpu.memory_space<vmem>>, vector<1x128x128xbf16>
    %290 = vector.shape_cast %289 : vector<1x128x128xbf16> to vector<128x128xbf16>
    %cst_291 = arith.constant dense<0.000000e+00> : vector<4x128xf32>
    %291 = tpu.matmul %288, %290, %cst_291 {dimension_numbers = #tpu.dot_dimension_numbers<[1], [0], [0], [1], [0, 0, 1, 1], [], []>} : vector<4x128xbf16>, vector<128x128xbf16>, vector<4x128xf32> -> vector<4x128xf32>
    %292 = arith.addf %287, %291 : vector<4x128xf32>
    %c176 = arith.constant 176 : index
    %c0_292 = arith.constant 0 : index
    %293 = vector.load %arg1[%c176, %c0_292] : memref<288x128xbf16, #tpu.memory_space<vmem>>, vector<4x128xbf16>
    %c2_293 = arith.constant 2 : index
    %c0_294 = arith.constant 0 : index
    %c0_295 = arith.constant 0 : index
    %294 = vector.load %arg2[%c2_293, %c0_294, %c0_295] : memref<9x128x128xbf16, #tpu.memory_space<vmem>>, vector<1x128x128xbf16>
    %295 = vector.shape_cast %294 : vector<1x128x128xbf16> to vector<128x128xbf16>
    %cst_296 = arith.constant dense<0.000000e+00> : vector<4x128xf32>
    %296 = tpu.matmul %293, %295, %cst_296 {dimension_numbers = #tpu.dot_dimension_numbers<[1], [0], [0], [1], [0, 0, 1, 1], [], []>} : vector<4x128xbf16>, vector<128x128xbf16>, vector<4x128xf32> -> vector<4x128xf32>
    %297 = arith.addf %292, %296 : vector<4x128xf32>
    %c216 = arith.constant 216 : index
    %c0_297 = arith.constant 0 : index
    %298 = vector.load %arg1[%c216, %c0_297] : memref<288x128xbf16, #tpu.memory_space<vmem>>, vector<4x128xbf16>
    %c3_298 = arith.constant 3 : index
    %c0_299 = arith.constant 0 : index
    %c0_300 = arith.constant 0 : index
    %299 = vector.load %arg2[%c3_298, %c0_299, %c0_300] : memref<9x128x128xbf16, #tpu.memory_space<vmem>>, vector<1x128x128xbf16>
    %300 = vector.shape_cast %299 : vector<1x128x128xbf16> to vector<128x128xbf16>
    %cst_301 = arith.constant dense<0.000000e+00> : vector<4x128xf32>
    %301 = tpu.matmul %298, %300, %cst_301 {dimension_numbers = #tpu.dot_dimension_numbers<[1], [0], [0], [1], [0, 0, 1, 1], [], []>} : vector<4x128xbf16>, vector<128x128xbf16>, vector<4x128xf32> -> vector<4x128xf32>
    %302 = arith.addf %297, %301 : vector<4x128xf32>
    %c220 = arith.constant 220 : index
    %c0_302 = arith.constant 0 : index
    %303 = vector.load %arg1[%c220, %c0_302] : memref<288x128xbf16, #tpu.memory_space<vmem>>, vector<4x128xbf16>
    %c4_303 = arith.constant 4 : index
    %c0_304 = arith.constant 0 : index
    %c0_305 = arith.constant 0 : index
    %304 = vector.load %arg2[%c4_303, %c0_304, %c0_305] : memref<9x128x128xbf16, #tpu.memory_space<vmem>>, vector<1x128x128xbf16>
    %305 = vector.shape_cast %304 : vector<1x128x128xbf16> to vector<128x128xbf16>
    %cst_306 = arith.constant dense<0.000000e+00> : vector<4x128xf32>
    %306 = tpu.matmul %303, %305, %cst_306 {dimension_numbers = #tpu.dot_dimension_numbers<[1], [0], [0], [1], [0, 0, 1, 1], [], []>} : vector<4x128xbf16>, vector<128x128xbf16>, vector<4x128xf32> -> vector<4x128xf32>
    %307 = arith.addf %302, %306 : vector<4x128xf32>
    %c224 = arith.constant 224 : index
    %c0_307 = arith.constant 0 : index
    %308 = vector.load %arg1[%c224, %c0_307] : memref<288x128xbf16, #tpu.memory_space<vmem>>, vector<4x128xbf16>
    %c5_308 = arith.constant 5 : index
    %c0_309 = arith.constant 0 : index
    %c0_310 = arith.constant 0 : index
    %309 = vector.load %arg2[%c5_308, %c0_309, %c0_310] : memref<9x128x128xbf16, #tpu.memory_space<vmem>>, vector<1x128x128xbf16>
    %310 = vector.shape_cast %309 : vector<1x128x128xbf16> to vector<128x128xbf16>
    %cst_311 = arith.constant dense<0.000000e+00> : vector<4x128xf32>
    %311 = tpu.matmul %308, %310, %cst_311 {dimension_numbers = #tpu.dot_dimension_numbers<[1], [0], [0], [1], [0, 0, 1, 1], [], []>} : vector<4x128xbf16>, vector<128x128xbf16>, vector<4x128xf32> -> vector<4x128xf32>
    %312 = arith.addf %307, %311 : vector<4x128xf32>
    %c264 = arith.constant 264 : index
    %c0_312 = arith.constant 0 : index
    %313 = vector.load %arg1[%c264, %c0_312] : memref<288x128xbf16, #tpu.memory_space<vmem>>, vector<4x128xbf16>
    %c6_313 = arith.constant 6 : index
    %c0_314 = arith.constant 0 : index
    %c0_315 = arith.constant 0 : index
    %314 = vector.load %arg2[%c6_313, %c0_314, %c0_315] : memref<9x128x128xbf16, #tpu.memory_space<vmem>>, vector<1x128x128xbf16>
    %315 = vector.shape_cast %314 : vector<1x128x128xbf16> to vector<128x128xbf16>
    %cst_316 = arith.constant dense<0.000000e+00> : vector<4x128xf32>
    %316 = tpu.matmul %313, %315, %cst_316 {dimension_numbers = #tpu.dot_dimension_numbers<[1], [0], [0], [1], [0, 0, 1, 1], [], []>} : vector<4x128xbf16>, vector<128x128xbf16>, vector<4x128xf32> -> vector<4x128xf32>
    %317 = arith.addf %312, %316 : vector<4x128xf32>
    %c268 = arith.constant 268 : index
    %c0_317 = arith.constant 0 : index
    %318 = vector.load %arg1[%c268, %c0_317] : memref<288x128xbf16, #tpu.memory_space<vmem>>, vector<4x128xbf16>
    %c7_318 = arith.constant 7 : index
    %c0_319 = arith.constant 0 : index
    %c0_320 = arith.constant 0 : index
    %319 = vector.load %arg2[%c7_318, %c0_319, %c0_320] : memref<9x128x128xbf16, #tpu.memory_space<vmem>>, vector<1x128x128xbf16>
    %320 = vector.shape_cast %319 : vector<1x128x128xbf16> to vector<128x128xbf16>
    %cst_321 = arith.constant dense<0.000000e+00> : vector<4x128xf32>
    %321 = tpu.matmul %318, %320, %cst_321 {dimension_numbers = #tpu.dot_dimension_numbers<[1], [0], [0], [1], [0, 0, 1, 1], [], []>} : vector<4x128xbf16>, vector<128x128xbf16>, vector<4x128xf32> -> vector<4x128xf32>
    %322 = arith.addf %317, %321 : vector<4x128xf32>
    %c272 = arith.constant 272 : index
    %c0_322 = arith.constant 0 : index
    %323 = vector.load %arg1[%c272, %c0_322] : memref<288x128xbf16, #tpu.memory_space<vmem>>, vector<4x128xbf16>
    %c8_323 = arith.constant 8 : index
    %c0_324 = arith.constant 0 : index
    %c0_325 = arith.constant 0 : index
    %324 = vector.load %arg2[%c8_323, %c0_324, %c0_325] : memref<9x128x128xbf16, #tpu.memory_space<vmem>>, vector<1x128x128xbf16>
    %325 = vector.shape_cast %324 : vector<1x128x128xbf16> to vector<128x128xbf16>
    %cst_326 = arith.constant dense<0.000000e+00> : vector<4x128xf32>
    %326 = tpu.matmul %323, %325, %cst_326 {dimension_numbers = #tpu.dot_dimension_numbers<[1], [0], [0], [1], [0, 0, 1, 1], [], []>} : vector<4x128xbf16>, vector<128x128xbf16>, vector<4x128xf32> -> vector<4x128xf32>
    %327 = arith.addf %322, %326 : vector<4x128xf32>
    %c24_327 = arith.constant 24 : index
    %c0_328 = arith.constant 0 : index
    %328 = vector.load %arg9[%c24_327, %c0_328] : memref<32x128xf32, #tpu.memory_space<vmem>>, vector<4x128xf32>
    tpu.vector_store %arg9[%c24_327, %c0_328], %327 {strides = array<i32>} : memref<32x128xf32, #tpu.memory_space<vmem>>, vector<4x128xf32>,
    %cst_329 = arith.constant 0.000000e+00 : f32
    %329 = vector.broadcast %cst_329 : f32 to vector<4x128xf32>
    %c180 = arith.constant 180 : index
    %c0_330 = arith.constant 0 : index
    %330 = vector.load %arg1[%c180, %c0_330] : memref<288x128xbf16, #tpu.memory_space<vmem>>, vector<4x128xbf16>
    %c0_331 = arith.constant 0 : index
    %c0_332 = arith.constant 0 : index
    %c0_333 = arith.constant 0 : index
    %331 = vector.load %arg2[%c0_331, %c0_332, %c0_333] : memref<9x128x128xbf16, #tpu.memory_space<vmem>>, vector<1x128x128xbf16>
    %332 = vector.shape_cast %331 : vector<1x128x128xbf16> to vector<128x128xbf16>
    %cst_334 = arith.constant dense<0.000000e+00> : vector<4x128xf32>
    %333 = tpu.matmul %330, %332, %cst_334 {dimension_numbers = #tpu.dot_dimension_numbers<[1], [0], [0], [1], [0, 0, 1, 1], [], []>} : vector<4x128xbf16>, vector<128x128xbf16>, vector<4x128xf32> -> vector<4x128xf32>
    %334 = arith.addf %329, %333 : vector<4x128xf32>
    %c184 = arith.constant 184 : index
    %c0_335 = arith.constant 0 : index
    %335 = vector.load %arg1[%c184, %c0_335] : memref<288x128xbf16, #tpu.memory_space<vmem>>, vector<4x128xbf16>
    %c1_336 = arith.constant 1 : index
    %c0_337 = arith.constant 0 : index
    %c0_338 = arith.constant 0 : index
    %336 = vector.load %arg2[%c1_336, %c0_337, %c0_338] : memref<9x128x128xbf16, #tpu.memory_space<vmem>>, vector<1x128x128xbf16>
    %337 = vector.shape_cast %336 : vector<1x128x128xbf16> to vector<128x128xbf16>
    %cst_339 = arith.constant dense<0.000000e+00> : vector<4x128xf32>
    %338 = tpu.matmul %335, %337, %cst_339 {dimension_numbers = #tpu.dot_dimension_numbers<[1], [0], [0], [1], [0, 0, 1, 1], [], []>} : vector<4x128xbf16>, vector<128x128xbf16>, vector<4x128xf32> -> vector<4x128xf32>
    %339 = arith.addf %334, %338 : vector<4x128xf32>
    %c188 = arith.constant 188 : index
    %c0_340 = arith.constant 0 : index
    %340 = vector.load %arg1[%c188, %c0_340] : memref<288x128xbf16, #tpu.memory_space<vmem>>, vector<4x128xbf16>
    %c2_341 = arith.constant 2 : index
    %c0_342 = arith.constant 0 : index
    %c0_343 = arith.constant 0 : index
    %341 = vector.load %arg2[%c2_341, %c0_342, %c0_343] : memref<9x128x128xbf16, #tpu.memory_space<vmem>>, vector<1x128x128xbf16>
    %342 = vector.shape_cast %341 : vector<1x128x128xbf16> to vector<128x128xbf16>
    %cst_344 = arith.constant dense<0.000000e+00> : vector<4x128xf32>
    %343 = tpu.matmul %340, %342, %cst_344 {dimension_numbers = #tpu.dot_dimension_numbers<[1], [0], [0], [1], [0, 0, 1, 1], [], []>} : vector<4x128xbf16>, vector<128x128xbf16>, vector<4x128xf32> -> vector<4x128xf32>
    %344 = arith.addf %339, %343 : vector<4x128xf32>
    %c228 = arith.constant 228 : index
    %c0_345 = arith.constant 0 : index
    %345 = vector.load %arg1[%c228, %c0_345] : memref<288x128xbf16, #tpu.memory_space<vmem>>, vector<4x128xbf16>
    %c3_346 = arith.constant 3 : index
    %c0_347 = arith.constant 0 : index
    %c0_348 = arith.constant 0 : index
    %346 = vector.load %arg2[%c3_346, %c0_347, %c0_348] : memref<9x128x128xbf16, #tpu.memory_space<vmem>>, vector<1x128x128xbf16>
    %347 = vector.shape_cast %346 : vector<1x128x128xbf16> to vector<128x128xbf16>
    %cst_349 = arith.constant dense<0.000000e+00> : vector<4x128xf32>
    %348 = tpu.matmul %345, %347, %cst_349 {dimension_numbers = #tpu.dot_dimension_numbers<[1], [0], [0], [1], [0, 0, 1, 1], [], []>} : vector<4x128xbf16>, vector<128x128xbf16>, vector<4x128xf32> -> vector<4x128xf32>
    %349 = arith.addf %344, %348 : vector<4x128xf32>
    %c232 = arith.constant 232 : index
    %c0_350 = arith.constant 0 : index
    %350 = vector.load %arg1[%c232, %c0_350] : memref<288x128xbf16, #tpu.memory_space<vmem>>, vector<4x128xbf16>
    %c4_351 = arith.constant 4 : index
    %c0_352 = arith.constant 0 : index
    %c0_353 = arith.constant 0 : index
    %351 = vector.load %arg2[%c4_351, %c0_352, %c0_353] : memref<9x128x128xbf16, #tpu.memory_space<vmem>>, vector<1x128x128xbf16>
    %352 = vector.shape_cast %351 : vector<1x128x128xbf16> to vector<128x128xbf16>
    %cst_354 = arith.constant dense<0.000000e+00> : vector<4x128xf32>
    %353 = tpu.matmul %350, %352, %cst_354 {dimension_numbers = #tpu.dot_dimension_numbers<[1], [0], [0], [1], [0, 0, 1, 1], [], []>} : vector<4x128xbf16>, vector<128x128xbf16>, vector<4x128xf32> -> vector<4x128xf32>
    %354 = arith.addf %349, %353 : vector<4x128xf32>
    %c236 = arith.constant 236 : index
    %c0_355 = arith.constant 0 : index
    %355 = vector.load %arg1[%c236, %c0_355] : memref<288x128xbf16, #tpu.memory_space<vmem>>, vector<4x128xbf16>
    %c5_356 = arith.constant 5 : index
    %c0_357 = arith.constant 0 : index
    %c0_358 = arith.constant 0 : index
    %356 = vector.load %arg2[%c5_356, %c0_357, %c0_358] : memref<9x128x128xbf16, #tpu.memory_space<vmem>>, vector<1x128x128xbf16>
    %357 = vector.shape_cast %356 : vector<1x128x128xbf16> to vector<128x128xbf16>
    %cst_359 = arith.constant dense<0.000000e+00> : vector<4x128xf32>
    %358 = tpu.matmul %355, %357, %cst_359 {dimension_numbers = #tpu.dot_dimension_numbers<[1], [0], [0], [1], [0, 0, 1, 1], [], []>} : vector<4x128xbf16>, vector<128x128xbf16>, vector<4x128xf32> -> vector<4x128xf32>
    %359 = arith.addf %354, %358 : vector<4x128xf32>
    %c276 = arith.constant 276 : index
    %c0_360 = arith.constant 0 : index
    %360 = vector.load %arg1[%c276, %c0_360] : memref<288x128xbf16, #tpu.memory_space<vmem>>, vector<4x128xbf16>
    %c6_361 = arith.constant 6 : index
    %c0_362 = arith.constant 0 : index
    %c0_363 = arith.constant 0 : index
    %361 = vector.load %arg2[%c6_361, %c0_362, %c0_363] : memref<9x128x128xbf16, #tpu.memory_space<vmem>>, vector<1x128x128xbf16>
    %362 = vector.shape_cast %361 : vector<1x128x128xbf16> to vector<128x128xbf16>
    %cst_364 = arith.constant dense<0.000000e+00> : vector<4x128xf32>
    %363 = tpu.matmul %360, %362, %cst_364 {dimension_numbers = #tpu.dot_dimension_numbers<[1], [0], [0], [1], [0, 0, 1, 1], [], []>} : vector<4x128xbf16>, vector<128x128xbf16>, vector<4x128xf32> -> vector<4x128xf32>
    %364 = arith.addf %359, %363 : vector<4x128xf32>
    %c280 = arith.constant 280 : index
    %c0_365 = arith.constant 0 : index
    %365 = vector.load %arg1[%c280, %c0_365] : memref<288x128xbf16, #tpu.memory_space<vmem>>, vector<4x128xbf16>
    %c7_366 = arith.constant 7 : index
    %c0_367 = arith.constant 0 : index
    %c0_368 = arith.constant 0 : index
    %366 = vector.load %arg2[%c7_366, %c0_367, %c0_368] : memref<9x128x128xbf16, #tpu.memory_space<vmem>>, vector<1x128x128xbf16>
    %367 = vector.shape_cast %366 : vector<1x128x128xbf16> to vector<128x128xbf16>
    %cst_369 = arith.constant dense<0.000000e+00> : vector<4x128xf32>
    %368 = tpu.matmul %365, %367, %cst_369 {dimension_numbers = #tpu.dot_dimension_numbers<[1], [0], [0], [1], [0, 0, 1, 1], [], []>} : vector<4x128xbf16>, vector<128x128xbf16>, vector<4x128xf32> -> vector<4x128xf32>
    %369 = arith.addf %364, %368 : vector<4x128xf32>
    %c284 = arith.constant 284 : index
    %c0_370 = arith.constant 0 : index
    %370 = vector.load %arg1[%c284, %c0_370] : memref<288x128xbf16, #tpu.memory_space<vmem>>, vector<4x128xbf16>
    %c8_371 = arith.constant 8 : index
    %c0_372 = arith.constant 0 : index
    %c0_373 = arith.constant 0 : index
    %371 = vector.load %arg2[%c8_371, %c0_372, %c0_373] : memref<9x128x128xbf16, #tpu.memory_space<vmem>>, vector<1x128x128xbf16>
    %372 = vector.shape_cast %371 : vector<1x128x128xbf16> to vector<128x128xbf16>
    %cst_374 = arith.constant dense<0.000000e+00> : vector<4x128xf32>
    %373 = tpu.matmul %370, %372, %cst_374 {dimension_numbers = #tpu.dot_dimension_numbers<[1], [0], [0], [1], [0, 0, 1, 1], [], []>} : vector<4x128xbf16>, vector<128x128xbf16>, vector<4x128xf32> -> vector<4x128xf32>
    %374 = arith.addf %369, %373 : vector<4x128xf32>
    %c28_375 = arith.constant 28 : index
    %c0_376 = arith.constant 0 : index
    %375 = vector.load %arg9[%c28_375, %c0_376] : memref<32x128xf32, #tpu.memory_space<vmem>>, vector<4x128xf32>
    tpu.vector_store %arg9[%c28_375, %c0_376], %374 {strides = array<i32>} : memref<32x128xf32, #tpu.memory_space<vmem>>, vector<4x128xf32>,
    %c0_377 = arith.constant 0 : index
    %c0_378 = arith.constant 0 : index
    %376 = vector.load %arg9[%c0_377, %c0_378] : memref<32x128xf32, #tpu.memory_space<vmem>>, vector<32x128xf32>
    %cst_379 = arith.constant dense<0.000000e+00> : vector<128xf32>
    %377 = vector.multi_reduction <add>, %376, %cst_379 [0] : vector<32x128xf32> to vector<128xf32>
    %378 = vector.shape_cast %377 : vector<128xf32> to vector<1x128xf32>
    %cst_380 = arith.constant 3.200000e+01 : f32
    %379 = vector.broadcast %cst_380 : f32 to vector<1x128xf32>
    %380 = arith.divf %378, %379 : vector<1x128xf32>
    %381 = vector.broadcast %380 : vector<1x128xf32> to vector<32x128xf32>
    %382 = arith.subf %376, %381 : vector<32x128xf32>
    %383 = arith.mulf %382, %382 : vector<32x128xf32>
    %cst_381 = arith.constant dense<0.000000e+00> : vector<128xf32>
    %384 = vector.multi_reduction <add>, %383, %cst_381 [0] : vector<32x128xf32> to vector<128xf32>
    %385 = vector.shape_cast %384 : vector<128xf32> to vector<1x128xf32>
    %cst_382 = arith.constant 3.200000e+01 : f32
    %386 = vector.broadcast %cst_382 : f32 to vector<1x128xf32>
    %387 = arith.divf %385, %386 : vector<1x128xf32>
    %cst_383 = arith.constant 9.99999974E-6 : f32
    %388 = vector.broadcast %cst_383 : f32 to vector<1x128xf32>
    %389 = arith.addf %387, %388 : vector<1x128xf32>
    %390 = math.rsqrt %389 : vector<1x128xf32>
    %391 = vector.broadcast %390 : vector<1x128xf32> to vector<32x128xf32>
    %392 = arith.mulf %382, %391 : vector<32x128xf32>
    %c0_384 = arith.constant 0 : index
    %c0_385 = arith.constant 0 : index
    %393 = vector.load %arg3[%c0_384, %c0_385] : memref<1x128xf32, #tpu.memory_space<vmem>>, vector<1x128xf32>
    %394 = vector.broadcast %393 : vector<1x128xf32> to vector<32x128xf32>
    %395 = arith.mulf %392, %394 : vector<32x128xf32>
    %c0_386 = arith.constant 0 : index
    %c0_387 = arith.constant 0 : index
    %396 = vector.load %arg4[%c0_386, %c0_387] : memref<1x128xf32, #tpu.memory_space<vmem>>, vector<1x128xf32>
    %397 = vector.broadcast %396 : vector<1x128xf32> to vector<32x128xf32>
    %398 = arith.addf %395, %397 : vector<32x128xf32>
    %cst_388 = arith.constant 0.000000e+00 : f32
    %399 = vector.broadcast %cst_388 : f32 to vector<32x128xf32>
    %400 = arith.cmpf ogt, %398, %399 : vector<32x128xf32>
    %cst_389 = arith.constant 2.000000e-01 : f32
    %401 = vector.broadcast %cst_389 : f32 to vector<32x128xf32>
    %402 = arith.mulf %401, %398 : vector<32x128xf32>
    %403 = arith.select %400, %398, %402 : vector<32x128xi1>, vector<32x128xf32>
    %c0_i32 = arith.constant 0 : i32
    %404 = arith.cmpi eq, %arg0, %c0_i32 : i32
    %405 = arith.extui %404 : i1 to i32
    %c0_i32_390 = arith.constant 0 : i32
    %406 = arith.cmpi ne, %405, %c0_i32_390 : i32
    scf.if %406 {
      %cst_400 = arith.constant 0.000000e+00 : f32
      %416 = vector.broadcast %cst_400 : f32 to vector<32x128xf32>
      %c0_401 = arith.constant 0 : index
      %c0_402 = arith.constant 0 : index
      %417 = vector.load %arg10[%c0_401, %c0_402] : memref<32x128xf32, #tpu.memory_space<vmem>>, vector<32x128xf32>
      tpu.vector_store %arg10[%c0_401, %c0_402], %416 {strides = array<i32>} : memref<32x128xf32, #tpu.memory_space<vmem>>, vector<32x128xf32>,
    } else {
    }
    %c0_391 = arith.constant 0 : index
    %c0_392 = arith.constant 0 : index
    %407 = vector.load %arg10[%c0_391, %c0_392] : memref<32x128xf32, #tpu.memory_space<vmem>>, vector<32x128xf32>
    %408 = arith.truncf %403 : vector<32x128xf32> to vector<32x128xbf16>
    %c0_393 = arith.constant 0 : index
    %c0_394 = arith.constant 0 : index
    %409 = vector.load %arg5[%c0_393, %c0_394] : memref<128x128xbf16, #tpu.memory_space<vmem>>, vector<128x128xbf16>
    %cst_395 = arith.constant dense<0.000000e+00> : vector<32x128xf32>
    %410 = tpu.matmul %408, %409, %cst_395 {dimension_numbers = #tpu.dot_dimension_numbers<[1], [0], [0], [1], [0, 0, 1, 1], [], []>} : vector<32x128xbf16>, vector<128x128xbf16>, vector<32x128xf32> -> vector<32x128xf32>
    %411 = arith.addf %407, %410 : vector<32x128xf32>
    %c0_396 = arith.constant 0 : index
    %c0_397 = arith.constant 0 : index
    %412 = vector.load %arg10[%c0_396, %c0_397] : memref<32x128xf32, #tpu.memory_space<vmem>>, vector<32x128xf32>
    tpu.vector_store %arg10[%c0_396, %c0_397], %411 {strides = array<i32>} : memref<32x128xf32, #tpu.memory_space<vmem>>, vector<32x128xf32>,
    %c0_i32_398 = arith.constant 0 : i32
    %413 = arith.cmpi eq, %arg0, %c0_i32_398 : i32
    %414 = arith.extui %413 : i1 to i32
    %c0_i32_399 = arith.constant 0 : i32
    %415 = arith.cmpi ne, %414, %c0_i32_399 : i32
    scf.if %415 {
      %c0_400 = arith.constant 0 : index
      %c0_401 = arith.constant 0 : index
      %416 = vector.load %arg10[%c0_400, %c0_401] : memref<32x128xf32, #tpu.memory_space<vmem>>, vector<32x128xf32>
      %cst_402 = arith.constant dense<0.000000e+00> : vector<128xf32>
      %417 = vector.multi_reduction <add>, %416, %cst_402 [0] : vector<32x128xf32> to vector<128xf32>
      %418 = vector.shape_cast %417 : vector<128xf32> to vector<1x128xf32>
      %cst_403 = arith.constant 3.200000e+01 : f32
      %419 = vector.broadcast %cst_403 : f32 to vector<1x128xf32>
      %420 = arith.divf %418, %419 : vector<1x128xf32>
      %421 = vector.broadcast %420 : vector<1x128xf32> to vector<32x128xf32>
      %422 = arith.subf %416, %421 : vector<32x128xf32>
      %423 = arith.mulf %422, %422 : vector<32x128xf32>
      %cst_404 = arith.constant dense<0.000000e+00> : vector<128xf32>
      %424 = vector.multi_reduction <add>, %423, %cst_404 [0] : vector<32x128xf32> to vector<128xf32>
      %425 = vector.shape_cast %424 : vector<128xf32> to vector<1x128xf32>
      %cst_405 = arith.constant 3.200000e+01 : f32
      %426 = vector.broadcast %cst_405 : f32 to vector<1x128xf32>
      %427 = arith.divf %425, %426 : vector<1x128xf32>
      %cst_406 = arith.constant 9.99999974E-6 : f32
      %428 = vector.broadcast %cst_406 : f32 to vector<1x128xf32>
      %429 = arith.addf %427, %428 : vector<1x128xf32>
      %430 = math.rsqrt %429 : vector<1x128xf32>
      %431 = vector.broadcast %430 : vector<1x128xf32> to vector<32x128xf32>
      %432 = arith.mulf %422, %431 : vector<32x128xf32>
      %c0_407 = arith.constant 0 : index
      %c0_408 = arith.constant 0 : index
      %433 = vector.load %arg6[%c0_407, %c0_408] : memref<1x128xf32, #tpu.memory_space<vmem>>, vector<1x128xf32>
      %434 = vector.broadcast %433 : vector<1x128xf32> to vector<32x128xf32>
      %435 = arith.mulf %432, %434 : vector<32x128xf32>
      %c0_409 = arith.constant 0 : index
      %c0_410 = arith.constant 0 : index
      %436 = vector.load %arg7[%c0_409, %c0_410] : memref<1x128xf32, #tpu.memory_space<vmem>>, vector<1x128xf32>
      %437 = vector.broadcast %436 : vector<1x128xf32> to vector<32x128xf32>
      %438 = arith.addf %435, %437 : vector<32x128xf32>
      %439 = arith.truncf %438 : vector<32x128xf32> to vector<32x128xbf16>
      %c0_411 = arith.constant 0 : index
      %c0_412 = arith.constant 0 : index
      %440 = vector.load %arg8[%c0_411, %c0_412] : memref<32x128xbf16, #tpu.memory_space<vmem>>, vector<32x128xbf16>
      tpu.vector_store %arg8[%c0_411, %c0_412], %439 {strides = array<i32>} : memref<32x128xbf16, #tpu.memory_space<vmem>>, vector<32x128xbf16>,
    } else {
    }
    return
  }
  func.func @transform_0(%arg0: i32) -> (i32, i32) {
    %c0_i32 = arith.constant 0 : i32
    %c0_i32_0 = arith.constant 0 : i32
    %c0_i32_1 = arith.constant 0 : i32
    return %c0_i32, %c0_i32_0 : i32, i32
  }
  func.func @transform_1(%arg0: i32) -> (i32, i32, i32) {
    %c0_i32 = arith.constant 0 : i32
    %c0_i32_0 = arith.constant 0 : i32
    %c0_i32_1 = arith.constant 0 : i32
    return %c0_i32, %c0_i32_0, %arg0 : i32, i32, i32
  }
  func.func @transform_2(%arg0: i32) -> (i32, i32) {
    %c0_i32 = arith.constant 0 : i32
    %c0_i32_0 = arith.constant 0 : i32
    return %c0_i32, %arg0 : i32, i32
  }
  func.func @transform_3(%arg0: i32) -> (i32, i32) {
    %c0_i32 = arith.constant 0 : i32
    %c0_i32_0 = arith.constant 0 : i32
    return %c0_i32, %arg0 : i32, i32
  }
  func.func @transform_4(%arg0: i32) -> (i32, i32) {
    %c0_i32 = arith.constant 0 : i32
    %c0_i32_0 = arith.constant 0 : i32
    return %arg0, %c0_i32 : i32, i32
  }
  func.func @transform_5(%arg0: i32) -> (i32, i32) {
    %c0_i32 = arith.constant 0 : i32
    %c0_i32_0 = arith.constant 0 : i32
    %c0_i32_1 = arith.constant 0 : i32
    return %c0_i32, %c0_i32_0 : i32, i32
  }
  func.func @transform_6(%arg0: i32) -> (i32, i32) {
    %c0_i32 = arith.constant 0 : i32
    %c0_i32_0 = arith.constant 0 : i32
    %c0_i32_1 = arith.constant 0 : i32
    return %c0_i32, %c0_i32_0 : i32, i32
  }
  func.func @transform_7(%arg0: i32) -> (i32, i32) {
    %c0_i32 = arith.constant 0 : i32
    %c0_i32_0 = arith.constant 0 : i32
    %c0_i32_1 = arith.constant 0 : i32
    return %c0_i32, %c0_i32_0 : i32, i32
  }
}

module attributes {stable_mosaic.version = 11 : i64} {
  func.func @_conv_bias_kernel(%arg0: i32, %arg1: memref<18x128xbf16, #tpu.memory_space<vmem>>, %arg2: memref<9x128x128xbf16, #tpu.memory_space<vmem>>, %arg3: memref<1x128xf32, #tpu.memory_space<vmem>>, %arg4: memref<2x128xbf16, #tpu.memory_space<vmem>>) attributes {dimension_semantics = [#tpu.dimension_semantics<parallel>], iteration_bounds = array<i64: 4>, scalar_prefetch = 0 : i64, scratch_operands = 0 : i64, tpu.core_type = #tpu.core_type<tc>, window_params = [{pipeline_mode = #tpu.pipeline_mode<synchronous>, transform_indices = @transform_0, window_bounds = array<i64: 18, 128>}, {transform_indices = @transform_1, window_bounds = array<i64: 9, 128, 128>}, {transform_indices = @transform_2, window_bounds = array<i64: 1, 128>}, {transform_indices = @transform_3, window_bounds = array<i64: 2, 128>}]} {
    %cst = arith.constant 0.000000e+00 : f32
    %0 = vector.broadcast %cst : f32 to vector<1x128xf32>
    %c0 = arith.constant 0 : index
    %c0_0 = arith.constant 0 : index
    %1 = vector.load %arg1[%c0, %c0_0] : memref<18x128xbf16, #tpu.memory_space<vmem>>, vector<1x128xbf16>
    %c0_1 = arith.constant 0 : index
    %c0_2 = arith.constant 0 : index
    %c0_3 = arith.constant 0 : index
    %2 = vector.load %arg2[%c0_1, %c0_2, %c0_3] : memref<9x128x128xbf16, #tpu.memory_space<vmem>>, vector<1x128x128xbf16>
    %3 = vector.shape_cast %2 : vector<1x128x128xbf16> to vector<128x128xbf16>
    %cst_4 = arith.constant dense<0.000000e+00> : vector<1x128xf32>
    %4 = tpu.matmul %1, %3, %cst_4 {dimension_numbers = #tpu.dot_dimension_numbers<[1], [0], [0], [1], [0, 0, 1, 1], [], []>} : vector<1x128xbf16>, vector<128x128xbf16>, vector<1x128xf32> -> vector<1x128xf32>
    %5 = arith.addf %0, %4 : vector<1x128xf32>
    %c1 = arith.constant 1 : index
    %c0_5 = arith.constant 0 : index
    %6 = vector.load %arg1[%c1, %c0_5] : memref<18x128xbf16, #tpu.memory_space<vmem>>, vector<1x128xbf16>
    %c1_6 = arith.constant 1 : index
    %c0_7 = arith.constant 0 : index
    %c0_8 = arith.constant 0 : index
    %7 = vector.load %arg2[%c1_6, %c0_7, %c0_8] : memref<9x128x128xbf16, #tpu.memory_space<vmem>>, vector<1x128x128xbf16>
    %8 = vector.shape_cast %7 : vector<1x128x128xbf16> to vector<128x128xbf16>
    %cst_9 = arith.constant dense<0.000000e+00> : vector<1x128xf32>
    %9 = tpu.matmul %6, %8, %cst_9 {dimension_numbers = #tpu.dot_dimension_numbers<[1], [0], [0], [1], [0, 0, 1, 1], [], []>} : vector<1x128xbf16>, vector<128x128xbf16>, vector<1x128xf32> -> vector<1x128xf32>
    %10 = arith.addf %5, %9 : vector<1x128xf32>
    %c2 = arith.constant 2 : index
    %c0_10 = arith.constant 0 : index
    %11 = vector.load %arg1[%c2, %c0_10] : memref<18x128xbf16, #tpu.memory_space<vmem>>, vector<1x128xbf16>
    %c2_11 = arith.constant 2 : index
    %c0_12 = arith.constant 0 : index
    %c0_13 = arith.constant 0 : index
    %12 = vector.load %arg2[%c2_11, %c0_12, %c0_13] : memref<9x128x128xbf16, #tpu.memory_space<vmem>>, vector<1x128x128xbf16>
    %13 = vector.shape_cast %12 : vector<1x128x128xbf16> to vector<128x128xbf16>
    %cst_14 = arith.constant dense<0.000000e+00> : vector<1x128xf32>
    %14 = tpu.matmul %11, %13, %cst_14 {dimension_numbers = #tpu.dot_dimension_numbers<[1], [0], [0], [1], [0, 0, 1, 1], [], []>} : vector<1x128xbf16>, vector<128x128xbf16>, vector<1x128xf32> -> vector<1x128xf32>
    %15 = arith.addf %10, %14 : vector<1x128xf32>
    %c3 = arith.constant 3 : index
    %c0_15 = arith.constant 0 : index
    %16 = vector.load %arg1[%c3, %c0_15] : memref<18x128xbf16, #tpu.memory_space<vmem>>, vector<1x128xbf16>
    %c3_16 = arith.constant 3 : index
    %c0_17 = arith.constant 0 : index
    %c0_18 = arith.constant 0 : index
    %17 = vector.load %arg2[%c3_16, %c0_17, %c0_18] : memref<9x128x128xbf16, #tpu.memory_space<vmem>>, vector<1x128x128xbf16>
    %18 = vector.shape_cast %17 : vector<1x128x128xbf16> to vector<128x128xbf16>
    %cst_19 = arith.constant dense<0.000000e+00> : vector<1x128xf32>
    %19 = tpu.matmul %16, %18, %cst_19 {dimension_numbers = #tpu.dot_dimension_numbers<[1], [0], [0], [1], [0, 0, 1, 1], [], []>} : vector<1x128xbf16>, vector<128x128xbf16>, vector<1x128xf32> -> vector<1x128xf32>
    %20 = arith.addf %15, %19 : vector<1x128xf32>
    %c4 = arith.constant 4 : index
    %c0_20 = arith.constant 0 : index
    %21 = vector.load %arg1[%c4, %c0_20] : memref<18x128xbf16, #tpu.memory_space<vmem>>, vector<1x128xbf16>
    %c4_21 = arith.constant 4 : index
    %c0_22 = arith.constant 0 : index
    %c0_23 = arith.constant 0 : index
    %22 = vector.load %arg2[%c4_21, %c0_22, %c0_23] : memref<9x128x128xbf16, #tpu.memory_space<vmem>>, vector<1x128x128xbf16>
    %23 = vector.shape_cast %22 : vector<1x128x128xbf16> to vector<128x128xbf16>
    %cst_24 = arith.constant dense<0.000000e+00> : vector<1x128xf32>
    %24 = tpu.matmul %21, %23, %cst_24 {dimension_numbers = #tpu.dot_dimension_numbers<[1], [0], [0], [1], [0, 0, 1, 1], [], []>} : vector<1x128xbf16>, vector<128x128xbf16>, vector<1x128xf32> -> vector<1x128xf32>
    %25 = arith.addf %20, %24 : vector<1x128xf32>
    %c5 = arith.constant 5 : index
    %c0_25 = arith.constant 0 : index
    %26 = vector.load %arg1[%c5, %c0_25] : memref<18x128xbf16, #tpu.memory_space<vmem>>, vector<1x128xbf16>
    %c5_26 = arith.constant 5 : index
    %c0_27 = arith.constant 0 : index
    %c0_28 = arith.constant 0 : index
    %27 = vector.load %arg2[%c5_26, %c0_27, %c0_28] : memref<9x128x128xbf16, #tpu.memory_space<vmem>>, vector<1x128x128xbf16>
    %28 = vector.shape_cast %27 : vector<1x128x128xbf16> to vector<128x128xbf16>
    %cst_29 = arith.constant dense<0.000000e+00> : vector<1x128xf32>
    %29 = tpu.matmul %26, %28, %cst_29 {dimension_numbers = #tpu.dot_dimension_numbers<[1], [0], [0], [1], [0, 0, 1, 1], [], []>} : vector<1x128xbf16>, vector<128x128xbf16>, vector<1x128xf32> -> vector<1x128xf32>
    %30 = arith.addf %25, %29 : vector<1x128xf32>
    %c6 = arith.constant 6 : index
    %c0_30 = arith.constant 0 : index
    %31 = vector.load %arg1[%c6, %c0_30] : memref<18x128xbf16, #tpu.memory_space<vmem>>, vector<1x128xbf16>
    %c6_31 = arith.constant 6 : index
    %c0_32 = arith.constant 0 : index
    %c0_33 = arith.constant 0 : index
    %32 = vector.load %arg2[%c6_31, %c0_32, %c0_33] : memref<9x128x128xbf16, #tpu.memory_space<vmem>>, vector<1x128x128xbf16>
    %33 = vector.shape_cast %32 : vector<1x128x128xbf16> to vector<128x128xbf16>
    %cst_34 = arith.constant dense<0.000000e+00> : vector<1x128xf32>
    %34 = tpu.matmul %31, %33, %cst_34 {dimension_numbers = #tpu.dot_dimension_numbers<[1], [0], [0], [1], [0, 0, 1, 1], [], []>} : vector<1x128xbf16>, vector<128x128xbf16>, vector<1x128xf32> -> vector<1x128xf32>
    %35 = arith.addf %30, %34 : vector<1x128xf32>
    %c7 = arith.constant 7 : index
    %c0_35 = arith.constant 0 : index
    %36 = vector.load %arg1[%c7, %c0_35] : memref<18x128xbf16, #tpu.memory_space<vmem>>, vector<1x128xbf16>
    %c7_36 = arith.constant 7 : index
    %c0_37 = arith.constant 0 : index
    %c0_38 = arith.constant 0 : index
    %37 = vector.load %arg2[%c7_36, %c0_37, %c0_38] : memref<9x128x128xbf16, #tpu.memory_space<vmem>>, vector<1x128x128xbf16>
    %38 = vector.shape_cast %37 : vector<1x128x128xbf16> to vector<128x128xbf16>
    %cst_39 = arith.constant dense<0.000000e+00> : vector<1x128xf32>
    %39 = tpu.matmul %36, %38, %cst_39 {dimension_numbers = #tpu.dot_dimension_numbers<[1], [0], [0], [1], [0, 0, 1, 1], [], []>} : vector<1x128xbf16>, vector<128x128xbf16>, vector<1x128xf32> -> vector<1x128xf32>
    %40 = arith.addf %35, %39 : vector<1x128xf32>
    %c8 = arith.constant 8 : index
    %c0_40 = arith.constant 0 : index
    %41 = vector.load %arg1[%c8, %c0_40] : memref<18x128xbf16, #tpu.memory_space<vmem>>, vector<1x128xbf16>
    %c8_41 = arith.constant 8 : index
    %c0_42 = arith.constant 0 : index
    %c0_43 = arith.constant 0 : index
    %42 = vector.load %arg2[%c8_41, %c0_42, %c0_43] : memref<9x128x128xbf16, #tpu.memory_space<vmem>>, vector<1x128x128xbf16>
    %43 = vector.shape_cast %42 : vector<1x128x128xbf16> to vector<128x128xbf16>
    %cst_44 = arith.constant dense<0.000000e+00> : vector<1x128xf32>
    %44 = tpu.matmul %41, %43, %cst_44 {dimension_numbers = #tpu.dot_dimension_numbers<[1], [0], [0], [1], [0, 0, 1, 1], [], []>} : vector<1x128xbf16>, vector<128x128xbf16>, vector<1x128xf32> -> vector<1x128xf32>
    %45 = arith.addf %40, %44 : vector<1x128xf32>
    %c0_45 = arith.constant 0 : index
    %c0_46 = arith.constant 0 : index
    %46 = vector.load %arg3[%c0_45, %c0_46] : memref<1x128xf32, #tpu.memory_space<vmem>>, vector<1x128xf32>
    %47 = arith.addf %45, %46 : vector<1x128xf32>
    %48 = arith.truncf %47 : vector<1x128xf32> to vector<1x128xbf16>
    %c0_47 = arith.constant 0 : index
    %c0_48 = arith.constant 0 : index
    %49 = vector.load %arg4[%c0_47, %c0_48] : memref<2x128xbf16, #tpu.memory_space<vmem>>, vector<1x128xbf16>
    tpu.vector_store %arg4[%c0_47, %c0_48], %48 {strides = array<i32>} : memref<2x128xbf16, #tpu.memory_space<vmem>>, vector<1x128xbf16>,
    %cst_49 = arith.constant 0.000000e+00 : f32
    %50 = vector.broadcast %cst_49 : f32 to vector<1x128xf32>
    %c9 = arith.constant 9 : index
    %c0_50 = arith.constant 0 : index
    %51 = vector.load %arg1[%c9, %c0_50] : memref<18x128xbf16, #tpu.memory_space<vmem>>, vector<1x128xbf16>
    %c0_51 = arith.constant 0 : index
    %c0_52 = arith.constant 0 : index
    %c0_53 = arith.constant 0 : index
    %52 = vector.load %arg2[%c0_51, %c0_52, %c0_53] : memref<9x128x128xbf16, #tpu.memory_space<vmem>>, vector<1x128x128xbf16>
    %53 = vector.shape_cast %52 : vector<1x128x128xbf16> to vector<128x128xbf16>
    %cst_54 = arith.constant dense<0.000000e+00> : vector<1x128xf32>
    %54 = tpu.matmul %51, %53, %cst_54 {dimension_numbers = #tpu.dot_dimension_numbers<[1], [0], [0], [1], [0, 0, 1, 1], [], []>} : vector<1x128xbf16>, vector<128x128xbf16>, vector<1x128xf32> -> vector<1x128xf32>
    %55 = arith.addf %50, %54 : vector<1x128xf32>
    %c10 = arith.constant 10 : index
    %c0_55 = arith.constant 0 : index
    %56 = vector.load %arg1[%c10, %c0_55] : memref<18x128xbf16, #tpu.memory_space<vmem>>, vector<1x128xbf16>
    %c1_56 = arith.constant 1 : index
    %c0_57 = arith.constant 0 : index
    %c0_58 = arith.constant 0 : index
    %57 = vector.load %arg2[%c1_56, %c0_57, %c0_58] : memref<9x128x128xbf16, #tpu.memory_space<vmem>>, vector<1x128x128xbf16>
    %58 = vector.shape_cast %57 : vector<1x128x128xbf16> to vector<128x128xbf16>
    %cst_59 = arith.constant dense<0.000000e+00> : vector<1x128xf32>
    %59 = tpu.matmul %56, %58, %cst_59 {dimension_numbers = #tpu.dot_dimension_numbers<[1], [0], [0], [1], [0, 0, 1, 1], [], []>} : vector<1x128xbf16>, vector<128x128xbf16>, vector<1x128xf32> -> vector<1x128xf32>
    %60 = arith.addf %55, %59 : vector<1x128xf32>
    %c11 = arith.constant 11 : index
    %c0_60 = arith.constant 0 : index
    %61 = vector.load %arg1[%c11, %c0_60] : memref<18x128xbf16, #tpu.memory_space<vmem>>, vector<1x128xbf16>
    %c2_61 = arith.constant 2 : index
    %c0_62 = arith.constant 0 : index
    %c0_63 = arith.constant 0 : index
    %62 = vector.load %arg2[%c2_61, %c0_62, %c0_63] : memref<9x128x128xbf16, #tpu.memory_space<vmem>>, vector<1x128x128xbf16>
    %63 = vector.shape_cast %62 : vector<1x128x128xbf16> to vector<128x128xbf16>
    %cst_64 = arith.constant dense<0.000000e+00> : vector<1x128xf32>
    %64 = tpu.matmul %61, %63, %cst_64 {dimension_numbers = #tpu.dot_dimension_numbers<[1], [0], [0], [1], [0, 0, 1, 1], [], []>} : vector<1x128xbf16>, vector<128x128xbf16>, vector<1x128xf32> -> vector<1x128xf32>
    %65 = arith.addf %60, %64 : vector<1x128xf32>
    %c12 = arith.constant 12 : index
    %c0_65 = arith.constant 0 : index
    %66 = vector.load %arg1[%c12, %c0_65] : memref<18x128xbf16, #tpu.memory_space<vmem>>, vector<1x128xbf16>
    %c3_66 = arith.constant 3 : index
    %c0_67 = arith.constant 0 : index
    %c0_68 = arith.constant 0 : index
    %67 = vector.load %arg2[%c3_66, %c0_67, %c0_68] : memref<9x128x128xbf16, #tpu.memory_space<vmem>>, vector<1x128x128xbf16>
    %68 = vector.shape_cast %67 : vector<1x128x128xbf16> to vector<128x128xbf16>
    %cst_69 = arith.constant dense<0.000000e+00> : vector<1x128xf32>
    %69 = tpu.matmul %66, %68, %cst_69 {dimension_numbers = #tpu.dot_dimension_numbers<[1], [0], [0], [1], [0, 0, 1, 1], [], []>} : vector<1x128xbf16>, vector<128x128xbf16>, vector<1x128xf32> -> vector<1x128xf32>
    %70 = arith.addf %65, %69 : vector<1x128xf32>
    %c13 = arith.constant 13 : index
    %c0_70 = arith.constant 0 : index
    %71 = vector.load %arg1[%c13, %c0_70] : memref<18x128xbf16, #tpu.memory_space<vmem>>, vector<1x128xbf16>
    %c4_71 = arith.constant 4 : index
    %c0_72 = arith.constant 0 : index
    %c0_73 = arith.constant 0 : index
    %72 = vector.load %arg2[%c4_71, %c0_72, %c0_73] : memref<9x128x128xbf16, #tpu.memory_space<vmem>>, vector<1x128x128xbf16>
    %73 = vector.shape_cast %72 : vector<1x128x128xbf16> to vector<128x128xbf16>
    %cst_74 = arith.constant dense<0.000000e+00> : vector<1x128xf32>
    %74 = tpu.matmul %71, %73, %cst_74 {dimension_numbers = #tpu.dot_dimension_numbers<[1], [0], [0], [1], [0, 0, 1, 1], [], []>} : vector<1x128xbf16>, vector<128x128xbf16>, vector<1x128xf32> -> vector<1x128xf32>
    %75 = arith.addf %70, %74 : vector<1x128xf32>
    %c14 = arith.constant 14 : index
    %c0_75 = arith.constant 0 : index
    %76 = vector.load %arg1[%c14, %c0_75] : memref<18x128xbf16, #tpu.memory_space<vmem>>, vector<1x128xbf16>
    %c5_76 = arith.constant 5 : index
    %c0_77 = arith.constant 0 : index
    %c0_78 = arith.constant 0 : index
    %77 = vector.load %arg2[%c5_76, %c0_77, %c0_78] : memref<9x128x128xbf16, #tpu.memory_space<vmem>>, vector<1x128x128xbf16>
    %78 = vector.shape_cast %77 : vector<1x128x128xbf16> to vector<128x128xbf16>
    %cst_79 = arith.constant dense<0.000000e+00> : vector<1x128xf32>
    %79 = tpu.matmul %76, %78, %cst_79 {dimension_numbers = #tpu.dot_dimension_numbers<[1], [0], [0], [1], [0, 0, 1, 1], [], []>} : vector<1x128xbf16>, vector<128x128xbf16>, vector<1x128xf32> -> vector<1x128xf32>
    %80 = arith.addf %75, %79 : vector<1x128xf32>
    %c15 = arith.constant 15 : index
    %c0_80 = arith.constant 0 : index
    %81 = vector.load %arg1[%c15, %c0_80] : memref<18x128xbf16, #tpu.memory_space<vmem>>, vector<1x128xbf16>
    %c6_81 = arith.constant 6 : index
    %c0_82 = arith.constant 0 : index
    %c0_83 = arith.constant 0 : index
    %82 = vector.load %arg2[%c6_81, %c0_82, %c0_83] : memref<9x128x128xbf16, #tpu.memory_space<vmem>>, vector<1x128x128xbf16>
    %83 = vector.shape_cast %82 : vector<1x128x128xbf16> to vector<128x128xbf16>
    %cst_84 = arith.constant dense<0.000000e+00> : vector<1x128xf32>
    %84 = tpu.matmul %81, %83, %cst_84 {dimension_numbers = #tpu.dot_dimension_numbers<[1], [0], [0], [1], [0, 0, 1, 1], [], []>} : vector<1x128xbf16>, vector<128x128xbf16>, vector<1x128xf32> -> vector<1x128xf32>
    %85 = arith.addf %80, %84 : vector<1x128xf32>
    %c16 = arith.constant 16 : index
    %c0_85 = arith.constant 0 : index
    %86 = vector.load %arg1[%c16, %c0_85] : memref<18x128xbf16, #tpu.memory_space<vmem>>, vector<1x128xbf16>
    %c7_86 = arith.constant 7 : index
    %c0_87 = arith.constant 0 : index
    %c0_88 = arith.constant 0 : index
    %87 = vector.load %arg2[%c7_86, %c0_87, %c0_88] : memref<9x128x128xbf16, #tpu.memory_space<vmem>>, vector<1x128x128xbf16>
    %88 = vector.shape_cast %87 : vector<1x128x128xbf16> to vector<128x128xbf16>
    %cst_89 = arith.constant dense<0.000000e+00> : vector<1x128xf32>
    %89 = tpu.matmul %86, %88, %cst_89 {dimension_numbers = #tpu.dot_dimension_numbers<[1], [0], [0], [1], [0, 0, 1, 1], [], []>} : vector<1x128xbf16>, vector<128x128xbf16>, vector<1x128xf32> -> vector<1x128xf32>
    %90 = arith.addf %85, %89 : vector<1x128xf32>
    %c17 = arith.constant 17 : index
    %c0_90 = arith.constant 0 : index
    %91 = vector.load %arg1[%c17, %c0_90] : memref<18x128xbf16, #tpu.memory_space<vmem>>, vector<1x128xbf16>
    %c8_91 = arith.constant 8 : index
    %c0_92 = arith.constant 0 : index
    %c0_93 = arith.constant 0 : index
    %92 = vector.load %arg2[%c8_91, %c0_92, %c0_93] : memref<9x128x128xbf16, #tpu.memory_space<vmem>>, vector<1x128x128xbf16>
    %93 = vector.shape_cast %92 : vector<1x128x128xbf16> to vector<128x128xbf16>
    %cst_94 = arith.constant dense<0.000000e+00> : vector<1x128xf32>
    %94 = tpu.matmul %91, %93, %cst_94 {dimension_numbers = #tpu.dot_dimension_numbers<[1], [0], [0], [1], [0, 0, 1, 1], [], []>} : vector<1x128xbf16>, vector<128x128xbf16>, vector<1x128xf32> -> vector<1x128xf32>
    %95 = arith.addf %90, %94 : vector<1x128xf32>
    %c0_95 = arith.constant 0 : index
    %c0_96 = arith.constant 0 : index
    %96 = vector.load %arg3[%c0_95, %c0_96] : memref<1x128xf32, #tpu.memory_space<vmem>>, vector<1x128xf32>
    %97 = arith.addf %95, %96 : vector<1x128xf32>
    %98 = arith.truncf %97 : vector<1x128xf32> to vector<1x128xbf16>
    %c1_97 = arith.constant 1 : index
    %c0_98 = arith.constant 0 : index
    %99 = vector.load %arg4[%c1_97, %c0_98] : memref<2x128xbf16, #tpu.memory_space<vmem>>, vector<1x128xbf16>
    tpu.vector_store %arg4[%c1_97, %c0_98], %98 {strides = array<i32>} : memref<2x128xbf16, #tpu.memory_space<vmem>>, vector<1x128xbf16>,
    return
  }
  func.func @transform_0(%arg0: i32) -> (i32, i32) {
    %c0_i32 = arith.constant 0 : i32
    %c0_i32_0 = arith.constant 0 : i32
    %c0_i32_1 = arith.constant 0 : i32
    return %c0_i32, %c0_i32_0 : i32, i32
  }
  func.func @transform_1(%arg0: i32) -> (i32, i32, i32) {
    %c0_i32 = arith.constant 0 : i32
    %c0_i32_0 = arith.constant 0 : i32
    %c0_i32_1 = arith.constant 0 : i32
    return %c0_i32, %c0_i32_0, %arg0 : i32, i32, i32
  }
  func.func @transform_2(%arg0: i32) -> (i32, i32) {
    %c0_i32 = arith.constant 0 : i32
    %c0_i32_0 = arith.constant 0 : i32
    return %c0_i32, %arg0 : i32, i32
  }
  func.func @transform_3(%arg0: i32) -> (i32, i32) {
    %c0_i32 = arith.constant 0 : i32
    %c0_i32_0 = arith.constant 0 : i32
    return %c0_i32, %arg0 : i32, i32
  }
}

module attributes {stable_mosaic.version = 11 : i64} {
  func.func @_double_linear_kernel(%arg0: memref<2x512xbf16, #tpu.memory_space<vmem>>, %arg1: memref<512x128xbf16, #tpu.memory_space<vmem>>, %arg2: memref<1x128xf32, #tpu.memory_space<vmem>>, %arg3: memref<128x128xbf16, #tpu.memory_space<vmem>>, %arg4: memref<1x128xf32, #tpu.memory_space<vmem>>, %arg5: memref<2x128xf32, #tpu.memory_space<vmem>>) attributes {dimension_semantics = [], scalar_prefetch = 0 : i64, scratch_operands = 0 : i64, tpu.core_type = #tpu.core_type<tc>} {
    %c0 = arith.constant 0 : index
    %c0_0 = arith.constant 0 : index
    %0 = vector.load %arg0[%c0, %c0_0] : memref<2x512xbf16, #tpu.memory_space<vmem>>, vector<2x512xbf16>
    %c0_1 = arith.constant 0 : index
    %c0_2 = arith.constant 0 : index
    %1 = vector.load %arg1[%c0_1, %c0_2] : memref<512x128xbf16, #tpu.memory_space<vmem>>, vector<512x128xbf16>
    %cst = arith.constant dense<0.000000e+00> : vector<2x128xf32>
    %2 = tpu.matmul %0, %1, %cst {dimension_numbers = #tpu.dot_dimension_numbers<[1], [0], [0], [1], [0, 0, 1, 1], [], []>} : vector<2x512xbf16>, vector<512x128xbf16>, vector<2x128xf32> -> vector<2x128xf32>
    %c0_3 = arith.constant 0 : index
    %c0_4 = arith.constant 0 : index
    %3 = vector.load %arg2[%c0_3, %c0_4] : memref<1x128xf32, #tpu.memory_space<vmem>>, vector<1x128xf32>
    %4 = vector.broadcast %3 : vector<1x128xf32> to vector<2x128xf32>
    %5 = arith.addf %2, %4 : vector<2x128xf32>
    %6 = arith.truncf %5 : vector<2x128xf32> to vector<2x128xbf16>
    %c0_5 = arith.constant 0 : index
    %c0_6 = arith.constant 0 : index
    %7 = vector.load %arg3[%c0_5, %c0_6] : memref<128x128xbf16, #tpu.memory_space<vmem>>, vector<128x128xbf16>
    %cst_7 = arith.constant dense<0.000000e+00> : vector<2x128xf32>
    %8 = tpu.matmul %6, %7, %cst_7 {dimension_numbers = #tpu.dot_dimension_numbers<[1], [0], [0], [1], [0, 0, 1, 1], [], []>} : vector<2x128xbf16>, vector<128x128xbf16>, vector<2x128xf32> -> vector<2x128xf32>
    %c0_8 = arith.constant 0 : index
    %c0_9 = arith.constant 0 : index
    %9 = vector.load %arg4[%c0_8, %c0_9] : memref<1x128xf32, #tpu.memory_space<vmem>>, vector<1x128xf32>
    %10 = vector.broadcast %9 : vector<1x128xf32> to vector<2x128xf32>
    %11 = arith.addf %8, %10 : vector<2x128xf32>
    %c0_10 = arith.constant 0 : index
    %c0_11 = arith.constant 0 : index
    %12 = vector.load %arg5[%c0_10, %c0_11] : memref<2x128xf32, #tpu.memory_space<vmem>>, vector<2x128xf32>
    tpu.vector_store %arg5[%c0_10, %c0_11], %11 {strides = array<i32>} : memref<2x128xf32, #tpu.memory_space<vmem>>, vector<2x128xf32>,
    return
  }
}

</mosaic_0001>

<bundles_post_ra>
// kernel: _lambda_.6
= control target key start
LH: loop header
LB: loop body
LE: loop exit
PB: predicated region body
PF: predicated region fallthrough
CT: control target
= control target key end

     0   :  { %s4046_s12 = smov 0   ;;  %s4048_s13 = smov 0   ;;  %s4770_s0 = inlined_call_operand.vmem [shape: bf16[18,128], index: 0, kind: input, shape index: {}]   ;;  %s4771_s1 = inlined_call_operand.vmem [shape: bf16[9,128,512], index: 1, kind: input, shape index: {}]   ;;  %s4772_s2 = inlined_call_operand.vmem [shape: f32[1,512], index: 2, kind: input, shape index: {}]   ;;  %s4773_s3 = inlined_call_operand.vmem [shape: bf16[2,512], index: 3, kind: output, shape index: {}]  }
   0x1   :  { %s4050_s14 = smov 0  }
   0x2 LB: > { %s2878_s15 = sadd.s32 4294967295, %s4021_s14   ;;  %s4063_s16 = sadd.s32 1, %s4021_s14   ;;  %s4021_s14 = sphi %s4050_s14, %s4776_s14   ;;  %s4017_s13 = sphi %s4048_s13, %s4775_s13   ;;  %s4013_s12 = sphi %s4046_s12, %s4774_s12  }
   0x3   : > { %s38_s17 = ssub.s32 %s4021_s14, %s4063_s16  ;;  %s41_s18 = sadd.s32 1, %s4017_s13 }
   0x4   : > { %p39_p0 = scmp.eq.s32.totalorder %s38_s17, 0  ;;  %p48_p1 = scmp.ne.s32.totalorder %s4017_s13, %s4013_s12 }
   0x5   : > { %p49_p2 = scmp.eq.s32.totalorder %s4021_s14, 0  ;;  %p2881_p4 = scmp.ge.s32.totalorder %s4021_s14, 4 }
   0x6   : > { %s4072_s19 = scalar_select %p39_p0, %s4017_s13, %s41_s18  }
   0x7   : > { %p50_p3 = por %p49_p2, %p48_p1  ;;  %129 = sbr.rel (%p2881_p4) target bundleno = 114 (0x72), region = 20 }
   0xe   : > { %132 = sbr.rel (!%p50_p3) target bundleno = 114 (0x72), region = 24  ;;  %s134_s20 = sand.u32 (%p50_p3), 1, %s4017_s13  }
   0xf   : > { %s2882_s21 = sshll.u32 (%p50_p3), %s4021_s14, 2  ;;  %s3817_s22 = smul.u32 (%p50_p3), 576, %s134_s20 }
  0x10   : > { %s4080_s25 = scalar_lea.vmem (%p50_p3), %s4771_s1, %s2882_s21 }
  0x11   : > { %v154_v0 = vld [vmem:[%s4080_s25] sm:$0xf] (%p50_p3)  ;;  %v156_v1 = vld [vmem:[%s4080_s25 + $0x10] sm:$0xf] (%p50_p3)  ;;  %s4087_s26 = scalar_lea.vmem (%p50_p3), [#allocation2], %s3817_s22 }
  0x12   : > { %v158_v2 = vld [vmem:[%s4080_s25 + $0x20] sm:$0xf] (%p50_p3)  ;;  %v160_v3 = vld [vmem:[%s4080_s25 + $0x30] sm:$0xf] (%p50_p3)  ;;  %155 = vst [vmem:[%s4087_s26] sm:$0xf] (%p50_p3), %v154_v0 }
  0x13   : > { %v162_v4 = vld [vmem:[%s4080_s25 + $0x40] sm:$0xf] (%p50_p3)  ;;  %157 = vst [vmem:[%s4087_s26 + $0x4] sm:$0xf] (%p50_p3), %v156_v1  ;;  %159 = vst [vmem:[%s4087_s26 + $0x8] sm:$0xf] (%p50_p3), %v158_v2 }
  0x14   : > { %161 = vst [vmem:[%s4087_s26 + $0xc] sm:$0xf] (%p50_p3), %v160_v3  ;;  %163 = vst [vmem:[%s4087_s26 + $0x10] sm:$0xf] (%p50_p3), %v162_v4  ;;  %v164_v5 = vld [vmem:[%s4080_s25 + $0x50] sm:$0xf] (%p50_p3) }
  0x15   : > { %v166_v6 = vld [vmem:[%s4080_s25 + $0x60] sm:$0xf]  ;;  %v168_v7 = vld [vmem:[%s4080_s25 + $0x70] sm:$0xf]  ;;  %165 = vst [vmem:[%s4087_s26 + $0x14] sm:$0xf] %v164_v5 }
  0x16   : > { %167 = vst [vmem:[%s4087_s26 + $0x18] sm:$0xf] %v166_v6  ;;  %169 = vst [vmem:[%s4087_s26 + $0x1c] sm:$0xf] %v168_v7  ;;  %v170_v8 = vld [vmem:[%s4080_s25 + $0x80] sm:$0xf] }
  0x17   : > { %v172_v9 = vld [vmem:[%s4080_s25 + $0x90] sm:$0xf]  ;;  %v174_v10 = vld [vmem:[%s4080_s25 + $0xa0] sm:$0xf]  ;;  %171 = vst [vmem:[%s4087_s26 + $0x20] sm:$0xf] %v170_v8 }
  0x18   : > { %173 = vst [vmem:[%s4087_s26 + $0x24] sm:$0xf] %v172_v9  ;;  %175 = vst [vmem:[%s4087_s26 + $0x28] sm:$0xf] %v174_v10  ;;  %v176_v11 = vld [vmem:[%s4080_s25 + $0xb0] sm:$0xf] }
  0x19   : > { %v178_v12 = vld [vmem:[%s4080_s25 + $0xc0] sm:$0xf]  ;;  %v180_v13 = vld [vmem:[%s4080_s25 + $0xd0] sm:$0xf]  ;;  %177 = vst [vmem:[%s4087_s26 + $0x2c] sm:$0xf] %v176_v11 }
  0x1a   : > { %179 = vst [vmem:[%s4087_s26 + $0x30] sm:$0xf] %v178_v12  ;;  %181 = vst [vmem:[%s4087_s26 + $0x34] sm:$0xf] %v180_v13  ;;  %v182_v14 = vld [vmem:[%s4080_s25 + $0xe0] sm:$0xf] }
  0x1b   : > { %v184_v15 = vld [vmem:[%s4080_s25 + $0xf0] sm:$0xf]  ;;  %v186_v16 = vld [vmem:[%s4080_s25 + $0x100] sm:$0xf]  ;;  %183 = vst [vmem:[%s4087_s26 + $0x38] sm:$0xf] %v182_v14 }
  0x1c   : > { %185 = vst [vmem:[%s4087_s26 + $0x3c] sm:$0xf] %v184_v15  ;;  %187 = vst [vmem:[%s4087_s26 + $0x40] sm:$0xf] %v186_v16  ;;  %v188_v17 = vld [vmem:[%s4080_s25 + $0x110] sm:$0xf] }
  0x1d   : > { %v190_v18 = vld [vmem:[%s4080_s25 + $0x120] sm:$0xf]  ;;  %v192_v19 = vld [vmem:[%s4080_s25 + $0x130] sm:$0xf]  ;;  %189 = vst [vmem:[%s4087_s26 + $0x44] sm:$0xf] %v188_v17 }
  0x1e   : > { %191 = vst [vmem:[%s4087_s26 + $0x48] sm:$0xf] %v190_v18  ;;  %193 = vst [vmem:[%s4087_s26 + $0x4c] sm:$0xf] %v192_v19  ;;  %v194_v20 = vld [vmem:[%s4080_s25 + $0x140] sm:$0xf] }
  0x1f   : > { %v196_v21 = vld [vmem:[%s4080_s25 + $0x150] sm:$0xf]  ;;  %v198_v22 = vld [vmem:[%s4080_s25 + $0x160] sm:$0xf]  ;;  %195 = vst [vmem:[%s4087_s26 + $0x50] sm:$0xf] %v194_v20 }
  0x20   : > { %197 = vst [vmem:[%s4087_s26 + $0x54] sm:$0xf] %v196_v21  ;;  %199 = vst [vmem:[%s4087_s26 + $0x58] sm:$0xf] %v198_v22  ;;  %v200_v23 = vld [vmem:[%s4080_s25 + $0x170] sm:$0xf] }
  0x21   : > { %v202_v24 = vld [vmem:[%s4080_s25 + $0x180] sm:$0xf]  ;;  %v204_v25 = vld [vmem:[%s4080_s25 + $0x190] sm:$0xf]  ;;  %201 = vst [vmem:[%s4087_s26 + $0x5c] sm:$0xf] %v200_v23 }
  0x22   : > { %203 = vst [vmem:[%s4087_s26 + $0x60] sm:$0xf] %v202_v24  ;;  %205 = vst [vmem:[%s4087_s26 + $0x64] sm:$0xf] %v204_v25  ;;  %v206_v26 = vld [vmem:[%s4080_s25 + $0x1a0] sm:$0xf] }
  0x23   : > { %v208_v27 = vld [vmem:[%s4080_s25 + $0x1b0] sm:$0xf]  ;;  %v210_v28 = vld [vmem:[%s4080_s25 + $0x1c0] sm:$0xf]  ;;  %207 = vst [vmem:[%s4087_s26 + $0x68] sm:$0xf] %v206_v26 }
  0x24   : > { %209 = vst [vmem:[%s4087_s26 + $0x6c] sm:$0xf] %v208_v27  ;;  %211 = vst [vmem:[%s4087_s26 + $0x70] sm:$0xf] %v210_v28  ;;  %v212_v29 = vld [vmem:[%s4080_s25 + $0x1d0] sm:$0xf] }
  0x25   : > { %v214_v30 = vld [vmem:[%s4080_s25 + $0x1e0] sm:$0xf]  ;;  %v216_v31 = vld [vmem:[%s4080_s25 + $0x1f0] sm:$0xf]  ;;  %213 = vst [vmem:[%s4087_s26 + $0x74] sm:$0xf] %v212_v29 }
  0x26   : > { %215 = vst [vmem:[%s4087_s26 + $0x78] sm:$0xf] %v214_v30  ;;  %217 = vst [vmem:[%s4087_s26 + $0x7c] sm:$0xf] %v216_v31  ;;  %v218_v32 = vld [vmem:[%s4080_s25 + $0x200] sm:$0xf] }
  0x27   : > { %v220_v33 = vld [vmem:[%s4080_s25 + $0x210] sm:$0xf]  ;;  %v222_v34 = vld [vmem:[%s4080_s25 + $0x220] sm:$0xf]  ;;  %219 = vst [vmem:[%s4087_s26 + $0x80] sm:$0xf] %v218_v32 }
  0x28   : > { %221 = vst [vmem:[%s4087_s26 + $0x84] sm:$0xf] %v220_v33  ;;  %223 = vst [vmem:[%s4087_s26 + $0x88] sm:$0xf] %v222_v34  ;;  %v224_v35 = vld [vmem:[%s4080_s25 + $0x230] sm:$0xf] }
  0x29   : > { %v226_v36 = vld [vmem:[%s4080_s25 + $0x240] sm:$0xf]  ;;  %v228_v37 = vld [vmem:[%s4080_s25 + $0x250] sm:$0xf]  ;;  %225 = vst [vmem:[%s4087_s26 + $0x8c] sm:$0xf] %v224_v35 }
  0x2a   : > { %227 = vst [vmem:[%s4087_s26 + $0x90] sm:$0xf] %v226_v36  ;;  %229 = vst [vmem:[%s4087_s26 + $0x94] sm:$0xf] %v228_v37  ;;  %v230_v38 = vld [vmem:[%s4080_s25 + $0x260] sm:$0xf] }
  0x2b   : > { %v232_v39 = vld [vmem:[%s4080_s25 + $0x270] sm:$0xf]  ;;  %v234_v40 = vld [vmem:[%s4080_s25 + $0x280] sm:$0xf]  ;;  %231 = vst [vmem:[%s4087_s26 + $0x98] sm:$0xf] %v230_v38 }
  0x2c   : > { %233 = vst [vmem:[%s4087_s26 + $0x9c] sm:$0xf] %v232_v39  ;;  %235 = vst [vmem:[%s4087_s26 + $0xa0] sm:$0xf] %v234_v40  ;;  %v236_v41 = vld [vmem:[%s4080_s25 + $0x290] sm:$0xf] }
  0x2d   : > { %v238_v42 = vld [vmem:[%s4080_s25 + $0x2a0] sm:$0xf]  ;;  %v240_v43 = vld [vmem:[%s4080_s25 + $0x2b0] sm:$0xf]  ;;  %237 = vst [vmem:[%s4087_s26 + $0xa4] sm:$0xf] %v236_v41 }
  0x2e   : > { %239 = vst [vmem:[%s4087_s26 + $0xa8] sm:$0xf] %v238_v42  ;;  %241 = vst [vmem:[%s4087_s26 + $0xac] sm:$0xf] %v240_v43  ;;  %v242_v44 = vld [vmem:[%s4080_s25 + $0x2c0] sm:$0xf] }
  0x2f   : > { %v244_v45 = vld [vmem:[%s4080_s25 + $0x2d0] sm:$0xf]  ;;  %v246_v46 = vld [vmem:[%s4080_s25 + $0x2e0] sm:$0xf]  ;;  %243 = vst [vmem:[%s4087_s26 + $0xb0] sm:$0xf] %v242_v44 }
  0x30   : > { %245 = vst [vmem:[%s4087_s26 + $0xb4] sm:$0xf] %v244_v45  ;;  %247 = vst [vmem:[%s4087_s26 + $0xb8] sm:$0xf] %v246_v46  ;;  %v248_v47 = vld [vmem:[%s4080_s25 + $0x2f0] sm:$0xf] }
  0x31   : > { %v250_v48 = vld [vmem:[%s4080_s25 + $0x300] sm:$0xf]  ;;  %v252_v49 = vld [vmem:[%s4080_s25 + $0x310] sm:$0xf]  ;;  %249 = vst [vmem:[%s4087_s26 + $0xbc] sm:$0xf] %v248_v47 }
  0x32   : > { %251 = vst [vmem:[%s4087_s26 + $0xc0] sm:$0xf] %v250_v48  ;;  %253 = vst [vmem:[%s4087_s26 + $0xc4] sm:$0xf] %v252_v49  ;;  %v254_v50 = vld [vmem:[%s4080_s25 + $0x320] sm:$0xf] }
  0x33   : > { %v256_v51 = vld [vmem:[%s4080_s25 + $0x330] sm:$0xf]  ;;  %v258_v52 = vld [vmem:[%s4080_s25 + $0x340] sm:$0xf]  ;;  %255 = vst [vmem:[%s4087_s26 + $0xc8] sm:$0xf] %v254_v50 }
  0x34   : > { %257 = vst [vmem:[%s4087_s26 + $0xcc] sm:$0xf] %v256_v51  ;;  %259 = vst [vmem:[%s4087_s26 + $0xd0] sm:$0xf] %v258_v52  ;;  %v260_v53 = vld [vmem:[%s4080_s25 + $0x350] sm:$0xf] }
  0x35   : > { %v262_v54 = vld [vmem:[%s4080_s25 + $0x360] sm:$0xf]  ;;  %v264_v55 = vld [vmem:[%s4080_s25 + $0x370] sm:$0xf]  ;;  %261 = vst [vmem:[%s4087_s26 + $0xd4] sm:$0xf] %v260_v53 }
  0x36   : > { %263 = vst [vmem:[%s4087_s26 + $0xd8] sm:$0xf] %v262_v54  ;;  %265 = vst [vmem:[%s4087_s26 + $0xdc] sm:$0xf] %v264_v55  ;;  %v266_v56 = vld [vmem:[%s4080_s25 + $0x380] sm:$0xf] }
  0x37   : > { %v268_v57 = vld [vmem:[%s4080_s25 + $0x390] sm:$0xf]  ;;  %v270_v58 = vld [vmem:[%s4080_s25 + $0x3a0] sm:$0xf]  ;;  %267 = vst [vmem:[%s4087_s26 + $0xe0] sm:$0xf] %v266_v56 }
  0x38   : > { %269 = vst [vmem:[%s4087_s26 + $0xe4] sm:$0xf] %v268_v57  ;;  %271 = vst [vmem:[%s4087_s26 + $0xe8] sm:$0xf] %v270_v58  ;;  %v272_v59 = vld [vmem:[%s4080_s25 + $0x3b0] sm:$0xf] }
  0x39   : > { %v274_v60 = vld [vmem:[%s4080_s25 + $0x3c0] sm:$0xf]  ;;  %v276_v61 = vld [vmem:[%s4080_s25 + $0x3d0] sm:$0xf]  ;;  %273 = vst [vmem:[%s4087_s26 + $0xec] sm:$0xf] %v272_v59 }
  0x3a   : > { %275 = vst [vmem:[%s4087_s26 + $0xf0] sm:$0xf] %v274_v60  ;;  %277 = vst [vmem:[%s4087_s26 + $0xf4] sm:$0xf] %v276_v61  ;;  %v278_v62 = vld [vmem:[%s4080_s25 + $0x3e0] sm:$0xf] }
  0x3b   : > { %v280_v63 = vld [vmem:[%s4080_s25 + $0x3f0] sm:$0xf]  ;;  %v282_v0 = vld [vmem:[%s4080_s25 + $0x400] sm:$0xf]  ;;  %279 = vst [vmem:[%s4087_s26 + $0xf8] sm:$0xf] %v278_v62 }
  0x3c   : > { %281 = vst [vmem:[%s4087_s26 + $0xfc] sm:$0xf] %v280_v63  ;;  %283 = vst [vmem:[%s4087_s26 + $0x100] sm:$0xf] %v282_v0  ;;  %v284_v1 = vld [vmem:[%s4080_s25 + $0x410] sm:$0xf] }
  0x3d   : > { %v286_v2 = vld [vmem:[%s4080_s25 + $0x420] sm:$0xf]  ;;  %v288_v3 = vld [vmem:[%s4080_s25 + $0x430] sm:$0xf]  ;;  %285 = vst [vmem:[%s4087_s26 + $0x104] sm:$0xf] %v284_v1 }
  0x3e   : > { %287 = vst [vmem:[%s4087_s26 + $0x108] sm:$0xf] %v286_v2  ;;  %289 = vst [vmem:[%s4087_s26 + $0x10c] sm:$0xf] %v288_v3  ;;  %v290_v4 = vld [vmem:[%s4080_s25 + $0x440] sm:$0xf] }
  0x3f   : > { %v292_v5 = vld [vmem:[%s4080_s25 + $0x450] sm:$0xf]  ;;  %v294_v6 = vld [vmem:[%s4080_s25 + $0x460] sm:$0xf]  ;;  %291 = vst [vmem:[%s4087_s26 + $0x110] sm:$0xf] %v290_v4 }
  0x40   : > { %293 = vst [vmem:[%s4087_s26 + $0x114] sm:$0xf] %v292_v5  ;;  %295 = vst [vmem:[%s4087_s26 + $0x118] sm:$0xf] %v294_v6  ;;  %v296_v7 = vld [vmem:[%s4080_s25 + $0x470] sm:$0xf] }
  0x41   : > { %v298_v8 = vld [vmem:[%s4080_s25 + $0x480] sm:$0xf]  ;;  %v300_v9 = vld [vmem:[%s4080_s25 + $0x490] sm:$0xf]  ;;  %297 = vst [vmem:[%s4087_s26 + $0x11c] sm:$0xf] %v296_v7 }
  0x42   : > { %299 = vst [vmem:[%s4087_s26 + $0x120] sm:$0xf] %v298_v8  ;;  %301 = vst [vmem:[%s4087_s26 + $0x124] sm:$0xf] %v300_v9  ;;  %v302_v10 = vld [vmem:[%s4080_s25 + $0x4a0] sm:$0xf] }
  0x43   : > { %v304_v11 = vld [vmem:[%s4080_s25 + $0x4b0] sm:$0xf]  ;;  %v306_v12 = vld [vmem:[%s4080_s25 + $0x4c0] sm:$0xf]  ;;  %303 = vst [vmem:[%s4087_s26 + $0x128] sm:$0xf] %v302_v10 }
  0x44   : > { %305 = vst [vmem:[%s4087_s26 + $0x12c] sm:$0xf] %v304_v11  ;;  %307 = vst [vmem:[%s4087_s26 + $0x130] sm:$0xf] %v306_v12  ;;  %v308_v13 = vld [vmem:[%s4080_s25 + $0x4d0] sm:$0xf] }
  0x45   : > { %v310_v14 = vld [vmem:[%s4080_s25 + $0x4e0] sm:$0xf]  ;;  %v312_v15 = vld [vmem:[%s4080_s25 + $0x4f0] sm:$0xf]  ;;  %309 = vst [vmem:[%s4087_s26 + $0x134] sm:$0xf] %v308_v13 }
  0x46   : > { %311 = vst [vmem:[%s4087_s26 + $0x138] sm:$0xf] %v310_v14  ;;  %313 = vst [vmem:[%s4087_s26 + $0x13c] sm:$0xf] %v312_v15  ;;  %v314_v16 = vld [vmem:[%s4080_s25 + $0x500] sm:$0xf] }
  0x47   : > { %v316_v17 = vld [vmem:[%s4080_s25 + $0x510] sm:$0xf]  ;;  %v318_v18 = vld [vmem:[%s4080_s25 + $0x520] sm:$0xf]  ;;  %315 = vst [vmem:[%s4087_s26 + $0x140] sm:$0xf] %v314_v16 }
  0x48   : > { %317 = vst [vmem:[%s4087_s26 + $0x144] sm:$0xf] %v316_v17  ;;  %319 = vst [vmem:[%s4087_s26 + $0x148] sm:$0xf] %v318_v18  ;;  %v320_v19 = vld [vmem:[%s4080_s25 + $0x530] sm:$0xf] }
  0x49   : > { %v322_v20 = vld [vmem:[%s4080_s25 + $0x540] sm:$0xf]  ;;  %v324_v21 = vld [vmem:[%s4080_s25 + $0x550] sm:$0xf]  ;;  %321 = vst [vmem:[%s4087_s26 + $0x14c] sm:$0xf] %v320_v19 }
  0x4a   : > { %323 = vst [vmem:[%s4087_s26 + $0x150] sm:$0xf] %v322_v20  ;;  %325 = vst [vmem:[%s4087_s26 + $0x154] sm:$0xf] %v324_v21  ;;  %v326_v22 = vld [vmem:[%s4080_s25 + $0x560] sm:$0xf] }
  0x4b   : > { %v328_v23 = vld [vmem:[%s4080_s25 + $0x570] sm:$0xf]  ;;  %v330_v24 = vld [vmem:[%s4080_s25 + $0x580] sm:$0xf]  ;;  %327 = vst [vmem:[%s4087_s26 + $0x158] sm:$0xf] %v326_v22 }
  0x4c   : > { %329 = vst [vmem:[%s4087_s26 + $0x15c] sm:$0xf] %v328_v23  ;;  %331 = vst [vmem:[%s4087_s26 + $0x160] sm:$0xf] %v330_v24  ;;  %v332_v25 = vld [vmem:[%s4080_s25 + $0x590] sm:$0xf] }
  0x4d   : > { %v334_v26 = vld [vmem:[%s4080_s25 + $0x5a0] sm:$0xf]  ;;  %v336_v27 = vld [vmem:[%s4080_s25 + $0x5b0] sm:$0xf]  ;;  %333 = vst [vmem:[%s4087_s26 + $0x164] sm:$0xf] %v332_v25 }
  0x4e   : > { %335 = vst [vmem:[%s4087_s26 + $0x168] sm:$0xf] %v334_v26  ;;  %337 = vst [vmem:[%s4087_s26 + $0x16c] sm:$0xf] %v336_v27  ;;  %v338_v28 = vld [vmem:[%s4080_s25 + $0x5c0] sm:$0xf] }
  0x4f   : > { %v340_v29 = vld [vmem:[%s4080_s25 + $0x5d0] sm:$0xf]  ;;  %v342_v30 = vld [vmem:[%s4080_s25 + $0x5e0] sm:$0xf]  ;;  %339 = vst [vmem:[%s4087_s26 + $0x170] sm:$0xf] %v338_v28 }
  0x50   : > { %341 = vst [vmem:[%s4087_s26 + $0x174] sm:$0xf] %v340_v29  ;;  %343 = vst [vmem:[%s4087_s26 + $0x178] sm:$0xf] %v342_v30  ;;  %v344_v31 = vld [vmem:[%s4080_s25 + $0x5f0] sm:$0xf] }
  0x51   : > { %v346_v32 = vld [vmem:[%s4080_s25 + $0x600] sm:$0xf]  ;;  %v348_v33 = vld [vmem:[%s4080_s25 + $0x610] sm:$0xf]  ;;  %345 = vst [vmem:[%s4087_s26 + $0x17c] sm:$0xf] %v344_v31 }
  0x52   : > { %347 = vst [vmem:[%s4087_s26 + $0x180] sm:$0xf] %v346_v32  ;;  %349 = vst [vmem:[%s4087_s26 + $0x184] sm:$0xf] %v348_v33  ;;  %v350_v34 = vld [vmem:[%s4080_s25 + $0x620] sm:$0xf] }
  0x53   : > { %v352_v35 = vld [vmem:[%s4080_s25 + $0x630] sm:$0xf]  ;;  %v354_v36 = vld [vmem:[%s4080_s25 + $0x640] sm:$0xf]  ;;  %351 = vst [vmem:[%s4087_s26 + $0x188] sm:$0xf] %v350_v34 }
  0x54   : > { %353 = vst [vmem:[%s4087_s26 + $0x18c] sm:$0xf] %v352_v35  ;;  %355 = vst [vmem:[%s4087_s26 + $0x190] sm:$0xf] %v354_v36  ;;  %v356_v37 = vld [vmem:[%s4080_s25 + $0x650] sm:$0xf] }
  0x55   : > { %v358_v38 = vld [vmem:[%s4080_s25 + $0x660] sm:$0xf]  ;;  %v360_v39 = vld [vmem:[%s4080_s25 + $0x670] sm:$0xf]  ;;  %357 = vst [vmem:[%s4087_s26 + $0x194] sm:$0xf] %v356_v37 }
  0x56   : > { %359 = vst [vmem:[%s4087_s26 + $0x198] sm:$0xf] %v358_v38  ;;  %361 = vst [vmem:[%s4087_s26 + $0x19c] sm:$0xf] %v360_v39  ;;  %v362_v40 = vld [vmem:[%s4080_s25 + $0x680] sm:$0xf] }
  0x57   : > { %v364_v41 = vld [vmem:[%s4080_s25 + $0x690] sm:$0xf]  ;;  %v366_v42 = vld [vmem:[%s4080_s25 + $0x6a0] sm:$0xf]  ;;  %363 = vst [vmem:[%s4087_s26 + $0x1a0] sm:$0xf] %v362_v40 }
  0x58   : > { %365 = vst [vmem:[%s4087_s26 + $0x1a4] sm:$0xf] %v364_v41  ;;  %367 = vst [vmem:[%s4087_s26 + $0x1a8] sm:$0xf] %v366_v42  ;;  %v368_v43 = vld [vmem:[%s4080_s25 + $0x6b0] sm:$0xf] }
  0x59   : > { %v370_v44 = vld [vmem:[%s4080_s25 + $0x6c0] sm:$0xf]  ;;  %v372_v45 = vld [vmem:[%s4080_s25 + $0x6d0] sm:$0xf]  ;;  %369 = vst [vmem:[%s4087_s26 + $0x1ac] sm:$0xf] %v368_v43 }
  0x5a   : > { %371 = vst [vmem:[%s4087_s26 + $0x1b0] sm:$0xf] %v370_v44  ;;  %373 = vst [vmem:[%s4087_s26 + $0x1b4] sm:$0xf] %v372_v45  ;;  %v374_v46 = vld [vmem:[%s4080_s25 + $0x6e0] sm:$0xf] }
  0x5b   : > { %v376_v47 = vld [vmem:[%s4080_s25 + $0x6f0] sm:$0xf]  ;;  %v378_v48 = vld [vmem:[%s4080_s25 + $0x700] sm:$0xf]  ;;  %375 = vst [vmem:[%s4087_s26 + $0x1b8] sm:$0xf] %v374_v46 }
  0x5c   : > { %377 = vst [vmem:[%s4087_s26 + $0x1bc] sm:$0xf] %v376_v47  ;;  %379 = vst [vmem:[%s4087_s26 + $0x1c0] sm:$0xf] %v378_v48  ;;  %v380_v49 = vld [vmem:[%s4080_s25 + $0x710] sm:$0xf] }
  0x5d   : > { %v382_v50 = vld [vmem:[%s4080_s25 + $0x720] sm:$0xf]  ;;  %v384_v51 = vld [vmem:[%s4080_s25 + $0x730] sm:$0xf]  ;;  %381 = vst [vmem:[%s4087_s26 + $0x1c4] sm:$0xf] %v380_v49 }
  0x5e   : > { %383 = vst [vmem:[%s4087_s26 + $0x1c8] sm:$0xf] %v382_v50  ;;  %385 = vst [vmem:[%s4087_s26 + $0x1cc] sm:$0xf] %v384_v51  ;;  %v386_v52 = vld [vmem:[%s4080_s25 + $0x740] sm:$0xf] }
  0x5f   : > { %v388_v53 = vld [vmem:[%s4080_s25 + $0x750] sm:$0xf]  ;;  %v390_v54 = vld [vmem:[%s4080_s25 + $0x760] sm:$0xf]  ;;  %387 = vst [vmem:[%s4087_s26 + $0x1d0] sm:$0xf] %v386_v52 }
  0x60   : > { %389 = vst [vmem:[%s4087_s26 + $0x1d4] sm:$0xf] %v388_v53  ;;  %391 = vst [vmem:[%s4087_s26 + $0x1d8] sm:$0xf] %v390_v54  ;;  %v392_v55 = vld [vmem:[%s4080_s25 + $0x770] sm:$0xf] }
  0x61   : > { %v394_v56 = vld [vmem:[%s4080_s25 + $0x780] sm:$0xf]  ;;  %v396_v57 = vld [vmem:[%s4080_s25 + $0x790] sm:$0xf]  ;;  %393 = vst [vmem:[%s4087_s26 + $0x1dc] sm:$0xf] %v392_v55 }
  0x62   : > { %395 = vst [vmem:[%s4087_s26 + $0x1e0] sm:$0xf] %v394_v56  ;;  %397 = vst [vmem:[%s4087_s26 + $0x1e4] sm:$0xf] %v396_v57  ;;  %v398_v58 = vld [vmem:[%s4080_s25 + $0x7a0] sm:$0xf] }
  0x63   : > { %v400_v59 = vld [vmem:[%s4080_s25 + $0x7b0] sm:$0xf]  ;;  %v402_v60 = vld [vmem:[%s4080_s25 + $0x7c0] sm:$0xf]  ;;  %399 = vst [vmem:[%s4087_s26 + $0x1e8] sm:$0xf] %v398_v58 }
  0x64   : > { %401 = vst [vmem:[%s4087_s26 + $0x1ec] sm:$0xf] %v400_v59  ;;  %403 = vst [vmem:[%s4087_s26 + $0x1f0] sm:$0xf] %v402_v60  ;;  %v404_v61 = vld [vmem:[%s4080_s25 + $0x7d0] sm:$0xf] }
  0x65   : > { %v406_v62 = vld [vmem:[%s4080_s25 + $0x7e0] sm:$0xf]  ;;  %v408_v63 = vld [vmem:[%s4080_s25 + $0x7f0] sm:$0xf]  ;;  %405 = vst [vmem:[%s4087_s26 + $0x1f4] sm:$0xf] %v404_v61 }
  0x66   : > { %407 = vst [vmem:[%s4087_s26 + $0x1f8] sm:$0xf] %v406_v62  ;;  %409 = vst [vmem:[%s4087_s26 + $0x1fc] sm:$0xf] %v408_v63  ;;  %v410_v0 = vld [vmem:[%s4080_s25 + $0x800] sm:$0xf] }
  0x67   : > { %v412_v1 = vld [vmem:[%s4080_s25 + $0x810] sm:$0xf]  ;;  %v414_v2 = vld [vmem:[%s4080_s25 + $0x820] sm:$0xf]  ;;  %411 = vst [vmem:[%s4087_s26 + $0x200] sm:$0xf] %v410_v0 }
  0x68   : > { %413 = vst [vmem:[%s4087_s26 + $0x204] sm:$0xf] %v412_v1  ;;  %415 = vst [vmem:[%s4087_s26 + $0x208] sm:$0xf] %v414_v2  ;;  %v416_v3 = vld [vmem:[%s4080_s25 + $0x830] sm:$0xf] }
  0x69   : > { %v418_v4 = vld [vmem:[%s4080_s25 + $0x840] sm:$0xf]  ;;  %v420_v5 = vld [vmem:[%s4080_s25 + $0x850] sm:$0xf]  ;;  %417 = vst [vmem:[%s4087_s26 + $0x20c] sm:$0xf] %v416_v3 }
  0x6a   : > { %419 = vst [vmem:[%s4087_s26 + $0x210] sm:$0xf] %v418_v4  ;;  %421 = vst [vmem:[%s4087_s26 + $0x214] sm:$0xf] %v420_v5  ;;  %v422_v6 = vld [vmem:[%s4080_s25 + $0x860] sm:$0xf] }
  0x6b   : > { %v424_v7 = vld [vmem:[%s4080_s25 + $0x870] sm:$0xf]  ;;  %v426_v8 = vld [vmem:[%s4080_s25 + $0x880] sm:$0xf]  ;;  %423 = vst [vmem:[%s4087_s26 + $0x218] sm:$0xf] %v422_v6 }
  0x6c   : > { %425 = vst [vmem:[%s4087_s26 + $0x21c] sm:$0xf] %v424_v7  ;;  %427 = vst [vmem:[%s4087_s26 + $0x220] sm:$0xf] %v426_v8  ;;  %v428_v9 = vld [vmem:[%s4080_s25 + $0x890] sm:$0xf] }
  0x6d   : > { %v430_v10 = vld [vmem:[%s4080_s25 + $0x8a0] sm:$0xf]  ;;  %v432_v11 = vld [vmem:[%s4080_s25 + $0x8b0] sm:$0xf]  ;;  %429 = vst [vmem:[%s4087_s26 + $0x224] sm:$0xf] %v428_v9 }
  0x6e   : > { %431 = vst [vmem:[%s4087_s26 + $0x228] sm:$0xf] %v430_v10  ;;  %433 = vst [vmem:[%s4087_s26 + $0x22c] sm:$0xf] %v432_v11  ;;  %v434_v12 = vld [vmem:[%s4080_s25 + $0x8c0] sm:$0xf] }
  0x6f   : > { %v436_v13 = vld [vmem:[%s4080_s25 + $0x8d0] sm:$0xf]  ;;  %v438_v14 = vld [vmem:[%s4080_s25 + $0x8e0] sm:$0xf]  ;;  %435 = vst [vmem:[%s4087_s26 + $0x230] sm:$0xf] %v434_v12 }
  0x70   : > { %437 = vst [vmem:[%s4087_s26 + $0x234] sm:$0xf] %v436_v13  ;;  %439 = vst [vmem:[%s4087_s26 + $0x238] sm:$0xf] %v438_v14  ;;  %v440_v15 = vld [vmem:[%s4080_s25 + $0x8f0] sm:$0xf] }
  0x71   : > { %441 = vst [vmem:[%s4087_s26 + $0x23c] sm:$0xf] %v440_v15 }
  0x72 PF: > { %p2883_p5 = scmp.ge.s32.totalorder %s4021_s14, 1  ;;  %p757_p6 = scmp.lt.s32.totalorder %s4021_s14, 5 }
  0x74   : > { %p758_p7 = pnand %p2883_p5, %p757_p6 }
  0x75   : > { %s764_s27 = sand.u32 (!%p758_p7), 1, %s4013_s12   ;;  %v4023_v16 = vmov (!%p758_p7), 0.0   ;;  %vm4024_vm0 = vmmov (!%p758_p7), 0   ;;  %v795_v29 = vld [vmem:[%s4770_s0] sm:$0x1] (!%p758_p7)  ;;  %p788_p8 = scmp.lt.s32.totalorder (!%p758_p7), %s2878_s15, 3 }
  0x76   : > { %761 = sbr.rel (%p758_p7) target bundleno = 638 (0x27e), region = 69  ;;  %3457 = vmatprep.subr.bf16.mxu0 (!%p758_p7), %v4023_v16  ;;  %3477 = vmatprep.subr.bf16.mxu1 (!%p758_p7), %v4023_v16  ;;  %v2900_v32 = vcombine.low (!%p758_p7), %v795_v29, %v795_v29  ;;  %v3879_v48 = vld [vmem:[%s4770_s0] ss:$0 sps:$4 sm:$0x22] (!%p758_p7)   ;;  %vm1791_vm1 = vcmask (!%p758_p7), 1040384  }
  0x77   : > { %s3818_s28 = smul.u32 (!%p758_p7), 576, %s764_s27  ;;  %3473 = vmatprep.mubr.msk.bf16.mxu0 (!%p758_p7), %vm4024_vm0, %v4023_v16  ;;  %3493 = vmatprep.mubr.msk.bf16.mxu1 (!%p758_p7), %vm4024_vm0, %v4023_v16  ;;  %v1142_v52 = vshrl.u32 (!%p758_p7), %v3879_v48, 16  ;;  %v1033_v54 = vrot.slane (!%p758_p7), %v3879_v48, 1  ;;  %v3896_v4 = vld [vmem:[%s4770_s0] ss:$0 sps:$4 sm:$0x44] (!%p758_p7)  }
  0x78   : > { %v833_v35 = vshrl.u32 (!%p758_p7), %v2900_v32, 16  ;;  %v1365_v8 = vshrl.u32 (!%p758_p7), %v3896_v4, 16  ;;  %v1256_v10 = vrot.slane (!%p758_p7), %v3896_v4, 2  ;;  %v4569_v48 = vld [vmem:[%s4770_s0 + $0x4] ss:$0 sps:$4 sm:$0x22] (!%p758_p7)  }
  0x79   : > { %s4381_s29 = scalar_lea.vmem (!%p758_p7), [#allocation2], %s3818_s28  ;;  %v1144_v55 = vrot.slane (!%p758_p7), %v1142_v52, 1  ;;  %v2036_v4 = vshrl.u32 (!%p758_p7), %v4569_v48, 16  ;;  %vm1792_vm2 = vsmask.f32 (!%p758_p7), 256 }
  0x7a   : > { %v3846_v17 = vld [vmem:[%s4381_s29 + $0x40] sm:$0xff] (!%p758_p7)   ;;  %v3848_v19 = vld [vmem:[%s4381_s29 + $0x48] sm:$0xff] (!%p758_p7)   ;;  %v3850_v21 = vld [vmem:[%s4381_s29 + $0x50] sm:$0xff] (!%p758_p7)   ;;  %v1367_v11 = vrot.slane (!%p758_p7), %v1365_v8, 2  ;;  %vm2811_vm4 = vsmask.f32 (!%p758_p7), 7938 }
  0x7b   : > { %v3847_v18 = vld [vmem:[%s4381_s29] sm:$0xff] (!%p758_p7)   ;;  %3458 = vmatpush3.bf16.msra.mxu0 (!%p758_p7), %v3846_v17  ;;  %v3849_v20 = vld [vmem:[%s4381_s29 + $0x8] sm:$0xff] (!%p758_p7)   ;;  %v3851_v22 = vld [vmem:[%s4381_s29 + $0x10] sm:$0xff] (!%p758_p7)  }
  0x7c   : > { %3478 = vmatpush3.bf16.msra.mxu1 (!%p758_p7), %v3847_v18  ;;  %3459 = vmatprep.subr.bf16.mxu0 (!%p758_p7), %v4023_v16  ;;  %v3852_v23 = vld [vmem:[%s4381_s29 + $0x58] sm:$0xff] (!%p758_p7)   ;;  %v3854_v25 = vld [vmem:[%s4381_s29 + $0x60] sm:$0xff] (!%p758_p7)   ;;  %v3856_v27 = vld [vmem:[%s4381_s29 + $0x68] sm:$0xff] (!%p758_p7)  }
  0x7d   : > { %3479 = vmatprep.subr.bf16.mxu1 %v4023_v16  ;;  %v3853_v24 = vld [vmem:[%s4381_s29 + $0x18] sm:$0xff]   ;;  %v3855_v26 = vld [vmem:[%s4381_s29 + $0x20] sm:$0xff]   ;;  %v3857_v28 = vld [vmem:[%s4381_s29 + $0x28] sm:$0xff]   ;;  %s4778_s15 = smov (!%p788_p8, %s2878_s15), 3 }
  0x7e   : > { %v3858_v30 = vld [vmem:[%s4381_s29 + $0x70] sm:$0xff]   ;;  %v3860_v33 = vld [vmem:[%s4381_s29 + $0x78] sm:$0xff]   ;;  %v3863_v36 = vld [vmem:[%s4381_s29 + $0x80] sm:$0xff]   ;;  %s4745_s30 = scalar_lea.vmem %s4772_s2, %s4778_s15  ;;  %s4751_s6 = scalar_lea.vmem %s4773_s3, %s4778_s15 }
  0x7f   : > { %3460 = vmatpush3.bf16.msra.mxu0 %v3848_v19  ;;  %v3859_v31 = vld [vmem:[%s4381_s29 + $0x30] sm:$0xff]   ;;  %v3861_v34 = vld [vmem:[%s4381_s29 + $0x38] sm:$0xff]   ;;  %v3864_v37 = vld [vmem:[%s4381_s29 + $0xc0] sm:$0xff]  }
  0x80   : > { %3480 = vmatpush3.bf16.msra.mxu1 %v3849_v20  ;;  %3461 = vmatprep.subr.bf16.mxu0 %v4023_v16  ;;  %v3865_v38 = vld [vmem:[%s4381_s29 + $0x88] sm:$0xff]   ;;  %v3867_v40 = vld [vmem:[%s4381_s29 + $0x90] sm:$0xff]   ;;  %v3869_v42 = vld [vmem:[%s4381_s29 + $0x98] sm:$0xff]  }
  0x81   : > { %3481 = vmatprep.subr.bf16.mxu1 %v4023_v16  ;;  %v3866_v39 = vld [vmem:[%s4381_s29 + $0xc8] sm:$0xff]   ;;  %v3868_v41 = vld [vmem:[%s4381_s29 + $0xd0] sm:$0xff]   ;;  %v3870_v43 = vld [vmem:[%s4381_s29 + $0xd8] sm:$0xff]  }
  0x82   : > { %v3871_v44 = vld [vmem:[%s4381_s29 + $0xa0] sm:$0xff]   ;;  %v3873_v46 = vld [vmem:[%s4381_s29 + $0xa8] sm:$0xff]   ;;  %v3875_v49 = vld [vmem:[%s4381_s29 + $0xb0] sm:$0xff]  }
  0x83   : > { %3462 = vmatpush3.bf16.msra.mxu0 %v3850_v21  ;;  %v3872_v45 = vld [vmem:[%s4381_s29 + $0xe0] sm:$0xff]   ;;  %v3874_v47 = vld [vmem:[%s4381_s29 + $0xe8] sm:$0xff]   ;;  %v3876_v50 = vld [vmem:[%s4381_s29 + $0xf0] sm:$0xff]  }
  0x84   : > { %3482 = vmatpush3.bf16.msra.mxu1 %v3851_v22  ;;  %3463 = vmatprep.subr.bf16.mxu0 %v4023_v16  ;;  %v3877_v51 = vld [vmem:[%s4381_s29 + $0xb8] sm:$0xff]   ;;  %v3880_v56 = vld [vmem:[%s4381_s29 + $0x100] sm:$0xff]   ;;  %v3882_v58 = vld [vmem:[%s4381_s29 + $0x108] sm:$0xff]  }
  0x85   : > { %3483 = vmatprep.subr.bf16.mxu1 %v4023_v16  ;;  %v3878_v53 = vld [vmem:[%s4381_s29 + $0xf8] sm:$0xff]   ;;  %v3881_v57 = vld [vmem:[%s4381_s29 + $0x140] sm:$0xff]   ;;  %v3883_v59 = vld [vmem:[%s4381_s29 + $0x148] sm:$0xff]  }
  0x86   : > { %v3884_v60 = vld [vmem:[%s4381_s29 + $0x110] sm:$0xff]   ;;  %v3886_v62 = vld [vmem:[%s4381_s29 + $0x118] sm:$0xff]   ;;  %v3888_v0 = vld [vmem:[%s4381_s29 + $0x120] sm:$0xff]  }
  0x87   : > { %3464 = vmatpush3.bf16.msra.mxu0 %v3852_v23  ;;  %v3885_v61 = vld [vmem:[%s4381_s29 + $0x150] sm:$0xff]   ;;  %v3887_v63 = vld [vmem:[%s4381_s29 + $0x158] sm:$0xff]   ;;  %v3889_v1 = vld [vmem:[%s4381_s29 + $0x160] sm:$0xff]  }
  0x88   : > { %3484 = vmatpush3.bf16.msra.mxu1 %v3853_v24  ;;  %3465 = vmatprep.subr.bf16.mxu0 %v4023_v16  ;;  %v3890_v2 = vld [vmem:[%s4381_s29 + $0x128] sm:$0xff]   ;;  %v3892_v5 = vld [vmem:[%s4381_s29 + $0x130] sm:$0xff]   ;;  %v3894_v7 = vld [vmem:[%s4381_s29 + $0x138] sm:$0xff]  }
  0x89   : > { %3485 = vmatprep.subr.bf16.mxu1 %v4023_v16  ;;  %v3891_v3 = vld [vmem:[%s4381_s29 + $0x168] sm:$0xff]   ;;  %v3893_v6 = vld [vmem:[%s4381_s29 + $0x170] sm:$0xff]   ;;  %v3895_v9 = vld [vmem:[%s4381_s29 + $0x178] sm:$0xff]  }
  0x8a   : > { %v3897_v12 = vld [vmem:[%s4381_s29 + $0x180] sm:$0xff]   ;;  %v3899_v14 = vld [vmem:[%s4381_s29 + $0x188] sm:$0xff]   ;;  %v3901_v17 = vld [vmem:[%s4381_s29 + $0x190] sm:$0xff]  }
  0x8b   : > { %3466 = vmatpush3.bf16.msra.mxu0 %v3854_v25  ;;  %v3898_v13 = vld [vmem:[%s4381_s29 + $0x1c0] sm:$0xff]   ;;  %v3900_v15 = vld [vmem:[%s4381_s29 + $0x1c8] sm:$0xff]   ;;  %v3902_v18 = vld [vmem:[%s4381_s29 + $0x1d0] sm:$0xff]  }
  0x8c   : > { %3486 = vmatpush3.bf16.msra.mxu1 %v3855_v26  ;;  %3467 = vmatprep.subr.bf16.mxu0 %v4023_v16  ;;  %v3903_v19 = vld [vmem:[%s4381_s29 + $0x198] sm:$0xff]   ;;  %v3905_v21 = vld [vmem:[%s4381_s29 + $0x1a0] sm:$0xff]   ;;  %v3907_v23 = vld [vmem:[%s4381_s29 + $0x1a8] sm:$0xff]  }
  0x8d   : > { %3487 = vmatprep.subr.bf16.mxu1 %v4023_v16  ;;  %v3904_v20 = vld [vmem:[%s4381_s29 + $0x1d8] sm:$0xff]   ;;  %v3906_v22 = vld [vmem:[%s4381_s29 + $0x1e0] sm:$0xff]   ;;  %v3908_v24 = vld [vmem:[%s4381_s29 + $0x1e8] sm:$0xff]  }
  0x8e   : > { %v3913_v25 = vld [vmem:[%s4770_s0] ss:$0 sps:$4 sm:$0x88]   ;;  %v3909_v26 = vld [vmem:[%s4381_s29 + $0x1b0] sm:$0xff]   ;;  %vm1793_vm3 = vmand %vm1791_vm1, %vm1792_vm2 }
  0x8f   : > { %3468 = vmatpush3.bf16.msra.mxu0 %v3856_v27  ;;  %v3910_v27 = vld [vmem:[%s4381_s29 + $0x1f0] sm:$0xff]   ;;  %v3931_v52 = vld [vmem:[%s4381_s29] sm:$0xff]   ;;  %vm2812_vm5 = vmand %vm1791_vm1, %vm2811_vm4 }
  0x90   : > { %3488 = vmatpush3.bf16.msra.mxu1 %v3857_v28  ;;  %3469 = vmatprep.subr.bf16.mxu0 %v4023_v16  ;;  %v3911_v28 = vld [vmem:[%s4381_s29 + $0x1b8] sm:$0xff]   ;;  %v3948_v8 = vld [vmem:[%s4381_s29 + $0xc0] sm:$0xff]  }
  0x91   : > { %3489 = vmatprep.subr.bf16.mxu1 %v4023_v16 }
  0x93   : > { %3470 = vmatpush3.bf16.msra.mxu0 %v3858_v30  ;;  %v3912_v30 = vld [vmem:[%s4381_s29 + $0x1f8] sm:$0xff]  }
  0x94   : > { %3490 = vmatpush3.bf16.msra.mxu1 %v3859_v31  ;;  %3471 = vmatprep.subr.bf16.mxu0 %v4023_v16  ;;  %v1479_v31 = vrot.slane %v3913_v25, 3 }
  0x95   : > { %3491 = vmatprep.subr.bf16.mxu1 %v4023_v16 }
  0x97   : > { %3472 = vmatpush3.bf16.msra.mxu0 %v3860_v33  ;;  %v3914_v33 = vld [vmem:[%s4381_s29 + $0x200] sm:$0xff]  }
  0x98   : > { %3492 = vmatpush3.bf16.msra.mxu1 %v3861_v34  ;;  %3497 = vmatprep.subr.bf16.mxu0 %v4023_v16  ;;  %v3915_v34 = vld [vmem:[%s4381_s29 + $0x40] sm:$0xff]  }
  0x99   : > { %3517 = vmatprep.subr.bf16.mxu1 %v4023_v16 }
  0x9a   : > { %3474 = vmatmul.mubr.bf16.vlgmr.msra.gmra.mrb[0].mxu0 %v833_v35  ;;  %v3916_v35 = vld [vmem:[%s4381_s29 + $0x208] sm:$0xff]  }
  0x9b   : > { %3494 = vmatmul.mubr.bf16.vlgmr.msra.gmra.mrb[0].mxu1 %v795_v29  ;;  %3498 = vmatpush3.bf16.msra.mxu0 %v3863_v36  ;;  %v1588_v29 = vshrl.u32 %v3913_v25, 16  ;;  %v3917_v36 = vld [vmem:[%s4381_s29 + $0x48] sm:$0xff]  }
  0x9c   : > { %3518 = vmatpush3.bf16.msra.mxu1 %v3864_v37  ;;  %3499 = vmatprep.subr.bf16.mxu0 %v4023_v16  ;;  %v3918_v37 = vld [vmem:[%s4381_s29 + $0x210] sm:$0xff]  }
  0x9d   : > { %3519 = vmatprep.subr.bf16.mxu1 %v4023_v16  ;;  %3513 = vmatprep.mubr.msk.bf16.mxu0 %vm4024_vm0, %v4023_v16  ;;  %v1590_v32 = vrot.slane %v1588_v29, 3  ;;  %v3965_v29 = vld [vmem:[%s4381_s29 + $0x140] sm:$0xff]  }
  0x9e   : > { %3533 = vmatprep.mubr.msk.bf16.mxu1 %vm4024_vm0, %v4023_v16 }
  0x9f   : > { %3500 = vmatpush3.bf16.msra.mxu0 %v3865_v38  ;;  %v3919_v38 = vld [vmem:[%s4381_s29 + $0x50] sm:$0xff]  }
  0xa0   : > { %3520 = vmatpush3.bf16.msra.mxu1 %v3866_v39  ;;  %3501 = vmatprep.subr.bf16.mxu0 %v4023_v16  ;;  %v3920_v39 = vld [vmem:[%s4381_s29 + $0x218] sm:$0xff]  }
  0xa1   : > { %3521 = vmatprep.subr.bf16.mxu1 %v4023_v16 }
  0xa3   : > { %3502 = vmatpush3.bf16.msra.mxu0 %v3867_v40  ;;  %v3921_v40 = vld [vmem:[%s4381_s29 + $0x58] sm:$0xff]  }
  0xa4   : > { %3522 = vmatpush3.bf16.msra.mxu1 %v3868_v41  ;;  %3503 = vmatprep.subr.bf16.mxu0 %v4023_v16  ;;  %v3922_v41 = vld [vmem:[%s4381_s29 + $0x220] sm:$0xff]  }
  0xa5   : > { %3523 = vmatprep.subr.bf16.mxu1 %v4023_v16 }
  0xa7   : > { %3504 = vmatpush3.bf16.msra.mxu0 %v3869_v42  ;;  %v3923_v42 = vld [vmem:[%s4381_s29 + $0x60] sm:$0xff]  }
  0xa8   : > { %3524 = vmatpush3.bf16.msra.mxu1 %v3870_v43  ;;  %3505 = vmatprep.subr.bf16.mxu0 %v4023_v16  ;;  %v3924_v43 = vld [vmem:[%s4381_s29 + $0x228] sm:$0xff]  }
  0xa9   : > { %3525 = vmatprep.subr.bf16.mxu1 %v4023_v16 }
  0xab   : > { %3506 = vmatpush3.bf16.msra.mxu0 %v3871_v44  ;;  %v3925_v44 = vld [vmem:[%s4381_s29 + $0x68] sm:$0xff]  }
  0xac   : > { %3526 = vmatpush3.bf16.msra.mxu1 %v3872_v45  ;;  %3507 = vmatprep.subr.bf16.mxu0 %v4023_v16  ;;  %v3926_v45 = vld [vmem:[%s4381_s29 + $0x230] sm:$0xff]  }
  0xad   : > { %3527 = vmatprep.subr.bf16.mxu1 %v4023_v16 }
  0xaf   : > { %3508 = vmatpush3.bf16.msra.mxu0 %v3873_v46  ;;  %v3927_v46 = vld [vmem:[%s4381_s29 + $0x70] sm:$0xff]  }
  0xb0   : > { %3528 = vmatpush3.bf16.msra.mxu1 %v3874_v47  ;;  %3509 = vmatprep.subr.bf16.mxu0 %v4023_v16  ;;  %v3928_v47 = vld [vmem:[%s4381_s29 + $0x238] sm:$0xff]  }
  0xb1   : > { %3529 = vmatprep.subr.bf16.mxu1 %v4023_v16 }
  0xb3   : > { %3510 = vmatpush3.bf16.msra.mxu0 %v3875_v49  ;;  %v3929_v49 = vld [vmem:[%s4381_s29 + $0x78] sm:$0xff]  }
  0xb4   : > { %3530 = vmatpush3.bf16.msra.mxu1 %v3876_v50  ;;  %3511 = vmatprep.subr.bf16.mxu0 %v4023_v16  ;;  %v1681_v50 = vld [vmem:[%s4770_s0 + $0x4] sm:$0x1] }
  0xb5   : > { %3531 = vmatprep.subr.bf16.mxu1 %v4023_v16 }
  0xb7   : > { %3512 = vmatpush3.bf16.msra.mxu0 %v3877_v51  ;;  %v1834_v51 = vrot.slane %v4569_v48, 1  ;;  %v3981_v48 = vld [vmem:[%s4770_s0 + $0x4] ss:$0 sps:$4 sm:$0x88]  }
  0xb8   : > { %3532 = vmatpush3.bf16.msra.mxu1 %v3878_v53  ;;  %3537 = vmatprep.subr.bf16.mxu0 %v4023_v16  ;;  %v3932_v53 = vld [vmem:[%s4381_s29 + $0x80] sm:$0xff]  }
  0xb9   : > { %3557 = vmatprep.subr.bf16.mxu1 %v4023_v16 }
  0xba   : > { %3514 = vmatmul.mubr.bf16.vlgmr.msra.gmra.mrb[4].mxu0 %v1033_v54  ;;  %v3933_v54 = vld [vmem:[%s4381_s29 + $0x8] sm:$0xff]  }
  0xbb   : > { %3534 = vmatmul.mubr.bf16.vlgmr.msra.gmra.mrb[4].mxu1 %v1144_v55  ;;  %3538 = vmatpush3.bf16.msra.mxu0 %v3880_v56  ;;  %v3934_v55 = vld [vmem:[%s4381_s29 + $0x88] sm:$0xff]   ;;  %v3935_v56 = vld [vmem:[%s4381_s29 + $0x10] sm:$0xff]  }
  0xbc   : > { %3558 = vmatpush3.bf16.msra.mxu1 %v3881_v57  ;;  %3539 = vmatprep.subr.bf16.mxu0 %v4023_v16  ;;  %v3936_v57 = vld [vmem:[%s4381_s29 + $0x90] sm:$0xff]  }
  0xbd   : > { %3559 = vmatprep.subr.bf16.mxu1 %v4023_v16  ;;  %3553 = vmatprep.mubr.msk.bf16.mxu0 %vm4024_vm0, %v4023_v16 }
  0xbe   : > { %3573 = vmatprep.mubr.msk.bf16.mxu1 %vm4024_vm0, %v4023_v16 }
  0xbf   : > { %3540 = vmatpush3.bf16.msra.mxu0 %v3882_v58  ;;  %v3937_v58 = vld [vmem:[%s4381_s29 + $0x18] sm:$0xff]  }
  0xc0   : > { %3560 = vmatpush3.bf16.msra.mxu1 %v3883_v59  ;;  %3541 = vmatprep.subr.bf16.mxu0 %v4023_v16  ;;  %v3938_v59 = vld [vmem:[%s4381_s29 + $0x98] sm:$0xff]  }
  0xc1   : > { %3561 = vmatprep.subr.bf16.mxu1 %v4023_v16 }
  0xc3   : > { %3542 = vmatpush3.bf16.msra.mxu0 %v3884_v60  ;;  %v3939_v60 = vld [vmem:[%s4381_s29 + $0x20] sm:$0xff]  }
  0xc4   : > { %3562 = vmatpush3.bf16.msra.mxu1 %v3885_v61  ;;  %3543 = vmatprep.subr.bf16.mxu0 %v4023_v16  ;;  %v3940_v61 = vld [vmem:[%s4381_s29 + $0xa0] sm:$0xff]  }
  0xc5   : > { %3563 = vmatprep.subr.bf16.mxu1 %v4023_v16 }
  0xc7   : > { %3544 = vmatpush3.bf16.msra.mxu0 %v3886_v62  ;;  %v3941_v62 = vld [vmem:[%s4381_s29 + $0x28] sm:$0xff]  }
  0xc8   : > { %3564 = vmatpush3.bf16.msra.mxu1 %v3887_v63  ;;  %3545 = vmatprep.subr.bf16.mxu0 %v4023_v16  ;;  %v3942_v63 = vld [vmem:[%s4381_s29 + $0xa8] sm:$0xff]  }
  0xc9   : > { %3565 = vmatprep.subr.bf16.mxu1 %v4023_v16 }
  0xcb   : > { %3546 = vmatpush3.bf16.msra.mxu0 %v3888_v0  ;;  %v3943_v0 = vld [vmem:[%s4381_s29 + $0x30] sm:$0xff]  }
  0xcc   : > { %3566 = vmatpush3.bf16.msra.mxu1 %v3889_v1  ;;  %3547 = vmatprep.subr.bf16.mxu0 %v4023_v16  ;;  %v3944_v1 = vld [vmem:[%s4381_s29 + $0xb0] sm:$0xff]  }
  0xcd   : > { %3567 = vmatprep.subr.bf16.mxu1 %v4023_v16 }
  0xcf   : > { %3548 = vmatpush3.bf16.msra.mxu0 %v3890_v2  ;;  %v3947_v2 = vld [vmem:[%s4770_s0 + $0x4] ss:$0 sps:$4 sm:$0x11]  }
  0xd0   : > { %3568 = vmatpush3.bf16.msra.mxu1 %v3891_v3  ;;  %3549 = vmatprep.subr.bf16.mxu0 %v4023_v16  ;;  %v3945_v3 = vld [vmem:[%s4381_s29 + $0x38] sm:$0xff]  }
  0xd1   : > { %3569 = vmatprep.subr.bf16.mxu1 %v4023_v16 }
  0xd3   : > { %3550 = vmatpush3.bf16.msra.mxu0 %v3892_v5  ;;  %v3946_v5 = vld [vmem:[%s4381_s29 + $0xb8] sm:$0xff]  }
  0xd4   : > { %3570 = vmatpush3.bf16.msra.mxu1 %v3893_v6  ;;  %3551 = vmatprep.subr.bf16.mxu0 %v4023_v16  ;;  %v1928_v6 = vshrl.u32 %v3947_v2, 16  ;;  %v3990_v2 = vld [vmem:[%s4381_s29 + $0x1e0] sm:$0xff]  }
  0xd5   : > { %3571 = vmatprep.subr.bf16.mxu1 %v4023_v16 }
  0xd7   : > { %3552 = vmatpush3.bf16.msra.mxu0 %v3894_v7  ;;  %v2038_v7 = vrot.slane %v2036_v4, 1  ;;  %v3992_v4 = vld [vmem:[%s4381_s29 + $0x1e8] sm:$0xff]  }
  0xd8   : > { %3572 = vmatpush3.bf16.msra.mxu1 %v3895_v9  ;;  %3577 = vmatprep.subr.bf16.mxu0 %v4023_v16  ;;  %v3949_v9 = vld [vmem:[%s4381_s29 + $0x100] sm:$0xff]  }
  0xd9   : > { %3597 = vmatprep.subr.bf16.mxu1 %v4023_v16 }
  0xda   : > { %3554 = vmatmul.mubr.bf16.vlgmr.msra.gmra.mrb[8].mxu0 %v1256_v10  ;;  %v3950_v10 = vld [vmem:[%s4381_s29 + $0xc8] sm:$0xff]  }
  0xdb   : > { %3574 = vmatmul.mubr.bf16.vlgmr.msra.gmra.mrb[8].mxu1 %v1367_v11  ;;  %3578 = vmatpush3.bf16.msra.mxu0 %v3897_v12  ;;  %v3951_v11 = vld [vmem:[%s4381_s29 + $0x108] sm:$0xff]   ;;  %v3952_v12 = vld [vmem:[%s4381_s29 + $0xd0] sm:$0xff]  }
  0xdc   : > { %3598 = vmatpush3.bf16.msra.mxu1 %v3898_v13  ;;  %3579 = vmatprep.subr.bf16.mxu0 %v4023_v16  ;;  %v3953_v13 = vld [vmem:[%s4381_s29 + $0x110] sm:$0xff]  }
  0xdd   : > { %3599 = vmatprep.subr.bf16.mxu1 %v4023_v16  ;;  %3593 = vmatprep.mubr.msk.bf16.mxu0 %vm4024_vm0, %v4023_v16 }
  0xde   : > { %3613 = vmatprep.mubr.msk.bf16.mxu1 %vm4024_vm0, %v4023_v16 }
  0xdf   : > { %3580 = vmatpush3.bf16.msra.mxu0 %v3899_v14  ;;  %v3954_v14 = vld [vmem:[%s4381_s29 + $0xd8] sm:$0xff]  }
  0xe0   : > { %3600 = vmatpush3.bf16.msra.mxu1 %v3900_v15  ;;  %3581 = vmatprep.subr.bf16.mxu0 %v4023_v16  ;;  %v3955_v15 = vld [vmem:[%s4381_s29 + $0x118] sm:$0xff]  }
  0xe1   : > { %3601 = vmatprep.subr.bf16.mxu1 %v4023_v16 }
  0xe3   : > { %3582 = vmatpush3.bf16.msra.mxu0 %v3901_v17  ;;  %v3956_v17 = vld [vmem:[%s4381_s29 + $0xe0] sm:$0xff]  }
  0xe4   : > { %3602 = vmatpush3.bf16.msra.mxu1 %v3902_v18  ;;  %3583 = vmatprep.subr.bf16.mxu0 %v4023_v16  ;;  %v3957_v18 = vld [vmem:[%s4381_s29 + $0x120] sm:$0xff]  }
  0xe5   : > { %3603 = vmatprep.subr.bf16.mxu1 %v4023_v16 }
  0xe7   : > { %3584 = vmatpush3.bf16.msra.mxu0 %v3903_v19  ;;  %v3958_v19 = vld [vmem:[%s4381_s29 + $0xe8] sm:$0xff]  }
  0xe8   : > { %3604 = vmatpush3.bf16.msra.mxu1 %v3904_v20  ;;  %3585 = vmatprep.subr.bf16.mxu0 %v4023_v16  ;;  %v3959_v20 = vld [vmem:[%s4381_s29 + $0x128] sm:$0xff]  }
  0xe9   : > { %3605 = vmatprep.subr.bf16.mxu1 %v4023_v16 }
  0xeb   : > { %3586 = vmatpush3.bf16.msra.mxu0 %v3905_v21  ;;  %v3960_v21 = vld [vmem:[%s4381_s29 + $0xf0] sm:$0xff]  }
  0xec   : > { %3606 = vmatpush3.bf16.msra.mxu1 %v3906_v22  ;;  %3587 = vmatprep.subr.bf16.mxu0 %v4023_v16  ;;  %v3964_v22 = vld [vmem:[%s4770_s0 + $0x4] ss:$0 sps:$4 sm:$0x44]  }
  0xed   : > { %3607 = vmatprep.subr.bf16.mxu1 %v4023_v16  ;;  %v2257_v25 = vshrl.u32 %v3964_v22, 16 }
  0xef   : > { %3588 = vmatpush3.bf16.msra.mxu0 %v3907_v23  ;;  %v3961_v23 = vld [vmem:[%s4381_s29 + $0x130] sm:$0xff]  }
  0xf0   : > { %3608 = vmatpush3.bf16.msra.mxu1 %v3908_v24  ;;  %3589 = vmatprep.subr.bf16.mxu0 %v4023_v16  ;;  %v3962_v24 = vld [vmem:[%s4381_s29 + $0xf8] sm:$0xff]  }
  0xf1   : > { %3609 = vmatprep.subr.bf16.mxu1 %v4023_v16 }
  0xf3   : > { %3590 = vmatpush3.bf16.msra.mxu0 %v3909_v26  ;;  %v3963_v26 = vld [vmem:[%s4381_s29 + $0x138] sm:$0xff]  }
  0xf4   : > { %3610 = vmatpush3.bf16.msra.mxu1 %v3910_v27  ;;  %3591 = vmatprep.subr.bf16.mxu0 %v4023_v16  ;;  %v2149_v27 = vrot.slane %v3964_v22, 2  ;;  %v3997_v22 = vld [vmem:[%s4381_s29 + $0x238] sm:$0xff]  }
  0xf5   : > { %3611 = vmatprep.subr.bf16.mxu1 %v4023_v16 }
  0xf7   : > { %3592 = vmatpush3.bf16.msra.mxu0 %v3911_v28  ;;  %v2259_v28 = vrot.slane %v2257_v25, 2 }
  0xf8   : > { %3612 = vmatpush3.bf16.msra.mxu1 %v3912_v30  ;;  %3617 = vmatprep.subr.bf16.mxu0 %v4023_v16  ;;  %v3966_v30 = vld [vmem:[%s4381_s29 + $0x180] sm:$0xff]  }
  0xf9   : > { %3637 = vmatprep.subr.bf16.mxu1 %v4023_v16 }
  0xfa   : > { %3594 = vmatmul.mubr.bf16.vlgmr.msra.gmra.mrb[12].mxu0 %v1479_v31  ;;  %v3967_v31 = vld [vmem:[%s4381_s29 + $0x148] sm:$0xff]  }
  0xfb   : > { %3614 = vmatmul.mubr.bf16.vlgmr.msra.gmra.mrb[12].mxu1 %v1590_v32  ;;  %3618 = vmatpush3.bf16.msra.mxu0 %v3914_v33  ;;  %v3968_v32 = vld [vmem:[%s4381_s29 + $0x188] sm:$0xff]   ;;  %v3969_v33 = vld [vmem:[%s4381_s29 + $0x150] sm:$0xff]  }
  0xfc   : > { %3638 = vmatpush3.bf16.msra.mxu1 %v3915_v34  ;;  %3619 = vmatprep.subr.bf16.mxu0 %v4023_v16  ;;  %v3970_v34 = vld [vmem:[%s4381_s29 + $0x190] sm:$0xff]  }
  0xfd   : > { %3639 = vmatprep.subr.bf16.mxu1 %v4023_v16  ;;  %3633 = vmatprep.mubr.msk.bf16.mxu0 %vm4024_vm0, %v4023_v16 }
  0xfe   : > { %3653 = vmatprep.mubr.msk.bf16.mxu1 %vm4024_vm0, %v4023_v16 }
  0xff   : > { %3620 = vmatpush3.bf16.msra.mxu0 %v3916_v35  ;;  %v3971_v35 = vld [vmem:[%s4381_s29 + $0x158] sm:$0xff]  }
 0x100   : > { %3640 = vmatpush3.bf16.msra.mxu1 %v3917_v36  ;;  %3621 = vmatprep.subr.bf16.mxu0 %v4023_v16  ;;  %v3972_v36 = vld [vmem:[%s4381_s29 + $0x198] sm:$0xff]  }
 0x101   : > { %3641 = vmatprep.subr.bf16.mxu1 %v4023_v16 }
 0x103   : > { %3622 = vmatpush3.bf16.msra.mxu0 %v3918_v37  ;;  %v3973_v37 = vld [vmem:[%s4381_s29 + $0x160] sm:$0xff]  }
 0x104   : > { %3642 = vmatpush3.bf16.msra.mxu1 %v3919_v38  ;;  %3623 = vmatprep.subr.bf16.mxu0 %v4023_v16  ;;  %v3974_v38 = vld [vmem:[%s4381_s29 + $0x1a0] sm:$0xff]  }
 0x105   : > { %3643 = vmatprep.subr.bf16.mxu1 %v4023_v16 }
 0x107   : > { %3624 = vmatpush3.bf16.msra.mxu0 %v3920_v39  ;;  %v3975_v39 = vld [vmem:[%s4381_s29 + $0x168] sm:$0xff]  }
 0x108   : > { %3644 = vmatpush3.bf16.msra.mxu1 %v3921_v40  ;;  %3625 = vmatprep.subr.bf16.mxu0 %v4023_v16  ;;  %v3976_v40 = vld [vmem:[%s4381_s29 + $0x1a8] sm:$0xff]  }
 0x109   : > { %3645 = vmatprep.subr.bf16.mxu1 %v4023_v16 }
 0x10b   : > { %3626 = vmatpush3.bf16.msra.mxu0 %v3922_v41 }
 0x10c   : > { %3646 = vmatpush3.bf16.msra.mxu1 %v3923_v42  ;;  %3627 = vmatprep.subr.bf16.mxu0 %v4023_v16 }
 0x10d   : > { %3647 = vmatprep.subr.bf16.mxu1 %v4023_v16 }
 0x10f   : > { %3628 = vmatpush3.bf16.msra.mxu0 %v3924_v43 }
 0x110   : > { %3648 = vmatpush3.bf16.msra.mxu1 %v3925_v44  ;;  %3629 = vmatprep.subr.bf16.mxu0 %v4023_v16 }
 0x111   : > { %3649 = vmatprep.subr.bf16.mxu1 %v4023_v16 }
 0x113   : > { %3630 = vmatpush3.bf16.msra.mxu0 %v3926_v45 }
 0x114   : > { %3650 = vmatpush3.bf16.msra.mxu1 %v3927_v46  ;;  %3631 = vmatprep.subr.bf16.mxu0 %v4023_v16 }
 0x115   : > { %3651 = vmatprep.subr.bf16.mxu1 %v4023_v16 }
 0x117   : > { %3632 = vmatpush3.bf16.msra.mxu0 %v3928_v47  ;;  %v3977_v47 = vld [vmem:[%s4381_s29 + $0x170] sm:$0xff]  }
 0x118   : > { %3652 = vmatpush3.bf16.msra.mxu1 %v3929_v49  ;;  %3657 = vmatprep.subr.bf16.mxu0 %v4023_v16 }
 0x119   : > { %3677 = vmatprep.subr.bf16.mxu1 %v4023_v16 }
 0x11a   : > { %3634 = vmatmul.mubr.bf16.vlgmr.msra.gmra.mrb[16].mxu0 %v1681_v50 }
 0x11b   : > { %3654 = vmatmul.mubr.bf16.vlgmr.msra.gmra.mrb[16].mxu1 %v1834_v51  ;;  %3658 = vmatpush3.bf16.msra.mxu0 %v3931_v52  ;;  %v3978_v51 = vld [vmem:[%s4381_s29 + $0x1b0] sm:$0xff]  }
 0x11c   : > { %3678 = vmatpush3.bf16.msra.mxu1 %v3932_v53  ;;  %3659 = vmatprep.subr.bf16.mxu0 %v4023_v16  ;;  %v3979_v53 = vld [vmem:[%s4381_s29 + $0x178] sm:$0xff]  }
 0x11d   : > { %3679 = vmatprep.subr.bf16.mxu1 %v4023_v16  ;;  %3673 = vmatprep.mubr.msk.bf16.mxu0 %vm4024_vm0, %v4023_v16 }
 0x11e   : > { %3693 = vmatprep.mubr.msk.bf16.mxu1 %vm4024_vm0, %v4023_v16 }
 0x11f   : > { %3660 = vmatpush3.bf16.msra.mxu0 %v3933_v54  ;;  %v2478_v54 = vshrl.u32 %v3981_v48, 16 }
 0x120   : > { %3680 = vmatpush3.bf16.msra.mxu1 %v3934_v55  ;;  %3661 = vmatprep.subr.bf16.mxu0 %v4023_v16  ;;  %v3980_v55 = vld [vmem:[%s4381_s29 + $0x1b8] sm:$0xff]  }
 0x121   : > { %3681 = vmatprep.subr.bf16.mxu1 %v4023_v16 }
 0x123   : > { %3662 = vmatpush3.bf16.msra.mxu0 %v3935_v56  ;;  %v2370_v56 = vrot.slane %v3981_v48, 3 }
 0x124   : > { %3682 = vmatpush3.bf16.msra.mxu1 %v3936_v57  ;;  %3663 = vmatprep.subr.bf16.mxu0 %v4023_v16  ;;  %v2480_v57 = vrot.slane %v2478_v54, 3 }
 0x125   : > { %3683 = vmatprep.subr.bf16.mxu1 %v4023_v16 }
 0x127   : > { %3664 = vmatpush3.bf16.msra.mxu0 %v3937_v58  ;;  %v3982_v58 = vld [vmem:[%s4381_s29 + $0x1c0] sm:$0xff]  }
 0x128   : > { %3684 = vmatpush3.bf16.msra.mxu1 %v3938_v59  ;;  %3665 = vmatprep.subr.bf16.mxu0 %v4023_v16  ;;  %v3983_v59 = vld [vmem:[%s4381_s29 + $0x200] sm:$0xff]  }
 0x129   : > { %3685 = vmatprep.subr.bf16.mxu1 %v4023_v16 }
 0x12b   : > { %3666 = vmatpush3.bf16.msra.mxu0 %v3939_v60  ;;  %v3984_v60 = vld [vmem:[%s4381_s29 + $0x1c8] sm:$0xff]  }
 0x12c   : > { %3686 = vmatpush3.bf16.msra.mxu1 %v3940_v61  ;;  %3667 = vmatprep.subr.bf16.mxu0 %v4023_v16  ;;  %v3985_v61 = vld [vmem:[%s4381_s29 + $0x208] sm:$0xff]  }
 0x12d   : > { %3687 = vmatprep.subr.bf16.mxu1 %v4023_v16 }
 0x12f   : > { %3668 = vmatpush3.bf16.msra.mxu0 %v3941_v62  ;;  %v3986_v62 = vld [vmem:[%s4381_s29 + $0x1d0] sm:$0xff]  }
 0x130   : > { %3688 = vmatpush3.bf16.msra.mxu1 %v3942_v63  ;;  %3669 = vmatprep.subr.bf16.mxu0 %v4023_v16  ;;  %v3987_v63 = vld [vmem:[%s4381_s29 + $0x210] sm:$0xff]  }
 0x131   : > { %3689 = vmatprep.subr.bf16.mxu1 %v4023_v16 }
 0x133   : > { %3670 = vmatpush3.bf16.msra.mxu0 %v3943_v0  ;;  %v3988_v0 = vld [vmem:[%s4381_s29 + $0x1d8] sm:$0xff]  }
 0x134   : > { %3690 = vmatpush3.bf16.msra.mxu1 %v3944_v1  ;;  %3671 = vmatprep.subr.bf16.mxu0 %v4023_v16  ;;  %v3989_v1 = vld [vmem:[%s4381_s29 + $0x218] sm:$0xff]  }
 0x135   : > { %3691 = vmatprep.subr.bf16.mxu1 %v4023_v16 }
 0x137   : > { %3672 = vmatpush3.bf16.msra.mxu0 %v3945_v3  ;;  %v3991_v3 = vld [vmem:[%s4381_s29 + $0x220] sm:$0xff]  }
 0x138   : > { %3692 = vmatpush3.bf16.msra.mxu1 %v3946_v5  ;;  %3697 = vmatprep.subr.bf16.mxu0 %v4023_v16  ;;  %v3993_v5 = vld [vmem:[%s4381_s29 + $0x228] sm:$0xff]  }
 0x139   : > { %3717 = vmatprep.subr.bf16.mxu1 %v4023_v16 }
 0x13a   : > { %3674 = vmatmul.mubr.bf16.vlgmr.msra.gmra.mrb[20].mxu0 %v1928_v6 }
 0x13b   : > { %3694 = vmatmul.mubr.bf16.vlgmr.msra.gmra.mrb[20].mxu1 %v2038_v7  ;;  %3698 = vmatpush3.bf16.msra.mxu0 %v3948_v8 }
 0x13c   : > { %3718 = vmatpush3.bf16.msra.mxu1 %v3949_v9  ;;  %3699 = vmatprep.subr.bf16.mxu0 %v4023_v16 }
 0x13d   : > { %3719 = vmatprep.subr.bf16.mxu1 %v4023_v16  ;;  %3713 = vmatprep.mubr.msk.bf16.mxu0 %vm4024_vm0, %v4023_v16 }
 0x13e   : > { %3733 = vmatprep.mubr.msk.bf16.mxu1 %vm4024_vm0, %v4023_v16 }
 0x13f   : > { %3700 = vmatpush3.bf16.msra.mxu0 %v3950_v10 }
 0x140   : > { %3720 = vmatpush3.bf16.msra.mxu1 %v3951_v11  ;;  %3701 = vmatprep.subr.bf16.mxu0 %v4023_v16 }
 0x141   : > { %3721 = vmatprep.subr.bf16.mxu1 %v4023_v16 }
 0x143   : > { %3702 = vmatpush3.bf16.msra.mxu0 %v3952_v12  ;;  %v3994_v12 = vld [vmem:[%s4381_s29 + $0x1f0] sm:$0xff]  }
 0x144   : > { %3722 = vmatpush3.bf16.msra.mxu1 %v3953_v13  ;;  %3703 = vmatprep.subr.bf16.mxu0 %v4023_v16 }
 0x145   : > { %3723 = vmatprep.subr.bf16.mxu1 %v4023_v16 }
 0x147   : > { %3704 = vmatpush3.bf16.msra.mxu0 %v3954_v14 }
 0x148   : > { %3724 = vmatpush3.bf16.msra.mxu1 %v3955_v15  ;;  %3705 = vmatprep.subr.bf16.mxu0 %v4023_v16 }
 0x149   : > { %3725 = vmatprep.subr.bf16.mxu1 %v4023_v16 }
 0x14b   : > { %3706 = vmatpush3.bf16.msra.mxu0 %v3956_v17  ;;  %v3995_v17 = vld [vmem:[%s4381_s29 + $0x230] sm:$0xff]  }
 0x14c   : > { %3726 = vmatpush3.bf16.msra.mxu1 %v3957_v18  ;;  %3707 = vmatprep.subr.bf16.mxu0 %v4023_v16  ;;  %v2571_v18 = vld [vmem:[%s4770_s0 + $0x8] sm:$0x1] }
 0x14d   : > { %3727 = vmatprep.subr.bf16.mxu1 %v4023_v16 }
 0x14f   : > { %3708 = vmatpush3.bf16.msra.mxu0 %v3958_v19 }
 0x150   : > { %3728 = vmatpush3.bf16.msra.mxu1 %v3959_v20  ;;  %3709 = vmatprep.subr.bf16.mxu0 %v4023_v16  ;;  %v3996_v20 = vld [vmem:[%s4381_s29 + $0x1f8] sm:$0xff]  }
 0x151   : > { %3729 = vmatprep.subr.bf16.mxu1 %v4023_v16 }
 0x153   : > { %3710 = vmatpush3.bf16.msra.mxu0 %v3960_v21  ;;  %v3284_v21 = vcombine.low %v2571_v18, %v2571_v18 }
 0x154   : > { %3730 = vmatpush3.bf16.msra.mxu1 %v3961_v23  ;;  %3711 = vmatprep.subr.bf16.mxu0 %v4023_v16 }
 0x155   : > { %3731 = vmatprep.subr.bf16.mxu1 %v4023_v16  ;;  %v2697_v23 = vshrl.u32 %v3284_v21, 16 }
 0x157   : > { %3712 = vmatpush3.bf16.msra.mxu0 %v3962_v24 }
 0x158   : > { %3732 = vmatpush3.bf16.msra.mxu1 %v3963_v26  ;;  %3737 = vmatprep.subr.bf16.mxu0 %v4023_v16 }
 0x159   : > { %3757 = vmatprep.subr.bf16.mxu1 %v4023_v16 }
 0x15a   : > { %3714 = vmatmul.mubr.bf16.vlgmr.msra.gmra.mrb[24].mxu0 %v2149_v27 }
 0x15b   : > { %3734 = vmatmul.mubr.bf16.vlgmr.msra.gmra.mrb[24].mxu1 %v2259_v28  ;;  %3738 = vmatpush3.bf16.msra.mxu0 %v3965_v29 }
 0x15c   : > { %3758 = vmatpush3.bf16.msra.mxu1 %v3966_v30  ;;  %3739 = vmatprep.subr.bf16.mxu0 %v4023_v16 }
 0x15d   : > { %3759 = vmatprep.subr.bf16.mxu1 %v4023_v16  ;;  %3753 = vmatprep.mubr.msk.bf16.mxu0 %vm4024_vm0, %v4023_v16 }
 0x15e   : > { %3773 = vmatprep.mubr.msk.bf16.mxu1 %vm4024_vm0, %v4023_v16 }
 0x15f   : > { %3740 = vmatpush3.bf16.msra.mxu0 %v3967_v31 }
 0x160   : > { %3760 = vmatpush3.bf16.msra.mxu1 %v3968_v32  ;;  %3741 = vmatprep.subr.bf16.mxu0 %v4023_v16 }
 0x161   : > { %3761 = vmatprep.subr.bf16.mxu1 %v4023_v16 }
 0x163   : > { %3742 = vmatpush3.bf16.msra.mxu0 %v3969_v33 }
 0x164   : > { %3762 = vmatpush3.bf16.msra.mxu1 %v3970_v34  ;;  %3743 = vmatprep.subr.bf16.mxu0 %v4023_v16 }
 0x165   : > { %3763 = vmatprep.subr.bf16.mxu1 %v4023_v16 }
 0x167   : > { %3744 = vmatpush3.bf16.msra.mxu0 %v3971_v35 }
 0x168   : > { %3764 = vmatpush3.bf16.msra.mxu1 %v3972_v36  ;;  %3745 = vmatprep.subr.bf16.mxu0 %v4023_v16 }
 0x169   : > { %3765 = vmatprep.subr.bf16.mxu1 %v4023_v16 }
 0x16b   : > { %3746 = vmatpush3.bf16.msra.mxu0 %v3973_v37 }
 0x16c   : > { %3766 = vmatpush3.bf16.msra.mxu1 %v3974_v38  ;;  %3747 = vmatprep.subr.bf16.mxu0 %v4023_v16 }
 0x16d   : > { %v918_v41 = vpop.f32.mrb[0].mxu0  ;;  %3767 = vmatprep.subr.bf16.mxu1 %v4023_v16 }
 0x16e   : > { %v1006_v42 = vpop.f32.mrb[0].mxu1  ;;  %v3475_v43 = vpop.f32.mrb[1].mxu0 }
 0x16f   : > { %v4685_v44 = vadd.f32 %v1006_v42, %v918_v41  ;;  %v3495_v45 = vpop.f32.mrb[1].mxu1  ;;  %v921_v46 = vpop.f32.mrb[2].mxu0  ;;  %3748 = vmatpush3.bf16.msra.mxu0 %v3975_v39 }
 0x170   : > { %v1009_v49 = vpop.f32.mrb[2].mxu1  ;;  %3768 = vmatpush3.bf16.msra.mxu1 %v3976_v40  ;;  %v3476_v50 = vpop.f32.mrb[3].mxu0  ;;  %3749 = vmatprep.subr.bf16.mxu0 %v4023_v16 }
 0x171   : > { %v3496_v52 = vpop.f32.mrb[3].mxu1  ;;  %3769 = vmatprep.subr.bf16.mxu1 %v4023_v16 }
 0x173   : > { %3750 = vmatpush3.bf16.msra.mxu0 %v3977_v47 }
 0x174   : > { %3770 = vmatpush3.bf16.msra.mxu1 %v3978_v51  ;;  %3751 = vmatprep.subr.bf16.mxu0 %v4023_v16 }
 0x175   : > { %3771 = vmatprep.subr.bf16.mxu1 %v4023_v16 }
 0x177   : > { %3752 = vmatpush3.bf16.msra.mxu0 %v3979_v53  ;;  %v1794_v53 = vld [vmem:[%s4751_s6] sm:$0x1] }
 0x178   : > { %3772 = vmatpush3.bf16.msra.mxu1 %v3980_v55  ;;  %3777 = vmatprep.subr.bf16.mxu0 %v4023_v16 }
 0x179   : > { %3797 = vmatprep.subr.bf16.mxu1 %v4023_v16 }
 0x17a   : > { %3754 = vmatmul.mubr.bf16.vlgmr.msra.gmra.mrb[28].mxu0 %v2370_v56 }
 0x17b   : > { %3774 = vmatmul.mubr.bf16.vlgmr.msra.gmra.mrb[28].mxu1 %v2480_v57  ;;  %3778 = vmatpush3.bf16.msra.mxu0 %v3982_v58 }
 0x17c   : > { %3798 = vmatpush3.bf16.msra.mxu1 %v3983_v59  ;;  %3779 = vmatprep.subr.bf16.mxu0 %v4023_v16 }
 0x17d   : > { %3799 = vmatprep.subr.bf16.mxu1 %v4023_v16  ;;  %3793 = vmatprep.mubr.msk.bf16.mxu0 %vm4024_vm0, %v4023_v16 }
 0x17e   : > { %3813 = vmatprep.mubr.msk.bf16.mxu1 %vm4024_vm0, %v4023_v16 }
 0x17f   : > { %3780 = vmatpush3.bf16.msra.mxu0 %v3984_v60 }
 0x180   : > { %3800 = vmatpush3.bf16.msra.mxu1 %v3985_v61  ;;  %3781 = vmatprep.subr.bf16.mxu0 %v4023_v16 }
 0x181   : > { %3801 = vmatprep.subr.bf16.mxu1 %v4023_v16 }
 0x183   : > { %3782 = vmatpush3.bf16.msra.mxu0 %v3986_v62 }
 0x184   : > { %3802 = vmatpush3.bf16.msra.mxu1 %v3987_v63  ;;  %3783 = vmatprep.subr.bf16.mxu0 %v4023_v16 }
 0x185   : > { %3803 = vmatprep.subr.bf16.mxu1 %v4023_v16 }
 0x187   : > { %3784 = vmatpush3.bf16.msra.mxu0 %v3988_v0 }
 0x188   : > { %3804 = vmatpush3.bf16.msra.mxu1 %v3989_v1  ;;  %3785 = vmatprep.subr.bf16.mxu0 %v4023_v16 }
 0x189   : > { %3805 = vmatprep.subr.bf16.mxu1 %v4023_v16 }
 0x18b   : > { %3786 = vmatpush3.bf16.msra.mxu0 %v3990_v2 }
 0x18c   : > { %3806 = vmatpush3.bf16.msra.mxu1 %v3991_v3  ;;  %3787 = vmatprep.subr.bf16.mxu0 %v4023_v16 }
 0x18d   : > { %v1117_v6 = vpop.f32.mrb[4].mxu0  ;;  %3807 = vmatprep.subr.bf16.mxu1 %v4023_v16 }
 0x18e   : > { %v1123_v7 = vadd.f32 %v1117_v6, %v4685_v44  ;;  %v1228_v8 = vpop.f32.mrb[4].mxu1  ;;  %v3515_v9 = vpop.f32.mrb[5].mxu0  ;;  %v1788_v44 = vld [vmem:[%s4745_s30] sm:$0x1] }
 0x18f   : > { %v3535_v10 = vpop.f32.mrb[5].mxu1  ;;  %v1120_v11 = vpop.f32.mrb[6].mxu0  ;;  %3788 = vmatpush3.bf16.msra.mxu0 %v3992_v4 }
 0x190   : > { %v1234_v13 = vadd.f32 %v1228_v8, %v1123_v7  ;;  %v1231_v14 = vpop.f32.mrb[6].mxu1  ;;  %3808 = vmatpush3.bf16.msra.mxu1 %v3993_v5  ;;  %v3516_v15 = vpop.f32.mrb[7].mxu0  ;;  %3789 = vmatprep.subr.bf16.mxu0 %v4023_v16 }
 0x191   : > { %v3536_v19 = vpop.f32.mrb[7].mxu1  ;;  %3809 = vmatprep.subr.bf16.mxu1 %v4023_v16 }
 0x193   : > { %3790 = vmatpush3.bf16.msra.mxu0 %v3994_v12 }
 0x194   : > { %3810 = vmatpush3.bf16.msra.mxu1 %v3995_v17  ;;  %3791 = vmatprep.subr.bf16.mxu0 %v4023_v16 }
 0x195   : > { %3811 = vmatprep.subr.bf16.mxu1 %v4023_v16 }
 0x197   : > { %3792 = vmatpush3.bf16.msra.mxu0 %v3996_v20 }
 0x198   : > { %3812 = vmatpush3.bf16.msra.mxu1 %v3997_v22 }
 0x19a   : > { %3794 = vmatmul.mubr.bf16.vlgmr.msra.gmra.mrb[32].mxu0 %v2571_v18 }
 0x19b   : > { %3814 = vmatmul.mubr.bf16.vlgmr.msra.gmra.mrb[32].mxu1 %v2697_v23 }
 0x1ad   : > { %v1340_v24 = vpop.f32.mrb[8].mxu0 }
 0x1ae   : > { %v1346_v25 = vadd.f32 %v1340_v24, %v1234_v13  ;;  %v1451_v26 = vpop.f32.mrb[8].mxu1  ;;  %v3555_v27 = vpop.f32.mrb[9].mxu0  ;;  %v4025_v24 = vmov 1966171168  }
 0x1af   : > { %v3575_v28 = vpop.f32.mrb[9].mxu1  ;;  %v1343_v29 = vpop.f32.mrb[10].mxu0 }
 0x1b0   : > { %v1457_v30 = vadd.f32 %v1451_v26, %v1346_v25  ;;  %v1454_v31 = vpop.f32.mrb[10].mxu1  ;;  %v3556_v32 = vpop.f32.mrb[11].mxu0  ;;  %v2794_v25 = vunpack.c.l.s4 %v4025_v24  ;;  %v2796_v26 = vlaneseq }
 0x1b1   : > { %v3576_v33 = vpop.f32.mrb[11].mxu1 }
 0x1b2   : > { %v2797_v31 = vshrl.u32 %v2796_v26, 7  ;;  %v2789_v33 = vld [vmem:[%s4745_s30] sm:$0x1] }
 0x1cd   : > { %v1563_v34 = vpop.f32.mrb[12].mxu0 }
 0x1ce   : > { %v1569_v35 = vadd.f32 %v1563_v34, %v1457_v30  ;;  %v1674_v16 = vpop.f32.mrb[12].mxu1  ;;  %v3595_v36 = vpop.f32.mrb[13].mxu0  ;;  %v2795_v30 = vunpack.c.0.s8 %v2794_v25 }
 0x1cf   : > { %v3615_v37 = vpop.f32.mrb[13].mxu1  ;;  %v1566_v38 = vpop.f32.mrb[14].mxu0 }
 0x1d0   : > { %v1680_v39 = vadd.f32 %v1674_v16, %v1569_v35  ;;  %v1677_v40 = vpop.f32.mrb[14].mxu1  ;;  %v3596_v41 = vpop.f32.mrb[15].mxu0 }
 0x1d1   : > { %v3616_v42 = vpop.f32.mrb[15].mxu1  ;;  %v2798_v40 = vsub.s32 %v2795_v30, %v2797_v31 }
 0x1ed   : > { %v1781_v43 = vpop.f32.mrb[16].mxu0 }
 0x1ee   : > { %v1787_v45 = vadd.f32 %v1781_v43, %v1680_v39  ;;  %v1918_v46 = vpop.f32.mrb[16].mxu1  ;;  %v3635_v47 = vpop.f32.mrb[17].mxu0 }
 0x1ef   : > { %v3655_v48 = vpop.f32.mrb[17].mxu1  ;;  %v1784_v49 = vpop.f32.mrb[18].mxu0 }
 0x1f0   : > { %v1789_v50 = vadd.f32 %v1788_v44, %v1787_v45  ;;  %v1921_v51 = vpop.f32.mrb[18].mxu1  ;;  %v3636_v52 = vpop.f32.mrb[19].mxu0 }
 0x1f1   : > { %v3656_v54 = vpop.f32.mrb[19].mxu1 }
 0x1f2   : > { %v1790_v55 = vpack.c.bf16 %v1789_v50, %v1789_v50 }
 0x1f4   : > { %v1795_v56 = vsel %vm1793_vm3, %v1790_v55, %v1794_v53 }
 0x1f5   : > { %1796 = vst [vmem:[%s4751_s6] sm:$0x1] %v1795_v56 }
 0x1fc   : > { %v2813_v45 = vld [vmem:[%s4751_s6] sm:$0x1] }
 0x20d   : > { %v2013_v57 = vpop.f32.mrb[20].mxu0 }
 0x20e   : > { %v2014_v58 = vadd.f32 %v2013_v57, %v1918_v46  ;;  %v2122_v59 = vpop.f32.mrb[20].mxu1  ;;  %v3675_v60 = vpop.f32.mrb[21].mxu0 }
 0x20f   : > { %v3695_v61 = vpop.f32.mrb[21].mxu1  ;;  %v2016_v62 = vpop.f32.mrb[22].mxu0 }
 0x210   : > { %v2128_v63 = vadd.f32 %v2122_v59, %v2014_v58  ;;  %v2125_v0 = vpop.f32.mrb[22].mxu1  ;;  %v3676_v1 = vpop.f32.mrb[23].mxu0 }
 0x211   : > { %v3696_v2 = vpop.f32.mrb[23].mxu1 }
 0x22d   : > { %v2233_v3 = vpop.f32.mrb[24].mxu0 }
 0x22e   : > { %v2239_v4 = vadd.f32 %v2233_v3, %v2128_v63  ;;  %v2343_v5 = vpop.f32.mrb[24].mxu1  ;;  %v3715_v6 = vpop.f32.mrb[25].mxu0 }
 0x22f   : > { %v3735_v7 = vpop.f32.mrb[25].mxu1  ;;  %v2236_v8 = vpop.f32.mrb[26].mxu0 }
 0x230   : > { %v2349_v9 = vadd.f32 %v2343_v5, %v2239_v4  ;;  %v2346_v10 = vpop.f32.mrb[26].mxu1  ;;  %v3716_v11 = vpop.f32.mrb[27].mxu0 }
 0x231   : > { %v3736_v12 = vpop.f32.mrb[27].mxu1 }
 0x24d   : > { %v2454_v13 = vpop.f32.mrb[28].mxu0 }
 0x24e   : > { %v2460_v14 = vadd.f32 %v2454_v13, %v2349_v9  ;;  %v2564_v15 = vpop.f32.mrb[28].mxu1  ;;  %v3755_v17 = vpop.f32.mrb[29].mxu0 }
 0x24f   : > { %v3775_v18 = vpop.f32.mrb[29].mxu1  ;;  %v2457_v19 = vpop.f32.mrb[30].mxu0 }
 0x250   : > { %v2570_v20 = vadd.f32 %v2564_v15, %v2460_v14  ;;  %v2567_v21 = vpop.f32.mrb[30].mxu1  ;;  %v3756_v22 = vpop.f32.mrb[31].mxu0 }
 0x251   : > { %v3776_v23 = vpop.f32.mrb[31].mxu1 }
 0x26d   : > { %v2670_v27 = vpop.f32.mrb[32].mxu0 }
 0x26e   : > { %v2676_v28 = vadd.f32 %v2670_v27, %v2570_v20  ;;  %v2782_v29 = vpop.f32.mrb[32].mxu1  ;;  %v3795_v32 = vpop.f32.mrb[33].mxu0 }
 0x26f   : > { %v3815_v34 = vpop.f32.mrb[33].mxu1  ;;  %v2673_v35 = vpop.f32.mrb[34].mxu0 }
 0x270   : > { %v2788_v16 = vadd.f32 %v2782_v29, %v2676_v28  ;;  %v2785_v36 = vpop.f32.mrb[34].mxu1  ;;  %v3796_v37 = vpop.f32.mrb[35].mxu0 }
 0x271   : > { %v3816_v38 = vpop.f32.mrb[35].mxu1 }
 0x272   : > { %v2790_v39 = vadd.f32 %v2789_v33, %v2788_v16 }
 0x274   : > { %v2791_v41 = vpack.c.bf16 %v2790_v39, %v2790_v39 }
 0x276   : > { %v2799_v42 = vrot.slane %v2791_v41, %v2798_v40 }
 0x278   : > { %v2806_v43 = vrot.slane %v2799_v42, %v2798_v40 }
 0x27a   : > { %v2808_v44 = vshll.u32 %v2806_v43, 16 }
 0x27c   : > { %v2814_v46 = vsel %vm2812_vm5, %v2808_v44, %v2813_v45 }
 0x27d   : > { %2815 = vst [vmem:[%s4751_s6] sm:$0x1] %v2814_v46 }
 0x27e PF: > { %p10_p9 = scmp.ge.s32.totalorder %s4063_s16, 6   ;;  %s4774_s12 = smov %s4017_s13 }
 0x27f   : > { %s4775_s13 = smov %s4072_s19  ;;  %s4776_s14 = smov %s4063_s16 }
 0x280   :  { %12 = sbr.rel (!%p10_p9) target bundleno = 2 (0x2), region = 119 }

// kernel: _lambda_.5
= control target key start
LH: loop header
LB: loop body
LE: loop exit
PB: predicated region body
PF: predicated region fallthrough
CT: control target
= control target key end

     0   :  { %12 = vsyncpa [#allocation5], 0  ;;  %s4702_s0 = inlined_call_operand.vmem [shape: bf16[32,128], index: 0, kind: input, shape index: {}]   ;;  %s4703_s1 = inlined_call_operand.hbm [shape: bf16[4,128,128], index: 1, kind: input, shape index: {}]   ;;  %s4704_s2 = inlined_call_operand.vmem [shape: f32[1,128], index: 2, kind: input, shape index: {}, may-alias: {2,5}]   ;;  %s4705_s3 = inlined_call_operand.vmem [shape: f32[1,128], index: 3, kind: input, shape index: {}, may-alias: {3,6}]   ;;  %s4706_s4 = inlined_call_operand.hbm [shape: bf16[128,128], index: 4, kind: input, shape index: {}]   ;;  %s4707_s5 = inlined_call_operand.vmem [shape: f32[1,128], index: 5, kind: input, shape index: {}, may-alias: {2,5}]   ;;  %s4708_s6 = inlined_call_operand.vmem [shape: f32[1,128], index: 6, kind: input, shape index: {}, may-alias: {3,6}]   ;;  %s4709_s7 = inlined_call_operand.vmem [shape: bf16[18,128], index: 7, kind: output, shape index: {}]  }
   0x1   :  { %13 = vsyncpa [#allocation7], 0  ;;  %s4303_s24 = smov [#allocation4]   ;;  %s4255_s28 = scalar_lea.hbm %s4703_s1, 4096 }
   0x2   :  { %s21_s25 = sshll.u32 %s4303_s24, 4  ;;  %p4256_p0 = scmp.ne.s32.totalorder %s4703_s1, %s4255_s28  ;;  %s22_s25 = int_to_ptr.vmem [resolvable:$true] %s21_s25 }
   0x3   :  { %p4259_p1 = scmp.lt.u32.totalorder %s4255_s28, %s4703_s1 }
   0x5   :  { %p4261_p2 = pnand %p4259_p1, %p4256_p0 }
   0x7   :  { %4264 = shalt.err (!%p4261_p2)
}
   0x8   :  { %s4265_s10 = scalar_lea.vmem %s22_s25, 4096  ;;  %p4270_p4 = scmp.lt.s32.totalorder %s22_s25, %s22_s25 }
   0x9   :  { %p4266_p3 = scmp.ne.s32.totalorder %s22_s25, %s4265_s10  ;;  %p4271_p5 = scmp.lt.s32.totalorder %s4265_s10, %s4265_s10 }
   0xb   :  { %p4272_p6 = por %p4271_p5, %p4270_p4 }
   0xd   :  { %p4273_p7 = pnand %p4272_p6, %p4266_p3 }
   0xf   :  { %4276 = shalt.err (!%p4273_p7)
}
  0x10   :  { %s4304_s11 = smov 64   ;;  %s4305_s12 = smov 4  }
  0x11   :  { %27 = dma.hbm_to_vmem [thread:$0]  %s4703_s1, 4096, %s22_s25, [#allocation5], %s4304_s11, %s4304_s11, %s4305_s12  }
  0x12   :  { %s4306_s15 = smov [#allocation6]   ;;  %s4277_s19 = scalar_lea.hbm %s4706_s4, 1024 }
  0x13   :  { %s37_s16 = sshll.u32 %s4306_s15, 4  ;;  %p4278_p8 = scmp.ne.s32.totalorder %s4706_s4, %s4277_s19  ;;  %s38_s16 = int_to_ptr.vmem [resolvable:$true] %s37_s16 }
  0x14   :  { %p4281_p9 = scmp.lt.u32.totalorder %s4277_s19, %s4706_s4 }
  0x16   :  { %p4283_p10 = pnand %p4281_p9, %p4278_p8 }
  0x18   :  { %4286 = shalt.err (!%p4283_p10)
}
  0x19   :  { %s4287_s24 = scalar_lea.vmem %s38_s16, 1024  ;;  %p4292_p12 = scmp.lt.s32.totalorder %s38_s16, %s38_s16 }
  0x1a   :  { %p4288_p11 = scmp.ne.s32.totalorder %s38_s16, %s4287_s24  ;;  %p4293_p13 = scmp.lt.s32.totalorder %s4287_s24, %s4287_s24 }
  0x1c   :  { %p4294_p0 = por %p4293_p13, %p4292_p12 }
  0x1e   :  { %p4295_p1 = pnand %p4294_p0, %p4288_p11 }
  0x20   :  { %4298 = shalt.err (!%p4295_p1)
}
  0x21   :  { %43 = dma.hbm_to_vmem [thread:$0]  %s4706_s4, 1024, %s38_s16, [#allocation7], %s4304_s11, %s4304_s11, %s4305_s12  }
  0x22   :  { %4299 = dma.done.wait [#allocation5], 4096  }
  0x23   :  { %4300 = vsyncadd [#allocation5], 4294963200 }
  0x24   :  { %4301 = dma.done.wait [#allocation7], 1024  }
  0x25   :  { %4302 = vsyncadd [#allocation7], 4294966272  ;;  %v4307_v0 = vmov 0.0   ;;  %vm4308_vm0 = vmmov 0   ;;  %v4039_v1 = vld [vmem:[#allocation4 + $0x40] sm:$0xff]   ;;  %v4041_v3 = vld [vmem:[#allocation4 + $0x48] sm:$0xff]  }
  0x26   :  { %3461 = vmatprep.subr.bf16.mxu0 %v4307_v0  ;;  %2805 = vst [vmem:[#allocation3 + $0x10] sm:$0x3] %v4307_v0  ;;  %3541 = vmatprep.subr.bf16.mxu1 %v4307_v0  ;;  %v4040_v2 = vld [vmem:[#allocation4 + $0x40] sm:$0xff]   ;;  %v4042_v4 = vld [vmem:[#allocation4 + $0x48] sm:$0xff]   ;;  %v4043_v5 = vld [vmem:[#allocation4 + $0x50] sm:$0xff]   ;;  %vm2738_vm1 = vcmask 1041408  }
  0x27   :  { %3477 = vmatprep.mubr.msk.bf16.mxu0 %vm4308_vm0, %v4307_v0  ;;  %3557 = vmatprep.mubr.msk.bf16.mxu1 %vm4308_vm0, %v4307_v0  ;;  %v4044_v6 = vld [vmem:[#allocation4 + $0x50] sm:$0xff]   ;;  %v4045_v7 = vld [vmem:[#allocation4 + $0x58] sm:$0xff]   ;;  %v4047_v9 = vld [vmem:[#allocation4 + $0x60] sm:$0xff]  }
  0x28   :  { %3462 = vmatpush3.bf16.msra.mxu0 %v4039_v1  ;;  %3542 = vmatpush3.bf16.msra.mxu1 %v4040_v2  ;;  %v4046_v8 = vld [vmem:[#allocation4 + $0x58] sm:$0xff]   ;;  %v4048_v10 = vld [vmem:[#allocation4 + $0x60] sm:$0xff]   ;;  %v4391_v11 = vld [vmem:[%s4702_s0] sm:$0x3] }
  0x29   :  { %3463 = vmatprep.subr.bf16.mxu0 %v4307_v0  ;;  %3543 = vmatprep.subr.bf16.mxu1 %v4307_v0  ;;  %v3008_v12 = vcombine.low %v4391_v11, %v4391_v11  ;;  %v4398_v13 = vld [vmem:[%s4702_s0] ss:$0 sps:$4 sm:$0xcc]   ;;  %v4049_v14 = vld [vmem:[#allocation4 + $0x68] sm:$0xff]   ;;  %v4053_v21 = vld [vmem:[#allocation4 + $0x78] sm:$0xff]  }
  0x2a   :  { %v4050_v15 = vld [vmem:[#allocation4 + $0x68] sm:$0xff]   ;;  %v4051_v16 = vld [vmem:[#allocation4 + $0x70] sm:$0xff]   ;;  %v541_v18 = vshrl.u32 %v4398_v13, 16  ;;  %v544_v19 = vshll.u32 %v4398_v13, 16  ;;  %v4054_v26 = vld [vmem:[#allocation4 + $0x78] sm:$0xff]   ;;  %v637_v46 = vrot.slane %v4398_v13, 2 }
  0x2b   :  { %v95_v17 = vshll.u32 %v3008_v12, 16  ;;  %v4052_v20 = vld [vmem:[#allocation4 + $0x70] sm:$0xff]   ;;  %v93_v22 = vshrl.u32 %v3008_v12, 16  ;;  %v4056_v28 = vld [vmem:[#allocation4] sm:$0xff]   ;;  %v4059_v31 = vld [vmem:[#allocation4 + $0x8] sm:$0xff]  }
  0x2c   :  { %3464 = vmatpush3.bf16.msra.mxu0 %v4041_v3  ;;  %3544 = vmatpush3.bf16.msra.mxu1 %v4042_v4  ;;  %v543_v24 = vrot.slane %v541_v18, 2  ;;  %v546_v25 = vrot.slane %v544_v19, 3  ;;  %v4058_v30 = vld [vmem:[#allocation4] sm:$0xff]   ;;  %v4060_v32 = vld [vmem:[#allocation4 + $0x8] sm:$0xff]   ;;  %v4061_v33 = vld [vmem:[#allocation4 + $0x10] sm:$0xff]  }
  0x2d   :  { %3465 = vmatprep.subr.bf16.mxu0 %v4307_v0  ;;  %3545 = vmatprep.subr.bf16.mxu1 %v4307_v0  ;;  %v97_v23 = vrot.slane %v95_v17, 1  ;;  %v4062_v34 = vld [vmem:[#allocation4 + $0x10] sm:$0xff]   ;;  %v4063_v35 = vld [vmem:[#allocation4 + $0x18] sm:$0xff]   ;;  %v4065_v37 = vld [vmem:[#allocation4 + $0x20] sm:$0xff]  }
  0x2e   :  { %v547_v29 = vor.u32 %v546_v25, %v543_v24  ;;  %v4064_v36 = vld [vmem:[#allocation4 + $0x18] sm:$0xff]   ;;  %v4066_v38 = vld [vmem:[#allocation4 + $0x20] sm:$0xff]   ;;  %v4067_v39 = vld [vmem:[#allocation4 + $0x28] sm:$0xff]  }
  0x2f   :  { %v98_v27 = vor.u32 %v97_v23, %v93_v22  ;;  %v4068_v40 = vld [vmem:[#allocation4 + $0x28] sm:$0xff]   ;;  %v4069_v41 = vld [vmem:[#allocation4 + $0x30] sm:$0xff]   ;;  %v4071_v43 = vld [vmem:[#allocation4 + $0x38] sm:$0xff]  }
  0x30   :  { %3466 = vmatpush3.bf16.msra.mxu0 %v4043_v5  ;;  %3546 = vmatpush3.bf16.msra.mxu1 %v4044_v6  ;;  %v4070_v42 = vld [vmem:[#allocation4 + $0x30] sm:$0xff]   ;;  %v4072_v44 = vld [vmem:[#allocation4 + $0x38] sm:$0xff]   ;;  %v4073_v45 = vld [vmem:[#allocation4 + $0x80] sm:$0xff]  }
  0x31   :  { %3467 = vmatprep.subr.bf16.mxu0 %v4307_v0  ;;  %3547 = vmatprep.subr.bf16.mxu1 %v4307_v0  ;;  %v4074_v47 = vld [vmem:[#allocation4 + $0x80] sm:$0xff]   ;;  %v4075_v48 = vld [vmem:[#allocation4 + $0x88] sm:$0xff]   ;;  %v4077_v50 = vld [vmem:[#allocation4 + $0x90] sm:$0xff]  }
  0x32   :  { %v4076_v49 = vld [vmem:[#allocation4 + $0x88] sm:$0xff]   ;;  %v4078_v51 = vld [vmem:[#allocation4 + $0x90] sm:$0xff]   ;;  %v4079_v52 = vld [vmem:[#allocation4 + $0x98] sm:$0xff]  }
  0x33   :  { %v4080_v53 = vld [vmem:[#allocation4 + $0x98] sm:$0xff]   ;;  %v4081_v54 = vld [vmem:[#allocation4 + $0xa0] sm:$0xff]   ;;  %v4083_v56 = vld [vmem:[#allocation4 + $0xa8] sm:$0xff]  }
  0x34   :  { %3468 = vmatpush3.bf16.msra.mxu0 %v4045_v7  ;;  %3548 = vmatpush3.bf16.msra.mxu1 %v4046_v8  ;;  %v4082_v55 = vld [vmem:[#allocation4 + $0xa0] sm:$0xff]   ;;  %v4084_v57 = vld [vmem:[#allocation4 + $0xa8] sm:$0xff]   ;;  %v4085_v58 = vld [vmem:[#allocation4 + $0xb0] sm:$0xff]  }
  0x35   :  { %3469 = vmatprep.subr.bf16.mxu0 %v4307_v0  ;;  %3549 = vmatprep.subr.bf16.mxu1 %v4307_v0  ;;  %v4086_v59 = vld [vmem:[#allocation4 + $0xb0] sm:$0xff]   ;;  %v4087_v61 = vld [vmem:[#allocation4 + $0xb8] sm:$0xff]   ;;  %v4090_v1 = vld [vmem:[#allocation4 + $0xc0] sm:$0xff]  }
  0x36   :  { %v4089_v60 = vld [vmem:[%s4702_s0] ss:$0 sps:$4 sm:$0xcc]   ;;  %v4088_v62 = vld [vmem:[#allocation4 + $0xb8] sm:$0xff]   ;;  %v727_v2 = vld [vmem:[%s4702_s0 + $0x4] sm:$0x3] }
  0x37   :  { %v297_v63 = vrot.slane %v4089_v60, 2  ;;  %v4092_v3 = vld [vmem:[#allocation4 + $0xc0] sm:$0xff]   ;;  %v4093_v4 = vld [vmem:[#allocation4 + $0xc8] sm:$0xff]   ;;  %v4095_v6 = vld [vmem:[#allocation4 + $0xd0] sm:$0xff]   ;;  %v3067_v12 = vcombine.low %v727_v2, %v727_v2 }
  0x38   :  { %3470 = vmatpush3.bf16.msra.mxu0 %v4047_v9  ;;  %3550 = vmatpush3.bf16.msra.mxu1 %v4048_v10  ;;  %v4094_v5 = vld [vmem:[#allocation4 + $0xc8] sm:$0xff]   ;;  %v4096_v7 = vld [vmem:[#allocation4 + $0xd0] sm:$0xff]   ;;  %v4097_v8 = vld [vmem:[#allocation4 + $0xd8] sm:$0xff]  }
  0x39   :  { %3471 = vmatprep.subr.bf16.mxu0 %v4307_v0  ;;  %3551 = vmatprep.subr.bf16.mxu1 %v4307_v0  ;;  %v4098_v9 = vld [vmem:[#allocation4 + $0xd8] sm:$0xff]   ;;  %v4099_v10 = vld [vmem:[#allocation4 + $0xe0] sm:$0xff]   ;;  %v4101_v13 = vld [vmem:[#allocation4 + $0xe8] sm:$0xff]   ;;  %v855_v17 = vshll.u32 %v3067_v12, 16 }
  0x3a   :  { %v4103_v18 = vld [vmem:[#allocation4 + $0xf0] sm:$0xff]   ;;  %v4105_v24 = vld [vmem:[#allocation4 + $0xf8] sm:$0xff]  }
  0x3b   :  { %v4104_v19 = vld [vmem:[#allocation4 + $0xf0] sm:$0xff]   ;;  %v857_v23 = vrot.slane %v855_v17, 1  ;;  %v4106_v25 = vld [vmem:[#allocation4 + $0xf8] sm:$0xff]   ;;  %v4149_v17 = vld [vmem:[#allocation4 + $0xa0] sm:$0xff]  }
  0x3c   :  { %3472 = vmatpush3.bf16.msra.mxu0 %v4049_v14  ;;  %3552 = vmatpush3.bf16.msra.mxu1 %v4050_v15  ;;  %v4102_v14 = vld [vmem:[#allocation4 + $0xe8] sm:$0xff]   ;;  %v406_v15 = vshrl.u32 %v4089_v60, 16 }
  0x3d   :  { %3473 = vmatprep.subr.bf16.mxu0 %v4307_v0  ;;  %3553 = vmatprep.subr.bf16.mxu1 %v4307_v0 }
  0x40   :  { %3474 = vmatpush3.bf16.msra.mxu0 %v4051_v16  ;;  %3554 = vmatpush3.bf16.msra.mxu1 %v4052_v20  ;;  %v409_v16 = vshll.u32 %v4089_v60, 16  ;;  %v853_v20 = vshrl.u32 %v3067_v12, 16  ;;  %v4129_v60 = vld [vmem:[#allocation4 + $0x10] sm:$0xff]   ;;  %v4144_v12 = vld [vmem:[#allocation4 + $0x88] sm:$0xff]  }
  0x41   :  { %3475 = vmatprep.subr.bf16.mxu0 %v4307_v0  ;;  %3555 = vmatprep.subr.bf16.mxu1 %v4307_v0 }
  0x42   :  { %v411_v22 = vrot.slane %v409_v16, 3  ;;  %v4148_v16 = vld [vmem:[#allocation4 + $0x98] sm:$0xff]  }
  0x44   :  { %3476 = vmatpush3.bf16.msra.mxu0 %v4053_v21  ;;  %3556 = vmatpush3.bf16.msra.mxu1 %v4054_v26  ;;  %v408_v21 = vrot.slane %v406_v15, 2  ;;  %v4147_v15 = vld [vmem:[#allocation4 + $0x98] sm:$0xff]  }
  0x45   :  { %3481 = vmatprep.subr.bf16.mxu0 %v4307_v0  ;;  %3561 = vmatprep.subr.bf16.mxu1 %v4307_v0 }
  0x46   :  { %v412_v26 = vor.u32 %v411_v22, %v408_v21  ;;  %v4153_v21 = vld [vmem:[#allocation4 + $0xb0] sm:$0xff]  }
  0x47   :  { %3478 = vmatmul.mubr.bf16.vlgmr.msra.gmra.mrb[0].mxu0 %v98_v27  ;;  %3558 = vmatmul.mubr.bf16.vlgmr.msra.gmra.mrb[0].mxu1 %v547_v29  ;;  %v858_v27 = vor.u32 %v857_v23, %v853_v20  ;;  %v4108_v29 = vld [vmem:[#allocation4 + $0x40] sm:$0xff]   ;;  %v4152_v20 = vld [vmem:[#allocation4 + $0xa8] sm:$0xff]   ;;  %v4154_v22 = vld [vmem:[#allocation4 + $0xb0] sm:$0xff]  }
  0x48   :  { %3482 = vmatpush3.bf16.msra.mxu0 %v4056_v28  ;;  %3562 = vmatpush3.bf16.msra.mxu1 %v4058_v30  ;;  %v4107_v28 = vld [vmem:[#allocation4 + $0x40] sm:$0xff]   ;;  %v4109_v30 = vld [vmem:[#allocation4 + $0x48] sm:$0xff]   ;;  %v4157_v23 = vld [vmem:[%s4702_s0 + $0x4] ss:$0 sps:$4 sm:$0xcc]  }
  0x49   :  { %3483 = vmatprep.subr.bf16.mxu0 %v4307_v0  ;;  %3563 = vmatprep.subr.bf16.mxu1 %v4307_v0 }
  0x4a   :  { %3497 = vmatprep.mubr.msk.bf16.mxu0 %vm4308_vm0, %v4307_v0  ;;  %3577 = vmatprep.mubr.msk.bf16.mxu1 %vm4308_vm0, %v4307_v0 }
  0x4c   :  { %3484 = vmatpush3.bf16.msra.mxu0 %v4059_v31  ;;  %3564 = vmatpush3.bf16.msra.mxu1 %v4060_v32  ;;  %v4110_v31 = vld [vmem:[#allocation4 + $0x48] sm:$0xff]   ;;  %v4111_v32 = vld [vmem:[#allocation4 + $0x50] sm:$0xff]  }
  0x4d   :  { %3485 = vmatprep.subr.bf16.mxu0 %v4307_v0  ;;  %3565 = vmatprep.subr.bf16.mxu1 %v4307_v0 }
  0x50   :  { %3486 = vmatpush3.bf16.msra.mxu0 %v4061_v33  ;;  %3566 = vmatpush3.bf16.msra.mxu1 %v4062_v34  ;;  %v4112_v33 = vld [vmem:[#allocation4 + $0x50] sm:$0xff]   ;;  %v4113_v34 = vld [vmem:[#allocation4 + $0x58] sm:$0xff]  }
  0x51   :  { %3487 = vmatprep.subr.bf16.mxu0 %v4307_v0  ;;  %3567 = vmatprep.subr.bf16.mxu1 %v4307_v0 }
  0x54   :  { %3488 = vmatpush3.bf16.msra.mxu0 %v4063_v35  ;;  %3568 = vmatpush3.bf16.msra.mxu1 %v4064_v36  ;;  %v4114_v35 = vld [vmem:[#allocation4 + $0x58] sm:$0xff]   ;;  %v4115_v36 = vld [vmem:[#allocation4 + $0x60] sm:$0xff]  }
  0x55   :  { %3489 = vmatprep.subr.bf16.mxu0 %v4307_v0  ;;  %3569 = vmatprep.subr.bf16.mxu1 %v4307_v0 }
  0x58   :  { %3490 = vmatpush3.bf16.msra.mxu0 %v4065_v37  ;;  %3570 = vmatpush3.bf16.msra.mxu1 %v4066_v38  ;;  %v4491_v37 = vld [vmem:[%s4702_s0 + $0x4] sm:$0x3]  ;;  %v4116_v38 = vld [vmem:[#allocation4 + $0x60] sm:$0xff]  }
  0x59   :  { %3491 = vmatprep.subr.bf16.mxu0 %v4307_v0  ;;  %3571 = vmatprep.subr.bf16.mxu1 %v4307_v0 }
  0x5c   :  { %3492 = vmatpush3.bf16.msra.mxu0 %v4067_v39  ;;  %3572 = vmatpush3.bf16.msra.mxu1 %v4068_v40  ;;  %v4496_v39 = vld [vmem:[%s4702_s0 + $0x8] sm:$0x3]  ;;  %v4117_v40 = vld [vmem:[#allocation4 + $0x68] sm:$0xff]  }
  0x5d   :  { %3493 = vmatprep.subr.bf16.mxu0 %v4307_v0  ;;  %3573 = vmatprep.subr.bf16.mxu1 %v4307_v0 }
  0x60   :  { %3494 = vmatpush3.bf16.msra.mxu0 %v4069_v41  ;;  %3574 = vmatpush3.bf16.msra.mxu1 %v4070_v42  ;;  %v4118_v41 = vld [vmem:[#allocation4 + $0x68] sm:$0xff]   ;;  %v3076_v42 = vcombine.low %v4491_v37, %v4491_v37 }
  0x61   :  { %3495 = vmatprep.subr.bf16.mxu0 %v4307_v0  ;;  %3575 = vmatprep.subr.bf16.mxu1 %v4307_v0 }
  0x64   :  { %3496 = vmatpush3.bf16.msra.mxu0 %v4071_v43  ;;  %3576 = vmatpush3.bf16.msra.mxu1 %v4072_v44  ;;  %v3110_v43 = vcombine.low %v4496_v39, %v4496_v39  ;;  %v4119_v44 = vld [vmem:[#allocation4 + $0x70] sm:$0xff]  }
  0x65   :  { %3501 = vmatprep.subr.bf16.mxu0 %v4307_v0  ;;  %3581 = vmatprep.subr.bf16.mxu1 %v4307_v0 }
  0x67   :  { %3498 = vmatmul.mubr.bf16.vlgmr.msra.gmra.mrb[0].mxu0 %v4391_v11  ;;  %3578 = vmatmul.mubr.bf16.vlgmr.msra.gmra.mrb[0].mxu1 %v637_v46  ;;  %v4100_v11 = vld [vmem:[#allocation4 + $0xe0] sm:$0xff]   ;;  %v989_v46 = vshll.u32 %v3076_v42, 16 }
  0x68   :  { %3502 = vmatpush3.bf16.msra.mxu0 %v4073_v45  ;;  %3582 = vmatpush3.bf16.msra.mxu1 %v4074_v47  ;;  %v4120_v45 = vld [vmem:[#allocation4 + $0x70] sm:$0xff]   ;;  %v1435_v47 = vshll.u32 %v3110_v43, 16 }
  0x69   :  { %3503 = vmatprep.subr.bf16.mxu0 %v4307_v0  ;;  %3583 = vmatprep.subr.bf16.mxu1 %v4307_v0 }
  0x6a   :  { %3517 = vmatprep.mubr.msk.bf16.mxu0 %vm4308_vm0, %v4307_v0  ;;  %3597 = vmatprep.mubr.msk.bf16.mxu1 %vm4308_vm0, %v4307_v0 }
  0x6c   :  { %3504 = vmatpush3.bf16.msra.mxu0 %v4075_v48  ;;  %3584 = vmatpush3.bf16.msra.mxu1 %v4076_v49  ;;  %v4121_v48 = vld [vmem:[#allocation4 + $0x78] sm:$0xff]   ;;  %v987_v49 = vshrl.u32 %v3076_v42, 16  ;;  %v1301_v42 = vshll.u32 %v4157_v23, 16 }
  0x6d   :  { %3505 = vmatprep.subr.bf16.mxu0 %v4307_v0  ;;  %3585 = vmatprep.subr.bf16.mxu1 %v4307_v0 }
  0x70   :  { %3506 = vmatpush3.bf16.msra.mxu0 %v4077_v50  ;;  %3586 = vmatpush3.bf16.msra.mxu1 %v4078_v51  ;;  %v991_v50 = vrot.slane %v989_v46, 1  ;;  %v1433_v51 = vshrl.u32 %v3110_v43, 16  ;;  %v4171_v43 = vld [vmem:[#allocation4 + $0xf0] sm:$0xff]  }
  0x71   :  { %3507 = vmatprep.subr.bf16.mxu0 %v4307_v0  ;;  %3587 = vmatprep.subr.bf16.mxu1 %v4307_v0  ;;  %v4172_v46 = vld [vmem:[#allocation4 + $0xf0] sm:$0xff]  }
  0x74   :  { %3508 = vmatpush3.bf16.msra.mxu0 %v4079_v52  ;;  %3588 = vmatpush3.bf16.msra.mxu1 %v4080_v53  ;;  %v1437_v52 = vrot.slane %v1435_v47, 1  ;;  %v4122_v53 = vld [vmem:[#allocation4 + $0x78] sm:$0xff]  }
  0x75   :  { %3509 = vmatprep.subr.bf16.mxu0 %v4307_v0  ;;  %3589 = vmatprep.subr.bf16.mxu1 %v4307_v0 }
  0x78   :  { %3510 = vmatpush3.bf16.msra.mxu0 %v4081_v54  ;;  %3590 = vmatpush3.bf16.msra.mxu1 %v4082_v55  ;;  %v992_v54 = vor.u32 %v991_v50, %v987_v49  ;;  %v4124_v55 = vld [vmem:[#allocation4] sm:$0xff]   ;;  %v4173_v49 = vld [vmem:[#allocation4 + $0xf8] sm:$0xff]  }
  0x79   :  { %3511 = vmatprep.subr.bf16.mxu0 %v4307_v0  ;;  %3591 = vmatprep.subr.bf16.mxu1 %v4307_v0 }
  0x7c   :  { %3512 = vmatpush3.bf16.msra.mxu0 %v4083_v56  ;;  %3592 = vmatpush3.bf16.msra.mxu1 %v4084_v57  ;;  %v1438_v56 = vor.u32 %v1437_v52, %v1433_v51  ;;  %v4126_v57 = vld [vmem:[#allocation4] sm:$0xff]   ;;  %v4174_v52 = vld [vmem:[#allocation4 + $0xf8] sm:$0xff]  }
  0x7d   :  { %3513 = vmatprep.subr.bf16.mxu0 %v4307_v0  ;;  %3593 = vmatprep.subr.bf16.mxu1 %v4307_v0 }
  0x80   :  { %3514 = vmatpush3.bf16.msra.mxu0 %v4085_v58  ;;  %3594 = vmatpush3.bf16.msra.mxu1 %v4086_v59  ;;  %v4127_v58 = vld [vmem:[#allocation4 + $0x8] sm:$0xff]  }
  0x81   :  { %3515 = vmatprep.subr.bf16.mxu0 %v4307_v0  ;;  %3595 = vmatprep.subr.bf16.mxu1 %v4307_v0  ;;  %v4128_v59 = vld [vmem:[#allocation4 + $0x8] sm:$0xff]  }
  0x84   :  { %3516 = vmatpush3.bf16.msra.mxu0 %v4087_v61  ;;  %3596 = vmatpush3.bf16.msra.mxu1 %v4088_v62  ;;  %v4130_v61 = vld [vmem:[#allocation4 + $0x10] sm:$0xff]   ;;  %v4131_v62 = vld [vmem:[#allocation4 + $0x18] sm:$0xff]  }
  0x85   :  { %3521 = vmatprep.subr.bf16.mxu0 %v4307_v0  ;;  %3601 = vmatprep.subr.bf16.mxu1 %v4307_v0 }
  0x87   :  { %3518 = vmatmul.mubr.bf16.vlgmr.msra.gmra.mrb[0].mxu0 %v297_v63  ;;  %3598 = vmatmul.mubr.bf16.vlgmr.msra.gmra.mrb[0].mxu1 %v727_v2  ;;  %v4132_v63 = vld [vmem:[#allocation4 + $0x18] sm:$0xff]   ;;  %v4134_v2 = vld [vmem:[#allocation4 + $0x20] sm:$0xff]  }
  0x88   :  { %3522 = vmatpush3.bf16.msra.mxu0 %v4090_v1  ;;  %3602 = vmatpush3.bf16.msra.mxu1 %v4092_v3  ;;  %v4133_v1 = vld [vmem:[#allocation4 + $0x20] sm:$0xff]   ;;  %v4135_v3 = vld [vmem:[#allocation4 + $0x28] sm:$0xff]  }
  0x89   :  { %3523 = vmatprep.subr.bf16.mxu0 %v4307_v0  ;;  %3603 = vmatprep.subr.bf16.mxu1 %v4307_v0 }
  0x8a   :  { %3537 = vmatprep.mubr.msk.bf16.mxu0 %vm4308_vm0, %v4307_v0  ;;  %3617 = vmatprep.mubr.msk.bf16.mxu1 %vm4308_vm0, %v4307_v0 }
  0x8c   :  { %3524 = vmatpush3.bf16.msra.mxu0 %v4093_v4  ;;  %3604 = vmatpush3.bf16.msra.mxu1 %v4094_v5  ;;  %v4136_v4 = vld [vmem:[#allocation4 + $0x28] sm:$0xff]   ;;  %v4137_v5 = vld [vmem:[#allocation4 + $0x30] sm:$0xff]  }
  0x8d   :  { %3525 = vmatprep.subr.bf16.mxu0 %v4307_v0  ;;  %3605 = vmatprep.subr.bf16.mxu1 %v4307_v0 }
  0x90   :  { %3526 = vmatpush3.bf16.msra.mxu0 %v4095_v6  ;;  %3606 = vmatpush3.bf16.msra.mxu1 %v4096_v7  ;;  %v4138_v6 = vld [vmem:[#allocation4 + $0x30] sm:$0xff]   ;;  %v4139_v7 = vld [vmem:[#allocation4 + $0x38] sm:$0xff]  }
  0x91   :  { %3527 = vmatprep.subr.bf16.mxu0 %v4307_v0  ;;  %3607 = vmatprep.subr.bf16.mxu1 %v4307_v0 }
  0x94   :  { %3528 = vmatpush3.bf16.msra.mxu0 %v4097_v8  ;;  %3608 = vmatpush3.bf16.msra.mxu1 %v4098_v9  ;;  %v4140_v8 = vld [vmem:[#allocation4 + $0x38] sm:$0xff]   ;;  %v4141_v9 = vld [vmem:[#allocation4 + $0x80] sm:$0xff]  }
  0x95   :  { %3529 = vmatprep.subr.bf16.mxu0 %v4307_v0  ;;  %3609 = vmatprep.subr.bf16.mxu1 %v4307_v0 }
  0x98   :  { %3530 = vmatpush3.bf16.msra.mxu0 %v4099_v10  ;;  %3610 = vmatpush3.bf16.msra.mxu1 %v4100_v11  ;;  %v4142_v10 = vld [vmem:[#allocation4 + $0x80] sm:$0xff]   ;;  %v4143_v11 = vld [vmem:[#allocation4 + $0x88] sm:$0xff]  }
  0x99   :  { %3531 = vmatprep.subr.bf16.mxu0 %v4307_v0  ;;  %3611 = vmatprep.subr.bf16.mxu1 %v4307_v0 }
  0x9c   :  { %3532 = vmatpush3.bf16.msra.mxu0 %v4101_v13  ;;  %3612 = vmatpush3.bf16.msra.mxu1 %v4102_v14  ;;  %v4145_v13 = vld [vmem:[#allocation4 + $0x90] sm:$0xff]  }
  0x9d   :  { %3533 = vmatprep.subr.bf16.mxu0 %v4307_v0  ;;  %3613 = vmatprep.subr.bf16.mxu1 %v4307_v0  ;;  %v4146_v14 = vld [vmem:[#allocation4 + $0x90] sm:$0xff]  }
  0xa0   :  { %3534 = vmatpush3.bf16.msra.mxu0 %v4103_v18  ;;  %3614 = vmatpush3.bf16.msra.mxu1 %v4104_v19  ;;  %v4150_v18 = vld [vmem:[#allocation4 + $0xa0] sm:$0xff]   ;;  %v4151_v19 = vld [vmem:[#allocation4 + $0xa8] sm:$0xff]  }
  0xa1   :  { %3535 = vmatprep.subr.bf16.mxu0 %v4307_v0  ;;  %3615 = vmatprep.subr.bf16.mxu1 %v4307_v0 }
  0xa4   :  { %3536 = vmatpush3.bf16.msra.mxu0 %v4105_v24  ;;  %3616 = vmatpush3.bf16.msra.mxu1 %v4106_v25  ;;  %v4155_v24 = vld [vmem:[#allocation4 + $0xb8] sm:$0xff]  }
  0xa5   :  { %3621 = vmatprep.subr.bf16.mxu0 %v4307_v0  ;;  %3701 = vmatprep.subr.bf16.mxu1 %v4307_v0  ;;  %v4159_v25 = vld [vmem:[%s4702_s0 + $0x8] ss:$0 sps:$4 sm:$0xcc]  }
  0xa7   :  { %3538 = vmatmul.mubr.bf16.vlgmr.msra.gmra.mrb[0].mxu0 %v412_v26  ;;  %3618 = vmatmul.mubr.bf16.vlgmr.msra.gmra.mrb[0].mxu1 %v858_v27  ;;  %v4156_v26 = vld [vmem:[#allocation4 + $0xb8] sm:$0xff]   ;;  %v1190_v27 = vrot.slane %v4157_v23, 2 }
  0xa8   :  { %3622 = vmatpush3.bf16.msra.mxu0 %v4107_v28  ;;  %3702 = vmatpush3.bf16.msra.mxu1 %v4108_v29  ;;  %v4158_v28 = vld [vmem:[#allocation4 + $0xc0] sm:$0xff]   ;;  %v1636_v29 = vrot.slane %v4159_v25, 2 }
  0xa9   :  { %3623 = vmatprep.subr.bf16.mxu0 %v4307_v0  ;;  %3703 = vmatprep.subr.bf16.mxu1 %v4307_v0 }
  0xaa   :  { %3637 = vmatprep.mubr.msk.bf16.mxu0 %vm4308_vm0, %v4307_v0  ;;  %3717 = vmatprep.mubr.msk.bf16.mxu1 %vm4308_vm0, %v4307_v0 }
  0xac   :  { %3624 = vmatpush3.bf16.msra.mxu0 %v4109_v30  ;;  %3704 = vmatpush3.bf16.msra.mxu1 %v4110_v31  ;;  %v4160_v30 = vld [vmem:[#allocation4 + $0xc0] sm:$0xff]   ;;  %v4161_v31 = vld [vmem:[#allocation4 + $0xc8] sm:$0xff]  }
  0xad   :  { %3625 = vmatprep.subr.bf16.mxu0 %v4307_v0  ;;  %3705 = vmatprep.subr.bf16.mxu1 %v4307_v0 }
  0xb0   :  { %3626 = vmatpush3.bf16.msra.mxu0 %v4111_v32  ;;  %3706 = vmatpush3.bf16.msra.mxu1 %v4112_v33  ;;  %v4162_v32 = vld [vmem:[#allocation4 + $0xc8] sm:$0xff]   ;;  %v4163_v33 = vld [vmem:[#allocation4 + $0xd0] sm:$0xff]  }
  0xb1   :  { %3627 = vmatprep.subr.bf16.mxu0 %v4307_v0  ;;  %3707 = vmatprep.subr.bf16.mxu1 %v4307_v0 }
  0xb4   :  { %3628 = vmatpush3.bf16.msra.mxu0 %v4113_v34  ;;  %3708 = vmatpush3.bf16.msra.mxu1 %v4114_v35  ;;  %v4164_v34 = vld [vmem:[#allocation4 + $0xd0] sm:$0xff]   ;;  %v4165_v35 = vld [vmem:[#allocation4 + $0xd8] sm:$0xff]  }
  0xb5   :  { %3629 = vmatprep.subr.bf16.mxu0 %v4307_v0  ;;  %3709 = vmatprep.subr.bf16.mxu1 %v4307_v0 }
  0xb8   :  { %3630 = vmatpush3.bf16.msra.mxu0 %v4115_v36  ;;  %3710 = vmatpush3.bf16.msra.mxu1 %v4116_v38  ;;  %v4166_v36 = vld [vmem:[#allocation4 + $0xd8] sm:$0xff]   ;;  %v4168_v38 = vld [vmem:[#allocation4 + $0xe0] sm:$0xff]  }
  0xb9   :  { %3631 = vmatprep.subr.bf16.mxu0 %v4307_v0  ;;  %3711 = vmatprep.subr.bf16.mxu1 %v4307_v0 }
  0xbc   :  { %3632 = vmatpush3.bf16.msra.mxu0 %v4117_v40  ;;  %3712 = vmatpush3.bf16.msra.mxu1 %v4118_v41  ;;  %v4170_v40 = vld [vmem:[#allocation4 + $0xe8] sm:$0xff]   ;;  %v1298_v41 = vshrl.u32 %v4157_v23, 16 }
  0xbd   :  { %3633 = vmatprep.subr.bf16.mxu0 %v4307_v0  ;;  %3713 = vmatprep.subr.bf16.mxu1 %v4307_v0  ;;  %v4196_v23 = vld [vmem:[#allocation4 + $0x8] sm:$0xff]  }
  0xbe   :  { %v1300_v47 = vrot.slane %v1298_v41, 2  ;;  %v4213_v41 = vld [vmem:[#allocation4 + $0x90] sm:$0xff]  }
  0xc0   :  { %3634 = vmatpush3.bf16.msra.mxu0 %v4119_v44  ;;  %3714 = vmatpush3.bf16.msra.mxu1 %v4120_v45  ;;  %v1744_v44 = vshrl.u32 %v4159_v25, 16  ;;  %v1747_v45 = vshll.u32 %v4159_v25, 16  ;;  %v4198_v25 = vld [vmem:[#allocation4 + $0x10] sm:$0xff]  }
  0xc1   :  { %3635 = vmatprep.subr.bf16.mxu0 %v4307_v0  ;;  %3715 = vmatprep.subr.bf16.mxu1 %v4307_v0 }
  0xc2   :  { %v1746_v50 = vrot.slane %v1744_v44, 2  ;;  %v1749_v51 = vrot.slane %v1747_v45, 3  ;;  %v4216_v44 = vld [vmem:[#allocation4 + $0x98] sm:$0xff]   ;;  %v4217_v45 = vld [vmem:[#allocation4 + $0xa0] sm:$0xff]  }
  0xc4   :  { %3636 = vmatpush3.bf16.msra.mxu0 %v4121_v48  ;;  %3716 = vmatpush3.bf16.msra.mxu1 %v4122_v53  ;;  %v1303_v48 = vrot.slane %v1301_v42, 3  ;;  %v4214_v42 = vld [vmem:[#allocation4 + $0x90] sm:$0xff]  }
  0xc5   :  { %3641 = vmatprep.subr.bf16.mxu0 %v4307_v0  ;;  %3721 = vmatprep.subr.bf16.mxu1 %v4307_v0 }
  0xc6   :  { %v1304_v53 = vor.u32 %v1303_v48, %v1300_v47  ;;  %v4219_v47 = vld [vmem:[#allocation4 + $0xa8] sm:$0xff]  }
  0xc7   :  { %3638 = vmatmul.mubr.bf16.vlgmr.msra.gmra.mrb[4].mxu0 %v992_v54  ;;  %3718 = vmatmul.mubr.bf16.vlgmr.msra.gmra.mrb[4].mxu1 %v1438_v56  ;;  %v1750_v54 = vor.u32 %v1749_v51, %v1746_v50  ;;  %v4176_v56 = vld [vmem:[#allocation4 + $0x40] sm:$0xff]   ;;  %v4220_v48 = vld [vmem:[#allocation4 + $0xa8] sm:$0xff]  }
  0xc8   :  { %3642 = vmatpush3.bf16.msra.mxu0 %v4124_v55  ;;  %3722 = vmatpush3.bf16.msra.mxu1 %v4126_v57  ;;  %v4175_v55 = vld [vmem:[#allocation4 + $0x40] sm:$0xff]   ;;  %v4177_v57 = vld [vmem:[#allocation4 + $0x48] sm:$0xff]  }
  0xc9   :  { %3643 = vmatprep.subr.bf16.mxu0 %v4307_v0  ;;  %3723 = vmatprep.subr.bf16.mxu1 %v4307_v0 }
  0xca   :  { %3657 = vmatprep.mubr.msk.bf16.mxu0 %vm4308_vm0, %v4307_v0  ;;  %3737 = vmatprep.mubr.msk.bf16.mxu1 %vm4308_vm0, %v4307_v0 }
  0xcc   :  { %3644 = vmatpush3.bf16.msra.mxu0 %v4127_v58  ;;  %3724 = vmatpush3.bf16.msra.mxu1 %v4128_v59  ;;  %v4178_v58 = vld [vmem:[#allocation4 + $0x48] sm:$0xff]   ;;  %v4179_v59 = vld [vmem:[#allocation4 + $0x50] sm:$0xff]  }
  0xcd   :  { %3645 = vmatprep.subr.bf16.mxu0 %v4307_v0  ;;  %3725 = vmatprep.subr.bf16.mxu1 %v4307_v0 }
  0xd0   :  { %3646 = vmatpush3.bf16.msra.mxu0 %v4129_v60  ;;  %3726 = vmatpush3.bf16.msra.mxu1 %v4130_v61  ;;  %v4180_v60 = vld [vmem:[#allocation4 + $0x50] sm:$0xff]   ;;  %v4181_v61 = vld [vmem:[#allocation4 + $0x58] sm:$0xff]  }
  0xd1   :  { %3647 = vmatprep.subr.bf16.mxu0 %v4307_v0  ;;  %3727 = vmatprep.subr.bf16.mxu1 %v4307_v0 }
  0xd4   :  { %3648 = vmatpush3.bf16.msra.mxu0 %v4131_v62  ;;  %3728 = vmatpush3.bf16.msra.mxu1 %v4132_v63  ;;  %v4182_v62 = vld [vmem:[#allocation4 + $0x58] sm:$0xff]   ;;  %v4183_v63 = vld [vmem:[#allocation4 + $0x60] sm:$0xff]  }
  0xd5   :  { %3649 = vmatprep.subr.bf16.mxu0 %v4307_v0  ;;  %3729 = vmatprep.subr.bf16.mxu1 %v4307_v0 }
  0xd8   :  { %3650 = vmatpush3.bf16.msra.mxu0 %v4133_v1  ;;  %3730 = vmatpush3.bf16.msra.mxu1 %v4134_v2  ;;  %v4184_v1 = vld [vmem:[#allocation4 + $0x60] sm:$0xff]   ;;  %v4594_v2 = vld [vmem:[%s4702_s0 + $0xc] sm:$0x3] }
  0xd9   :  { %3651 = vmatprep.subr.bf16.mxu0 %v4307_v0  ;;  %3731 = vmatprep.subr.bf16.mxu1 %v4307_v0 }
  0xdc   :  { %3652 = vmatpush3.bf16.msra.mxu0 %v4135_v3  ;;  %3732 = vmatpush3.bf16.msra.mxu1 %v4136_v4  ;;  %v4600_v3 = vld [vmem:[%s4702_s0 + $0x8] ss:$0 sps:$4 sm:$0xcc]   ;;  %v4185_v4 = vld [vmem:[#allocation4 + $0x68] sm:$0xff]  }
  0xdd   :  { %3653 = vmatprep.subr.bf16.mxu0 %v4307_v0  ;;  %3733 = vmatprep.subr.bf16.mxu1 %v4307_v0 }
  0xe0   :  { %3654 = vmatpush3.bf16.msra.mxu0 %v4137_v5  ;;  %3734 = vmatpush3.bf16.msra.mxu1 %v4138_v6  ;;  %v3178_v5 = vcombine.low %v4594_v2, %v4594_v2  ;;  %v4186_v6 = vld [vmem:[#allocation4 + $0x68] sm:$0xff]  }
  0xe1   :  { %3655 = vmatprep.subr.bf16.mxu0 %v4307_v0  ;;  %3735 = vmatprep.subr.bf16.mxu1 %v4307_v0 }
  0xe4   :  { %3656 = vmatpush3.bf16.msra.mxu0 %v4139_v7  ;;  %3736 = vmatpush3.bf16.msra.mxu1 %v4140_v8  ;;  %v1879_v7 = vshrl.u32 %v4600_v3, 16  ;;  %v1882_v8 = vshll.u32 %v4600_v3, 16 }
  0xe5   :  { %3661 = vmatprep.subr.bf16.mxu0 %v4307_v0  ;;  %3741 = vmatprep.subr.bf16.mxu1 %v4307_v0 }
  0xe7   :  { %3658 = vmatmul.mubr.bf16.vlgmr.msra.gmra.mrb[4].mxu0 %v4491_v37  ;;  %3738 = vmatmul.mubr.bf16.vlgmr.msra.gmra.mrb[4].mxu1 %v4496_v39  ;;  %v4167_v37 = vld [vmem:[#allocation4 + $0xe0] sm:$0xff]   ;;  %v4169_v39 = vld [vmem:[#allocation4 + $0xe8] sm:$0xff]  }
  0xe8   :  { %3662 = vmatpush3.bf16.msra.mxu0 %v4141_v9  ;;  %3742 = vmatpush3.bf16.msra.mxu1 %v4142_v10  ;;  %v4187_v9 = vld [vmem:[#allocation4 + $0x70] sm:$0xff]   ;;  %v2327_v10 = vshll.u32 %v3178_v5, 16 }
  0xe9   :  { %3663 = vmatprep.subr.bf16.mxu0 %v4307_v0  ;;  %3743 = vmatprep.subr.bf16.mxu1 %v4307_v0 }
  0xea   :  { %3677 = vmatprep.mubr.msk.bf16.mxu0 %vm4308_vm0, %v4307_v0  ;;  %3757 = vmatprep.mubr.msk.bf16.mxu1 %vm4308_vm0, %v4307_v0 }
  0xec   :  { %3664 = vmatpush3.bf16.msra.mxu0 %v4143_v11  ;;  %3744 = vmatpush3.bf16.msra.mxu1 %v4144_v12  ;;  %v4188_v11 = vld [vmem:[#allocation4 + $0x70] sm:$0xff]   ;;  %v1881_v12 = vrot.slane %v1879_v7, 2  ;;  %v4233_v7 = vld [vmem:[#allocation4 + $0xd8] sm:$0xff]  }
  0xed   :  { %3665 = vmatprep.subr.bf16.mxu0 %v4307_v0  ;;  %3745 = vmatprep.subr.bf16.mxu1 %v4307_v0 }
  0xf0   :  { %3666 = vmatpush3.bf16.msra.mxu0 %v4145_v13  ;;  %3746 = vmatpush3.bf16.msra.mxu1 %v4146_v14  ;;  %v1884_v13 = vrot.slane %v1882_v8, 3  ;;  %v4189_v14 = vld [vmem:[#allocation4 + $0x78] sm:$0xff]  }
  0xf1   :  { %3667 = vmatprep.subr.bf16.mxu0 %v4307_v0  ;;  %3747 = vmatprep.subr.bf16.mxu1 %v4307_v0  ;;  %v4234_v8 = vld [vmem:[#allocation4 + $0xd8] sm:$0xff]  }
  0xf4   :  { %3668 = vmatpush3.bf16.msra.mxu0 %v4147_v15  ;;  %3748 = vmatpush3.bf16.msra.mxu1 %v4148_v16  ;;  %v2325_v15 = vshrl.u32 %v3178_v5, 16  ;;  %v2329_v16 = vrot.slane %v2327_v10, 1  ;;  %v4231_v5 = vld [vmem:[#allocation4 + $0xd0] sm:$0xff]   ;;  %v4236_v10 = vld [vmem:[#allocation4 + $0xe0] sm:$0xff]  }
  0xf5   :  { %3669 = vmatprep.subr.bf16.mxu0 %v4307_v0  ;;  %3749 = vmatprep.subr.bf16.mxu1 %v4307_v0 }
  0xf8   :  { %3670 = vmatpush3.bf16.msra.mxu0 %v4149_v17  ;;  %3750 = vmatpush3.bf16.msra.mxu1 %v4150_v18  ;;  %v4190_v17 = vld [vmem:[#allocation4 + $0x78] sm:$0xff]   ;;  %v1885_v18 = vor.u32 %v1884_v13, %v1881_v12  ;;  %v4237_v12 = vld [vmem:[#allocation4 + $0xe8] sm:$0xff]  }
  0xf9   :  { %3671 = vmatprep.subr.bf16.mxu0 %v4307_v0  ;;  %3751 = vmatprep.subr.bf16.mxu1 %v4307_v0  ;;  %v4238_v13 = vld [vmem:[#allocation4 + $0xe8] sm:$0xff]  }
  0xfc   :  { %3672 = vmatpush3.bf16.msra.mxu0 %v4151_v19  ;;  %3752 = vmatpush3.bf16.msra.mxu1 %v4152_v20  ;;  %v4192_v19 = vld [vmem:[#allocation4] sm:$0xff]   ;;  %v2330_v20 = vor.u32 %v2329_v16, %v2325_v15  ;;  %v4239_v15 = vld [vmem:[#allocation4 + $0xf0] sm:$0xff]  }
  0xfd   :  { %3673 = vmatprep.subr.bf16.mxu0 %v4307_v0  ;;  %3753 = vmatprep.subr.bf16.mxu1 %v4307_v0 }
 0x100   :  { %3674 = vmatpush3.bf16.msra.mxu0 %v4153_v21  ;;  %3754 = vmatpush3.bf16.msra.mxu1 %v4154_v22  ;;  %v4194_v21 = vld [vmem:[#allocation4] sm:$0xff]   ;;  %v4195_v22 = vld [vmem:[#allocation4 + $0x8] sm:$0xff]  }
 0x101   :  { %3675 = vmatprep.subr.bf16.mxu0 %v4307_v0  ;;  %3755 = vmatprep.subr.bf16.mxu1 %v4307_v0 }
 0x104   :  { %3676 = vmatpush3.bf16.msra.mxu0 %v4155_v24  ;;  %3756 = vmatpush3.bf16.msra.mxu1 %v4156_v26  ;;  %v4197_v24 = vld [vmem:[#allocation4 + $0x10] sm:$0xff]   ;;  %v4199_v26 = vld [vmem:[#allocation4 + $0x18] sm:$0xff]  }
 0x105   :  { %3681 = vmatprep.subr.bf16.mxu0 %v4307_v0  ;;  %3761 = vmatprep.subr.bf16.mxu1 %v4307_v0 }
 0x107   :  { %3678 = vmatmul.mubr.bf16.vlgmr.msra.gmra.mrb[4].mxu0 %v1190_v27  ;;  %3758 = vmatmul.mubr.bf16.vlgmr.msra.gmra.mrb[4].mxu1 %v1636_v29  ;;  %v4200_v27 = vld [vmem:[#allocation4 + $0x18] sm:$0xff]   ;;  %v4202_v29 = vld [vmem:[#allocation4 + $0x20] sm:$0xff]  }
 0x108   :  { %3682 = vmatpush3.bf16.msra.mxu0 %v4158_v28  ;;  %3762 = vmatpush3.bf16.msra.mxu1 %v4160_v30  ;;  %v4201_v28 = vld [vmem:[#allocation4 + $0x20] sm:$0xff]   ;;  %v4203_v30 = vld [vmem:[#allocation4 + $0x28] sm:$0xff]  }
 0x109   :  { %3683 = vmatprep.subr.bf16.mxu0 %v4307_v0  ;;  %3763 = vmatprep.subr.bf16.mxu1 %v4307_v0 }
 0x10a   :  { %3697 = vmatprep.mubr.msk.bf16.mxu0 %vm4308_vm0, %v4307_v0  ;;  %3777 = vmatprep.mubr.msk.bf16.mxu1 %vm4308_vm0, %v4307_v0 }
 0x10c   :  { %3684 = vmatpush3.bf16.msra.mxu0 %v4161_v31  ;;  %3764 = vmatpush3.bf16.msra.mxu1 %v4162_v32  ;;  %v4204_v31 = vld [vmem:[#allocation4 + $0x28] sm:$0xff]   ;;  %v4205_v32 = vld [vmem:[#allocation4 + $0x30] sm:$0xff]  }
 0x10d   :  { %3685 = vmatprep.subr.bf16.mxu0 %v4307_v0  ;;  %3765 = vmatprep.subr.bf16.mxu1 %v4307_v0 }
 0x110   :  { %3686 = vmatpush3.bf16.msra.mxu0 %v4163_v33  ;;  %3766 = vmatpush3.bf16.msra.mxu1 %v4164_v34  ;;  %v4206_v33 = vld [vmem:[#allocation4 + $0x30] sm:$0xff]   ;;  %v4207_v34 = vld [vmem:[#allocation4 + $0x38] sm:$0xff]  }
 0x111   :  { %3687 = vmatprep.subr.bf16.mxu0 %v4307_v0  ;;  %3767 = vmatprep.subr.bf16.mxu1 %v4307_v0 }
 0x114   :  { %3688 = vmatpush3.bf16.msra.mxu0 %v4165_v35  ;;  %3768 = vmatpush3.bf16.msra.mxu1 %v4166_v36  ;;  %v4208_v35 = vld [vmem:[#allocation4 + $0x38] sm:$0xff]   ;;  %v1975_v36 = vrot.slane %v4600_v3, 2  ;;  %v4229_v3 = vld [vmem:[#allocation4 + $0xc8] sm:$0xff]  }
 0x115   :  { %3689 = vmatprep.subr.bf16.mxu0 %v4307_v0  ;;  %3769 = vmatprep.subr.bf16.mxu1 %v4307_v0 }
 0x118   :  { %3690 = vmatpush3.bf16.msra.mxu0 %v4167_v37  ;;  %3770 = vmatpush3.bf16.msra.mxu1 %v4168_v38  ;;  %v4209_v37 = vld [vmem:[#allocation4 + $0x80] sm:$0xff]  }
 0x119   :  { %3691 = vmatprep.subr.bf16.mxu0 %v4307_v0  ;;  %3771 = vmatprep.subr.bf16.mxu1 %v4307_v0  ;;  %v4210_v38 = vld [vmem:[#allocation4 + $0x80] sm:$0xff]  }
 0x11c   :  { %3692 = vmatpush3.bf16.msra.mxu0 %v4169_v39  ;;  %3772 = vmatpush3.bf16.msra.mxu1 %v4170_v40  ;;  %v4211_v39 = vld [vmem:[#allocation4 + $0x88] sm:$0xff]  }
 0x11d   :  { %3693 = vmatprep.subr.bf16.mxu0 %v4307_v0  ;;  %3773 = vmatprep.subr.bf16.mxu1 %v4307_v0  ;;  %v4212_v40 = vld [vmem:[#allocation4 + $0x88] sm:$0xff]  }
 0x120   :  { %3694 = vmatpush3.bf16.msra.mxu0 %v4171_v43  ;;  %3774 = vmatpush3.bf16.msra.mxu1 %v4172_v46  ;;  %v4215_v43 = vld [vmem:[#allocation4 + $0x98] sm:$0xff]   ;;  %v4218_v46 = vld [vmem:[#allocation4 + $0xa0] sm:$0xff]  }
 0x121   :  { %3695 = vmatprep.subr.bf16.mxu0 %v4307_v0  ;;  %3775 = vmatprep.subr.bf16.mxu1 %v4307_v0 }
 0x124   :  { %3696 = vmatpush3.bf16.msra.mxu0 %v4173_v49  ;;  %3776 = vmatpush3.bf16.msra.mxu1 %v4174_v52 }
 0x125   :  { %3781 = vmatprep.subr.bf16.mxu0 %v4307_v0  ;;  %3861 = vmatprep.subr.bf16.mxu1 %v4307_v0 }
 0x127   :  { %3698 = vmatmul.mubr.bf16.vlgmr.msra.gmra.mrb[4].mxu0 %v1304_v53  ;;  %3778 = vmatmul.mubr.bf16.vlgmr.msra.gmra.mrb[4].mxu1 %v1750_v54  ;;  %v4221_v54 = vld [vmem:[#allocation4 + $0xb0] sm:$0xff]  }
 0x128   :  { %3782 = vmatpush3.bf16.msra.mxu0 %v4175_v55  ;;  %3862 = vmatpush3.bf16.msra.mxu1 %v4176_v56 }
 0x129   :  { %3783 = vmatprep.subr.bf16.mxu0 %v4307_v0  ;;  %3863 = vmatprep.subr.bf16.mxu1 %v4307_v0 }
 0x12a   :  { %3797 = vmatprep.mubr.msk.bf16.mxu0 %vm4308_vm0, %v4307_v0  ;;  %3877 = vmatprep.mubr.msk.bf16.mxu1 %vm4308_vm0, %v4307_v0 }
 0x12c   :  { %3784 = vmatpush3.bf16.msra.mxu0 %v4177_v57  ;;  %3864 = vmatpush3.bf16.msra.mxu1 %v4178_v58  ;;  %v4222_v57 = vld [vmem:[#allocation4 + $0xb0] sm:$0xff]  }
 0x12d   :  { %3785 = vmatprep.subr.bf16.mxu0 %v4307_v0  ;;  %3865 = vmatprep.subr.bf16.mxu1 %v4307_v0 }
 0x130   :  { %3786 = vmatpush3.bf16.msra.mxu0 %v4179_v59  ;;  %3866 = vmatpush3.bf16.msra.mxu1 %v4180_v60  ;;  %v4223_v59 = vld [vmem:[#allocation4 + $0xb8] sm:$0xff]  }
 0x131   :  { %3787 = vmatprep.subr.bf16.mxu0 %v4307_v0  ;;  %3867 = vmatprep.subr.bf16.mxu1 %v4307_v0  ;;  %v4227_v60 = vld [vmem:[%s4702_s0 + $0xc] ss:$0 sps:$4 sm:$0xcc]  }
 0x132   :  { %v2636_v16 = vshrl.u32 %v4227_v60, 16 }
 0x134   :  { %3788 = vmatpush3.bf16.msra.mxu0 %v4181_v61  ;;  %3868 = vmatpush3.bf16.msra.mxu1 %v4182_v62  ;;  %v4224_v61 = vld [vmem:[#allocation4 + $0xb8] sm:$0xff]  }
 0x135   :  { %3789 = vmatprep.subr.bf16.mxu0 %v4307_v0  ;;  %3869 = vmatprep.subr.bf16.mxu1 %v4307_v0  ;;  %v2065_v62 = vld [vmem:[%s4702_s0 + $0xc] sm:$0x3] }
 0x138   :  { %3790 = vmatpush3.bf16.msra.mxu0 %v4183_v63  ;;  %3870 = vmatpush3.bf16.msra.mxu1 %v4184_v1  ;;  %v4226_v63 = vld [vmem:[#allocation4 + $0xc0] sm:$0xff]   ;;  %v2528_v1 = vrot.slane %v4227_v60, 2 }
 0x139   :  { %3791 = vmatprep.subr.bf16.mxu0 %v4307_v0  ;;  %3871 = vmatprep.subr.bf16.mxu1 %v4307_v0 }
 0x13c   :  { %3792 = vmatpush3.bf16.msra.mxu0 %v4185_v4  ;;  %3872 = vmatpush3.bf16.msra.mxu1 %v4186_v6  ;;  %v4230_v4 = vld [vmem:[#allocation4 + $0xc8] sm:$0xff]   ;;  %v4232_v6 = vld [vmem:[#allocation4 + $0xd0] sm:$0xff]  }
 0x13d   :  { %3793 = vmatprep.subr.bf16.mxu0 %v4307_v0  ;;  %3873 = vmatprep.subr.bf16.mxu1 %v4307_v0 }
 0x140   :  { %3794 = vmatpush3.bf16.msra.mxu0 %v4187_v9  ;;  %3874 = vmatpush3.bf16.msra.mxu1 %v4188_v11  ;;  %v4235_v9 = vld [vmem:[#allocation4 + $0xe0] sm:$0xff]   ;;  %v3169_v11 = vcombine.low %v2065_v62, %v2065_v62 }
 0x141   :  { %3795 = vmatprep.subr.bf16.mxu0 %v4307_v0  ;;  %3875 = vmatprep.subr.bf16.mxu1 %v4307_v0 }
 0x144   :  { %3796 = vmatpush3.bf16.msra.mxu0 %v4189_v14  ;;  %3876 = vmatpush3.bf16.msra.mxu1 %v4190_v17  ;;  %v2193_v14 = vshll.u32 %v3169_v11, 16  ;;  %v2639_v17 = vshll.u32 %v4227_v60, 16 }
 0x145   :  { %3801 = vmatprep.subr.bf16.mxu0 %v4307_v0  ;;  %3881 = vmatprep.subr.bf16.mxu1 %v4307_v0 }
 0x147   :  { %3798 = vmatmul.mubr.bf16.vlgmr.msra.gmra.mrb[8].mxu0 %v1885_v18  ;;  %3878 = vmatmul.mubr.bf16.vlgmr.msra.gmra.mrb[8].mxu1 %v2330_v20  ;;  %v4240_v18 = vld [vmem:[#allocation4 + $0xf0] sm:$0xff]   ;;  %v2195_v20 = vrot.slane %v2193_v14, 1 }
 0x148   :  { %3802 = vmatpush3.bf16.msra.mxu0 %v4192_v19  ;;  %3882 = vmatpush3.bf16.msra.mxu1 %v4194_v21  ;;  %v2191_v19 = vshrl.u32 %v3169_v11, 16  ;;  %v4241_v21 = vld [vmem:[#allocation4 + $0xf8] sm:$0xff]  }
 0x149   :  { %3803 = vmatprep.subr.bf16.mxu0 %v4307_v0  ;;  %3883 = vmatprep.subr.bf16.mxu1 %v4307_v0 }
 0x14a   :  { %3817 = vmatprep.mubr.msk.bf16.mxu0 %vm4308_vm0, %v4307_v0  ;;  %3897 = vmatprep.mubr.msk.bf16.mxu1 %vm4308_vm0, %v4307_v0 }
 0x14c   :  { %3804 = vmatpush3.bf16.msra.mxu0 %v4195_v22  ;;  %3884 = vmatpush3.bf16.msra.mxu1 %v4196_v23  ;;  %v2638_v22 = vrot.slane %v2636_v16, 2  ;;  %v2641_v23 = vrot.slane %v2639_v17, 3 }
 0x14d   :  { %3805 = vmatprep.subr.bf16.mxu0 %v4307_v0  ;;  %3885 = vmatprep.subr.bf16.mxu1 %v4307_v0 }
 0x150   :  { %3806 = vmatpush3.bf16.msra.mxu0 %v4197_v24  ;;  %3886 = vmatpush3.bf16.msra.mxu1 %v4198_v25  ;;  %v4242_v24 = vld [vmem:[#allocation4 + $0xf8] sm:$0xff]   ;;  %v2196_v25 = vor.u32 %v2195_v20, %v2191_v19 }
 0x151   :  { %3807 = vmatprep.subr.bf16.mxu0 %v4307_v0  ;;  %3887 = vmatprep.subr.bf16.mxu1 %v4307_v0 }
 0x154   :  { %3808 = vmatpush3.bf16.msra.mxu0 %v4199_v26  ;;  %3888 = vmatpush3.bf16.msra.mxu1 %v4200_v27  ;;  %v2642_v26 = vor.u32 %v2641_v23, %v2638_v22  ;;  %v3213_v22 = vld [vmem:[%s4705_s3] ss:$0 sm:$0xff] }
 0x155   :  { %3809 = vmatprep.subr.bf16.mxu0 %v4307_v0  ;;  %3889 = vmatprep.subr.bf16.mxu1 %v4307_v0 }
 0x158   :  { %3810 = vmatpush3.bf16.msra.mxu0 %v4201_v28  ;;  %3890 = vmatpush3.bf16.msra.mxu1 %v4202_v29 }
 0x159   :  { %3811 = vmatprep.subr.bf16.mxu0 %v4307_v0  ;;  %3891 = vmatprep.subr.bf16.mxu1 %v4307_v0 }
 0x15c   :  { %3812 = vmatpush3.bf16.msra.mxu0 %v4203_v30  ;;  %3892 = vmatpush3.bf16.msra.mxu1 %v4204_v31 }
 0x15d   :  { %3813 = vmatprep.subr.bf16.mxu0 %v4307_v0  ;;  %3893 = vmatprep.subr.bf16.mxu1 %v4307_v0 }
 0x160   :  { %3814 = vmatpush3.bf16.msra.mxu0 %v4205_v32  ;;  %3894 = vmatpush3.bf16.msra.mxu1 %v4206_v33 }
 0x161   :  { %3815 = vmatprep.subr.bf16.mxu0 %v4307_v0  ;;  %3895 = vmatprep.subr.bf16.mxu1 %v4307_v0 }
 0x164   :  { %3816 = vmatpush3.bf16.msra.mxu0 %v4207_v34  ;;  %3896 = vmatpush3.bf16.msra.mxu1 %v4208_v35  ;;  %v4243_v35 = vld [vmem:[#allocation6] sm:$0xff]  }
 0x165   :  { %3821 = vmatprep.subr.bf16.mxu0 %v4307_v0  ;;  %3901 = vmatprep.subr.bf16.mxu1 %v4307_v0 }
 0x167   :  { %3818 = vmatmul.mubr.bf16.vlgmr.msra.gmra.mrb[8].mxu0 %v1975_v36  ;;  %3898 = vmatmul.mubr.bf16.vlgmr.msra.gmra.mrb[8].mxu1 %v4594_v2  ;;  %v4228_v2 = vld [vmem:[#allocation4 + $0xc0] sm:$0xff]   ;;  %v4244_v36 = vld [vmem:[#allocation6 + $0x8] sm:$0xff]  }
 0x168   :  { %3822 = vmatpush3.bf16.msra.mxu0 %v4209_v37  ;;  %3902 = vmatpush3.bf16.msra.mxu1 %v4210_v38  ;;  %v4246_v37 = vld [vmem:[#allocation6 + $0x18] sm:$0xff]   ;;  %v4247_v38 = vld [vmem:[#allocation6 + $0x20] sm:$0xff]  }
 0x169   :  { %3823 = vmatprep.subr.bf16.mxu0 %v4307_v0  ;;  %3903 = vmatprep.subr.bf16.mxu1 %v4307_v0 }
 0x16a   :  { %3837 = vmatprep.mubr.msk.bf16.mxu0 %vm4308_vm0, %v4307_v0  ;;  %3917 = vmatprep.mubr.msk.bf16.mxu1 %vm4308_vm0, %v4307_v0 }
 0x16c   :  { %3824 = vmatpush3.bf16.msra.mxu0 %v4211_v39  ;;  %3904 = vmatpush3.bf16.msra.mxu1 %v4212_v40  ;;  %v4248_v39 = vld [vmem:[#allocation6 + $0x28] sm:$0xff]   ;;  %v4249_v40 = vld [vmem:[#allocation6 + $0x30] sm:$0xff]  }
 0x16d   :  { %3825 = vmatprep.subr.bf16.mxu0 %v4307_v0  ;;  %3905 = vmatprep.subr.bf16.mxu1 %v4307_v0 }
 0x170   :  { %3826 = vmatpush3.bf16.msra.mxu0 %v4213_v41  ;;  %3906 = vmatpush3.bf16.msra.mxu1 %v4214_v42  ;;  %v4250_v41 = vld [vmem:[#allocation6 + $0x38] sm:$0xff]  }
 0x171   :  { %3827 = vmatprep.subr.bf16.mxu0 %v4307_v0  ;;  %3907 = vmatprep.subr.bf16.mxu1 %v4307_v0 }
 0x174   :  { %3828 = vmatpush3.bf16.msra.mxu0 %v4215_v43  ;;  %3908 = vmatpush3.bf16.msra.mxu1 %v4216_v44 }
 0x175   :  { %3829 = vmatprep.subr.bf16.mxu0 %v4307_v0  ;;  %3909 = vmatprep.subr.bf16.mxu1 %v4307_v0 }
 0x178   :  { %3830 = vmatpush3.bf16.msra.mxu0 %v4217_v45  ;;  %3910 = vmatpush3.bf16.msra.mxu1 %v4218_v46 }
 0x179   :  { %3831 = vmatprep.subr.bf16.mxu0 %v4307_v0  ;;  %3911 = vmatprep.subr.bf16.mxu1 %v4307_v0 }
 0x17a   :  { %v496_v49 = vpop.f32.mrb[0].mxu0  ;;  %v942_v50 = vpop.f32.mrb[0].mxu1 }
 0x17b   :  { %503 = vst [vmem:[#allocation2] sm:$0x7] %v496_v49  ;;  %v3539_v51 = vpop.f32.mrb[1].mxu0  ;;  %949 = vst [vmem:[#allocation2 + $0x3] sm:$0x7] %v942_v50  ;;  %v3619_v52 = vpop.f32.mrb[1].mxu1 }
 0x17c   :  { %v499_v53 = vpop.f32.mrb[2].mxu0  ;;  %3832 = vmatpush3.bf16.msra.mxu0 %v4219_v47  ;;  %v945_v55 = vpop.f32.mrb[2].mxu1  ;;  %3912 = vmatpush3.bf16.msra.mxu1 %v4220_v48 }
 0x17d   :  { %v3540_v56 = vpop.f32.mrb[3].mxu0  ;;  %3833 = vmatprep.subr.bf16.mxu0 %v4307_v0  ;;  %v3620_v58 = vpop.f32.mrb[3].mxu1  ;;  %3913 = vmatprep.subr.bf16.mxu1 %v4307_v0 }
 0x180   :  { %3834 = vmatpush3.bf16.msra.mxu0 %v4221_v54  ;;  %3914 = vmatpush3.bf16.msra.mxu1 %v4222_v57 }
 0x181   :  { %3835 = vmatprep.subr.bf16.mxu0 %v4307_v0  ;;  %3915 = vmatprep.subr.bf16.mxu1 %v4307_v0 }
 0x184   :  { %3836 = vmatpush3.bf16.msra.mxu0 %v4223_v59  ;;  %3916 = vmatpush3.bf16.msra.mxu1 %v4224_v61 }
 0x185   :  { %3841 = vmatprep.subr.bf16.mxu0 %v4307_v0  ;;  %3921 = vmatprep.subr.bf16.mxu1 %v4307_v0 }
 0x187   :  { %3838 = vmatmul.mubr.bf16.vlgmr.msra.gmra.mrb[8].mxu0 %v2065_v62  ;;  %3918 = vmatmul.mubr.bf16.vlgmr.msra.gmra.mrb[8].mxu1 %v2528_v1 }
 0x188   :  { %3842 = vmatpush3.bf16.msra.mxu0 %v4226_v63  ;;  %3922 = vmatpush3.bf16.msra.mxu1 %v4228_v2 }
 0x189   :  { %3843 = vmatprep.subr.bf16.mxu0 %v4307_v0  ;;  %3923 = vmatprep.subr.bf16.mxu1 %v4307_v0 }
 0x18a   :  { %3857 = vmatprep.mubr.msk.bf16.mxu0 %vm4308_vm0, %v4307_v0  ;;  %3937 = vmatprep.mubr.msk.bf16.mxu1 %vm4308_vm0, %v4307_v0 }
 0x18c   :  { %3844 = vmatpush3.bf16.msra.mxu0 %v4229_v3  ;;  %3924 = vmatpush3.bf16.msra.mxu1 %v4230_v4 }
 0x18d   :  { %3845 = vmatprep.subr.bf16.mxu0 %v4307_v0  ;;  %3925 = vmatprep.subr.bf16.mxu1 %v4307_v0 }
 0x190   :  { %3846 = vmatpush3.bf16.msra.mxu0 %v4231_v5  ;;  %3926 = vmatpush3.bf16.msra.mxu1 %v4232_v6 }
 0x191   :  { %3847 = vmatprep.subr.bf16.mxu0 %v4307_v0  ;;  %3927 = vmatprep.subr.bf16.mxu1 %v4307_v0 }
 0x194   :  { %3848 = vmatpush3.bf16.msra.mxu0 %v4233_v7  ;;  %3928 = vmatpush3.bf16.msra.mxu1 %v4234_v8 }
 0x195   :  { %3849 = vmatprep.subr.bf16.mxu0 %v4307_v0  ;;  %3929 = vmatprep.subr.bf16.mxu1 %v4307_v0 }
 0x198   :  { %3850 = vmatpush3.bf16.msra.mxu0 %v4235_v9  ;;  %3930 = vmatpush3.bf16.msra.mxu1 %v4236_v10 }
 0x199   :  { %3851 = vmatprep.subr.bf16.mxu0 %v4307_v0  ;;  %3931 = vmatprep.subr.bf16.mxu1 %v4307_v0 }
 0x19c   :  { %3852 = vmatpush3.bf16.msra.mxu0 %v4237_v12  ;;  %3932 = vmatpush3.bf16.msra.mxu1 %v4238_v13 }
 0x19d   :  { %3853 = vmatprep.subr.bf16.mxu0 %v4307_v0  ;;  %3933 = vmatprep.subr.bf16.mxu1 %v4307_v0 }
 0x1a0   :  { %3854 = vmatpush3.bf16.msra.mxu0 %v4239_v15  ;;  %3934 = vmatpush3.bf16.msra.mxu1 %v4240_v18  ;;  %v3212_v18 = vld [vmem:[%s4704_s2] ss:$0 sm:$0xff] }
 0x1a1   :  { %3855 = vmatprep.subr.bf16.mxu0 %v4307_v0  ;;  %3935 = vmatprep.subr.bf16.mxu1 %v4307_v0  ;;  %v4245_v0 = vld [vmem:[#allocation6 + $0x10] sm:$0xff]  }
 0x1a4   :  { %3856 = vmatpush3.bf16.msra.mxu0 %v4241_v21  ;;  %3936 = vmatpush3.bf16.msra.mxu1 %v4242_v24 }
 0x1a5   :  { %3941 = vmatprep.subr.bf16.mxu0 %v4243_v35 }
 0x1a7   :  { %3858 = vmatmul.mubr.bf16.vlgmr.msra.gmra.mrb[8].mxu0 %v2196_v25  ;;  %3938 = vmatmul.mubr.bf16.vlgmr.msra.gmra.mrb[8].mxu1 %v2642_v26 }
 0x1a8   :  { %3942 = vmatpush3.bf16.msra.mxu0 %v4243_v35 }
 0x1a9   :  { %3943 = vmatprep.subr.bf16.mxu0 %v4244_v36 }
 0x1ac   :  { %3944 = vmatpush3.bf16.msra.mxu0 %v4244_v36 }
 0x1ad   :  { %3945 = vmatprep.subr.bf16.mxu0 %v4245_v0 }
 0x1b0   :  { %3946 = vmatpush3.bf16.msra.mxu0 %v4245_v0  ;;  %v2808_v0 = vld [vmem:[#allocation3 + $0x10] sm:$0x3] }
 0x1b1   :  { %3947 = vmatprep.subr.bf16.mxu0 %v4246_v37 }
 0x1b4   :  { %3948 = vmatpush3.bf16.msra.mxu0 %v4246_v37 }
 0x1b5   :  { %3949 = vmatprep.subr.bf16.mxu0 %v4247_v38 }
 0x1b8   :  { %3950 = vmatpush3.bf16.msra.mxu0 %v4247_v38 }
 0x1b9   :  { %3951 = vmatprep.subr.bf16.mxu0 %v4248_v39 }
 0x1bc   :  { %3952 = vmatpush3.bf16.msra.mxu0 %v4248_v39 }
 0x1bd   :  { %3953 = vmatprep.subr.bf16.mxu0 %v4249_v40 }
 0x1c0   :  { %3954 = vmatpush3.bf16.msra.mxu0 %v4249_v40 }
 0x1c1   :  { %3955 = vmatprep.subr.bf16.mxu0 %v4250_v41 }
 0x1c4   :  { %3956 = vmatpush3.bf16.msra.mxu0 %v4250_v41 }
 0x1fa   :  { %v1388_v27 = vpop.f32.mrb[4].mxu0  ;;  %v1834_v28 = vpop.f32.mrb[4].mxu1 }
 0x1fb   :  { %1395 = vst [vmem:[#allocation2 + $0x6] sm:$0x7] %v1388_v27  ;;  %v3699_v29 = vpop.f32.mrb[5].mxu0  ;;  %1841 = vst [vmem:[#allocation2 + $0x9] sm:$0x7] %v1834_v28  ;;  %v3779_v30 = vpop.f32.mrb[5].mxu1 }
 0x1fc   :  { %v1391_v31 = vpop.f32.mrb[6].mxu0  ;;  %v1837_v32 = vpop.f32.mrb[6].mxu1 }
 0x1fd   :  { %v3700_v33 = vpop.f32.mrb[7].mxu0  ;;  %v3780_v34 = vpop.f32.mrb[7].mxu1 }
 0x202   :  { %v2734_v50 = vld [vmem:[#allocation2] sm:$0xff] }
 0x27a   :  { %v2280_v42 = vpop.f32.mrb[8].mxu0  ;;  %v2726_v43 = vpop.f32.mrb[8].mxu1 }
 0x27b   :  { %2287 = vst [vmem:[#allocation2 + $0xc] sm:$0x7] %v2280_v42  ;;  %v3859_v44 = vpop.f32.mrb[9].mxu0  ;;  %2733 = vst [vmem:[#allocation2 + $0xf] sm:$0x7] %v2726_v43  ;;  %v3939_v45 = vpop.f32.mrb[9].mxu1 }
 0x27c   :  { %v2283_v46 = vpop.f32.mrb[10].mxu0  ;;  %v2729_v47 = vpop.f32.mrb[10].mxu1 }
 0x27d   :  { %v3860_v48 = vpop.f32.mrb[11].mxu0  ;;  %v3940_v49 = vpop.f32.mrb[11].mxu1 }
 0x282   :  { %v2735_v51 = vld [vmem:[#allocation2 + $0x8] sm:$0xff]  ;;  %v2736_v52 = vld [vmem:[#allocation2 + $0x10] sm:$0x3] }
 0x283   :  { %v2737_v53 = vadd.f32 %v2735_v51, %v2734_v50  ;;  %v2739_v54 = vsel %vm2738_vm1, %v2736_v52, 0.0 }
 0x285   :  { %v2740_v55 = vadd.f32 %v2739_v54, %v2737_v53 }
 0x287   :  { %v2741_v56 = vrot.slane %v2740_v55, 4 }
 0x289   :  { %v2742_v57 = vadd.f32 %v2741_v56, %v2740_v55 }
 0x28b   :  { %v2743_v58 = vrot.slane %v2742_v57, 2 }
 0x28d   :  { %v2744_v59 = vadd.f32 %v2743_v58, %v2742_v57 }
 0x28f   :  { %v2745_v60 = vrot.slane %v2744_v59, 1 }
 0x291   :  { %v2746_v61 = vadd.f32 %v2745_v60, %v2744_v59 }
 0x293   :  { %v2748_v62 = vmul.f32 0.055555556, %v2746_v61 }
 0x295   :  { %v2749_v63 = vsub.f32 %v2734_v50, %v2748_v62  ;;  %v2750_v1 = vsub.f32 %v2735_v51, %v2748_v62  ;;  %v2751_v2 = vsub.f32 %v2736_v52, %v2748_v62 }
 0x297   :  { %v2752_v3 = vmul.f32 %v2749_v63, %v2749_v63  ;;  %v2753_v4 = vmul.f32 %v2750_v1, %v2750_v1  ;;  %v2754_v5 = vmul.f32 %v2751_v2, %v2751_v2 }
 0x299   :  { %v2755_v6 = vadd.f32 %v2753_v4, %v2752_v3  ;;  %v2756_v7 = vsel %vm2738_vm1, %v2754_v5, 0.0 }
 0x29b   :  { %v2757_v8 = vadd.f32 %v2756_v7, %v2755_v6 }
 0x29d   :  { %v2758_v9 = vrot.slane %v2757_v8, 4 }
 0x29f   :  { %v2759_v10 = vadd.f32 %v2758_v9, %v2757_v8  ;;  %v3222_v8 = vld [vmem:[%s4707_s5] ss:$0 sm:$0xff] }
 0x2a1   :  { %v2760_v11 = vrot.slane %v2759_v10, 2 }
 0x2a3   :  { %v2761_v12 = vadd.f32 %v2760_v11, %v2759_v10 }
 0x2a5   :  { %v2762_v13 = vrot.slane %v2761_v12, 1 }
 0x2a7   :  { %v2763_v14 = vadd.f32 %v2762_v13, %v2761_v12  ;;  %v3223_v12 = vld [vmem:[%s4708_s6] ss:$0 sm:$0xff] }
 0x2a9   :  { %v2764_v15 = vmul.f32 0.055555556, %v2763_v14 }
 0x2ab   :  { %v2765_v16 = vadd.f32 1e-05, %v2764_v15 }
 0x2ad   :  { %4251 = vrsqrt.f32 %v2765_v16 }
 0x2b7   :  { %v4252_v17 = vpop.eup %4251 }
 0x2b8   :  { %v2767_v19 = vmul.f32 %v4252_v17, %v2749_v63  ;;  %v2768_v20 = vmul.f32 %v4252_v17, %v2750_v1  ;;  %v2769_v21 = vmul.f32 %v4252_v17, %v2751_v2 }
 0x2ba   :  { %v2777_v23 = vmul.f32 %v3212_v18, %v2767_v19  ;;  %v2778_v24 = vmul.f32 %v3212_v18, %v2768_v20  ;;  %v2779_v25 = vmul.f32 %v3212_v18, %v2769_v21 }
 0x2bc   :  { %v2787_v26 = vadd.f32 %v3213_v22, %v2777_v23  ;;  %v2788_v27 = vadd.f32 %v3213_v22, %v2778_v24  ;;  %v2789_v28 = vadd.f32 %v3213_v22, %v2779_v25 }
 0x2be   :  { %vm2790_vm2 = vcmp.gt.f32.partialorder %v2787_v26, 0.0  ;;  %vm2791_vm3 = vcmp.gt.f32.partialorder %v2788_v27, 0.0  ;;  %v2793_v29 = vmul.f32 0.2, %v2787_v26  ;;  %v2794_v30 = vmul.f32 0.2, %v2788_v27 }
 0x2bf   :  { %vm2792_vm4 = vcmp.gt.f32.partialorder %v2789_v28, 0.0  ;;  %v2795_v31 = vmul.f32 0.2, %v2789_v28 }
 0x2c0   :  { %v2796_v32 = vsel %vm2790_vm2, %v2787_v26, %v2793_v29  ;;  %v2797_v33 = vsel %vm2791_vm3, %v2788_v27, %v2794_v30 }
 0x2c1   :  { %v2809_v34 = vpack.c.bf16 %v2797_v33, %v2796_v32  ;;  %v2798_v35 = vsel %vm2792_vm4, %v2789_v28, %v2795_v31 }
 0x2c2   :  { %v2810_v36 = vpack.c.bf16 %v2798_v35, %v2798_v35 }
 0x2c3   :  { %3957 = vmatprep.mubr.bf16.mxu0 %v2809_v34 }
 0x2c4   :  { %3958 = vmatmul.mubr.bf16.vlgmr.msra.gmra.mrb[12].mxu0 %v2810_v36 }
 0x397   :  { %v3959_v37 = vpop.f32.mrb[12].mxu0 }
 0x398   :  { %v2925_v38 = vadd.f32 %v3959_v37, %v2808_v0  ;;  %v2909_v39 = vpop.f32.mrb[13].mxu0 }
 0x399   :  { %v3960_v40 = vpop.f32.mrb[14].mxu0 }
 0x39a   :  { %2928 = vst [vmem:[#allocation3 + $0x10] sm:$0x3] %v2925_v38  ;;  %v2912_v41 = vpop.f32.mrb[15].mxu0 }
 0x39b   :  { %v2935_v42 = vadd.f32 %v2912_v41, %v2909_v39 }
 0x3a1   :  { %v2934_v43 = vld [vmem:[#allocation3 + $0x10] sm:$0x3] }
 0x3a2   :  { %v2936_v44 = vsel %vm2738_vm1, %v2934_v43, 0.0 }
 0x3a3   :  { %v2937_v45 = vadd.f32 %v2936_v44, %v2935_v42 }
 0x3a5   :  { %v2938_v46 = vrot.slane %v2937_v45, 4 }
 0x3a7   :  { %v2939_v47 = vadd.f32 %v2938_v46, %v2937_v45 }
 0x3a9   :  { %v2940_v48 = vrot.slane %v2939_v47, 2 }
 0x3ab   :  { %v2941_v49 = vadd.f32 %v2940_v48, %v2939_v47 }
 0x3ad   :  { %v2942_v50 = vrot.slane %v2941_v49, 1 }
 0x3af   :  { %v2943_v51 = vadd.f32 %v2942_v50, %v2941_v49 }
 0x3b1   :  { %v2944_v52 = vmul.f32 0.055555556, %v2943_v51 }
 0x3b3   :  { %v2945_v53 = vsub.f32 %v2909_v39, %v2944_v52  ;;  %v2946_v54 = vsub.f32 %v2912_v41, %v2944_v52  ;;  %v2947_v55 = vsub.f32 %v2934_v43, %v2944_v52 }
 0x3b5   :  { %v2948_v56 = vmul.f32 %v2945_v53, %v2945_v53  ;;  %v2949_v57 = vmul.f32 %v2946_v54, %v2946_v54  ;;  %v2950_v58 = vmul.f32 %v2947_v55, %v2947_v55 }
 0x3b7   :  { %v2951_v59 = vadd.f32 %v2949_v57, %v2948_v56  ;;  %v2952_v60 = vsel %vm2738_vm1, %v2950_v58, 0.0 }
 0x3b9   :  { %v2953_v61 = vadd.f32 %v2952_v60, %v2951_v59 }
 0x3bb   :  { %v2954_v62 = vrot.slane %v2953_v61, 4 }
 0x3bd   :  { %v2955_v63 = vadd.f32 %v2954_v62, %v2953_v61 }
 0x3bf   :  { %v2956_v1 = vrot.slane %v2955_v63, 2 }
 0x3c1   :  { %v2957_v2 = vadd.f32 %v2956_v1, %v2955_v63 }
 0x3c3   :  { %v2958_v3 = vrot.slane %v2957_v2, 1 }
 0x3c5   :  { %v2959_v4 = vadd.f32 %v2958_v3, %v2957_v2 }
 0x3c7   :  { %v2960_v5 = vmul.f32 0.055555556, %v2959_v4 }
 0x3c9   :  { %v2961_v6 = vadd.f32 1e-05, %v2960_v5 }
 0x3cb   :  { %4253 = vrsqrt.f32 %v2961_v6 }
 0x3d5   :  { %v4254_v7 = vpop.eup %4253 }
 0x3d6   :  { %v2963_v9 = vmul.f32 %v4254_v7, %v2945_v53  ;;  %v2964_v10 = vmul.f32 %v4254_v7, %v2946_v54  ;;  %v2965_v11 = vmul.f32 %v4254_v7, %v2947_v55 }
 0x3d8   :  { %v2973_v13 = vmul.f32 %v3222_v8, %v2963_v9  ;;  %v2974_v14 = vmul.f32 %v3222_v8, %v2964_v10  ;;  %v2975_v15 = vmul.f32 %v3222_v8, %v2965_v11 }
 0x3da   :  { %v2983_v16 = vadd.f32 %v3223_v12, %v2973_v13  ;;  %v2984_v17 = vadd.f32 %v3223_v12, %v2974_v14  ;;  %v2985_v18 = vadd.f32 %v3223_v12, %v2975_v15 }
 0x3dc   :  { %v3229_v19 = vpack.c.bf16 %v2985_v18, %v2985_v18  ;;  %v3233_v20 = vpack.c.bf16 %v2984_v17, %v2983_v16 }
 0x3de   :  { %3234 = vst [vmem:[%s4709_s7] sm:$0xff] %v3233_v20   ;;  %3001 = vst [vmem:[%s4709_s7 + $0x8] sm:$0x1] %v3229_v19 }
 0x3df   :  { %3006 = vsyncpa [#allocation5], 1 }
 0x3e0   :  { %3007 = vsyncpa [#allocation7], 1 }

// kernel: _lambda_.7
= control target key start
LH: loop header
LB: loop body
LE: loop exit
PB: predicated region body
PF: predicated region fallthrough
CT: control target
= control target key end

     0   :  { %v106_v30 = vlaneseq  ;;  %v706_v34 = vmov 1966171168   ;;  %v707_v37 = vmov 0.0   ;;  %s881_s0 = inlined_call_operand.vmem [shape: bf16[2,512], index: 0, kind: input, shape index: {}]   ;;  %s882_s1 = inlined_call_operand.vmem [shape: bf16[512,128], index: 1, kind: input, shape index: {}]   ;;  %s883_s2 = inlined_call_operand.vmem [shape: f32[1,128], index: 2, kind: input, shape index: {}]   ;;  %s884_s3 = inlined_call_operand.vmem [shape: bf16[128,128], index: 3, kind: input, shape index: {}]   ;;  %s885_s4 = inlined_call_operand.vmem [shape: f32[1,128], index: 4, kind: input, shape index: {}]   ;;  %s886_s5 = inlined_call_operand.hbm [shape: f32[2,128], index: 5, kind: output, shape index: {}]  }
   0x1   :  { %v642_v0 = vld [vmem:[%s882_s1 + $0x40] sm:$0xff]   ;;  %v646_v4 = vld [vmem:[%s882_s1 + $0x48] sm:$0xff]   ;;  %v650_v8 = vld [vmem:[%s882_s1 + $0x50] sm:$0xff]   ;;  %v104_v35 = vunpack.c.l.s4 %v706_v34 }
   0x2   :  { %v643_v1 = vld [vmem:[%s882_s1 + $0xc0] sm:$0xff]   ;;  %565 = vmatprep.subr.bf16.mxu0 %v642_v0  ;;  %v647_v5 = vld [vmem:[%s882_s1 + $0xc8] sm:$0xff]   ;;  %v651_v9 = vld [vmem:[%s882_s1 + $0xd0] sm:$0xff]   ;;  %v107_v36 = vshrl.u32 %v106_v30, 7 }
   0x3   :  { %v644_v2 = vld [vmem:[%s882_s1] sm:$0xff]   ;;  %587 = vmatprep.subr.bf16.mxu1 %v643_v1  ;;  %v648_v6 = vld [vmem:[%s882_s1 + $0x8] sm:$0xff]   ;;  %v652_v10 = vld [vmem:[%s882_s1 + $0x10] sm:$0xff]   ;;  %v105_v39 = vunpack.c.0.s8 %v104_v35 }
   0x4   :  { %v645_v3 = vld [vmem:[%s882_s1 + $0x80] sm:$0xff]   ;;  %566 = vmatpush3.bf16.msra.mxu0 %v644_v2  ;;  %v649_v7 = vld [vmem:[%s882_s1 + $0x88] sm:$0xff]   ;;  %v653_v11 = vld [vmem:[%s882_s1 + $0x90] sm:$0xff]  }
   0x5   :  { %588 = vmatpush3.bf16.msra.mxu1 %v645_v3  ;;  %567 = vmatprep.subr.bf16.mxu0 %v646_v4  ;;  %v654_v12 = vld [vmem:[%s882_s1 + $0x58] sm:$0xff]   ;;  %v658_v16 = vld [vmem:[%s882_s1 + $0x60] sm:$0xff]   ;;  %v662_v20 = vld [vmem:[%s882_s1 + $0x68] sm:$0xff]   ;;  %v108_v40 = vsub.s32 %v105_v39, %v107_v36 }
   0x6   :  { %589 = vmatprep.subr.bf16.mxu1 %v647_v5  ;;  %v655_v13 = vld [vmem:[%s882_s1 + $0xd8] sm:$0xff]   ;;  %v659_v17 = vld [vmem:[%s882_s1 + $0xe0] sm:$0xff]   ;;  %v663_v21 = vld [vmem:[%s882_s1 + $0xe8] sm:$0xff]  }
   0x7   :  { %v656_v14 = vld [vmem:[%s882_s1 + $0x18] sm:$0xff]   ;;  %v660_v18 = vld [vmem:[%s882_s1 + $0x20] sm:$0xff]   ;;  %v664_v22 = vld [vmem:[%s882_s1 + $0x28] sm:$0xff]  }
   0x8   :  { %568 = vmatpush3.bf16.msra.mxu0 %v648_v6  ;;  %v657_v15 = vld [vmem:[%s882_s1 + $0x98] sm:$0xff]   ;;  %v661_v19 = vld [vmem:[%s882_s1 + $0xa0] sm:$0xff]   ;;  %v665_v23 = vld [vmem:[%s882_s1 + $0xa8] sm:$0xff]  }
   0x9   :  { %590 = vmatpush3.bf16.msra.mxu1 %v649_v7  ;;  %569 = vmatprep.subr.bf16.mxu0 %v650_v8  ;;  %v666_v24 = vld [vmem:[%s882_s1 + $0x70] sm:$0xff]   ;;  %v670_v28 = vld [vmem:[%s882_s1 + $0x78] sm:$0xff]   ;;  %v523_v33 = vld.sshfl [vmem:[%s881_s0] sm:$0x33 pattern:$0x75316420] }
   0xa   :  { %591 = vmatprep.subr.bf16.mxu1 %v651_v9  ;;  %v667_v25 = vld [vmem:[%s882_s1 + $0xf0] sm:$0xff]   ;;  %v671_v29 = vld [vmem:[%s882_s1 + $0xf8] sm:$0xff]   ;;  %v102_v38 = vcombine.high %v523_v33, %v523_v33  ;;  %v674_v41 = vld [vmem:[%s884_s3] sm:$0xff]   ;;  %v109_v43 = vrot.slane %v523_v33, %v108_v40 }
   0xb   :  { %v668_v26 = vld [vmem:[%s882_s1 + $0x30] sm:$0xff]   ;;  %v672_v31 = vld [vmem:[%s882_s1 + $0x38] sm:$0xff]  }
   0xc   :  { %570 = vmatpush3.bf16.msra.mxu0 %v652_v10  ;;  %v669_v27 = vld [vmem:[%s882_s1 + $0xb0] sm:$0xff]   ;;  %v673_v32 = vld [vmem:[%s882_s1 + $0xb8] sm:$0xff]   ;;  %v116_v42 = vrot.slane %v102_v38, %v108_v40 }
   0xd   :  { %592 = vmatpush3.bf16.msra.mxu1 %v653_v11  ;;  %571 = vmatprep.subr.bf16.mxu0 %v654_v12 }
   0xe   :  { %593 = vmatprep.subr.bf16.mxu1 %v655_v13 }
  0x10   :  { %572 = vmatpush3.bf16.msra.mxu0 %v656_v14 }
  0x11   :  { %594 = vmatpush3.bf16.msra.mxu1 %v657_v15  ;;  %573 = vmatprep.subr.bf16.mxu0 %v658_v16 }
  0x12   :  { %595 = vmatprep.subr.bf16.mxu1 %v659_v17 }
  0x14   :  { %574 = vmatpush3.bf16.msra.mxu0 %v660_v18 }
  0x15   :  { %596 = vmatpush3.bf16.msra.mxu1 %v661_v19  ;;  %575 = vmatprep.subr.bf16.mxu0 %v662_v20 }
  0x16   :  { %597 = vmatprep.subr.bf16.mxu1 %v663_v21 }
  0x18   :  { %576 = vmatpush3.bf16.msra.mxu0 %v664_v22 }
  0x19   :  { %598 = vmatpush3.bf16.msra.mxu1 %v665_v23  ;;  %577 = vmatprep.subr.bf16.mxu0 %v666_v24 }
  0x1a   :  { %599 = vmatprep.subr.bf16.mxu1 %v667_v25 }
  0x1c   :  { %578 = vmatpush3.bf16.msra.mxu0 %v668_v26 }
  0x1d   :  { %600 = vmatpush3.bf16.msra.mxu1 %v669_v27  ;;  %579 = vmatprep.subr.bf16.mxu0 %v670_v28 }
  0x1e   :  { %601 = vmatprep.subr.bf16.mxu1 %v671_v29 }
  0x20   :  { %580 = vmatpush3.bf16.msra.mxu0 %v672_v31 }
  0x21   :  { %602 = vmatpush3.bf16.msra.mxu1 %v673_v32  ;;  %618 = vmatprep.subr.bf16.mxu0 %v707_v37 }
  0x22   :  { %10 = vsyncpa [#allocation3], 0  ;;  %347 = vmatprep.mubr.bf16.mxu0 %v116_v42  ;;  %v118_v44 = vcombine.high %v116_v42, %v116_v42  ;;  %v117_v45 = vcombine.high %v109_v43, %v109_v43  ;;  %v675_v46 = vld [vmem:[%s884_s3 + $0x8] sm:$0xff]   ;;  %v676_v47 = vld [vmem:[%s884_s3 + $0x10] sm:$0xff]   ;;  %vm708_vm0 = vmmov 0   ;;  %s709_s26 = smov [#allocation2]  }
  0x23   :  { %348 = vmatmul.mubr.bf16.vlgmr.msra.gmra.mrb[0].mxu0 %v109_v43  ;;  %v677_v48 = vld [vmem:[%s884_s3 + $0x18] sm:$0xff]   ;;  %v678_v49 = vld [vmem:[%s884_s3 + $0x20] sm:$0xff]   ;;  %v679_v50 = vld [vmem:[%s884_s3 + $0x28] sm:$0xff]   ;;  %s514_s27 = sshll.u32 %s709_s26, 4  ;;  %s515_s27 = int_to_ptr.vmem [resolvable:$true] %s514_s27 }
  0x24   :  { %387 = vmatprep.mubr.bf16.mxu1 %v118_v44  ;;  %619 = vmatpush3.bf16.msra.mxu0 %v674_v41  ;;  %v680_v51 = vld [vmem:[%s884_s3 + $0x30] sm:$0xff]   ;;  %v681_v52 = vld [vmem:[%s884_s3 + $0x38] sm:$0xff]   ;;  %v522_v54 = vld [vmem:[%s883_s2] ss:$0 sm:$0xff]  ;;  %s682_s2 = scalar_lea.vmem %s515_s27, 32  ;;  %p687_p1 = scmp.lt.s32.totalorder %s515_s27, %s515_s27 }
  0x25   :  { %388 = vmatmul.mubr.bf16.vlgmr.msra.gmra.mrb[0].mxu1 %v117_v45  ;;  %620 = vmatprep.subr.bf16.mxu0 %v707_v37  ;;  %v556_v3 = vld [vmem:[%s885_s4] ss:$0 sm:$0xff]  ;;  %p683_p0 = scmp.ne.s32.totalorder %s515_s27, %s682_s2  ;;  %p688_p2 = scmp.lt.s32.totalorder %s682_s2, %s682_s2 }
  0x26   :  { %634 = vmatprep.mubr.msk.bf16.mxu0 %vm708_vm0, %v707_v37 }
  0x27   :  { %p689_p3 = por %p688_p2, %p687_p1 }
  0x28   :  { %621 = vmatpush3.bf16.msra.mxu0 %v675_v46 }
  0x29   :  { %622 = vmatprep.subr.bf16.mxu0 %v707_v37  ;;  %p690_p4 = pnand %p689_p3, %p683_p0 }
  0x2c   :  { %623 = vmatpush3.bf16.msra.mxu0 %v676_v47 }
  0x2d   :  { %624 = vmatprep.subr.bf16.mxu0 %v707_v37 }
  0x30   :  { %625 = vmatpush3.bf16.msra.mxu0 %v677_v48 }
  0x31   :  { %626 = vmatprep.subr.bf16.mxu0 %v707_v37 }
  0x34   :  { %627 = vmatpush3.bf16.msra.mxu0 %v678_v49 }
  0x35   :  { %628 = vmatprep.subr.bf16.mxu0 %v707_v37 }
  0x38   :  { %629 = vmatpush3.bf16.msra.mxu0 %v679_v50 }
  0x39   :  { %630 = vmatprep.subr.bf16.mxu0 %v707_v37 }
  0x3c   :  { %631 = vmatpush3.bf16.msra.mxu0 %v680_v51 }
  0x3d   :  { %632 = vmatprep.subr.bf16.mxu0 %v707_v37 }
  0x40   :  { %633 = vmatpush3.bf16.msra.mxu0 %v681_v52 }
  0xf6   :  { %v581_v53 = vpop.f32.mrb[0].mxu0 }
  0xf7   :  { %v582_v55 = vpop.f32.mrb[1].mxu0 }
  0xf8   :  { %v603_v56 = vpop.f32.mrb[0].mxu1  ;;  %v583_v57 = vadd.f32 %v582_v55, %v581_v53  ;;  %v584_v58 = vpop.f32.mrb[2].mxu0 }
  0xf9   :  { %v604_v59 = vpop.f32.mrb[1].mxu1  ;;  %v585_v60 = vpop.f32.mrb[3].mxu0 }
  0xfa   :  { %v350_v61 = vadd.f32 %v583_v57, %v522_v54  ;;  %v605_v62 = vadd.f32 %v604_v59, %v603_v56  ;;  %v606_v63 = vpop.f32.mrb[2].mxu1 }
  0xfb   :  { %v607_v0 = vpop.f32.mrb[3].mxu1 }
  0xfc   :  { %v390_v1 = vadd.f32 %v605_v62, %v350_v61 }
  0xfe   :  { %v395_v2 = vpack.c.bf16 %v390_v1, %v390_v1 }
 0x100   :  { %635 = vmatmul.mubr.bf16.vlgmr.msra.gmra.mrb[4].mxu0 %v395_v2 }
 0x1d3   :  { %v501_v4 = vpop.f32.mrb[4].mxu0 }
 0x1d4   :  { %v502_v5 = vadd.f32 %v556_v3, %v501_v4  ;;  %v636_v6 = vpop.f32.mrb[5].mxu0 }
 0x1d5   :  { %v504_v7 = vpop.f32.mrb[6].mxu0 }
 0x1d6   :  { %507 = vst [vmem:[#allocation2] sm:$0x3] %v502_v5  ;;  %v637_v8 = vpop.f32.mrb[7].mxu0 }
 0x1d7   :  { %693 = shalt.err (!%p690_p4)
}
 0x1d8   :  { %s694_s4 = scalar_lea.hbm %s886_s5, 32 }
 0x1d9   :  { %p695_p5 = scmp.ne.s32.totalorder %s886_s5, %s694_s4  ;;  %p698_p6 = scmp.lt.u32.totalorder %s694_s4, %s886_s5 }
 0x1db   :  { %p700_p7 = pnand %p698_p6, %p695_p5 }
 0x1dd   :  { %703 = shalt.err (!%p700_p7)
}
 0x1de   :  { %517 = dma.vmem_to_hbm [thread:$0]  %s515_s27, 32, %s886_s5, [#allocation3]  }
 0x1df   :  { %704 = dma.done.wait [#allocation3], 32  }
 0x1e0   :  { %705 = vsyncadd [#allocation3], 4294967264 }
 0x1e1   :  { %521 = vsyncpa [#allocation3], 1 }

// kernel: _lambda_.4
= control target key start
LH: loop header
LB: loop body
LE: loop exit
PB: predicated region body
PF: predicated region fallthrough
CT: control target
= control target key end

     0   :  { %12 = vsyncpa [#allocation5], 0  ;;  %s12883_s0 = inlined_call_operand.vmem [shape: bf16[288,128], index: 0, kind: input, shape index: {}]   ;;  %s12884_s1 = inlined_call_operand.hbm [shape: bf16[9,128,128], index: 1, kind: input, shape index: {}]   ;;  %s12885_s2 = inlined_call_operand.vmem [shape: f32[1,128], index: 2, kind: input, shape index: {}, may-alias: {2,5}]   ;;  %s12886_s3 = inlined_call_operand.vmem [shape: f32[1,128], index: 3, kind: input, shape index: {}, may-alias: {3,6}]   ;;  %s12887_s4 = inlined_call_operand.hbm [shape: bf16[128,128], index: 4, kind: input, shape index: {}]   ;;  %s12888_s5 = inlined_call_operand.vmem [shape: f32[1,128], index: 5, kind: input, shape index: {}, may-alias: {2,5}]   ;;  %s12889_s6 = inlined_call_operand.vmem [shape: f32[1,128], index: 6, kind: input, shape index: {}, may-alias: {3,6}]   ;;  %s12890_s7 = inlined_call_operand.vmem [shape: bf16[32,128], index: 7, kind: output, shape index: {}]  }
   0x1   :  { %13 = vsyncpa [#allocation7], 0  ;;  %s11859_s24 = smov [#allocation4]   ;;  %s11811_s28 = scalar_lea.hbm %s12884_s1, 9216 }
   0x2   :  { %s21_s25 = sshll.u32 %s11859_s24, 4  ;;  %p11812_p0 = scmp.ne.s32.totalorder %s12884_s1, %s11811_s28  ;;  %s22_s25 = int_to_ptr.vmem [resolvable:$true] %s21_s25 }
   0x3   :  { %p11815_p1 = scmp.lt.u32.totalorder %s11811_s28, %s12884_s1 }
   0x5   :  { %p11817_p2 = pnand %p11815_p1, %p11812_p0 }
   0x7   :  { %11820 = shalt.err (!%p11817_p2)
}
   0x8   :  { %s11821_s10 = scalar_lea.vmem %s22_s25, 9216  ;;  %p11826_p4 = scmp.lt.s32.totalorder %s22_s25, %s22_s25 }
   0x9   :  { %p11822_p3 = scmp.ne.s32.totalorder %s22_s25, %s11821_s10  ;;  %p11827_p5 = scmp.lt.s32.totalorder %s11821_s10, %s11821_s10 }
   0xb   :  { %p11828_p6 = por %p11827_p5, %p11826_p4 }
   0xd   :  { %p11829_p7 = pnand %p11828_p6, %p11822_p3 }
   0xf   :  { %11832 = shalt.err (!%p11829_p7)
}
  0x10   :  { %s11860_s11 = smov 64   ;;  %s11861_s12 = smov 4  }
  0x11   :  { %27 = dma.hbm_to_vmem [thread:$0]  %s12884_s1, 9216, %s22_s25, [#allocation5], %s11860_s11, %s11860_s11, %s11861_s12  }
  0x12   :  { %s11862_s15 = smov [#allocation6]   ;;  %s11833_s19 = scalar_lea.hbm %s12887_s4, 1024 }
  0x13   :  { %s37_s16 = sshll.u32 %s11862_s15, 4  ;;  %p11834_p8 = scmp.ne.s32.totalorder %s12887_s4, %s11833_s19  ;;  %s38_s16 = int_to_ptr.vmem [resolvable:$true] %s37_s16 }
  0x14   :  { %p11837_p9 = scmp.lt.u32.totalorder %s11833_s19, %s12887_s4 }
  0x16   :  { %p11839_p10 = pnand %p11837_p9, %p11834_p8 }
  0x18   :  { %11842 = shalt.err (!%p11839_p10)
}
  0x19   :  { %s11843_s24 = scalar_lea.vmem %s38_s16, 1024  ;;  %p11848_p12 = scmp.lt.s32.totalorder %s38_s16, %s38_s16 }
  0x1a   :  { %p11844_p11 = scmp.ne.s32.totalorder %s38_s16, %s11843_s24  ;;  %p11849_p13 = scmp.lt.s32.totalorder %s11843_s24, %s11843_s24 }
  0x1c   :  { %p11850_p0 = por %p11849_p13, %p11848_p12 }
  0x1e   :  { %p11851_p1 = pnand %p11850_p0, %p11844_p11 }
  0x20   :  { %11854 = shalt.err (!%p11851_p1)
}
  0x21   :  { %43 = dma.hbm_to_vmem [thread:$0]  %s12887_s4, 1024, %s38_s16, [#allocation7], %s11860_s11, %s11860_s11, %s11861_s12  }
  0x22   :  { %11855 = dma.done.wait [#allocation5], 9216  }
  0x23   :  { %11856 = vsyncadd [#allocation5], 4294958080 }
  0x24   :  { %11857 = dma.done.wait [#allocation7], 1024  }
  0x25   :  { %11858 = vsyncadd [#allocation7], 4294966272  ;;  %v11863_v0 = vmov 0.0   ;;  %vm11864_vm0 = vmmov 0   ;;  %v11187_v1 = vld [vmem:[#allocation4 + $0x40] sm:$0xff]   ;;  %v11189_v3 = vld [vmem:[#allocation4 + $0x48] sm:$0xff]  }
  0x26   :  { %9465 = vmatprep.subr.bf16.mxu0 %v11863_v0  ;;  %9645 = vmatprep.subr.bf16.mxu1 %v11863_v0  ;;  %v11188_v2 = vld [vmem:[#allocation4 + $0x40] sm:$0xff]   ;;  %v11190_v4 = vld [vmem:[#allocation4 + $0x48] sm:$0xff]   ;;  %v11191_v5 = vld [vmem:[#allocation4 + $0x50] sm:$0xff]  }
  0x27   :  { %9481 = vmatprep.mubr.msk.bf16.mxu0 %vm11864_vm0, %v11863_v0  ;;  %9661 = vmatprep.mubr.msk.bf16.mxu1 %vm11864_vm0, %v11863_v0  ;;  %v11192_v6 = vld [vmem:[#allocation4 + $0x50] sm:$0xff]   ;;  %v11193_v7 = vld [vmem:[#allocation4 + $0x58] sm:$0xff]   ;;  %v11195_v9 = vld [vmem:[#allocation4 + $0x60] sm:$0xff]  }
  0x28   :  { %9466 = vmatpush3.bf16.msra.mxu0 %v11187_v1  ;;  %9646 = vmatpush3.bf16.msra.mxu1 %v11188_v2  ;;  %v11194_v8 = vld [vmem:[#allocation4 + $0x58] sm:$0xff]   ;;  %v11196_v10 = vld [vmem:[#allocation4 + $0x60] sm:$0xff]   ;;  %v11197_v11 = vld [vmem:[#allocation4 + $0x68] sm:$0xff]  }
  0x29   :  { %9467 = vmatprep.subr.bf16.mxu0 %v11863_v0  ;;  %9647 = vmatprep.subr.bf16.mxu1 %v11863_v0  ;;  %v11198_v12 = vld [vmem:[#allocation4 + $0x68] sm:$0xff]   ;;  %v11199_v13 = vld [vmem:[#allocation4 + $0x70] sm:$0xff]   ;;  %v11203_v15 = vld [vmem:[%s12883_s0] ss:$0 sps:$4 sm:$0xcc]  }
  0x2a   :  { %v11200_v14 = vld [vmem:[#allocation4 + $0x70] sm:$0xff]   ;;  %v11201_v16 = vld [vmem:[#allocation4 + $0x78] sm:$0xff]   ;;  %v93_v18 = vrot.slane %v11203_v15, 2  ;;  %v11204_v19 = vld [vmem:[#allocation4] sm:$0xff]  }
  0x2b   :  { %v11202_v17 = vld [vmem:[#allocation4 + $0x78] sm:$0xff]   ;;  %v1048_v20 = vld [vmem:[%s12883_s0 + $0x8] sm:$0x3]  ;;  %v11205_v21 = vld [vmem:[#allocation4] sm:$0xff]  }
  0x2c   :  { %9468 = vmatpush3.bf16.msra.mxu0 %v11189_v3  ;;  %9648 = vmatpush3.bf16.msra.mxu1 %v11190_v4  ;;  %v11206_v22 = vld [vmem:[#allocation4 + $0x8] sm:$0xff]   ;;  %v11208_v24 = vld [vmem:[#allocation4 + $0x10] sm:$0xff]   ;;  %v11210_v26 = vld [vmem:[#allocation4 + $0x18] sm:$0xff]  }
  0x2d   :  { %9469 = vmatprep.subr.bf16.mxu0 %v11863_v0  ;;  %9649 = vmatprep.subr.bf16.mxu1 %v11863_v0  ;;  %v11207_v23 = vld [vmem:[#allocation4 + $0x8] sm:$0xff]   ;;  %v11209_v25 = vld [vmem:[#allocation4 + $0x10] sm:$0xff]   ;;  %v11211_v27 = vld [vmem:[#allocation4 + $0x18] sm:$0xff]  }
  0x2e   :  { %v11212_v28 = vld [vmem:[#allocation4 + $0x20] sm:$0xff]   ;;  %v11214_v30 = vld [vmem:[#allocation4 + $0x28] sm:$0xff]   ;;  %v11216_v32 = vld [vmem:[#allocation4 + $0x30] sm:$0xff]  }
  0x2f   :  { %v11213_v29 = vld [vmem:[#allocation4 + $0x20] sm:$0xff]   ;;  %v11215_v31 = vld [vmem:[#allocation4 + $0x28] sm:$0xff]   ;;  %v11217_v33 = vld [vmem:[#allocation4 + $0x30] sm:$0xff]  }
  0x30   :  { %9470 = vmatpush3.bf16.msra.mxu0 %v11191_v5  ;;  %9650 = vmatpush3.bf16.msra.mxu1 %v11192_v6  ;;  %v11221_v34 = vld [vmem:[%s12883_s0 + $0x4] ss:$0 sps:$4 sm:$0xcc]   ;;  %v11218_v35 = vld [vmem:[#allocation4 + $0x38] sm:$0xff]   ;;  %v55_v37 = vld [vmem:[%s12883_s0] sm:$0x3] }
  0x31   :  { %9471 = vmatprep.subr.bf16.mxu0 %v11863_v0  ;;  %9651 = vmatprep.subr.bf16.mxu1 %v11863_v0  ;;  %v11219_v36 = vld [vmem:[#allocation4 + $0x38] sm:$0xff]   ;;  %v11220_v38 = vld [vmem:[#allocation4 + $0x80] sm:$0xff]   ;;  %v1156_v39 = vrot.slane %v11221_v34, 2  ;;  %v11223_v41 = vld [vmem:[#allocation4 + $0x88] sm:$0xff]  }
  0x32   :  { %v11222_v40 = vld [vmem:[#allocation4 + $0x80] sm:$0xff]   ;;  %v11224_v42 = vld [vmem:[#allocation4 + $0x88] sm:$0xff]   ;;  %v11225_v43 = vld [vmem:[#allocation4 + $0x90] sm:$0xff]  }
  0x33   :  { %v11226_v44 = vld [vmem:[#allocation4 + $0x90] sm:$0xff]   ;;  %v11227_v45 = vld [vmem:[#allocation4 + $0x98] sm:$0xff]   ;;  %v11229_v47 = vld [vmem:[#allocation4 + $0xa0] sm:$0xff]  }
  0x34   :  { %9472 = vmatpush3.bf16.msra.mxu0 %v11193_v7  ;;  %9652 = vmatpush3.bf16.msra.mxu1 %v11194_v8  ;;  %v11228_v46 = vld [vmem:[#allocation4 + $0x98] sm:$0xff]   ;;  %v11230_v48 = vld [vmem:[#allocation4 + $0xa0] sm:$0xff]   ;;  %v11231_v49 = vld [vmem:[#allocation4 + $0xa8] sm:$0xff]  }
  0x35   :  { %9473 = vmatprep.subr.bf16.mxu0 %v11863_v0  ;;  %9653 = vmatprep.subr.bf16.mxu1 %v11863_v0  ;;  %v11232_v50 = vld [vmem:[#allocation4 + $0xa8] sm:$0xff]   ;;  %v11233_v51 = vld [vmem:[#allocation4 + $0xb0] sm:$0xff]   ;;  %v11235_v54 = vld [vmem:[#allocation4 + $0xb8] sm:$0xff]  }
  0x36   :  { %v11234_v52 = vld [vmem:[#allocation4 + $0xb0] sm:$0xff]   ;;  %v11238_v53 = vld [vmem:[%s12883_s0 + $0x8] ss:$0 sps:$4 sm:$0xcc]   ;;  %v11236_v55 = vld [vmem:[#allocation4 + $0xb8] sm:$0xff]  }
  0x37   :  { %v271_v56 = vld [vmem:[%s12883_s0 + $0x4] sm:$0x3]  ;;  %v1266_v58 = vrot.slane %v11238_v53, 2  ;;  %v11240_v60 = vld [vmem:[#allocation4 + $0xc8] sm:$0xff]   ;;  %v11242_v62 = vld [vmem:[#allocation4 + $0xd0] sm:$0xff]  }
  0x38   :  { %9474 = vmatpush3.bf16.msra.mxu0 %v11195_v9  ;;  %9654 = vmatpush3.bf16.msra.mxu1 %v11196_v10  ;;  %v11237_v57 = vld [vmem:[#allocation4 + $0xc0] sm:$0xff]   ;;  %v11241_v61 = vld [vmem:[#allocation4 + $0xc8] sm:$0xff]   ;;  %v11243_v63 = vld [vmem:[#allocation4 + $0xd0] sm:$0xff]  }
  0x39   :  { %9475 = vmatprep.subr.bf16.mxu0 %v11863_v0  ;;  %9655 = vmatprep.subr.bf16.mxu1 %v11863_v0  ;;  %v11239_v59 = vld [vmem:[#allocation4 + $0xc0] sm:$0xff]   ;;  %v11244_v1 = vld [vmem:[#allocation4 + $0xd8] sm:$0xff]   ;;  %v11248_v5 = vld [vmem:[#allocation4 + $0xe8] sm:$0xff]  }
  0x3a   :  { %v11245_v2 = vld [vmem:[#allocation4 + $0xd8] sm:$0xff]   ;;  %v11246_v3 = vld [vmem:[#allocation4 + $0xe0] sm:$0xff]   ;;  %v11249_v6 = vld [vmem:[#allocation4 + $0xe8] sm:$0xff]  }
  0x3b   :  { %v11247_v4 = vld [vmem:[#allocation4 + $0xe0] sm:$0xff]   ;;  %v11250_v7 = vld [vmem:[#allocation4 + $0xf0] sm:$0xff]   ;;  %v11255_v9 = vld [vmem:[%s12883_s0 + $0x1c] ss:$0 sps:$4 sm:$0xcc]  }
  0x3c   :  { %9476 = vmatpush3.bf16.msra.mxu0 %v11197_v11  ;;  %9656 = vmatpush3.bf16.msra.mxu1 %v11198_v12  ;;  %v11251_v8 = vld [vmem:[#allocation4 + $0xf0] sm:$0xff]   ;;  %v11252_v10 = vld [vmem:[#allocation4 + $0xf8] sm:$0xff]   ;;  %v11256_v15 = vld [vmem:[#allocation4 + $0x100] sm:$0xff]  }
  0x3d   :  { %9477 = vmatprep.subr.bf16.mxu0 %v11863_v0  ;;  %9657 = vmatprep.subr.bf16.mxu1 %v11863_v0  ;;  %v11253_v11 = vld [vmem:[#allocation4 + $0xf8] sm:$0xff]   ;;  %v11273_v34 = vld [vmem:[#allocation4 + $0x140] sm:$0xff]  }
  0x3e   :  { %v378_v12 = vld [vmem:[%s12883_s0 + $0x18] sm:$0x3]  ;;  %v11290_v53 = vld [vmem:[#allocation4 + $0x180] sm:$0xff]  }
  0x40   :  { %9478 = vmatpush3.bf16.msra.mxu0 %v11199_v13  ;;  %9658 = vmatpush3.bf16.msra.mxu1 %v11200_v14  ;;  %v11254_v13 = vld [vmem:[#allocation4 + $0x100] sm:$0xff]   ;;  %v1377_v14 = vrot.slane %v11255_v9, 2 }
  0x41   :  { %9479 = vmatprep.subr.bf16.mxu0 %v11863_v0  ;;  %9659 = vmatprep.subr.bf16.mxu1 %v11863_v0  ;;  %v11307_v9 = vld [vmem:[#allocation4 + $0x1c0] sm:$0xff]  }
  0x44   :  { %9480 = vmatpush3.bf16.msra.mxu0 %v11201_v16  ;;  %9660 = vmatpush3.bf16.msra.mxu1 %v11202_v17  ;;  %v11257_v16 = vld [vmem:[#allocation4 + $0x108] sm:$0xff]  }
  0x45   :  { %9485 = vmatprep.subr.bf16.mxu0 %v11863_v0  ;;  %9665 = vmatprep.subr.bf16.mxu1 %v11863_v0  ;;  %v11258_v17 = vld [vmem:[#allocation4 + $0x108] sm:$0xff]  }
  0x47   :  { %9482 = vmatmul.mubr.bf16.vlgmr.msra.gmra.mrb[0].mxu0 %v93_v18  ;;  %9662 = vmatmul.mubr.bf16.vlgmr.msra.gmra.mrb[0].mxu1 %v1048_v20  ;;  %v11259_v18 = vld [vmem:[#allocation4 + $0x110] sm:$0xff]   ;;  %v11261_v20 = vld [vmem:[#allocation4 + $0x118] sm:$0xff]  }
  0x48   :  { %9486 = vmatpush3.bf16.msra.mxu0 %v11204_v19  ;;  %9666 = vmatpush3.bf16.msra.mxu1 %v11205_v21  ;;  %v11260_v19 = vld [vmem:[#allocation4 + $0x110] sm:$0xff]   ;;  %v11262_v21 = vld [vmem:[#allocation4 + $0x118] sm:$0xff]  }
  0x49   :  { %9487 = vmatprep.subr.bf16.mxu0 %v11863_v0  ;;  %9667 = vmatprep.subr.bf16.mxu1 %v11863_v0 }
  0x4a   :  { %9501 = vmatprep.mubr.msk.bf16.mxu0 %vm11864_vm0, %v11863_v0  ;;  %9681 = vmatprep.mubr.msk.bf16.mxu1 %vm11864_vm0, %v11863_v0 }
  0x4c   :  { %9488 = vmatpush3.bf16.msra.mxu0 %v11206_v22  ;;  %9668 = vmatpush3.bf16.msra.mxu1 %v11207_v23  ;;  %v11263_v22 = vld [vmem:[#allocation4 + $0x120] sm:$0xff]  }
  0x4d   :  { %9489 = vmatprep.subr.bf16.mxu0 %v11863_v0  ;;  %9669 = vmatprep.subr.bf16.mxu1 %v11863_v0  ;;  %v11264_v23 = vld [vmem:[#allocation4 + $0x120] sm:$0xff]  }
  0x50   :  { %9490 = vmatpush3.bf16.msra.mxu0 %v11208_v24  ;;  %9670 = vmatpush3.bf16.msra.mxu1 %v11209_v25  ;;  %v11265_v24 = vld [vmem:[#allocation4 + $0x128] sm:$0xff]  }
  0x51   :  { %9491 = vmatprep.subr.bf16.mxu0 %v11863_v0  ;;  %9671 = vmatprep.subr.bf16.mxu1 %v11863_v0  ;;  %v11266_v25 = vld [vmem:[#allocation4 + $0x128] sm:$0xff]  }
  0x54   :  { %9492 = vmatpush3.bf16.msra.mxu0 %v11210_v26  ;;  %9672 = vmatpush3.bf16.msra.mxu1 %v11211_v27  ;;  %v11267_v26 = vld [vmem:[#allocation4 + $0x130] sm:$0xff]  }
  0x55   :  { %9493 = vmatprep.subr.bf16.mxu0 %v11863_v0  ;;  %9673 = vmatprep.subr.bf16.mxu1 %v11863_v0  ;;  %v11268_v27 = vld [vmem:[#allocation4 + $0x130] sm:$0xff]  }
  0x58   :  { %9494 = vmatpush3.bf16.msra.mxu0 %v11212_v28  ;;  %9674 = vmatpush3.bf16.msra.mxu1 %v11213_v29  ;;  %v11271_v28 = vld [vmem:[%s12883_s0 + $0x18] ss:$0 sps:$4 sm:$0xcc]  }
  0x59   :  { %9495 = vmatprep.subr.bf16.mxu0 %v11863_v0  ;;  %9675 = vmatprep.subr.bf16.mxu1 %v11863_v0  ;;  %v11269_v29 = vld [vmem:[#allocation4 + $0x138] sm:$0xff]  }
  0x5c   :  { %9496 = vmatpush3.bf16.msra.mxu0 %v11214_v30  ;;  %9676 = vmatpush3.bf16.msra.mxu1 %v11215_v31  ;;  %v11270_v30 = vld [vmem:[#allocation4 + $0x138] sm:$0xff]   ;;  %v506_v31 = vrot.slane %v11271_v28, 2  ;;  %v11324_v28 = vld [vmem:[#allocation4 + $0x200] sm:$0xff]  }
  0x5d   :  { %9497 = vmatprep.subr.bf16.mxu0 %v11863_v0  ;;  %9677 = vmatprep.subr.bf16.mxu1 %v11863_v0 }
  0x60   :  { %9498 = vmatpush3.bf16.msra.mxu0 %v11216_v32  ;;  %9678 = vmatpush3.bf16.msra.mxu1 %v11217_v33  ;;  %v11272_v32 = vld [vmem:[#allocation4 + $0x140] sm:$0xff]  }
  0x61   :  { %9499 = vmatprep.subr.bf16.mxu0 %v11863_v0  ;;  %9679 = vmatprep.subr.bf16.mxu1 %v11863_v0  ;;  %v1468_v33 = vld [vmem:[%s12883_s0 + $0x20] sm:$0x3] }
  0x64   :  { %9500 = vmatpush3.bf16.msra.mxu0 %v11218_v35  ;;  %9680 = vmatpush3.bf16.msra.mxu1 %v11219_v36  ;;  %v11274_v35 = vld [vmem:[#allocation4 + $0x148] sm:$0xff]  }
  0x65   :  { %9505 = vmatprep.subr.bf16.mxu0 %v11863_v0  ;;  %9685 = vmatprep.subr.bf16.mxu1 %v11863_v0  ;;  %v11275_v36 = vld [vmem:[#allocation4 + $0x148] sm:$0xff]  }
  0x67   :  { %9502 = vmatmul.mubr.bf16.vlgmr.msra.gmra.mrb[0].mxu0 %v55_v37  ;;  %9682 = vmatmul.mubr.bf16.vlgmr.msra.gmra.mrb[0].mxu1 %v1156_v39  ;;  %v11276_v37 = vld [vmem:[#allocation4 + $0x150] sm:$0xff]   ;;  %v11278_v39 = vld [vmem:[#allocation4 + $0x158] sm:$0xff]  }
  0x68   :  { %9506 = vmatpush3.bf16.msra.mxu0 %v11220_v38  ;;  %9686 = vmatpush3.bf16.msra.mxu1 %v11222_v40  ;;  %v11277_v38 = vld [vmem:[#allocation4 + $0x150] sm:$0xff]   ;;  %v11279_v40 = vld [vmem:[#allocation4 + $0x158] sm:$0xff]  }
  0x69   :  { %9507 = vmatprep.subr.bf16.mxu0 %v11863_v0  ;;  %9687 = vmatprep.subr.bf16.mxu1 %v11863_v0 }
  0x6a   :  { %9521 = vmatprep.mubr.msk.bf16.mxu0 %vm11864_vm0, %v11863_v0  ;;  %9701 = vmatprep.mubr.msk.bf16.mxu1 %vm11864_vm0, %v11863_v0 }
  0x6c   :  { %9508 = vmatpush3.bf16.msra.mxu0 %v11223_v41  ;;  %9688 = vmatpush3.bf16.msra.mxu1 %v11224_v42  ;;  %v11280_v41 = vld [vmem:[#allocation4 + $0x160] sm:$0xff]  }
  0x6d   :  { %9509 = vmatprep.subr.bf16.mxu0 %v11863_v0  ;;  %9689 = vmatprep.subr.bf16.mxu1 %v11863_v0  ;;  %v11281_v42 = vld [vmem:[#allocation4 + $0x160] sm:$0xff]  }
  0x70   :  { %9510 = vmatpush3.bf16.msra.mxu0 %v11225_v43  ;;  %9690 = vmatpush3.bf16.msra.mxu1 %v11226_v44  ;;  %v11282_v43 = vld [vmem:[#allocation4 + $0x168] sm:$0xff]  }
  0x71   :  { %9511 = vmatprep.subr.bf16.mxu0 %v11863_v0  ;;  %9691 = vmatprep.subr.bf16.mxu1 %v11863_v0  ;;  %v11283_v44 = vld [vmem:[#allocation4 + $0x168] sm:$0xff]  }
  0x74   :  { %9512 = vmatpush3.bf16.msra.mxu0 %v11227_v45  ;;  %9692 = vmatpush3.bf16.msra.mxu1 %v11228_v46  ;;  %v11284_v45 = vld [vmem:[#allocation4 + $0x170] sm:$0xff]  }
  0x75   :  { %9513 = vmatprep.subr.bf16.mxu0 %v11863_v0  ;;  %9693 = vmatprep.subr.bf16.mxu1 %v11863_v0  ;;  %v11285_v46 = vld [vmem:[#allocation4 + $0x170] sm:$0xff]  }
  0x78   :  { %9514 = vmatpush3.bf16.msra.mxu0 %v11229_v47  ;;  %9694 = vmatpush3.bf16.msra.mxu1 %v11230_v48  ;;  %v11289_v47 = vld [vmem:[%s12883_s0 + $0x20] ss:$0 sps:$4 sm:$0xcc]   ;;  %v11286_v48 = vld [vmem:[#allocation4 + $0x178] sm:$0xff]  }
  0x79   :  { %9515 = vmatprep.subr.bf16.mxu0 %v11863_v0  ;;  %9695 = vmatprep.subr.bf16.mxu1 %v11863_v0 }
  0x7c   :  { %9516 = vmatpush3.bf16.msra.mxu0 %v11231_v49  ;;  %9696 = vmatpush3.bf16.msra.mxu1 %v11232_v50  ;;  %v11287_v49 = vld [vmem:[#allocation4 + $0x178] sm:$0xff]  }
  0x7d   :  { %9517 = vmatprep.subr.bf16.mxu0 %v11863_v0  ;;  %9697 = vmatprep.subr.bf16.mxu1 %v11863_v0  ;;  %v597_v50 = vld [vmem:[%s12883_s0 + $0x1c] sm:$0x3] }
  0x80   :  { %9518 = vmatpush3.bf16.msra.mxu0 %v11233_v51  ;;  %9698 = vmatpush3.bf16.msra.mxu1 %v11234_v52  ;;  %v11288_v51 = vld [vmem:[#allocation4 + $0x180] sm:$0xff]   ;;  %v1594_v52 = vrot.slane %v11289_v47, 2 }
  0x81   :  { %9519 = vmatprep.subr.bf16.mxu0 %v11863_v0  ;;  %9699 = vmatprep.subr.bf16.mxu1 %v11863_v0  ;;  %v11341_v47 = vld [vmem:[#allocation4 + $0x40] sm:$0xff]  }
  0x84   :  { %9520 = vmatpush3.bf16.msra.mxu0 %v11235_v54  ;;  %9700 = vmatpush3.bf16.msra.mxu1 %v11236_v55  ;;  %v11291_v54 = vld [vmem:[#allocation4 + $0x188] sm:$0xff]  }
  0x85   :  { %9525 = vmatprep.subr.bf16.mxu0 %v11863_v0  ;;  %9705 = vmatprep.subr.bf16.mxu1 %v11863_v0  ;;  %v11292_v55 = vld [vmem:[#allocation4 + $0x188] sm:$0xff]  }
  0x87   :  { %9522 = vmatmul.mubr.bf16.vlgmr.msra.gmra.mrb[0].mxu0 %v271_v56  ;;  %9702 = vmatmul.mubr.bf16.vlgmr.msra.gmra.mrb[0].mxu1 %v1266_v58  ;;  %v11293_v56 = vld [vmem:[#allocation4 + $0x190] sm:$0xff]   ;;  %v11295_v58 = vld [vmem:[#allocation4 + $0x198] sm:$0xff]  }
  0x88   :  { %9526 = vmatpush3.bf16.msra.mxu0 %v11237_v57  ;;  %9706 = vmatpush3.bf16.msra.mxu1 %v11239_v59  ;;  %v11294_v57 = vld [vmem:[#allocation4 + $0x190] sm:$0xff]   ;;  %v11296_v59 = vld [vmem:[#allocation4 + $0x198] sm:$0xff]  }
  0x89   :  { %9527 = vmatprep.subr.bf16.mxu0 %v11863_v0  ;;  %9707 = vmatprep.subr.bf16.mxu1 %v11863_v0 }
  0x8a   :  { %9541 = vmatprep.mubr.msk.bf16.mxu0 %vm11864_vm0, %v11863_v0  ;;  %9721 = vmatprep.mubr.msk.bf16.mxu1 %vm11864_vm0, %v11863_v0 }
  0x8c   :  { %9528 = vmatpush3.bf16.msra.mxu0 %v11240_v60  ;;  %9708 = vmatpush3.bf16.msra.mxu1 %v11241_v61  ;;  %v11297_v60 = vld [vmem:[#allocation4 + $0x1a0] sm:$0xff]  }
  0x8d   :  { %9529 = vmatprep.subr.bf16.mxu0 %v11863_v0  ;;  %9709 = vmatprep.subr.bf16.mxu1 %v11863_v0  ;;  %v11298_v61 = vld [vmem:[#allocation4 + $0x1a0] sm:$0xff]  }
  0x90   :  { %9530 = vmatpush3.bf16.msra.mxu0 %v11242_v62  ;;  %9710 = vmatpush3.bf16.msra.mxu1 %v11243_v63  ;;  %v11299_v62 = vld [vmem:[#allocation4 + $0x1a8] sm:$0xff]  }
  0x91   :  { %9531 = vmatprep.subr.bf16.mxu0 %v11863_v0  ;;  %9711 = vmatprep.subr.bf16.mxu1 %v11863_v0  ;;  %v11300_v63 = vld [vmem:[#allocation4 + $0x1a8] sm:$0xff]  }
  0x94   :  { %9532 = vmatpush3.bf16.msra.mxu0 %v11244_v1  ;;  %9712 = vmatpush3.bf16.msra.mxu1 %v11245_v2  ;;  %v11301_v1 = vld [vmem:[#allocation4 + $0x1b0] sm:$0xff]  }
  0x95   :  { %9533 = vmatprep.subr.bf16.mxu0 %v11863_v0  ;;  %9713 = vmatprep.subr.bf16.mxu1 %v11863_v0  ;;  %v11302_v2 = vld [vmem:[#allocation4 + $0x1b0] sm:$0xff]  }
  0x98   :  { %9534 = vmatpush3.bf16.msra.mxu0 %v11246_v3  ;;  %9714 = vmatpush3.bf16.msra.mxu1 %v11247_v4  ;;  %v11306_v3 = vld [vmem:[%s12883_s0 + $0x34] ss:$0 sps:$4 sm:$0xcc]   ;;  %v11303_v4 = vld [vmem:[#allocation4 + $0x1b8] sm:$0xff]  }
  0x99   :  { %9535 = vmatprep.subr.bf16.mxu0 %v11863_v0  ;;  %9715 = vmatprep.subr.bf16.mxu1 %v11863_v0 }
  0x9c   :  { %9536 = vmatpush3.bf16.msra.mxu0 %v11248_v5  ;;  %9716 = vmatpush3.bf16.msra.mxu1 %v11249_v6  ;;  %v11304_v5 = vld [vmem:[#allocation4 + $0x1b8] sm:$0xff]   ;;  %v704_v6 = vld [vmem:[%s12883_s0 + $0x30] sm:$0x3] }
  0x9d   :  { %9537 = vmatprep.subr.bf16.mxu0 %v11863_v0  ;;  %9717 = vmatprep.subr.bf16.mxu1 %v11863_v0 }
  0xa0   :  { %9538 = vmatpush3.bf16.msra.mxu0 %v11250_v7  ;;  %9718 = vmatpush3.bf16.msra.mxu1 %v11251_v8  ;;  %v11305_v7 = vld [vmem:[#allocation4 + $0x1c0] sm:$0xff]   ;;  %v1705_v8 = vrot.slane %v11306_v3, 2 }
  0xa1   :  { %9539 = vmatprep.subr.bf16.mxu0 %v11863_v0  ;;  %9719 = vmatprep.subr.bf16.mxu1 %v11863_v0  ;;  %v11358_v3 = vld [vmem:[#allocation4] sm:$0xff]  }
  0xa4   :  { %9540 = vmatpush3.bf16.msra.mxu0 %v11252_v10  ;;  %9720 = vmatpush3.bf16.msra.mxu1 %v11253_v11  ;;  %v11308_v10 = vld [vmem:[#allocation4 + $0x1c8] sm:$0xff]  }
  0xa5   :  { %9545 = vmatprep.subr.bf16.mxu0 %v11863_v0  ;;  %9725 = vmatprep.subr.bf16.mxu1 %v11863_v0  ;;  %v11309_v11 = vld [vmem:[#allocation4 + $0x1c8] sm:$0xff]  }
  0xa7   :  { %9542 = vmatmul.mubr.bf16.vlgmr.msra.gmra.mrb[0].mxu0 %v378_v12  ;;  %9722 = vmatmul.mubr.bf16.vlgmr.msra.gmra.mrb[0].mxu1 %v1377_v14  ;;  %v11310_v12 = vld [vmem:[#allocation4 + $0x1d0] sm:$0xff]   ;;  %v11312_v14 = vld [vmem:[#allocation4 + $0x1d8] sm:$0xff]  }
  0xa8   :  { %9546 = vmatpush3.bf16.msra.mxu0 %v11254_v13  ;;  %9726 = vmatpush3.bf16.msra.mxu1 %v11256_v15  ;;  %v11311_v13 = vld [vmem:[#allocation4 + $0x1d0] sm:$0xff]   ;;  %v11313_v15 = vld [vmem:[#allocation4 + $0x1d8] sm:$0xff]  }
  0xa9   :  { %9547 = vmatprep.subr.bf16.mxu0 %v11863_v0  ;;  %9727 = vmatprep.subr.bf16.mxu1 %v11863_v0 }
  0xaa   :  { %9561 = vmatprep.mubr.msk.bf16.mxu0 %vm11864_vm0, %v11863_v0  ;;  %9741 = vmatprep.mubr.msk.bf16.mxu1 %vm11864_vm0, %v11863_v0 }
  0xac   :  { %9548 = vmatpush3.bf16.msra.mxu0 %v11257_v16  ;;  %9728 = vmatpush3.bf16.msra.mxu1 %v11258_v17  ;;  %v11314_v16 = vld [vmem:[#allocation4 + $0x1e0] sm:$0xff]  }
  0xad   :  { %9549 = vmatprep.subr.bf16.mxu0 %v11863_v0  ;;  %9729 = vmatprep.subr.bf16.mxu1 %v11863_v0  ;;  %v11315_v17 = vld [vmem:[#allocation4 + $0x1e0] sm:$0xff]  }
  0xb0   :  { %9550 = vmatpush3.bf16.msra.mxu0 %v11259_v18  ;;  %9730 = vmatpush3.bf16.msra.mxu1 %v11260_v19  ;;  %v11316_v18 = vld [vmem:[#allocation4 + $0x1e8] sm:$0xff]  }
  0xb1   :  { %9551 = vmatprep.subr.bf16.mxu0 %v11863_v0  ;;  %9731 = vmatprep.subr.bf16.mxu1 %v11863_v0  ;;  %v11317_v19 = vld [vmem:[#allocation4 + $0x1e8] sm:$0xff]  }
  0xb4   :  { %9552 = vmatpush3.bf16.msra.mxu0 %v11261_v20  ;;  %9732 = vmatpush3.bf16.msra.mxu1 %v11262_v21  ;;  %v11318_v20 = vld [vmem:[#allocation4 + $0x1f0] sm:$0xff]  }
  0xb5   :  { %9553 = vmatprep.subr.bf16.mxu0 %v11863_v0  ;;  %9733 = vmatprep.subr.bf16.mxu1 %v11863_v0  ;;  %v11319_v21 = vld [vmem:[#allocation4 + $0x1f0] sm:$0xff]  }
  0xb8   :  { %9554 = vmatpush3.bf16.msra.mxu0 %v11263_v22  ;;  %9734 = vmatpush3.bf16.msra.mxu1 %v11264_v23  ;;  %v11322_v22 = vld [vmem:[%s12883_s0 + $0x30] ss:$0 sps:$4 sm:$0xcc]   ;;  %v11320_v23 = vld [vmem:[#allocation4 + $0x1f8] sm:$0xff]  }
  0xb9   :  { %9555 = vmatprep.subr.bf16.mxu0 %v11863_v0  ;;  %9735 = vmatprep.subr.bf16.mxu1 %v11863_v0 }
  0xbc   :  { %9556 = vmatpush3.bf16.msra.mxu0 %v11265_v24  ;;  %9736 = vmatpush3.bf16.msra.mxu1 %v11266_v25  ;;  %v11321_v24 = vld [vmem:[#allocation4 + $0x1f8] sm:$0xff]   ;;  %v832_v25 = vrot.slane %v11322_v22, 2  ;;  %v11375_v22 = vld [vmem:[#allocation4 + $0x80] sm:$0xff]  }
  0xbd   :  { %9557 = vmatprep.subr.bf16.mxu0 %v11863_v0  ;;  %9737 = vmatprep.subr.bf16.mxu1 %v11863_v0 }
  0xc0   :  { %9558 = vmatpush3.bf16.msra.mxu0 %v11267_v26  ;;  %9738 = vmatpush3.bf16.msra.mxu1 %v11268_v27  ;;  %v11323_v26 = vld [vmem:[#allocation4 + $0x200] sm:$0xff]   ;;  %v1796_v27 = vld [vmem:[%s12883_s0 + $0x38] sm:$0x3] }
  0xc1   :  { %9559 = vmatprep.subr.bf16.mxu0 %v11863_v0  ;;  %9739 = vmatprep.subr.bf16.mxu1 %v11863_v0 }
  0xc4   :  { %9560 = vmatpush3.bf16.msra.mxu0 %v11269_v29  ;;  %9740 = vmatpush3.bf16.msra.mxu1 %v11270_v30  ;;  %v11325_v29 = vld [vmem:[#allocation4 + $0x208] sm:$0xff]  }
  0xc5   :  { %9565 = vmatprep.subr.bf16.mxu0 %v11863_v0  ;;  %9745 = vmatprep.subr.bf16.mxu1 %v11863_v0  ;;  %v11326_v30 = vld [vmem:[#allocation4 + $0x208] sm:$0xff]  }
  0xc7   :  { %9562 = vmatmul.mubr.bf16.vlgmr.msra.gmra.mrb[0].mxu0 %v506_v31  ;;  %9742 = vmatmul.mubr.bf16.vlgmr.msra.gmra.mrb[0].mxu1 %v1468_v33  ;;  %v11327_v31 = vld [vmem:[#allocation4 + $0x210] sm:$0xff]   ;;  %v11329_v33 = vld [vmem:[#allocation4 + $0x218] sm:$0xff]  }
  0xc8   :  { %9566 = vmatpush3.bf16.msra.mxu0 %v11272_v32  ;;  %9746 = vmatpush3.bf16.msra.mxu1 %v11273_v34  ;;  %v11328_v32 = vld [vmem:[#allocation4 + $0x210] sm:$0xff]   ;;  %v11330_v34 = vld [vmem:[#allocation4 + $0x218] sm:$0xff]  }
  0xc9   :  { %9567 = vmatprep.subr.bf16.mxu0 %v11863_v0  ;;  %9747 = vmatprep.subr.bf16.mxu1 %v11863_v0 }
  0xca   :  { %9581 = vmatprep.mubr.msk.bf16.mxu0 %vm11864_vm0, %v11863_v0  ;;  %9761 = vmatprep.mubr.msk.bf16.mxu1 %vm11864_vm0, %v11863_v0 }
  0xcc   :  { %9568 = vmatpush3.bf16.msra.mxu0 %v11274_v35  ;;  %9748 = vmatpush3.bf16.msra.mxu1 %v11275_v36  ;;  %v11331_v35 = vld [vmem:[#allocation4 + $0x220] sm:$0xff]  }
  0xcd   :  { %9569 = vmatprep.subr.bf16.mxu0 %v11863_v0  ;;  %9749 = vmatprep.subr.bf16.mxu1 %v11863_v0  ;;  %v11332_v36 = vld [vmem:[#allocation4 + $0x220] sm:$0xff]  }
  0xd0   :  { %9570 = vmatpush3.bf16.msra.mxu0 %v11276_v37  ;;  %9750 = vmatpush3.bf16.msra.mxu1 %v11277_v38  ;;  %v11333_v37 = vld [vmem:[#allocation4 + $0x228] sm:$0xff]  }
  0xd1   :  { %9571 = vmatprep.subr.bf16.mxu0 %v11863_v0  ;;  %9751 = vmatprep.subr.bf16.mxu1 %v11863_v0  ;;  %v11334_v38 = vld [vmem:[#allocation4 + $0x228] sm:$0xff]  }
  0xd4   :  { %9572 = vmatpush3.bf16.msra.mxu0 %v11278_v39  ;;  %9752 = vmatpush3.bf16.msra.mxu1 %v11279_v40  ;;  %v11335_v39 = vld [vmem:[#allocation4 + $0x230] sm:$0xff]  }
  0xd5   :  { %9573 = vmatprep.subr.bf16.mxu0 %v11863_v0  ;;  %9753 = vmatprep.subr.bf16.mxu1 %v11863_v0  ;;  %v11336_v40 = vld [vmem:[#allocation4 + $0x230] sm:$0xff]  }
  0xd8   :  { %9574 = vmatpush3.bf16.msra.mxu0 %v11280_v41  ;;  %9754 = vmatpush3.bf16.msra.mxu1 %v11281_v42  ;;  %v11339_v41 = vld [vmem:[%s12883_s0 + $0x38] ss:$0 sps:$4 sm:$0xcc]  }
  0xd9   :  { %9575 = vmatprep.subr.bf16.mxu0 %v11863_v0  ;;  %9755 = vmatprep.subr.bf16.mxu1 %v11863_v0  ;;  %v11337_v42 = vld [vmem:[#allocation4 + $0x238] sm:$0xff]  }
  0xdc   :  { %9576 = vmatpush3.bf16.msra.mxu0 %v11282_v43  ;;  %9756 = vmatpush3.bf16.msra.mxu1 %v11283_v44  ;;  %v11338_v43 = vld [vmem:[#allocation4 + $0x238] sm:$0xff]   ;;  %v923_v44 = vld [vmem:[%s12883_s0 + $0x34] sm:$0x3] }
  0xdd   :  { %9577 = vmatprep.subr.bf16.mxu0 %v11863_v0  ;;  %9757 = vmatprep.subr.bf16.mxu1 %v11863_v0 }
  0xe0   :  { %9578 = vmatpush3.bf16.msra.mxu0 %v11284_v45  ;;  %9758 = vmatpush3.bf16.msra.mxu1 %v11285_v46  ;;  %v1922_v45 = vrot.slane %v11339_v41, 2  ;;  %v11340_v46 = vld [vmem:[#allocation4 + $0x40] sm:$0xff]  }
  0xe1   :  { %9579 = vmatprep.subr.bf16.mxu0 %v11863_v0  ;;  %9759 = vmatprep.subr.bf16.mxu1 %v11863_v0  ;;  %v11392_v41 = vld [vmem:[#allocation4 + $0xc0] sm:$0xff]  }
  0xe4   :  { %9580 = vmatpush3.bf16.msra.mxu0 %v11286_v48  ;;  %9760 = vmatpush3.bf16.msra.mxu1 %v11287_v49  ;;  %v11342_v48 = vld [vmem:[#allocation4 + $0x48] sm:$0xff]  }
  0xe5   :  { %9585 = vmatprep.subr.bf16.mxu0 %v11863_v0  ;;  %9765 = vmatprep.subr.bf16.mxu1 %v11863_v0  ;;  %v11343_v49 = vld [vmem:[#allocation4 + $0x48] sm:$0xff]  }
  0xe7   :  { %9582 = vmatmul.mubr.bf16.vlgmr.msra.gmra.mrb[0].mxu0 %v597_v50  ;;  %9762 = vmatmul.mubr.bf16.vlgmr.msra.gmra.mrb[0].mxu1 %v1594_v52  ;;  %v11344_v50 = vld [vmem:[#allocation4 + $0x50] sm:$0xff]   ;;  %v11346_v52 = vld [vmem:[#allocation4 + $0x58] sm:$0xff]  }
  0xe8   :  { %9586 = vmatpush3.bf16.msra.mxu0 %v11288_v51  ;;  %9766 = vmatpush3.bf16.msra.mxu1 %v11290_v53  ;;  %v11345_v51 = vld [vmem:[#allocation4 + $0x50] sm:$0xff]   ;;  %v11347_v53 = vld [vmem:[#allocation4 + $0x58] sm:$0xff]  }
  0xe9   :  { %9587 = vmatprep.subr.bf16.mxu0 %v11863_v0  ;;  %9767 = vmatprep.subr.bf16.mxu1 %v11863_v0 }
  0xea   :  { %9601 = vmatprep.mubr.msk.bf16.mxu0 %vm11864_vm0, %v11863_v0  ;;  %9781 = vmatprep.mubr.msk.bf16.mxu1 %vm11864_vm0, %v11863_v0 }
  0xec   :  { %9588 = vmatpush3.bf16.msra.mxu0 %v11291_v54  ;;  %9768 = vmatpush3.bf16.msra.mxu1 %v11292_v55  ;;  %v11348_v54 = vld [vmem:[#allocation4 + $0x60] sm:$0xff]  }
  0xed   :  { %9589 = vmatprep.subr.bf16.mxu0 %v11863_v0  ;;  %9769 = vmatprep.subr.bf16.mxu1 %v11863_v0  ;;  %v11349_v55 = vld [vmem:[#allocation4 + $0x60] sm:$0xff]  }
  0xf0   :  { %9590 = vmatpush3.bf16.msra.mxu0 %v11293_v56  ;;  %9770 = vmatpush3.bf16.msra.mxu1 %v11294_v57  ;;  %v11350_v56 = vld [vmem:[#allocation4 + $0x68] sm:$0xff]  }
  0xf1   :  { %9591 = vmatprep.subr.bf16.mxu0 %v11863_v0  ;;  %9771 = vmatprep.subr.bf16.mxu1 %v11863_v0  ;;  %v11351_v57 = vld [vmem:[#allocation4 + $0x68] sm:$0xff]  }
  0xf4   :  { %9592 = vmatpush3.bf16.msra.mxu0 %v11295_v58  ;;  %9772 = vmatpush3.bf16.msra.mxu1 %v11296_v59  ;;  %v11352_v58 = vld [vmem:[#allocation4 + $0x70] sm:$0xff]  }
  0xf5   :  { %9593 = vmatprep.subr.bf16.mxu0 %v11863_v0  ;;  %9773 = vmatprep.subr.bf16.mxu1 %v11863_v0  ;;  %v11353_v59 = vld [vmem:[#allocation4 + $0x70] sm:$0xff]  }
  0xf8   :  { %9594 = vmatpush3.bf16.msra.mxu0 %v11297_v60  ;;  %9774 = vmatpush3.bf16.msra.mxu1 %v11298_v61  ;;  %v11356_v60 = vld [vmem:[%s12883_s0 + $0xc] ss:$0 sps:$4 sm:$0xcc]   ;;  %v11354_v61 = vld [vmem:[#allocation4 + $0x78] sm:$0xff]  }
  0xf9   :  { %9595 = vmatprep.subr.bf16.mxu0 %v11863_v0  ;;  %9775 = vmatprep.subr.bf16.mxu1 %v11863_v0 }
  0xfc   :  { %9596 = vmatpush3.bf16.msra.mxu0 %v11299_v62  ;;  %9776 = vmatpush3.bf16.msra.mxu1 %v11300_v63  ;;  %v11355_v62 = vld [vmem:[#allocation4 + $0x78] sm:$0xff]   ;;  %v2051_v63 = vrot.slane %v11356_v60, 2  ;;  %v11409_v60 = vld [vmem:[#allocation4 + $0x100] sm:$0xff]  }
  0xfd   :  { %9597 = vmatprep.subr.bf16.mxu0 %v11863_v0  ;;  %9777 = vmatprep.subr.bf16.mxu1 %v11863_v0 }
 0x100   :  { %9598 = vmatpush3.bf16.msra.mxu0 %v11301_v1  ;;  %9778 = vmatpush3.bf16.msra.mxu1 %v11302_v2  ;;  %v11357_v1 = vld [vmem:[#allocation4] sm:$0xff]   ;;  %v2999_v2 = vld [vmem:[%s12883_s0 + $0x14] sm:$0x3] }
 0x101   :  { %9599 = vmatprep.subr.bf16.mxu0 %v11863_v0  ;;  %9779 = vmatprep.subr.bf16.mxu1 %v11863_v0 }
 0x104   :  { %9600 = vmatpush3.bf16.msra.mxu0 %v11303_v4  ;;  %9780 = vmatpush3.bf16.msra.mxu1 %v11304_v5  ;;  %v11359_v4 = vld [vmem:[#allocation4 + $0x8] sm:$0xff]  }
 0x105   :  { %9605 = vmatprep.subr.bf16.mxu0 %v11863_v0  ;;  %9785 = vmatprep.subr.bf16.mxu1 %v11863_v0  ;;  %v11360_v5 = vld [vmem:[#allocation4 + $0x8] sm:$0xff]  }
 0x107   :  { %9602 = vmatmul.mubr.bf16.vlgmr.msra.gmra.mrb[0].mxu0 %v704_v6  ;;  %9782 = vmatmul.mubr.bf16.vlgmr.msra.gmra.mrb[0].mxu1 %v1705_v8  ;;  %v11361_v6 = vld [vmem:[#allocation4 + $0x10] sm:$0xff]   ;;  %v11363_v8 = vld [vmem:[#allocation4 + $0x18] sm:$0xff]  }
 0x108   :  { %9606 = vmatpush3.bf16.msra.mxu0 %v11305_v7  ;;  %9786 = vmatpush3.bf16.msra.mxu1 %v11307_v9  ;;  %v11362_v7 = vld [vmem:[#allocation4 + $0x10] sm:$0xff]   ;;  %v11364_v9 = vld [vmem:[#allocation4 + $0x18] sm:$0xff]  }
 0x109   :  { %9607 = vmatprep.subr.bf16.mxu0 %v11863_v0  ;;  %9787 = vmatprep.subr.bf16.mxu1 %v11863_v0 }
 0x10a   :  { %9621 = vmatprep.mubr.msk.bf16.mxu0 %vm11864_vm0, %v11863_v0  ;;  %9801 = vmatprep.mubr.msk.bf16.mxu1 %vm11864_vm0, %v11863_v0 }
 0x10c   :  { %9608 = vmatpush3.bf16.msra.mxu0 %v11308_v10  ;;  %9788 = vmatpush3.bf16.msra.mxu1 %v11309_v11  ;;  %v11365_v10 = vld [vmem:[#allocation4 + $0x20] sm:$0xff]  }
 0x10d   :  { %9609 = vmatprep.subr.bf16.mxu0 %v11863_v0  ;;  %9789 = vmatprep.subr.bf16.mxu1 %v11863_v0  ;;  %v11366_v11 = vld [vmem:[#allocation4 + $0x20] sm:$0xff]  }
 0x110   :  { %9610 = vmatpush3.bf16.msra.mxu0 %v11310_v12  ;;  %9790 = vmatpush3.bf16.msra.mxu1 %v11311_v13  ;;  %v11367_v12 = vld [vmem:[#allocation4 + $0x28] sm:$0xff]  }
 0x111   :  { %9611 = vmatprep.subr.bf16.mxu0 %v11863_v0  ;;  %9791 = vmatprep.subr.bf16.mxu1 %v11863_v0  ;;  %v11368_v13 = vld [vmem:[#allocation4 + $0x28] sm:$0xff]  }
 0x114   :  { %9612 = vmatpush3.bf16.msra.mxu0 %v11312_v14  ;;  %9792 = vmatpush3.bf16.msra.mxu1 %v11313_v15  ;;  %v11369_v14 = vld [vmem:[#allocation4 + $0x30] sm:$0xff]  }
 0x115   :  { %9613 = vmatprep.subr.bf16.mxu0 %v11863_v0  ;;  %9793 = vmatprep.subr.bf16.mxu1 %v11863_v0  ;;  %v11370_v15 = vld [vmem:[#allocation4 + $0x30] sm:$0xff]  }
 0x118   :  { %9614 = vmatpush3.bf16.msra.mxu0 %v11314_v16  ;;  %9794 = vmatpush3.bf16.msra.mxu1 %v11315_v17  ;;  %v11374_v16 = vld [vmem:[%s12883_s0 + $0x10] ss:$0 sps:$4 sm:$0xcc]   ;;  %v11371_v17 = vld [vmem:[#allocation4 + $0x38] sm:$0xff]  }
 0x119   :  { %9615 = vmatprep.subr.bf16.mxu0 %v11863_v0  ;;  %9795 = vmatprep.subr.bf16.mxu1 %v11863_v0 }
 0x11c   :  { %9616 = vmatpush3.bf16.msra.mxu0 %v11316_v18  ;;  %9796 = vmatpush3.bf16.msra.mxu1 %v11317_v19  ;;  %v11372_v18 = vld [vmem:[#allocation4 + $0x38] sm:$0xff]   ;;  %v2014_v19 = vld [vmem:[%s12883_s0 + $0xc] sm:$0x3] }
 0x11d   :  { %9617 = vmatprep.subr.bf16.mxu0 %v11863_v0  ;;  %9797 = vmatprep.subr.bf16.mxu1 %v11863_v0 }
 0x120   :  { %9618 = vmatpush3.bf16.msra.mxu0 %v11318_v20  ;;  %9798 = vmatpush3.bf16.msra.mxu1 %v11319_v21  ;;  %v11373_v20 = vld [vmem:[#allocation4 + $0x80] sm:$0xff]   ;;  %v3107_v21 = vrot.slane %v11374_v16, 2  ;;  %v3419_v16 = vld [vmem:[%s12883_s0 + $0x2c] sm:$0x3] }
 0x121   :  { %9619 = vmatprep.subr.bf16.mxu0 %v11863_v0  ;;  %9799 = vmatprep.subr.bf16.mxu1 %v11863_v0 }
 0x124   :  { %9620 = vmatpush3.bf16.msra.mxu0 %v11320_v23  ;;  %9800 = vmatpush3.bf16.msra.mxu1 %v11321_v24  ;;  %v11376_v23 = vld [vmem:[#allocation4 + $0x88] sm:$0xff]  }
 0x125   :  { %9625 = vmatprep.subr.bf16.mxu0 %v11863_v0  ;;  %9805 = vmatprep.subr.bf16.mxu1 %v11863_v0  ;;  %v11377_v24 = vld [vmem:[#allocation4 + $0x88] sm:$0xff]  }
 0x127   :  { %9622 = vmatmul.mubr.bf16.vlgmr.msra.gmra.mrb[0].mxu0 %v832_v25  ;;  %9802 = vmatmul.mubr.bf16.vlgmr.msra.gmra.mrb[0].mxu1 %v1796_v27  ;;  %v11378_v25 = vld [vmem:[#allocation4 + $0x90] sm:$0xff]   ;;  %v11380_v27 = vld [vmem:[#allocation4 + $0x98] sm:$0xff]  }
 0x128   :  { %9626 = vmatpush3.bf16.msra.mxu0 %v11323_v26  ;;  %9806 = vmatpush3.bf16.msra.mxu1 %v11324_v28  ;;  %v11379_v26 = vld [vmem:[#allocation4 + $0x90] sm:$0xff]   ;;  %v11381_v28 = vld [vmem:[#allocation4 + $0x98] sm:$0xff]  }
 0x129   :  { %9627 = vmatprep.subr.bf16.mxu0 %v11863_v0  ;;  %9807 = vmatprep.subr.bf16.mxu1 %v11863_v0 }
 0x12a   :  { %9641 = vmatprep.mubr.msk.bf16.mxu0 %vm11864_vm0, %v11863_v0  ;;  %9821 = vmatprep.mubr.msk.bf16.mxu1 %vm11864_vm0, %v11863_v0 }
 0x12c   :  { %9628 = vmatpush3.bf16.msra.mxu0 %v11325_v29  ;;  %9808 = vmatpush3.bf16.msra.mxu1 %v11326_v30  ;;  %v11382_v29 = vld [vmem:[#allocation4 + $0xa0] sm:$0xff]  }
 0x12d   :  { %9629 = vmatprep.subr.bf16.mxu0 %v11863_v0  ;;  %9809 = vmatprep.subr.bf16.mxu1 %v11863_v0  ;;  %v11383_v30 = vld [vmem:[#allocation4 + $0xa0] sm:$0xff]  }
 0x130   :  { %9630 = vmatpush3.bf16.msra.mxu0 %v11327_v31  ;;  %9810 = vmatpush3.bf16.msra.mxu1 %v11328_v32  ;;  %v11384_v31 = vld [vmem:[#allocation4 + $0xa8] sm:$0xff]  }
 0x131   :  { %9631 = vmatprep.subr.bf16.mxu0 %v11863_v0  ;;  %9811 = vmatprep.subr.bf16.mxu1 %v11863_v0  ;;  %v11385_v32 = vld [vmem:[#allocation4 + $0xa8] sm:$0xff]  }
 0x134   :  { %9632 = vmatpush3.bf16.msra.mxu0 %v11329_v33  ;;  %9812 = vmatpush3.bf16.msra.mxu1 %v11330_v34  ;;  %v11386_v33 = vld [vmem:[#allocation4 + $0xb0] sm:$0xff]  }
 0x135   :  { %9633 = vmatprep.subr.bf16.mxu0 %v11863_v0  ;;  %9813 = vmatprep.subr.bf16.mxu1 %v11863_v0  ;;  %v11387_v34 = vld [vmem:[#allocation4 + $0xb0] sm:$0xff]  }
 0x138   :  { %9634 = vmatpush3.bf16.msra.mxu0 %v11331_v35  ;;  %9814 = vmatpush3.bf16.msra.mxu1 %v11332_v36  ;;  %v11391_v35 = vld [vmem:[%s12883_s0 + $0x14] ss:$0 sps:$4 sm:$0xcc]   ;;  %v11388_v36 = vld [vmem:[#allocation4 + $0xb8] sm:$0xff]  }
 0x139   :  { %9635 = vmatprep.subr.bf16.mxu0 %v11863_v0  ;;  %9815 = vmatprep.subr.bf16.mxu1 %v11863_v0 }
 0x13c   :  { %9636 = vmatpush3.bf16.msra.mxu0 %v11333_v37  ;;  %9816 = vmatpush3.bf16.msra.mxu1 %v11334_v38  ;;  %v11389_v37 = vld [vmem:[#allocation4 + $0xb8] sm:$0xff]   ;;  %v2229_v38 = vld [vmem:[%s12883_s0 + $0x10] sm:$0x3] }
 0x13d   :  { %9637 = vmatprep.subr.bf16.mxu0 %v11863_v0  ;;  %9817 = vmatprep.subr.bf16.mxu1 %v11863_v0 }
 0x140   :  { %9638 = vmatpush3.bf16.msra.mxu0 %v11335_v39  ;;  %9818 = vmatpush3.bf16.msra.mxu1 %v11336_v40  ;;  %v11390_v39 = vld [vmem:[#allocation4 + $0xc0] sm:$0xff]   ;;  %v3217_v40 = vrot.slane %v11391_v35, 2 }
 0x141   :  { %9639 = vmatprep.subr.bf16.mxu0 %v11863_v0  ;;  %9819 = vmatprep.subr.bf16.mxu1 %v11863_v0  ;;  %v11443_v35 = vld [vmem:[#allocation4 + $0x180] sm:$0xff]  }
 0x144   :  { %9640 = vmatpush3.bf16.msra.mxu0 %v11337_v42  ;;  %9820 = vmatpush3.bf16.msra.mxu1 %v11338_v43  ;;  %v11393_v42 = vld [vmem:[#allocation4 + $0xc8] sm:$0xff]  }
 0x145   :  { %9825 = vmatprep.subr.bf16.mxu0 %v11863_v0  ;;  %10005 = vmatprep.subr.bf16.mxu1 %v11863_v0  ;;  %v11394_v43 = vld [vmem:[#allocation4 + $0xc8] sm:$0xff]  }
 0x147   :  { %9642 = vmatmul.mubr.bf16.vlgmr.msra.gmra.mrb[0].mxu0 %v923_v44  ;;  %9822 = vmatmul.mubr.bf16.vlgmr.msra.gmra.mrb[0].mxu1 %v1922_v45  ;;  %v11395_v44 = vld [vmem:[#allocation4 + $0xd0] sm:$0xff]  }
 0x148   :  { %9826 = vmatpush3.bf16.msra.mxu0 %v11340_v46  ;;  %10006 = vmatpush3.bf16.msra.mxu1 %v11341_v47  ;;  %v11396_v45 = vld [vmem:[#allocation4 + $0xd0] sm:$0xff]   ;;  %v11397_v46 = vld [vmem:[#allocation4 + $0xd8] sm:$0xff]  }
 0x149   :  { %9827 = vmatprep.subr.bf16.mxu0 %v11863_v0  ;;  %10007 = vmatprep.subr.bf16.mxu1 %v11863_v0  ;;  %v11398_v47 = vld [vmem:[#allocation4 + $0xd8] sm:$0xff]  }
 0x14a   :  { %9841 = vmatprep.mubr.msk.bf16.mxu0 %vm11864_vm0, %v11863_v0  ;;  %10021 = vmatprep.mubr.msk.bf16.mxu1 %vm11864_vm0, %v11863_v0 }
 0x14c   :  { %9828 = vmatpush3.bf16.msra.mxu0 %v11342_v48  ;;  %10008 = vmatpush3.bf16.msra.mxu1 %v11343_v49  ;;  %v11399_v48 = vld [vmem:[#allocation4 + $0xe0] sm:$0xff]  }
 0x14d   :  { %9829 = vmatprep.subr.bf16.mxu0 %v11863_v0  ;;  %10009 = vmatprep.subr.bf16.mxu1 %v11863_v0  ;;  %v11400_v49 = vld [vmem:[#allocation4 + $0xe0] sm:$0xff]  }
 0x150   :  { %9830 = vmatpush3.bf16.msra.mxu0 %v11344_v50  ;;  %10010 = vmatpush3.bf16.msra.mxu1 %v11345_v51  ;;  %v11401_v50 = vld [vmem:[#allocation4 + $0xe8] sm:$0xff]  }
 0x151   :  { %9831 = vmatprep.subr.bf16.mxu0 %v11863_v0  ;;  %10011 = vmatprep.subr.bf16.mxu1 %v11863_v0  ;;  %v11402_v51 = vld [vmem:[#allocation4 + $0xe8] sm:$0xff]  }
 0x154   :  { %9832 = vmatpush3.bf16.msra.mxu0 %v11346_v52  ;;  %10012 = vmatpush3.bf16.msra.mxu1 %v11347_v53  ;;  %v11403_v52 = vld [vmem:[#allocation4 + $0xf0] sm:$0xff]  }
 0x155   :  { %9833 = vmatprep.subr.bf16.mxu0 %v11863_v0  ;;  %10013 = vmatprep.subr.bf16.mxu1 %v11863_v0  ;;  %v11404_v53 = vld [vmem:[#allocation4 + $0xf0] sm:$0xff]  }
 0x158   :  { %9834 = vmatpush3.bf16.msra.mxu0 %v11348_v54  ;;  %10014 = vmatpush3.bf16.msra.mxu1 %v11349_v55  ;;  %v11408_v54 = vld [vmem:[%s12883_s0 + $0x28] ss:$0 sps:$4 sm:$0xcc]   ;;  %v11405_v55 = vld [vmem:[#allocation4 + $0xf8] sm:$0xff]  }
 0x159   :  { %9835 = vmatprep.subr.bf16.mxu0 %v11863_v0  ;;  %10015 = vmatprep.subr.bf16.mxu1 %v11863_v0 }
 0x15c   :  { %9836 = vmatpush3.bf16.msra.mxu0 %v11350_v56  ;;  %10016 = vmatpush3.bf16.msra.mxu1 %v11351_v57  ;;  %v11406_v56 = vld [vmem:[#allocation4 + $0xf8] sm:$0xff]   ;;  %v2335_v57 = vld [vmem:[%s12883_s0 + $0x24] sm:$0x3] }
 0x15d   :  { %9837 = vmatprep.subr.bf16.mxu0 %v11863_v0  ;;  %10017 = vmatprep.subr.bf16.mxu1 %v11863_v0 }
 0x160   :  { %9838 = vmatpush3.bf16.msra.mxu0 %v11352_v58  ;;  %10018 = vmatpush3.bf16.msra.mxu1 %v11353_v59  ;;  %v11407_v58 = vld [vmem:[#allocation4 + $0x100] sm:$0xff]   ;;  %v3328_v59 = vrot.slane %v11408_v54, 2 }
 0x161   :  { %9839 = vmatprep.subr.bf16.mxu0 %v11863_v0  ;;  %10019 = vmatprep.subr.bf16.mxu1 %v11863_v0 }
 0x164   :  { %9840 = vmatpush3.bf16.msra.mxu0 %v11354_v61  ;;  %10020 = vmatpush3.bf16.msra.mxu1 %v11355_v62  ;;  %v11410_v61 = vld [vmem:[#allocation4 + $0x108] sm:$0xff]  }
 0x165   :  { %9845 = vmatprep.subr.bf16.mxu0 %v11863_v0  ;;  %10025 = vmatprep.subr.bf16.mxu1 %v11863_v0  ;;  %v11411_v62 = vld [vmem:[#allocation4 + $0x108] sm:$0xff]  }
 0x167   :  { %9842 = vmatmul.mubr.bf16.vlgmr.msra.gmra.mrb[4].mxu0 %v2051_v63  ;;  %10022 = vmatmul.mubr.bf16.vlgmr.msra.gmra.mrb[4].mxu1 %v2999_v2  ;;  %v11412_v63 = vld [vmem:[#allocation4 + $0x110] sm:$0xff]   ;;  %v11414_v2 = vld [vmem:[#allocation4 + $0x118] sm:$0xff]  }
 0x168   :  { %9846 = vmatpush3.bf16.msra.mxu0 %v11357_v1  ;;  %10026 = vmatpush3.bf16.msra.mxu1 %v11358_v3  ;;  %v11413_v1 = vld [vmem:[#allocation4 + $0x110] sm:$0xff]   ;;  %v11415_v3 = vld [vmem:[#allocation4 + $0x118] sm:$0xff]  }
 0x169   :  { %9847 = vmatprep.subr.bf16.mxu0 %v11863_v0  ;;  %10027 = vmatprep.subr.bf16.mxu1 %v11863_v0 }
 0x16a   :  { %9861 = vmatprep.mubr.msk.bf16.mxu0 %vm11864_vm0, %v11863_v0  ;;  %10041 = vmatprep.mubr.msk.bf16.mxu1 %vm11864_vm0, %v11863_v0 }
 0x16c   :  { %9848 = vmatpush3.bf16.msra.mxu0 %v11359_v4  ;;  %10028 = vmatpush3.bf16.msra.mxu1 %v11360_v5  ;;  %v11416_v4 = vld [vmem:[#allocation4 + $0x120] sm:$0xff]  }
 0x16d   :  { %9849 = vmatprep.subr.bf16.mxu0 %v11863_v0  ;;  %10029 = vmatprep.subr.bf16.mxu1 %v11863_v0  ;;  %v11417_v5 = vld [vmem:[#allocation4 + $0x120] sm:$0xff]  }
 0x170   :  { %9850 = vmatpush3.bf16.msra.mxu0 %v11361_v6  ;;  %10030 = vmatpush3.bf16.msra.mxu1 %v11362_v7  ;;  %v11418_v6 = vld [vmem:[#allocation4 + $0x128] sm:$0xff]  }
 0x171   :  { %9851 = vmatprep.subr.bf16.mxu0 %v11863_v0  ;;  %10031 = vmatprep.subr.bf16.mxu1 %v11863_v0  ;;  %v11419_v7 = vld [vmem:[#allocation4 + $0x128] sm:$0xff]  }
 0x174   :  { %9852 = vmatpush3.bf16.msra.mxu0 %v11363_v8  ;;  %10032 = vmatpush3.bf16.msra.mxu1 %v11364_v9  ;;  %v11420_v8 = vld [vmem:[#allocation4 + $0x130] sm:$0xff]  }
 0x175   :  { %9853 = vmatprep.subr.bf16.mxu0 %v11863_v0  ;;  %10033 = vmatprep.subr.bf16.mxu1 %v11863_v0  ;;  %v11421_v9 = vld [vmem:[#allocation4 + $0x130] sm:$0xff]  }
 0x178   :  { %9854 = vmatpush3.bf16.msra.mxu0 %v11365_v10  ;;  %10034 = vmatpush3.bf16.msra.mxu1 %v11366_v11  ;;  %v11424_v10 = vld [vmem:[%s12883_s0 + $0x24] ss:$0 sps:$4 sm:$0xcc]   ;;  %v11422_v11 = vld [vmem:[#allocation4 + $0x138] sm:$0xff]  }
 0x179   :  { %9855 = vmatprep.subr.bf16.mxu0 %v11863_v0  ;;  %10035 = vmatprep.subr.bf16.mxu1 %v11863_v0 }
 0x17c   :  { %9856 = vmatpush3.bf16.msra.mxu0 %v11367_v12  ;;  %10036 = vmatpush3.bf16.msra.mxu1 %v11368_v13  ;;  %v11423_v12 = vld [vmem:[#allocation4 + $0x138] sm:$0xff]   ;;  %v2461_v13 = vrot.slane %v11424_v10, 2  ;;  %v11471_v10 = vld [vmem:[#allocation4 + $0x1f0] sm:$0xff]  }
 0x17d   :  { %9857 = vmatprep.subr.bf16.mxu0 %v11863_v0  ;;  %10037 = vmatprep.subr.bf16.mxu1 %v11863_v0 }
 0x180   :  { %9858 = vmatpush3.bf16.msra.mxu0 %v11369_v14  ;;  %10038 = vmatpush3.bf16.msra.mxu1 %v11370_v15  ;;  %v11425_v14 = vld [vmem:[#allocation4 + $0x140] sm:$0xff]  }
 0x181   :  { %9859 = vmatprep.subr.bf16.mxu0 %v11863_v0  ;;  %10039 = vmatprep.subr.bf16.mxu1 %v11863_v0  ;;  %v11426_v15 = vld [vmem:[#allocation4 + $0x140] sm:$0xff]  }
 0x184   :  { %9860 = vmatpush3.bf16.msra.mxu0 %v11371_v17  ;;  %10040 = vmatpush3.bf16.msra.mxu1 %v11372_v18  ;;  %v11427_v17 = vld [vmem:[#allocation4 + $0x148] sm:$0xff]  }
 0x185   :  { %9865 = vmatprep.subr.bf16.mxu0 %v11863_v0  ;;  %10045 = vmatprep.subr.bf16.mxu1 %v11863_v0  ;;  %v11428_v18 = vld [vmem:[#allocation4 + $0x148] sm:$0xff]  }
 0x187   :  { %9862 = vmatmul.mubr.bf16.vlgmr.msra.gmra.mrb[4].mxu0 %v2014_v19  ;;  %10042 = vmatmul.mubr.bf16.vlgmr.msra.gmra.mrb[4].mxu1 %v3107_v21  ;;  %v11429_v19 = vld [vmem:[#allocation4 + $0x150] sm:$0xff]   ;;  %v11431_v21 = vld [vmem:[#allocation4 + $0x158] sm:$0xff]  }
 0x188   :  { %9866 = vmatpush3.bf16.msra.mxu0 %v11373_v20  ;;  %10046 = vmatpush3.bf16.msra.mxu1 %v11375_v22  ;;  %v11430_v20 = vld [vmem:[#allocation4 + $0x150] sm:$0xff]   ;;  %v11432_v22 = vld [vmem:[#allocation4 + $0x158] sm:$0xff]  }
 0x189   :  { %9867 = vmatprep.subr.bf16.mxu0 %v11863_v0  ;;  %10047 = vmatprep.subr.bf16.mxu1 %v11863_v0 }
 0x18a   :  { %9881 = vmatprep.mubr.msk.bf16.mxu0 %vm11864_vm0, %v11863_v0  ;;  %10061 = vmatprep.mubr.msk.bf16.mxu1 %vm11864_vm0, %v11863_v0 }
 0x18c   :  { %9868 = vmatpush3.bf16.msra.mxu0 %v11376_v23  ;;  %10048 = vmatpush3.bf16.msra.mxu1 %v11377_v24  ;;  %v11433_v23 = vld [vmem:[#allocation4 + $0x160] sm:$0xff]  }
 0x18d   :  { %9869 = vmatprep.subr.bf16.mxu0 %v11863_v0  ;;  %10049 = vmatprep.subr.bf16.mxu1 %v11863_v0  ;;  %v11434_v24 = vld [vmem:[#allocation4 + $0x160] sm:$0xff]  }
 0x190   :  { %9870 = vmatpush3.bf16.msra.mxu0 %v11378_v25  ;;  %10050 = vmatpush3.bf16.msra.mxu1 %v11379_v26  ;;  %v11435_v25 = vld [vmem:[#allocation4 + $0x168] sm:$0xff]  }
 0x191   :  { %9871 = vmatprep.subr.bf16.mxu0 %v11863_v0  ;;  %10051 = vmatprep.subr.bf16.mxu1 %v11863_v0  ;;  %v11436_v26 = vld [vmem:[#allocation4 + $0x168] sm:$0xff]  }
 0x194   :  { %9872 = vmatpush3.bf16.msra.mxu0 %v11380_v27  ;;  %10052 = vmatpush3.bf16.msra.mxu1 %v11381_v28  ;;  %v11437_v27 = vld [vmem:[#allocation4 + $0x170] sm:$0xff]  }
 0x195   :  { %9873 = vmatprep.subr.bf16.mxu0 %v11863_v0  ;;  %10053 = vmatprep.subr.bf16.mxu1 %v11863_v0  ;;  %v11438_v28 = vld [vmem:[#allocation4 + $0x170] sm:$0xff]  }
 0x198   :  { %9874 = vmatpush3.bf16.msra.mxu0 %v11382_v29  ;;  %10054 = vmatpush3.bf16.msra.mxu1 %v11383_v30  ;;  %v11442_v29 = vld [vmem:[%s12883_s0 + $0x2c] ss:$0 sps:$4 sm:$0xcc]   ;;  %v11439_v30 = vld [vmem:[#allocation4 + $0x178] sm:$0xff]  }
 0x199   :  { %9875 = vmatprep.subr.bf16.mxu0 %v11863_v0  ;;  %10055 = vmatprep.subr.bf16.mxu1 %v11863_v0 }
 0x19c   :  { %9876 = vmatpush3.bf16.msra.mxu0 %v11384_v31  ;;  %10056 = vmatpush3.bf16.msra.mxu1 %v11385_v32  ;;  %v11440_v31 = vld [vmem:[#allocation4 + $0x178] sm:$0xff]   ;;  %v2552_v32 = vld [vmem:[%s12883_s0 + $0x28] sm:$0x3] }
 0x19d   :  { %9877 = vmatprep.subr.bf16.mxu0 %v11863_v0  ;;  %10057 = vmatprep.subr.bf16.mxu1 %v11863_v0 }
 0x1a0   :  { %9878 = vmatpush3.bf16.msra.mxu0 %v11386_v33  ;;  %10058 = vmatpush3.bf16.msra.mxu1 %v11387_v34  ;;  %v11441_v33 = vld [vmem:[#allocation4 + $0x180] sm:$0xff]   ;;  %v3545_v34 = vrot.slane %v11442_v29, 2  ;;  %v11488_v29 = vld [vmem:[#allocation4 + $0x230] sm:$0xff]  }
 0x1a1   :  { %9879 = vmatprep.subr.bf16.mxu0 %v11863_v0  ;;  %10059 = vmatprep.subr.bf16.mxu1 %v11863_v0 }
 0x1a4   :  { %9880 = vmatpush3.bf16.msra.mxu0 %v11388_v36  ;;  %10060 = vmatpush3.bf16.msra.mxu1 %v11389_v37  ;;  %v11444_v36 = vld [vmem:[#allocation4 + $0x188] sm:$0xff]  }
 0x1a5   :  { %9885 = vmatprep.subr.bf16.mxu0 %v11863_v0  ;;  %10065 = vmatprep.subr.bf16.mxu1 %v11863_v0  ;;  %v11445_v37 = vld [vmem:[#allocation4 + $0x188] sm:$0xff]  }
 0x1a7   :  { %9882 = vmatmul.mubr.bf16.vlgmr.msra.gmra.mrb[4].mxu0 %v2229_v38  ;;  %10062 = vmatmul.mubr.bf16.vlgmr.msra.gmra.mrb[4].mxu1 %v3217_v40  ;;  %v11446_v38 = vld [vmem:[#allocation4 + $0x190] sm:$0xff]   ;;  %v11448_v40 = vld [vmem:[#allocation4 + $0x198] sm:$0xff]  }
 0x1a8   :  { %9886 = vmatpush3.bf16.msra.mxu0 %v11390_v39  ;;  %10066 = vmatpush3.bf16.msra.mxu1 %v11392_v41  ;;  %v11447_v39 = vld [vmem:[#allocation4 + $0x190] sm:$0xff]   ;;  %v11449_v41 = vld [vmem:[#allocation4 + $0x198] sm:$0xff]  }
 0x1a9   :  { %9887 = vmatprep.subr.bf16.mxu0 %v11863_v0  ;;  %10067 = vmatprep.subr.bf16.mxu1 %v11863_v0 }
 0x1aa   :  { %9901 = vmatprep.mubr.msk.bf16.mxu0 %vm11864_vm0, %v11863_v0  ;;  %10081 = vmatprep.mubr.msk.bf16.mxu1 %vm11864_vm0, %v11863_v0 }
 0x1ac   :  { %9888 = vmatpush3.bf16.msra.mxu0 %v11393_v42  ;;  %10068 = vmatpush3.bf16.msra.mxu1 %v11394_v43  ;;  %v11450_v42 = vld [vmem:[#allocation4 + $0x1a0] sm:$0xff]  }
 0x1ad   :  { %9889 = vmatprep.subr.bf16.mxu0 %v11863_v0  ;;  %10069 = vmatprep.subr.bf16.mxu1 %v11863_v0  ;;  %v11451_v43 = vld [vmem:[#allocation4 + $0x1a0] sm:$0xff]  }
 0x1b0   :  { %9890 = vmatpush3.bf16.msra.mxu0 %v11395_v44  ;;  %10070 = vmatpush3.bf16.msra.mxu1 %v11396_v45  ;;  %v11452_v44 = vld [vmem:[#allocation4 + $0x1a8] sm:$0xff]  }
 0x1b1   :  { %9891 = vmatprep.subr.bf16.mxu0 %v11863_v0  ;;  %10071 = vmatprep.subr.bf16.mxu1 %v11863_v0  ;;  %v11453_v45 = vld [vmem:[#allocation4 + $0x1a8] sm:$0xff]  }
 0x1b4   :  { %9892 = vmatpush3.bf16.msra.mxu0 %v11397_v46  ;;  %10072 = vmatpush3.bf16.msra.mxu1 %v11398_v47 }
 0x1b5   :  { %9893 = vmatprep.subr.bf16.mxu0 %v11863_v0  ;;  %10073 = vmatprep.subr.bf16.mxu1 %v11863_v0 }
 0x1b8   :  { %9894 = vmatpush3.bf16.msra.mxu0 %v11399_v48  ;;  %10074 = vmatpush3.bf16.msra.mxu1 %v11400_v49  ;;  %v11454_v49 = vld [vmem:[#allocation4 + $0x1b0] sm:$0xff]  }
 0x1b9   :  { %9895 = vmatprep.subr.bf16.mxu0 %v11863_v0  ;;  %10075 = vmatprep.subr.bf16.mxu1 %v11863_v0 }
 0x1bc   :  { %9896 = vmatpush3.bf16.msra.mxu0 %v11401_v50  ;;  %10076 = vmatpush3.bf16.msra.mxu1 %v11402_v51  ;;  %v11455_v50 = vld [vmem:[#allocation4 + $0x1b0] sm:$0xff]  }
 0x1bd   :  { %9897 = vmatprep.subr.bf16.mxu0 %v11863_v0  ;;  %10077 = vmatprep.subr.bf16.mxu1 %v11863_v0 }
 0x1c0   :  { %9898 = vmatpush3.bf16.msra.mxu0 %v11403_v52  ;;  %10078 = vmatpush3.bf16.msra.mxu1 %v11404_v53 }
 0x1c1   :  { %9899 = vmatprep.subr.bf16.mxu0 %v11863_v0  ;;  %10079 = vmatprep.subr.bf16.mxu1 %v11863_v0 }
 0x1c4   :  { %9900 = vmatpush3.bf16.msra.mxu0 %v11405_v55  ;;  %10080 = vmatpush3.bf16.msra.mxu1 %v11406_v56  ;;  %v11459_v55 = vld [vmem:[%s12883_s0 + $0x40] ss:$0 sps:$4 sm:$0xcc]  }
 0x1c5   :  { %9905 = vmatprep.subr.bf16.mxu0 %v11863_v0  ;;  %10085 = vmatprep.subr.bf16.mxu1 %v11863_v0 }
 0x1c7   :  { %9902 = vmatmul.mubr.bf16.vlgmr.msra.gmra.mrb[4].mxu0 %v2335_v57  ;;  %10082 = vmatmul.mubr.bf16.vlgmr.msra.gmra.mrb[4].mxu1 %v3328_v59  ;;  %v11456_v57 = vld [vmem:[#allocation4 + $0x1b8] sm:$0xff]  }
 0x1c8   :  { %9906 = vmatpush3.bf16.msra.mxu0 %v11407_v58  ;;  %10086 = vmatpush3.bf16.msra.mxu1 %v11409_v60  ;;  %v11457_v58 = vld [vmem:[#allocation4 + $0x1b8] sm:$0xff]   ;;  %v11458_v60 = vld [vmem:[#allocation4 + $0x1c0] sm:$0xff]  }
 0x1c9   :  { %9907 = vmatprep.subr.bf16.mxu0 %v11863_v0  ;;  %10087 = vmatprep.subr.bf16.mxu1 %v11863_v0  ;;  %v2658_v59 = vld [vmem:[%s12883_s0 + $0x3c] sm:$0x3] }
 0x1ca   :  { %9921 = vmatprep.mubr.msk.bf16.mxu0 %vm11864_vm0, %v11863_v0  ;;  %10101 = vmatprep.mubr.msk.bf16.mxu1 %vm11864_vm0, %v11863_v0 }
 0x1cc   :  { %9908 = vmatpush3.bf16.msra.mxu0 %v11410_v61  ;;  %10088 = vmatpush3.bf16.msra.mxu1 %v11411_v62  ;;  %v3656_v61 = vrot.slane %v11459_v55, 2  ;;  %v11460_v62 = vld [vmem:[#allocation4 + $0x1c0] sm:$0xff]   ;;  %v4950_v55 = vld [vmem:[%s12883_s0 + $0x50] sm:$0x3] }
 0x1cd   :  { %9909 = vmatprep.subr.bf16.mxu0 %v11863_v0  ;;  %10089 = vmatprep.subr.bf16.mxu1 %v11863_v0 }
 0x1d0   :  { %9910 = vmatpush3.bf16.msra.mxu0 %v11412_v63  ;;  %10090 = vmatpush3.bf16.msra.mxu1 %v11413_v1  ;;  %v11461_v63 = vld [vmem:[#allocation4 + $0x1c8] sm:$0xff]  }
 0x1d1   :  { %9911 = vmatprep.subr.bf16.mxu0 %v11863_v0  ;;  %10091 = vmatprep.subr.bf16.mxu1 %v11863_v0  ;;  %v11462_v1 = vld [vmem:[#allocation4 + $0x1c8] sm:$0xff]  }
 0x1d4   :  { %9912 = vmatpush3.bf16.msra.mxu0 %v11414_v2  ;;  %10092 = vmatpush3.bf16.msra.mxu1 %v11415_v3  ;;  %v11463_v2 = vld [vmem:[#allocation4 + $0x1d0] sm:$0xff]  }
 0x1d5   :  { %9913 = vmatprep.subr.bf16.mxu0 %v11863_v0  ;;  %10093 = vmatprep.subr.bf16.mxu1 %v11863_v0  ;;  %v11464_v3 = vld [vmem:[#allocation4 + $0x1d0] sm:$0xff]  }
 0x1d8   :  { %9914 = vmatpush3.bf16.msra.mxu0 %v11416_v4  ;;  %10094 = vmatpush3.bf16.msra.mxu1 %v11417_v5  ;;  %v11465_v4 = vld [vmem:[#allocation4 + $0x1d8] sm:$0xff]  }
 0x1d9   :  { %9915 = vmatprep.subr.bf16.mxu0 %v11863_v0  ;;  %10095 = vmatprep.subr.bf16.mxu1 %v11863_v0  ;;  %v11466_v5 = vld [vmem:[#allocation4 + $0x1d8] sm:$0xff]  }
 0x1dc   :  { %9916 = vmatpush3.bf16.msra.mxu0 %v11418_v6  ;;  %10096 = vmatpush3.bf16.msra.mxu1 %v11419_v7  ;;  %v11467_v6 = vld [vmem:[#allocation4 + $0x1e0] sm:$0xff]  }
 0x1dd   :  { %9917 = vmatprep.subr.bf16.mxu0 %v11863_v0  ;;  %10097 = vmatprep.subr.bf16.mxu1 %v11863_v0  ;;  %v11468_v7 = vld [vmem:[#allocation4 + $0x1e0] sm:$0xff]  }
 0x1e0   :  { %9918 = vmatpush3.bf16.msra.mxu0 %v11420_v8  ;;  %10098 = vmatpush3.bf16.msra.mxu1 %v11421_v9  ;;  %v11469_v8 = vld [vmem:[#allocation4 + $0x1e8] sm:$0xff]  }
 0x1e1   :  { %9919 = vmatprep.subr.bf16.mxu0 %v11863_v0  ;;  %10099 = vmatprep.subr.bf16.mxu1 %v11863_v0  ;;  %v11470_v9 = vld [vmem:[#allocation4 + $0x1e8] sm:$0xff]  }
 0x1e4   :  { %9920 = vmatpush3.bf16.msra.mxu0 %v11422_v11  ;;  %10100 = vmatpush3.bf16.msra.mxu1 %v11423_v12  ;;  %v11472_v11 = vld [vmem:[#allocation4 + $0x1f0] sm:$0xff]   ;;  %v11475_v12 = vld [vmem:[%s12883_s0 + $0x3c] ss:$0 sps:$4 sm:$0xcc]  }
 0x1e5   :  { %9925 = vmatprep.subr.bf16.mxu0 %v11863_v0  ;;  %10105 = vmatprep.subr.bf16.mxu1 %v11863_v0 }
 0x1e7   :  { %9922 = vmatmul.mubr.bf16.vlgmr.msra.gmra.mrb[4].mxu0 %v2461_v13  ;;  %10102 = vmatmul.mubr.bf16.vlgmr.msra.gmra.mrb[4].mxu1 %v3419_v16  ;;  %v11473_v13 = vld [vmem:[#allocation4 + $0x1f8] sm:$0xff]   ;;  %v11476_v16 = vld [vmem:[#allocation4 + $0x200] sm:$0xff]  }
 0x1e8   :  { %9926 = vmatpush3.bf16.msra.mxu0 %v11425_v14  ;;  %10106 = vmatpush3.bf16.msra.mxu1 %v11426_v15  ;;  %v11474_v14 = vld [vmem:[#allocation4 + $0x1f8] sm:$0xff]   ;;  %v2784_v15 = vrot.slane %v11475_v12, 2  ;;  %v11528_v12 = vld [vmem:[#allocation4 + $0x80] sm:$0xff]  }
 0x1e9   :  { %9927 = vmatprep.subr.bf16.mxu0 %v11863_v0  ;;  %10107 = vmatprep.subr.bf16.mxu1 %v11863_v0 }
 0x1ea   :  { %9941 = vmatprep.mubr.msk.bf16.mxu0 %vm11864_vm0, %v11863_v0  ;;  %10121 = vmatprep.mubr.msk.bf16.mxu1 %vm11864_vm0, %v11863_v0 }
 0x1ec   :  { %9928 = vmatpush3.bf16.msra.mxu0 %v11427_v17  ;;  %10108 = vmatpush3.bf16.msra.mxu1 %v11428_v18  ;;  %v3747_v17 = vld [vmem:[%s12883_s0 + $0x44] sm:$0x3] }
 0x1ed   :  { %9929 = vmatprep.subr.bf16.mxu0 %v11863_v0  ;;  %10109 = vmatprep.subr.bf16.mxu1 %v11863_v0  ;;  %v11477_v18 = vld [vmem:[#allocation4 + $0x200] sm:$0xff]  }
 0x1f0   :  { %9930 = vmatpush3.bf16.msra.mxu0 %v11429_v19  ;;  %10110 = vmatpush3.bf16.msra.mxu1 %v11430_v20  ;;  %v11478_v19 = vld [vmem:[#allocation4 + $0x208] sm:$0xff]  }
 0x1f1   :  { %9931 = vmatprep.subr.bf16.mxu0 %v11863_v0  ;;  %10111 = vmatprep.subr.bf16.mxu1 %v11863_v0  ;;  %v11479_v20 = vld [vmem:[#allocation4 + $0x208] sm:$0xff]  }
 0x1f4   :  { %9932 = vmatpush3.bf16.msra.mxu0 %v11431_v21  ;;  %10112 = vmatpush3.bf16.msra.mxu1 %v11432_v22  ;;  %v11480_v21 = vld [vmem:[#allocation4 + $0x210] sm:$0xff]  }
 0x1f5   :  { %9933 = vmatprep.subr.bf16.mxu0 %v11863_v0  ;;  %10113 = vmatprep.subr.bf16.mxu1 %v11863_v0  ;;  %v11481_v22 = vld [vmem:[#allocation4 + $0x210] sm:$0xff]  }
 0x1f8   :  { %9934 = vmatpush3.bf16.msra.mxu0 %v11433_v23  ;;  %10114 = vmatpush3.bf16.msra.mxu1 %v11434_v24  ;;  %v11482_v23 = vld [vmem:[#allocation4 + $0x218] sm:$0xff]  }
 0x1f9   :  { %9935 = vmatprep.subr.bf16.mxu0 %v11863_v0  ;;  %10115 = vmatprep.subr.bf16.mxu1 %v11863_v0  ;;  %v11483_v24 = vld [vmem:[#allocation4 + $0x218] sm:$0xff]  }
 0x1fc   :  { %9936 = vmatpush3.bf16.msra.mxu0 %v11435_v25  ;;  %10116 = vmatpush3.bf16.msra.mxu1 %v11436_v26  ;;  %v11484_v25 = vld [vmem:[#allocation4 + $0x220] sm:$0xff]  }
 0x1fd   :  { %9937 = vmatprep.subr.bf16.mxu0 %v11863_v0  ;;  %10117 = vmatprep.subr.bf16.mxu1 %v11863_v0  ;;  %v11485_v26 = vld [vmem:[#allocation4 + $0x220] sm:$0xff]  }
 0x200   :  { %9938 = vmatpush3.bf16.msra.mxu0 %v11437_v27  ;;  %10118 = vmatpush3.bf16.msra.mxu1 %v11438_v28  ;;  %v11486_v27 = vld [vmem:[#allocation4 + $0x228] sm:$0xff]  }
 0x201   :  { %9939 = vmatprep.subr.bf16.mxu0 %v11863_v0  ;;  %10119 = vmatprep.subr.bf16.mxu1 %v11863_v0  ;;  %v11487_v28 = vld [vmem:[#allocation4 + $0x228] sm:$0xff]  }
 0x204   :  { %9940 = vmatpush3.bf16.msra.mxu0 %v11439_v30  ;;  %10120 = vmatpush3.bf16.msra.mxu1 %v11440_v31  ;;  %v11489_v30 = vld [vmem:[#allocation4 + $0x230] sm:$0xff]   ;;  %v11490_v31 = vld [vmem:[#allocation4 + $0x238] sm:$0xff]  }
 0x205   :  { %9945 = vmatprep.subr.bf16.mxu0 %v11863_v0  ;;  %10125 = vmatprep.subr.bf16.mxu1 %v11863_v0 }
 0x207   :  { %9942 = vmatmul.mubr.bf16.vlgmr.msra.gmra.mrb[4].mxu0 %v2552_v32  ;;  %10122 = vmatmul.mubr.bf16.vlgmr.msra.gmra.mrb[4].mxu1 %v3545_v34  ;;  %v11492_v32 = vld [vmem:[%s12883_s0 + $0x44] ss:$0 sps:$4 sm:$0xcc]   ;;  %v2875_v34 = vld [vmem:[%s12883_s0 + $0x40] sm:$0x3] }
 0x208   :  { %9946 = vmatpush3.bf16.msra.mxu0 %v11441_v33  ;;  %10126 = vmatpush3.bf16.msra.mxu1 %v11443_v35  ;;  %v11491_v33 = vld [vmem:[#allocation4 + $0x238] sm:$0xff]   ;;  %v3873_v35 = vrot.slane %v11492_v32, 2  ;;  %v11546_v32 = vld [vmem:[#allocation4 + $0xc8] sm:$0xff]  }
 0x209   :  { %9947 = vmatprep.subr.bf16.mxu0 %v11863_v0  ;;  %10127 = vmatprep.subr.bf16.mxu1 %v11863_v0 }
 0x20a   :  { %9961 = vmatprep.mubr.msk.bf16.mxu0 %vm11864_vm0, %v11863_v0  ;;  %10141 = vmatprep.mubr.msk.bf16.mxu1 %vm11864_vm0, %v11863_v0 }
 0x20c   :  { %9948 = vmatpush3.bf16.msra.mxu0 %v11444_v36  ;;  %10128 = vmatpush3.bf16.msra.mxu1 %v11445_v37  ;;  %v11493_v36 = vld [vmem:[#allocation4 + $0x40] sm:$0xff]  }
 0x20d   :  { %9949 = vmatprep.subr.bf16.mxu0 %v11863_v0  ;;  %10129 = vmatprep.subr.bf16.mxu1 %v11863_v0  ;;  %v11494_v37 = vld [vmem:[#allocation4 + $0x40] sm:$0xff]  }
 0x210   :  { %9950 = vmatpush3.bf16.msra.mxu0 %v11446_v38  ;;  %10130 = vmatpush3.bf16.msra.mxu1 %v11447_v39  ;;  %v11495_v38 = vld [vmem:[#allocation4 + $0x48] sm:$0xff]  }
 0x211   :  { %9951 = vmatprep.subr.bf16.mxu0 %v11863_v0  ;;  %10131 = vmatprep.subr.bf16.mxu1 %v11863_v0  ;;  %v11496_v39 = vld [vmem:[#allocation4 + $0x48] sm:$0xff]  }
 0x214   :  { %9952 = vmatpush3.bf16.msra.mxu0 %v11448_v40  ;;  %10132 = vmatpush3.bf16.msra.mxu1 %v11449_v41  ;;  %v11497_v40 = vld [vmem:[#allocation4 + $0x50] sm:$0xff]  }
 0x215   :  { %9953 = vmatprep.subr.bf16.mxu0 %v11863_v0  ;;  %10133 = vmatprep.subr.bf16.mxu1 %v11863_v0  ;;  %v11498_v41 = vld [vmem:[#allocation4 + $0x50] sm:$0xff]  }
 0x218   :  { %9954 = vmatpush3.bf16.msra.mxu0 %v11450_v42  ;;  %10134 = vmatpush3.bf16.msra.mxu1 %v11451_v43  ;;  %v11499_v42 = vld [vmem:[#allocation4 + $0x58] sm:$0xff]  }
 0x219   :  { %9955 = vmatprep.subr.bf16.mxu0 %v11863_v0  ;;  %10135 = vmatprep.subr.bf16.mxu1 %v11863_v0  ;;  %v11500_v43 = vld [vmem:[#allocation4 + $0x58] sm:$0xff]  }
 0x21a   :  { %v1023_v46 = vpop.f32.mrb[0].mxu0  ;;  %v2006_v47 = vpop.f32.mrb[0].mxu1 }
 0x21b   :  { %1030 = vst [vmem:[#allocation2] sm:$0xf] %v1023_v46  ;;  %v9643_v48 = vpop.f32.mrb[1].mxu0  ;;  %2013 = vst [vmem:[#allocation2 + $0x4] sm:$0xf] %v2006_v47  ;;  %v9823_v51 = vpop.f32.mrb[1].mxu1 }
 0x21c   :  { %v1026_v52 = vpop.f32.mrb[2].mxu0  ;;  %9956 = vmatpush3.bf16.msra.mxu0 %v11452_v44  ;;  %v2009_v53 = vpop.f32.mrb[2].mxu1  ;;  %10136 = vmatpush3.bf16.msra.mxu1 %v11453_v45  ;;  %v11501_v44 = vld [vmem:[#allocation4 + $0x60] sm:$0xff]   ;;  %v11503_v46 = vld [vmem:[#allocation4 + $0x68] sm:$0xff]   ;;  %v11505_v48 = vld [vmem:[#allocation4 + $0x70] sm:$0xff]  }
 0x21d   :  { %v9644_v54 = vpop.f32.mrb[3].mxu0  ;;  %9957 = vmatprep.subr.bf16.mxu0 %v11863_v0  ;;  %v9824_v56 = vpop.f32.mrb[3].mxu1  ;;  %10137 = vmatprep.subr.bf16.mxu1 %v11863_v0  ;;  %v11502_v45 = vld [vmem:[#allocation4 + $0x60] sm:$0xff]   ;;  %v11504_v47 = vld [vmem:[#allocation4 + $0x68] sm:$0xff]   ;;  %v11507_v51 = vld [vmem:[#allocation4 + $0x78] sm:$0xff]  }
 0x21e   :  { %v11508_v52 = vld [vmem:[#allocation4 + $0x78] sm:$0xff]   ;;  %v11510_v54 = vld [vmem:[#allocation4] sm:$0xff]  }
 0x21f   :  { %v11511_v56 = vld [vmem:[#allocation4] sm:$0xff]  }
 0x220   :  { %9958 = vmatpush3.bf16.msra.mxu0 %v11454_v49  ;;  %10138 = vmatpush3.bf16.msra.mxu1 %v11455_v50  ;;  %v11506_v49 = vld [vmem:[#allocation4 + $0x70] sm:$0xff]   ;;  %v11509_v50 = vld [vmem:[%s12883_s0 + $0x48] ss:$0 sps:$4 sm:$0xcc]  }
 0x221   :  { %9959 = vmatprep.subr.bf16.mxu0 %v11863_v0  ;;  %10139 = vmatprep.subr.bf16.mxu1 %v11863_v0  ;;  %v4002_v53 = vrot.slane %v11509_v50, 2  ;;  %v11562_v50 = vld [vmem:[#allocation4 + $0x100] sm:$0xff]  }
 0x224   :  { %9960 = vmatpush3.bf16.msra.mxu0 %v11456_v57  ;;  %10140 = vmatpush3.bf16.msra.mxu1 %v11457_v58  ;;  %v11512_v57 = vld [vmem:[#allocation4 + $0x8] sm:$0xff]  }
 0x225   :  { %9965 = vmatprep.subr.bf16.mxu0 %v11863_v0  ;;  %10145 = vmatprep.subr.bf16.mxu1 %v11863_v0  ;;  %v11513_v58 = vld [vmem:[#allocation4 + $0x8] sm:$0xff]  }
 0x227   :  { %9962 = vmatmul.mubr.bf16.vlgmr.msra.gmra.mrb[4].mxu0 %v2658_v59  ;;  %10142 = vmatmul.mubr.bf16.vlgmr.msra.gmra.mrb[4].mxu1 %v3656_v61  ;;  %v11514_v59 = vld [vmem:[#allocation4 + $0x10] sm:$0xff]   ;;  %v11516_v61 = vld [vmem:[#allocation4 + $0x18] sm:$0xff]  }
 0x228   :  { %9966 = vmatpush3.bf16.msra.mxu0 %v11458_v60  ;;  %10146 = vmatpush3.bf16.msra.mxu1 %v11460_v62  ;;  %v11515_v60 = vld [vmem:[#allocation4 + $0x10] sm:$0xff]   ;;  %v11517_v62 = vld [vmem:[#allocation4 + $0x18] sm:$0xff]  }
 0x229   :  { %9967 = vmatprep.subr.bf16.mxu0 %v11863_v0  ;;  %10147 = vmatprep.subr.bf16.mxu1 %v11863_v0 }
 0x22a   :  { %9981 = vmatprep.mubr.msk.bf16.mxu0 %vm11864_vm0, %v11863_v0  ;;  %10161 = vmatprep.mubr.msk.bf16.mxu1 %vm11864_vm0, %v11863_v0 }
 0x22c   :  { %9968 = vmatpush3.bf16.msra.mxu0 %v11461_v63  ;;  %10148 = vmatpush3.bf16.msra.mxu1 %v11462_v1  ;;  %v11518_v63 = vld [vmem:[#allocation4 + $0x20] sm:$0xff]  }
 0x22d   :  { %9969 = vmatprep.subr.bf16.mxu0 %v11863_v0  ;;  %10149 = vmatprep.subr.bf16.mxu1 %v11863_v0  ;;  %v11519_v1 = vld [vmem:[#allocation4 + $0x20] sm:$0xff]  }
 0x230   :  { %9970 = vmatpush3.bf16.msra.mxu0 %v11463_v2  ;;  %10150 = vmatpush3.bf16.msra.mxu1 %v11464_v3  ;;  %v11520_v2 = vld [vmem:[#allocation4 + $0x28] sm:$0xff]  }
 0x231   :  { %9971 = vmatprep.subr.bf16.mxu0 %v11863_v0  ;;  %10151 = vmatprep.subr.bf16.mxu1 %v11863_v0  ;;  %v11521_v3 = vld [vmem:[#allocation4 + $0x28] sm:$0xff]  }
 0x234   :  { %9972 = vmatpush3.bf16.msra.mxu0 %v11465_v4  ;;  %10152 = vmatpush3.bf16.msra.mxu1 %v11466_v5  ;;  %v11522_v4 = vld [vmem:[#allocation4 + $0x30] sm:$0xff]  }
 0x235   :  { %9973 = vmatprep.subr.bf16.mxu0 %v11863_v0  ;;  %10153 = vmatprep.subr.bf16.mxu1 %v11863_v0  ;;  %v11523_v5 = vld [vmem:[#allocation4 + $0x30] sm:$0xff]  }
 0x238   :  { %9974 = vmatpush3.bf16.msra.mxu0 %v11467_v6  ;;  %10154 = vmatpush3.bf16.msra.mxu1 %v11468_v7  ;;  %v11524_v6 = vld [vmem:[#allocation4 + $0x38] sm:$0xff]   ;;  %v11527_v7 = vld [vmem:[%s12883_s0 + $0x4c] ss:$0 sps:$4 sm:$0xcc]  }
 0x239   :  { %9975 = vmatprep.subr.bf16.mxu0 %v11863_v0  ;;  %10155 = vmatprep.subr.bf16.mxu1 %v11863_v0 }
 0x23c   :  { %9976 = vmatpush3.bf16.msra.mxu0 %v11469_v8  ;;  %10156 = vmatpush3.bf16.msra.mxu1 %v11470_v9  ;;  %v11525_v8 = vld [vmem:[#allocation4 + $0x38] sm:$0xff]   ;;  %v3965_v9 = vld [vmem:[%s12883_s0 + $0x48] sm:$0x3] }
 0x23d   :  { %9977 = vmatprep.subr.bf16.mxu0 %v11863_v0  ;;  %10157 = vmatprep.subr.bf16.mxu1 %v11863_v0 }
 0x240   :  { %9978 = vmatpush3.bf16.msra.mxu0 %v11471_v10  ;;  %10158 = vmatpush3.bf16.msra.mxu1 %v11472_v11  ;;  %v11526_v10 = vld [vmem:[#allocation4 + $0x80] sm:$0xff]   ;;  %v5058_v11 = vrot.slane %v11527_v7, 2  ;;  %v11580_v7 = vld [vmem:[#allocation4 + $0x148] sm:$0xff]  }
 0x241   :  { %9979 = vmatprep.subr.bf16.mxu0 %v11863_v0  ;;  %10159 = vmatprep.subr.bf16.mxu1 %v11863_v0 }
 0x244   :  { %9980 = vmatpush3.bf16.msra.mxu0 %v11473_v13  ;;  %10160 = vmatpush3.bf16.msra.mxu1 %v11474_v14  ;;  %v11529_v13 = vld [vmem:[#allocation4 + $0x88] sm:$0xff]  }
 0x245   :  { %9985 = vmatprep.subr.bf16.mxu0 %v11863_v0  ;;  %10165 = vmatprep.subr.bf16.mxu1 %v11863_v0  ;;  %v11530_v14 = vld [vmem:[#allocation4 + $0x88] sm:$0xff]  }
 0x247   :  { %9982 = vmatmul.mubr.bf16.vlgmr.msra.gmra.mrb[4].mxu0 %v2784_v15  ;;  %10162 = vmatmul.mubr.bf16.vlgmr.msra.gmra.mrb[4].mxu1 %v3747_v17  ;;  %v11531_v15 = vld [vmem:[#allocation4 + $0x90] sm:$0xff]   ;;  %v11533_v17 = vld [vmem:[#allocation4 + $0x98] sm:$0xff]  }
 0x248   :  { %9986 = vmatpush3.bf16.msra.mxu0 %v11476_v16  ;;  %10166 = vmatpush3.bf16.msra.mxu1 %v11477_v18  ;;  %v11532_v16 = vld [vmem:[#allocation4 + $0x90] sm:$0xff]   ;;  %v11534_v18 = vld [vmem:[#allocation4 + $0x98] sm:$0xff]  }
 0x249   :  { %9987 = vmatprep.subr.bf16.mxu0 %v11863_v0  ;;  %10167 = vmatprep.subr.bf16.mxu1 %v11863_v0 }
 0x24a   :  { %10001 = vmatprep.mubr.msk.bf16.mxu0 %vm11864_vm0, %v11863_v0  ;;  %10181 = vmatprep.mubr.msk.bf16.mxu1 %vm11864_vm0, %v11863_v0 }
 0x24c   :  { %9988 = vmatpush3.bf16.msra.mxu0 %v11478_v19  ;;  %10168 = vmatpush3.bf16.msra.mxu1 %v11479_v20  ;;  %v11535_v19 = vld [vmem:[#allocation4 + $0xa0] sm:$0xff]  }
 0x24d   :  { %9989 = vmatprep.subr.bf16.mxu0 %v11863_v0  ;;  %10169 = vmatprep.subr.bf16.mxu1 %v11863_v0  ;;  %v11536_v20 = vld [vmem:[#allocation4 + $0xa0] sm:$0xff]  }
 0x250   :  { %9990 = vmatpush3.bf16.msra.mxu0 %v11480_v21  ;;  %10170 = vmatpush3.bf16.msra.mxu1 %v11481_v22  ;;  %v11537_v21 = vld [vmem:[#allocation4 + $0xa8] sm:$0xff]  }
 0x251   :  { %9991 = vmatprep.subr.bf16.mxu0 %v11863_v0  ;;  %10171 = vmatprep.subr.bf16.mxu1 %v11863_v0  ;;  %v11538_v22 = vld [vmem:[#allocation4 + $0xa8] sm:$0xff]  }
 0x254   :  { %9992 = vmatpush3.bf16.msra.mxu0 %v11482_v23  ;;  %10172 = vmatpush3.bf16.msra.mxu1 %v11483_v24  ;;  %v11539_v23 = vld [vmem:[#allocation4 + $0xb0] sm:$0xff]  }
 0x255   :  { %9993 = vmatprep.subr.bf16.mxu0 %v11863_v0  ;;  %10173 = vmatprep.subr.bf16.mxu1 %v11863_v0  ;;  %v11540_v24 = vld [vmem:[#allocation4 + $0xb0] sm:$0xff]  }
 0x258   :  { %9994 = vmatpush3.bf16.msra.mxu0 %v11484_v25  ;;  %10174 = vmatpush3.bf16.msra.mxu1 %v11485_v26  ;;  %v11541_v25 = vld [vmem:[#allocation4 + $0xb8] sm:$0xff]   ;;  %v11544_v26 = vld [vmem:[%s12883_s0 + $0x50] ss:$0 sps:$4 sm:$0xcc]  }
 0x259   :  { %9995 = vmatprep.subr.bf16.mxu0 %v11863_v0  ;;  %10175 = vmatprep.subr.bf16.mxu1 %v11863_v0 }
 0x25c   :  { %9996 = vmatpush3.bf16.msra.mxu0 %v11486_v27  ;;  %10176 = vmatpush3.bf16.msra.mxu1 %v11487_v28  ;;  %v11542_v27 = vld [vmem:[#allocation4 + $0xb8] sm:$0xff]   ;;  %v4180_v28 = vld [vmem:[%s12883_s0 + $0x4c] sm:$0x3] }
 0x25d   :  { %9997 = vmatprep.subr.bf16.mxu0 %v11863_v0  ;;  %10177 = vmatprep.subr.bf16.mxu1 %v11863_v0 }
 0x260   :  { %9998 = vmatpush3.bf16.msra.mxu0 %v11488_v29  ;;  %10178 = vmatpush3.bf16.msra.mxu1 %v11489_v30  ;;  %v11543_v29 = vld [vmem:[#allocation4 + $0xc0] sm:$0xff]   ;;  %v5168_v30 = vrot.slane %v11544_v26, 2  ;;  %v11597_v26 = vld [vmem:[#allocation4 + $0x188] sm:$0xff]  }
 0x261   :  { %9999 = vmatprep.subr.bf16.mxu0 %v11863_v0  ;;  %10179 = vmatprep.subr.bf16.mxu1 %v11863_v0 }
 0x264   :  { %10000 = vmatpush3.bf16.msra.mxu0 %v11490_v31  ;;  %10180 = vmatpush3.bf16.msra.mxu1 %v11491_v33  ;;  %v11545_v31 = vld [vmem:[#allocation4 + $0xc0] sm:$0xff]   ;;  %v11547_v33 = vld [vmem:[#allocation4 + $0xc8] sm:$0xff]  }
 0x265   :  { %10185 = vmatprep.subr.bf16.mxu0 %v11863_v0  ;;  %10365 = vmatprep.subr.bf16.mxu1 %v11863_v0 }
 0x267   :  { %10002 = vmatmul.mubr.bf16.vlgmr.msra.gmra.mrb[4].mxu0 %v2875_v34  ;;  %10182 = vmatmul.mubr.bf16.vlgmr.msra.gmra.mrb[4].mxu1 %v3873_v35  ;;  %v11548_v34 = vld [vmem:[#allocation4 + $0xd0] sm:$0xff]  }
 0x268   :  { %10186 = vmatpush3.bf16.msra.mxu0 %v11493_v36  ;;  %10366 = vmatpush3.bf16.msra.mxu1 %v11494_v37  ;;  %v11549_v35 = vld [vmem:[#allocation4 + $0xd0] sm:$0xff]   ;;  %v11550_v36 = vld [vmem:[#allocation4 + $0xd8] sm:$0xff]  }
 0x269   :  { %10187 = vmatprep.subr.bf16.mxu0 %v11863_v0  ;;  %10367 = vmatprep.subr.bf16.mxu1 %v11863_v0  ;;  %v11551_v37 = vld [vmem:[#allocation4 + $0xd8] sm:$0xff]  }
 0x26a   :  { %10201 = vmatprep.mubr.msk.bf16.mxu0 %vm11864_vm0, %v11863_v0  ;;  %10381 = vmatprep.mubr.msk.bf16.mxu1 %vm11864_vm0, %v11863_v0 }
 0x26c   :  { %10188 = vmatpush3.bf16.msra.mxu0 %v11495_v38  ;;  %10368 = vmatpush3.bf16.msra.mxu1 %v11496_v39  ;;  %v11552_v38 = vld [vmem:[#allocation4 + $0xe0] sm:$0xff]  }
 0x26d   :  { %10189 = vmatprep.subr.bf16.mxu0 %v11863_v0  ;;  %10369 = vmatprep.subr.bf16.mxu1 %v11863_v0  ;;  %v11553_v39 = vld [vmem:[#allocation4 + $0xe0] sm:$0xff]  }
 0x270   :  { %10190 = vmatpush3.bf16.msra.mxu0 %v11497_v40  ;;  %10370 = vmatpush3.bf16.msra.mxu1 %v11498_v41  ;;  %v11554_v40 = vld [vmem:[#allocation4 + $0xe8] sm:$0xff]  }
 0x271   :  { %10191 = vmatprep.subr.bf16.mxu0 %v11863_v0  ;;  %10371 = vmatprep.subr.bf16.mxu1 %v11863_v0  ;;  %v11555_v41 = vld [vmem:[#allocation4 + $0xe8] sm:$0xff]  }
 0x274   :  { %10192 = vmatpush3.bf16.msra.mxu0 %v11499_v42  ;;  %10372 = vmatpush3.bf16.msra.mxu1 %v11500_v43  ;;  %v11556_v42 = vld [vmem:[#allocation4 + $0xf0] sm:$0xff]  }
 0x275   :  { %10193 = vmatprep.subr.bf16.mxu0 %v11863_v0  ;;  %10373 = vmatprep.subr.bf16.mxu1 %v11863_v0  ;;  %v11557_v43 = vld [vmem:[#allocation4 + $0xf0] sm:$0xff]  }
 0x278   :  { %10194 = vmatpush3.bf16.msra.mxu0 %v11501_v44  ;;  %10374 = vmatpush3.bf16.msra.mxu1 %v11502_v45  ;;  %v11558_v44 = vld [vmem:[#allocation4 + $0xf8] sm:$0xff]   ;;  %v11561_v45 = vld [vmem:[%s12883_s0 + $0x64] ss:$0 sps:$4 sm:$0xcc]  }
 0x279   :  { %10195 = vmatprep.subr.bf16.mxu0 %v11863_v0  ;;  %10375 = vmatprep.subr.bf16.mxu1 %v11863_v0 }
 0x27c   :  { %10196 = vmatpush3.bf16.msra.mxu0 %v11503_v46  ;;  %10376 = vmatpush3.bf16.msra.mxu1 %v11504_v47  ;;  %v11559_v46 = vld [vmem:[#allocation4 + $0xf8] sm:$0xff]   ;;  %v4286_v47 = vld [vmem:[%s12883_s0 + $0x60] sm:$0x3] }
 0x27d   :  { %10197 = vmatprep.subr.bf16.mxu0 %v11863_v0  ;;  %10377 = vmatprep.subr.bf16.mxu1 %v11863_v0 }
 0x280   :  { %10198 = vmatpush3.bf16.msra.mxu0 %v11505_v48  ;;  %10378 = vmatpush3.bf16.msra.mxu1 %v11506_v49  ;;  %v11560_v48 = vld [vmem:[#allocation4 + $0x100] sm:$0xff]   ;;  %v5279_v49 = vrot.slane %v11561_v45, 2 }
 0x281   :  { %10199 = vmatprep.subr.bf16.mxu0 %v11863_v0  ;;  %10379 = vmatprep.subr.bf16.mxu1 %v11863_v0 }
 0x284   :  { %10200 = vmatpush3.bf16.msra.mxu0 %v11507_v51  ;;  %10380 = vmatpush3.bf16.msra.mxu1 %v11508_v52  ;;  %v11563_v51 = vld [vmem:[#allocation4 + $0x108] sm:$0xff]  }
 0x285   :  { %10205 = vmatprep.subr.bf16.mxu0 %v11863_v0  ;;  %10385 = vmatprep.subr.bf16.mxu1 %v11863_v0  ;;  %v11564_v52 = vld [vmem:[#allocation4 + $0x108] sm:$0xff]  }
 0x287   :  { %10202 = vmatmul.mubr.bf16.vlgmr.msra.gmra.mrb[8].mxu0 %v4002_v53  ;;  %10382 = vmatmul.mubr.bf16.vlgmr.msra.gmra.mrb[8].mxu1 %v4950_v55  ;;  %v11565_v53 = vld [vmem:[#allocation4 + $0x110] sm:$0xff]   ;;  %v11567_v55 = vld [vmem:[#allocation4 + $0x118] sm:$0xff]  }
 0x288   :  { %10206 = vmatpush3.bf16.msra.mxu0 %v11510_v54  ;;  %10386 = vmatpush3.bf16.msra.mxu1 %v11511_v56  ;;  %v11566_v54 = vld [vmem:[#allocation4 + $0x110] sm:$0xff]   ;;  %v11568_v56 = vld [vmem:[#allocation4 + $0x118] sm:$0xff]  }
 0x289   :  { %10207 = vmatprep.subr.bf16.mxu0 %v11863_v0  ;;  %10387 = vmatprep.subr.bf16.mxu1 %v11863_v0 }
 0x28a   :  { %10221 = vmatprep.mubr.msk.bf16.mxu0 %vm11864_vm0, %v11863_v0  ;;  %10401 = vmatprep.mubr.msk.bf16.mxu1 %vm11864_vm0, %v11863_v0 }
 0x28c   :  { %10208 = vmatpush3.bf16.msra.mxu0 %v11512_v57  ;;  %10388 = vmatpush3.bf16.msra.mxu1 %v11513_v58  ;;  %v11569_v57 = vld [vmem:[#allocation4 + $0x120] sm:$0xff]  }
 0x28d   :  { %10209 = vmatprep.subr.bf16.mxu0 %v11863_v0  ;;  %10389 = vmatprep.subr.bf16.mxu1 %v11863_v0  ;;  %v11570_v58 = vld [vmem:[#allocation4 + $0x120] sm:$0xff]  }
 0x290   :  { %10210 = vmatpush3.bf16.msra.mxu0 %v11514_v59  ;;  %10390 = vmatpush3.bf16.msra.mxu1 %v11515_v60  ;;  %v11571_v59 = vld [vmem:[#allocation4 + $0x128] sm:$0xff]  }
 0x291   :  { %10211 = vmatprep.subr.bf16.mxu0 %v11863_v0  ;;  %10391 = vmatprep.subr.bf16.mxu1 %v11863_v0  ;;  %v11572_v60 = vld [vmem:[#allocation4 + $0x128] sm:$0xff]  }
 0x294   :  { %10212 = vmatpush3.bf16.msra.mxu0 %v11516_v61  ;;  %10392 = vmatpush3.bf16.msra.mxu1 %v11517_v62  ;;  %v11573_v61 = vld [vmem:[#allocation4 + $0x130] sm:$0xff]  }
 0x295   :  { %10213 = vmatprep.subr.bf16.mxu0 %v11863_v0  ;;  %10393 = vmatprep.subr.bf16.mxu1 %v11863_v0  ;;  %v11574_v62 = vld [vmem:[#allocation4 + $0x130] sm:$0xff]  }
 0x298   :  { %10214 = vmatpush3.bf16.msra.mxu0 %v11518_v63  ;;  %10394 = vmatpush3.bf16.msra.mxu1 %v11519_v1  ;;  %v11577_v63 = vld [vmem:[%s12883_s0 + $0x60] ss:$0 sps:$4 sm:$0xcc]   ;;  %v11575_v1 = vld [vmem:[#allocation4 + $0x138] sm:$0xff]  }
 0x299   :  { %10215 = vmatprep.subr.bf16.mxu0 %v11863_v0  ;;  %10395 = vmatprep.subr.bf16.mxu1 %v11863_v0 }
 0x29c   :  { %10216 = vmatpush3.bf16.msra.mxu0 %v11520_v2  ;;  %10396 = vmatpush3.bf16.msra.mxu1 %v11521_v3  ;;  %v11576_v2 = vld [vmem:[#allocation4 + $0x138] sm:$0xff]   ;;  %v4412_v3 = vrot.slane %v11577_v63, 2  ;;  %v11624_v63 = vld [vmem:[#allocation4 + $0x1f0] sm:$0xff]  }
 0x29d   :  { %10217 = vmatprep.subr.bf16.mxu0 %v11863_v0  ;;  %10397 = vmatprep.subr.bf16.mxu1 %v11863_v0 }
 0x2a0   :  { %10218 = vmatpush3.bf16.msra.mxu0 %v11522_v4  ;;  %10398 = vmatpush3.bf16.msra.mxu1 %v11523_v5  ;;  %v11578_v4 = vld [vmem:[#allocation4 + $0x140] sm:$0xff]   ;;  %v5370_v5 = vld [vmem:[%s12883_s0 + $0x68] sm:$0x3] }
 0x2a1   :  { %10219 = vmatprep.subr.bf16.mxu0 %v11863_v0  ;;  %10399 = vmatprep.subr.bf16.mxu1 %v11863_v0 }
 0x2a4   :  { %10220 = vmatpush3.bf16.msra.mxu0 %v11524_v6  ;;  %10400 = vmatpush3.bf16.msra.mxu1 %v11525_v8  ;;  %v11579_v6 = vld [vmem:[#allocation4 + $0x140] sm:$0xff]   ;;  %v11581_v8 = vld [vmem:[#allocation4 + $0x148] sm:$0xff]  }
 0x2a5   :  { %10225 = vmatprep.subr.bf16.mxu0 %v11863_v0  ;;  %10405 = vmatprep.subr.bf16.mxu1 %v11863_v0 }
 0x2a7   :  { %10222 = vmatmul.mubr.bf16.vlgmr.msra.gmra.mrb[8].mxu0 %v3965_v9  ;;  %10402 = vmatmul.mubr.bf16.vlgmr.msra.gmra.mrb[8].mxu1 %v5058_v11  ;;  %v11582_v9 = vld [vmem:[#allocation4 + $0x150] sm:$0xff]   ;;  %v11584_v11 = vld [vmem:[#allocation4 + $0x158] sm:$0xff]  }
 0x2a8   :  { %10226 = vmatpush3.bf16.msra.mxu0 %v11526_v10  ;;  %10406 = vmatpush3.bf16.msra.mxu1 %v11528_v12  ;;  %v11583_v10 = vld [vmem:[#allocation4 + $0x150] sm:$0xff]   ;;  %v11585_v12 = vld [vmem:[#allocation4 + $0x158] sm:$0xff]  }
 0x2a9   :  { %10227 = vmatprep.subr.bf16.mxu0 %v11863_v0  ;;  %10407 = vmatprep.subr.bf16.mxu1 %v11863_v0 }
 0x2aa   :  { %10241 = vmatprep.mubr.msk.bf16.mxu0 %vm11864_vm0, %v11863_v0  ;;  %10421 = vmatprep.mubr.msk.bf16.mxu1 %vm11864_vm0, %v11863_v0 }
 0x2ac   :  { %10228 = vmatpush3.bf16.msra.mxu0 %v11529_v13  ;;  %10408 = vmatpush3.bf16.msra.mxu1 %v11530_v14  ;;  %v11586_v13 = vld [vmem:[#allocation4 + $0x160] sm:$0xff]  }
 0x2ad   :  { %10229 = vmatprep.subr.bf16.mxu0 %v11863_v0  ;;  %10409 = vmatprep.subr.bf16.mxu1 %v11863_v0  ;;  %v11587_v14 = vld [vmem:[#allocation4 + $0x160] sm:$0xff]  }
 0x2b0   :  { %10230 = vmatpush3.bf16.msra.mxu0 %v11531_v15  ;;  %10410 = vmatpush3.bf16.msra.mxu1 %v11532_v16  ;;  %v11588_v15 = vld [vmem:[#allocation4 + $0x168] sm:$0xff]  }
 0x2b1   :  { %10231 = vmatprep.subr.bf16.mxu0 %v11863_v0  ;;  %10411 = vmatprep.subr.bf16.mxu1 %v11863_v0  ;;  %v11589_v16 = vld [vmem:[#allocation4 + $0x168] sm:$0xff]  }
 0x2b4   :  { %10232 = vmatpush3.bf16.msra.mxu0 %v11533_v17  ;;  %10412 = vmatpush3.bf16.msra.mxu1 %v11534_v18  ;;  %v11590_v17 = vld [vmem:[#allocation4 + $0x170] sm:$0xff]  }
 0x2b5   :  { %10233 = vmatprep.subr.bf16.mxu0 %v11863_v0  ;;  %10413 = vmatprep.subr.bf16.mxu1 %v11863_v0  ;;  %v11591_v18 = vld [vmem:[#allocation4 + $0x170] sm:$0xff]  }
 0x2b8   :  { %10234 = vmatpush3.bf16.msra.mxu0 %v11535_v19  ;;  %10414 = vmatpush3.bf16.msra.mxu1 %v11536_v20  ;;  %v11592_v19 = vld [vmem:[#allocation4 + $0x178] sm:$0xff]   ;;  %v11595_v20 = vld [vmem:[%s12883_s0 + $0x68] ss:$0 sps:$4 sm:$0xcc]  }
 0x2b9   :  { %10235 = vmatprep.subr.bf16.mxu0 %v11863_v0  ;;  %10415 = vmatprep.subr.bf16.mxu1 %v11863_v0 }
 0x2bc   :  { %10236 = vmatpush3.bf16.msra.mxu0 %v11537_v21  ;;  %10416 = vmatpush3.bf16.msra.mxu1 %v11538_v22  ;;  %v11593_v21 = vld [vmem:[#allocation4 + $0x178] sm:$0xff]   ;;  %v4503_v22 = vld [vmem:[%s12883_s0 + $0x64] sm:$0x3] }
 0x2bd   :  { %10237 = vmatprep.subr.bf16.mxu0 %v11863_v0  ;;  %10417 = vmatprep.subr.bf16.mxu1 %v11863_v0 }
 0x2c0   :  { %10238 = vmatpush3.bf16.msra.mxu0 %v11539_v23  ;;  %10418 = vmatpush3.bf16.msra.mxu1 %v11540_v24  ;;  %v11594_v23 = vld [vmem:[#allocation4 + $0x180] sm:$0xff]   ;;  %v5496_v24 = vrot.slane %v11595_v20, 2  ;;  %v11642_v20 = vld [vmem:[#allocation4 + $0x230] sm:$0xff]  }
 0x2c1   :  { %10239 = vmatprep.subr.bf16.mxu0 %v11863_v0  ;;  %10419 = vmatprep.subr.bf16.mxu1 %v11863_v0 }
 0x2c4   :  { %10240 = vmatpush3.bf16.msra.mxu0 %v11541_v25  ;;  %10420 = vmatpush3.bf16.msra.mxu1 %v11542_v27  ;;  %v11596_v25 = vld [vmem:[#allocation4 + $0x180] sm:$0xff]   ;;  %v11598_v27 = vld [vmem:[#allocation4 + $0x188] sm:$0xff]  }
 0x2c5   :  { %10245 = vmatprep.subr.bf16.mxu0 %v11863_v0  ;;  %10425 = vmatprep.subr.bf16.mxu1 %v11863_v0 }
 0x2c7   :  { %10242 = vmatmul.mubr.bf16.vlgmr.msra.gmra.mrb[8].mxu0 %v4180_v28  ;;  %10422 = vmatmul.mubr.bf16.vlgmr.msra.gmra.mrb[8].mxu1 %v5168_v30  ;;  %v11599_v28 = vld [vmem:[#allocation4 + $0x190] sm:$0xff]   ;;  %v11601_v30 = vld [vmem:[#allocation4 + $0x198] sm:$0xff]  }
 0x2c8   :  { %10246 = vmatpush3.bf16.msra.mxu0 %v11543_v29  ;;  %10426 = vmatpush3.bf16.msra.mxu1 %v11545_v31  ;;  %v11600_v29 = vld [vmem:[#allocation4 + $0x190] sm:$0xff]   ;;  %v11602_v31 = vld [vmem:[#allocation4 + $0x198] sm:$0xff]  }
 0x2c9   :  { %10247 = vmatprep.subr.bf16.mxu0 %v11863_v0  ;;  %10427 = vmatprep.subr.bf16.mxu1 %v11863_v0 }
 0x2ca   :  { %10261 = vmatprep.mubr.msk.bf16.mxu0 %vm11864_vm0, %v11863_v0  ;;  %10441 = vmatprep.mubr.msk.bf16.mxu1 %vm11864_vm0, %v11863_v0 }
 0x2cc   :  { %10248 = vmatpush3.bf16.msra.mxu0 %v11546_v32  ;;  %10428 = vmatpush3.bf16.msra.mxu1 %v11547_v33  ;;  %v11603_v32 = vld [vmem:[#allocation4 + $0x1a0] sm:$0xff]  }
 0x2cd   :  { %10249 = vmatprep.subr.bf16.mxu0 %v11863_v0  ;;  %10429 = vmatprep.subr.bf16.mxu1 %v11863_v0  ;;  %v11604_v33 = vld [vmem:[#allocation4 + $0x1a0] sm:$0xff]  }
 0x2d0   :  { %10250 = vmatpush3.bf16.msra.mxu0 %v11548_v34  ;;  %10430 = vmatpush3.bf16.msra.mxu1 %v11549_v35  ;;  %v11605_v34 = vld [vmem:[#allocation4 + $0x1a8] sm:$0xff]  }
 0x2d1   :  { %10251 = vmatprep.subr.bf16.mxu0 %v11863_v0  ;;  %10431 = vmatprep.subr.bf16.mxu1 %v11863_v0  ;;  %v11606_v35 = vld [vmem:[#allocation4 + $0x1a8] sm:$0xff]  }
 0x2d4   :  { %10252 = vmatpush3.bf16.msra.mxu0 %v11550_v36  ;;  %10432 = vmatpush3.bf16.msra.mxu1 %v11551_v37 }
 0x2d5   :  { %10253 = vmatprep.subr.bf16.mxu0 %v11863_v0  ;;  %10433 = vmatprep.subr.bf16.mxu1 %v11863_v0 }
 0x2d8   :  { %10254 = vmatpush3.bf16.msra.mxu0 %v11552_v38  ;;  %10434 = vmatpush3.bf16.msra.mxu1 %v11553_v39 }
 0x2d9   :  { %10255 = vmatprep.subr.bf16.mxu0 %v11863_v0  ;;  %10435 = vmatprep.subr.bf16.mxu1 %v11863_v0 }
 0x2dc   :  { %10256 = vmatpush3.bf16.msra.mxu0 %v11554_v40  ;;  %10436 = vmatpush3.bf16.msra.mxu1 %v11555_v41  ;;  %v11607_v41 = vld [vmem:[#allocation4 + $0x1b0] sm:$0xff]  }
 0x2dd   :  { %10257 = vmatprep.subr.bf16.mxu0 %v11863_v0  ;;  %10437 = vmatprep.subr.bf16.mxu1 %v11863_v0 }
 0x2e0   :  { %10258 = vmatpush3.bf16.msra.mxu0 %v11556_v42  ;;  %10438 = vmatpush3.bf16.msra.mxu1 %v11557_v43 }
 0x2e1   :  { %10259 = vmatprep.subr.bf16.mxu0 %v11863_v0  ;;  %10439 = vmatprep.subr.bf16.mxu1 %v11863_v0 }
 0x2e4   :  { %10260 = vmatpush3.bf16.msra.mxu0 %v11558_v44  ;;  %10440 = vmatpush3.bf16.msra.mxu1 %v11559_v46  ;;  %v11608_v44 = vld [vmem:[#allocation4 + $0x1b0] sm:$0xff]   ;;  %v11609_v46 = vld [vmem:[#allocation4 + $0x1b8] sm:$0xff]  }
 0x2e5   :  { %10265 = vmatprep.subr.bf16.mxu0 %v11863_v0  ;;  %10445 = vmatprep.subr.bf16.mxu1 %v11863_v0 }
 0x2e7   :  { %10262 = vmatmul.mubr.bf16.vlgmr.msra.gmra.mrb[8].mxu0 %v4286_v47  ;;  %10442 = vmatmul.mubr.bf16.vlgmr.msra.gmra.mrb[8].mxu1 %v5279_v49  ;;  %v11612_v47 = vld [vmem:[%s12883_s0 + $0x7c] ss:$0 sps:$4 sm:$0xcc]   ;;  %v4609_v49 = vld [vmem:[%s12883_s0 + $0x78] sm:$0x3] }
 0x2e8   :  { %10266 = vmatpush3.bf16.msra.mxu0 %v11560_v48  ;;  %10446 = vmatpush3.bf16.msra.mxu1 %v11562_v50  ;;  %v11610_v48 = vld [vmem:[#allocation4 + $0x1b8] sm:$0xff]   ;;  %v11611_v50 = vld [vmem:[#allocation4 + $0x1c0] sm:$0xff]  }
 0x2e9   :  { %10267 = vmatprep.subr.bf16.mxu0 %v11863_v0  ;;  %10447 = vmatprep.subr.bf16.mxu1 %v11863_v0 }
 0x2ea   :  { %10281 = vmatprep.mubr.msk.bf16.mxu0 %vm11864_vm0, %v11863_v0  ;;  %10461 = vmatprep.mubr.msk.bf16.mxu1 %vm11864_vm0, %v11863_v0 }
 0x2ec   :  { %10268 = vmatpush3.bf16.msra.mxu0 %v11563_v51  ;;  %10448 = vmatpush3.bf16.msra.mxu1 %v11564_v52  ;;  %v5607_v51 = vrot.slane %v11612_v47, 2  ;;  %v11613_v52 = vld [vmem:[#allocation4 + $0x1c0] sm:$0xff]   ;;  %v11665_v47 = vld [vmem:[#allocation4 + $0x8] sm:$0xff]  }
 0x2ed   :  { %10269 = vmatprep.subr.bf16.mxu0 %v11863_v0  ;;  %10449 = vmatprep.subr.bf16.mxu1 %v11863_v0 }
 0x2f0   :  { %10270 = vmatpush3.bf16.msra.mxu0 %v11565_v53  ;;  %10450 = vmatpush3.bf16.msra.mxu1 %v11566_v54  ;;  %v11614_v53 = vld [vmem:[#allocation4 + $0x1c8] sm:$0xff]  }
 0x2f1   :  { %10271 = vmatprep.subr.bf16.mxu0 %v11863_v0  ;;  %10451 = vmatprep.subr.bf16.mxu1 %v11863_v0  ;;  %v11615_v54 = vld [vmem:[#allocation4 + $0x1c8] sm:$0xff]  }
 0x2f4   :  { %10272 = vmatpush3.bf16.msra.mxu0 %v11567_v55  ;;  %10452 = vmatpush3.bf16.msra.mxu1 %v11568_v56  ;;  %v11616_v55 = vld [vmem:[#allocation4 + $0x1d0] sm:$0xff]  }
 0x2f5   :  { %10273 = vmatprep.subr.bf16.mxu0 %v11863_v0  ;;  %10453 = vmatprep.subr.bf16.mxu1 %v11863_v0  ;;  %v11617_v56 = vld [vmem:[#allocation4 + $0x1d0] sm:$0xff]  }
 0x2f8   :  { %10274 = vmatpush3.bf16.msra.mxu0 %v11569_v57  ;;  %10454 = vmatpush3.bf16.msra.mxu1 %v11570_v58  ;;  %v11618_v57 = vld [vmem:[#allocation4 + $0x1d8] sm:$0xff]  }
 0x2f9   :  { %10275 = vmatprep.subr.bf16.mxu0 %v11863_v0  ;;  %10455 = vmatprep.subr.bf16.mxu1 %v11863_v0  ;;  %v11619_v58 = vld [vmem:[#allocation4 + $0x1d8] sm:$0xff]  }
 0x2fc   :  { %10276 = vmatpush3.bf16.msra.mxu0 %v11571_v59  ;;  %10456 = vmatpush3.bf16.msra.mxu1 %v11572_v60  ;;  %v11620_v59 = vld [vmem:[#allocation4 + $0x1e0] sm:$0xff]  }
 0x2fd   :  { %10277 = vmatprep.subr.bf16.mxu0 %v11863_v0  ;;  %10457 = vmatprep.subr.bf16.mxu1 %v11863_v0  ;;  %v11621_v60 = vld [vmem:[#allocation4 + $0x1e0] sm:$0xff]  }
 0x300   :  { %10278 = vmatpush3.bf16.msra.mxu0 %v11573_v61  ;;  %10458 = vmatpush3.bf16.msra.mxu1 %v11574_v62  ;;  %v11622_v61 = vld [vmem:[#allocation4 + $0x1e8] sm:$0xff]  }
 0x301   :  { %10279 = vmatprep.subr.bf16.mxu0 %v11863_v0  ;;  %10459 = vmatprep.subr.bf16.mxu1 %v11863_v0  ;;  %v11623_v62 = vld [vmem:[#allocation4 + $0x1e8] sm:$0xff]  }
 0x304   :  { %10280 = vmatpush3.bf16.msra.mxu0 %v11575_v1  ;;  %10460 = vmatpush3.bf16.msra.mxu1 %v11576_v2  ;;  %v11625_v1 = vld [vmem:[#allocation4 + $0x1f0] sm:$0xff]   ;;  %v11628_v2 = vld [vmem:[%s12883_s0 + $0x78] ss:$0 sps:$4 sm:$0xcc]  }
 0x305   :  { %10285 = vmatprep.subr.bf16.mxu0 %v11863_v0  ;;  %10465 = vmatprep.subr.bf16.mxu1 %v11863_v0 }
 0x307   :  { %10282 = vmatmul.mubr.bf16.vlgmr.msra.gmra.mrb[8].mxu0 %v4412_v3  ;;  %10462 = vmatmul.mubr.bf16.vlgmr.msra.gmra.mrb[8].mxu1 %v5370_v5  ;;  %v11626_v3 = vld [vmem:[#allocation4 + $0x1f8] sm:$0xff]   ;;  %v4735_v5 = vrot.slane %v11628_v2, 2  ;;  %v11681_v2 = vld [vmem:[#allocation4 + $0x80] sm:$0xff]  }
 0x308   :  { %10286 = vmatpush3.bf16.msra.mxu0 %v11578_v4  ;;  %10466 = vmatpush3.bf16.msra.mxu1 %v11579_v6  ;;  %v11627_v4 = vld [vmem:[#allocation4 + $0x1f8] sm:$0xff]   ;;  %v11629_v6 = vld [vmem:[#allocation4 + $0x200] sm:$0xff]  }
 0x309   :  { %10287 = vmatprep.subr.bf16.mxu0 %v11863_v0  ;;  %10467 = vmatprep.subr.bf16.mxu1 %v11863_v0 }
 0x30a   :  { %10301 = vmatprep.mubr.msk.bf16.mxu0 %vm11864_vm0, %v11863_v0  ;;  %10481 = vmatprep.mubr.msk.bf16.mxu1 %vm11864_vm0, %v11863_v0 }
 0x30c   :  { %10288 = vmatpush3.bf16.msra.mxu0 %v11580_v7  ;;  %10468 = vmatpush3.bf16.msra.mxu1 %v11581_v8  ;;  %v5698_v7 = vld [vmem:[%s12883_s0 + $0x80] sm:$0x3] }
 0x30d   :  { %10289 = vmatprep.subr.bf16.mxu0 %v11863_v0  ;;  %10469 = vmatprep.subr.bf16.mxu1 %v11863_v0  ;;  %v11630_v8 = vld [vmem:[#allocation4 + $0x200] sm:$0xff]  }
 0x310   :  { %10290 = vmatpush3.bf16.msra.mxu0 %v11582_v9  ;;  %10470 = vmatpush3.bf16.msra.mxu1 %v11583_v10  ;;  %v11631_v9 = vld [vmem:[#allocation4 + $0x208] sm:$0xff]  }
 0x311   :  { %10291 = vmatprep.subr.bf16.mxu0 %v11863_v0  ;;  %10471 = vmatprep.subr.bf16.mxu1 %v11863_v0  ;;  %v11632_v10 = vld [vmem:[#allocation4 + $0x208] sm:$0xff]  }
 0x314   :  { %10292 = vmatpush3.bf16.msra.mxu0 %v11584_v11  ;;  %10472 = vmatpush3.bf16.msra.mxu1 %v11585_v12  ;;  %v11633_v11 = vld [vmem:[#allocation4 + $0x210] sm:$0xff]  }
 0x315   :  { %10293 = vmatprep.subr.bf16.mxu0 %v11863_v0  ;;  %10473 = vmatprep.subr.bf16.mxu1 %v11863_v0  ;;  %v11634_v12 = vld [vmem:[#allocation4 + $0x210] sm:$0xff]  }
 0x318   :  { %10294 = vmatpush3.bf16.msra.mxu0 %v11586_v13  ;;  %10474 = vmatpush3.bf16.msra.mxu1 %v11587_v14  ;;  %v11635_v13 = vld [vmem:[#allocation4 + $0x218] sm:$0xff]  }
 0x319   :  { %10295 = vmatprep.subr.bf16.mxu0 %v11863_v0  ;;  %10475 = vmatprep.subr.bf16.mxu1 %v11863_v0  ;;  %v11636_v14 = vld [vmem:[#allocation4 + $0x218] sm:$0xff]  }
 0x31c   :  { %10296 = vmatpush3.bf16.msra.mxu0 %v11588_v15  ;;  %10476 = vmatpush3.bf16.msra.mxu1 %v11589_v16  ;;  %v11637_v15 = vld [vmem:[#allocation4 + $0x220] sm:$0xff]  }
 0x31d   :  { %10297 = vmatprep.subr.bf16.mxu0 %v11863_v0  ;;  %10477 = vmatprep.subr.bf16.mxu1 %v11863_v0  ;;  %v11638_v16 = vld [vmem:[#allocation4 + $0x220] sm:$0xff]  }
 0x320   :  { %10298 = vmatpush3.bf16.msra.mxu0 %v11590_v17  ;;  %10478 = vmatpush3.bf16.msra.mxu1 %v11591_v18  ;;  %v11639_v17 = vld [vmem:[#allocation4 + $0x228] sm:$0xff]  }
 0x321   :  { %10299 = vmatprep.subr.bf16.mxu0 %v11863_v0  ;;  %10479 = vmatprep.subr.bf16.mxu1 %v11863_v0  ;;  %v11640_v18 = vld [vmem:[#allocation4 + $0x228] sm:$0xff]  }
 0x324   :  { %10300 = vmatpush3.bf16.msra.mxu0 %v11592_v19  ;;  %10480 = vmatpush3.bf16.msra.mxu1 %v11593_v21  ;;  %v11641_v19 = vld [vmem:[#allocation4 + $0x230] sm:$0xff]   ;;  %v11643_v21 = vld [vmem:[#allocation4 + $0x238] sm:$0xff]  }
 0x325   :  { %10305 = vmatprep.subr.bf16.mxu0 %v11863_v0  ;;  %10485 = vmatprep.subr.bf16.mxu1 %v11863_v0 }
 0x327   :  { %10302 = vmatmul.mubr.bf16.vlgmr.msra.gmra.mrb[8].mxu0 %v4503_v22  ;;  %10482 = vmatmul.mubr.bf16.vlgmr.msra.gmra.mrb[8].mxu1 %v5496_v24  ;;  %v11645_v22 = vld [vmem:[%s12883_s0 + $0x80] ss:$0 sps:$4 sm:$0xcc]   ;;  %v4826_v24 = vld [vmem:[%s12883_s0 + $0x7c] sm:$0x3] }
 0x328   :  { %10306 = vmatpush3.bf16.msra.mxu0 %v11594_v23  ;;  %10486 = vmatpush3.bf16.msra.mxu1 %v11596_v25  ;;  %v11644_v23 = vld [vmem:[#allocation4 + $0x238] sm:$0xff]   ;;  %v5824_v25 = vrot.slane %v11645_v22, 2  ;;  %v11699_v22 = vld [vmem:[#allocation4 + $0xc8] sm:$0xff]  }
 0x329   :  { %10307 = vmatprep.subr.bf16.mxu0 %v11863_v0  ;;  %10487 = vmatprep.subr.bf16.mxu1 %v11863_v0 }
 0x32a   :  { %10321 = vmatprep.mubr.msk.bf16.mxu0 %vm11864_vm0, %v11863_v0  ;;  %10501 = vmatprep.mubr.msk.bf16.mxu1 %vm11864_vm0, %v11863_v0 }
 0x32c   :  { %10308 = vmatpush3.bf16.msra.mxu0 %v11597_v26  ;;  %10488 = vmatpush3.bf16.msra.mxu1 %v11598_v27  ;;  %v11646_v26 = vld [vmem:[#allocation4 + $0x40] sm:$0xff]  }
 0x32d   :  { %10309 = vmatprep.subr.bf16.mxu0 %v11863_v0  ;;  %10489 = vmatprep.subr.bf16.mxu1 %v11863_v0  ;;  %v11647_v27 = vld [vmem:[#allocation4 + $0x40] sm:$0xff]  }
 0x330   :  { %10310 = vmatpush3.bf16.msra.mxu0 %v11599_v28  ;;  %10490 = vmatpush3.bf16.msra.mxu1 %v11600_v29  ;;  %v11648_v28 = vld [vmem:[#allocation4 + $0x48] sm:$0xff]  }
 0x331   :  { %10311 = vmatprep.subr.bf16.mxu0 %v11863_v0  ;;  %10491 = vmatprep.subr.bf16.mxu1 %v11863_v0  ;;  %v11649_v29 = vld [vmem:[#allocation4 + $0x48] sm:$0xff]  }
 0x334   :  { %10312 = vmatpush3.bf16.msra.mxu0 %v11601_v30  ;;  %10492 = vmatpush3.bf16.msra.mxu1 %v11602_v31  ;;  %v11650_v30 = vld [vmem:[#allocation4 + $0x50] sm:$0xff]  }
 0x335   :  { %10313 = vmatprep.subr.bf16.mxu0 %v11863_v0  ;;  %10493 = vmatprep.subr.bf16.mxu1 %v11863_v0  ;;  %v11651_v31 = vld [vmem:[#allocation4 + $0x50] sm:$0xff]  }
 0x338   :  { %10314 = vmatpush3.bf16.msra.mxu0 %v11603_v32  ;;  %10494 = vmatpush3.bf16.msra.mxu1 %v11604_v33  ;;  %v11652_v32 = vld [vmem:[#allocation4 + $0x58] sm:$0xff]  }
 0x339   :  { %10315 = vmatprep.subr.bf16.mxu0 %v11863_v0  ;;  %10495 = vmatprep.subr.bf16.mxu1 %v11863_v0  ;;  %v11653_v33 = vld [vmem:[#allocation4 + $0x58] sm:$0xff]  }
 0x33a   :  { %v2974_v36 = vpop.f32.mrb[4].mxu0  ;;  %v3957_v37 = vpop.f32.mrb[4].mxu1 }
 0x33b   :  { %2981 = vst [vmem:[#allocation2 + $0x8] sm:$0xf] %v2974_v36  ;;  %v10003_v38 = vpop.f32.mrb[5].mxu0  ;;  %3964 = vst [vmem:[#allocation2 + $0xc] sm:$0xf] %v3957_v37  ;;  %v10183_v39 = vpop.f32.mrb[5].mxu1 }
 0x33c   :  { %v2977_v40 = vpop.f32.mrb[6].mxu0  ;;  %10316 = vmatpush3.bf16.msra.mxu0 %v11605_v34  ;;  %v3960_v42 = vpop.f32.mrb[6].mxu1  ;;  %10496 = vmatpush3.bf16.msra.mxu1 %v11606_v35  ;;  %v11654_v34 = vld [vmem:[#allocation4 + $0x60] sm:$0xff]   ;;  %v11656_v36 = vld [vmem:[#allocation4 + $0x68] sm:$0xff]   ;;  %v11658_v38 = vld [vmem:[#allocation4 + $0x70] sm:$0xff]  }
 0x33d   :  { %v10004_v43 = vpop.f32.mrb[7].mxu0  ;;  %10317 = vmatprep.subr.bf16.mxu0 %v11863_v0  ;;  %v10184_v45 = vpop.f32.mrb[7].mxu1  ;;  %10497 = vmatprep.subr.bf16.mxu1 %v11863_v0  ;;  %v11655_v35 = vld [vmem:[#allocation4 + $0x60] sm:$0xff]   ;;  %v11657_v37 = vld [vmem:[#allocation4 + $0x68] sm:$0xff]   ;;  %v11659_v39 = vld [vmem:[#allocation4 + $0x70] sm:$0xff]  }
 0x33e   :  { %v11662_v40 = vld [vmem:[%s12883_s0 + $0x54] ss:$0 sps:$4 sm:$0xcc]   ;;  %v11661_v42 = vld [vmem:[#allocation4 + $0x78] sm:$0xff]  }
 0x33f   :  { %v5953_v43 = vrot.slane %v11662_v40, 2  ;;  %v6901_v45 = vld [vmem:[%s12883_s0 + $0x5c] sm:$0x3]  ;;  %v11715_v40 = vld [vmem:[#allocation4 + $0x100] sm:$0xff]  }
 0x340   :  { %10318 = vmatpush3.bf16.msra.mxu0 %v11607_v41  ;;  %10498 = vmatpush3.bf16.msra.mxu1 %v11608_v44  ;;  %v11660_v41 = vld [vmem:[#allocation4 + $0x78] sm:$0xff]   ;;  %v11663_v44 = vld [vmem:[#allocation4] sm:$0xff]  }
 0x341   :  { %10319 = vmatprep.subr.bf16.mxu0 %v11863_v0  ;;  %10499 = vmatprep.subr.bf16.mxu1 %v11863_v0 }
 0x344   :  { %10320 = vmatpush3.bf16.msra.mxu0 %v11609_v46  ;;  %10500 = vmatpush3.bf16.msra.mxu1 %v11610_v48  ;;  %v11664_v46 = vld [vmem:[#allocation4] sm:$0xff]   ;;  %v11666_v48 = vld [vmem:[#allocation4 + $0x8] sm:$0xff]  }
 0x345   :  { %10325 = vmatprep.subr.bf16.mxu0 %v11863_v0  ;;  %10505 = vmatprep.subr.bf16.mxu1 %v11863_v0 }
 0x347   :  { %10322 = vmatmul.mubr.bf16.vlgmr.msra.gmra.mrb[8].mxu0 %v4609_v49  ;;  %10502 = vmatmul.mubr.bf16.vlgmr.msra.gmra.mrb[8].mxu1 %v5607_v51  ;;  %v11667_v49 = vld [vmem:[#allocation4 + $0x10] sm:$0xff]   ;;  %v11669_v51 = vld [vmem:[#allocation4 + $0x18] sm:$0xff]  }
 0x348   :  { %10326 = vmatpush3.bf16.msra.mxu0 %v11611_v50  ;;  %10506 = vmatpush3.bf16.msra.mxu1 %v11613_v52  ;;  %v11668_v50 = vld [vmem:[#allocation4 + $0x10] sm:$0xff]   ;;  %v11670_v52 = vld [vmem:[#allocation4 + $0x18] sm:$0xff]  }
 0x349   :  { %10327 = vmatprep.subr.bf16.mxu0 %v11863_v0  ;;  %10507 = vmatprep.subr.bf16.mxu1 %v11863_v0 }
 0x34a   :  { %10341 = vmatprep.mubr.msk.bf16.mxu0 %vm11864_vm0, %v11863_v0  ;;  %10521 = vmatprep.mubr.msk.bf16.mxu1 %vm11864_vm0, %v11863_v0 }
 0x34c   :  { %10328 = vmatpush3.bf16.msra.mxu0 %v11614_v53  ;;  %10508 = vmatpush3.bf16.msra.mxu1 %v11615_v54  ;;  %v11671_v53 = vld [vmem:[#allocation4 + $0x20] sm:$0xff]  }
 0x34d   :  { %10329 = vmatprep.subr.bf16.mxu0 %v11863_v0  ;;  %10509 = vmatprep.subr.bf16.mxu1 %v11863_v0  ;;  %v11672_v54 = vld [vmem:[#allocation4 + $0x20] sm:$0xff]  }
 0x350   :  { %10330 = vmatpush3.bf16.msra.mxu0 %v11616_v55  ;;  %10510 = vmatpush3.bf16.msra.mxu1 %v11617_v56  ;;  %v11673_v55 = vld [vmem:[#allocation4 + $0x28] sm:$0xff]  }
 0x351   :  { %10331 = vmatprep.subr.bf16.mxu0 %v11863_v0  ;;  %10511 = vmatprep.subr.bf16.mxu1 %v11863_v0  ;;  %v11674_v56 = vld [vmem:[#allocation4 + $0x28] sm:$0xff]  }
 0x354   :  { %10332 = vmatpush3.bf16.msra.mxu0 %v11618_v57  ;;  %10512 = vmatpush3.bf16.msra.mxu1 %v11619_v58  ;;  %v11675_v57 = vld [vmem:[#allocation4 + $0x30] sm:$0xff]  }
 0x355   :  { %10333 = vmatprep.subr.bf16.mxu0 %v11863_v0  ;;  %10513 = vmatprep.subr.bf16.mxu1 %v11863_v0  ;;  %v11676_v58 = vld [vmem:[#allocation4 + $0x30] sm:$0xff]  }
 0x358   :  { %10334 = vmatpush3.bf16.msra.mxu0 %v11620_v59  ;;  %10514 = vmatpush3.bf16.msra.mxu1 %v11621_v60  ;;  %v11677_v59 = vld [vmem:[#allocation4 + $0x38] sm:$0xff]  }
 0x359   :  { %10335 = vmatprep.subr.bf16.mxu0 %v11863_v0  ;;  %10515 = vmatprep.subr.bf16.mxu1 %v11863_v0  ;;  %v11680_v60 = vld [vmem:[%s12883_s0 + $0x58] ss:$0 sps:$4 sm:$0xcc]  }
 0x35c   :  { %10336 = vmatpush3.bf16.msra.mxu0 %v11622_v61  ;;  %10516 = vmatpush3.bf16.msra.mxu1 %v11623_v62  ;;  %v11678_v61 = vld [vmem:[#allocation4 + $0x38] sm:$0xff]   ;;  %v5916_v62 = vld [vmem:[%s12883_s0 + $0x54] sm:$0x3] }
 0x35d   :  { %10337 = vmatprep.subr.bf16.mxu0 %v11863_v0  ;;  %10517 = vmatprep.subr.bf16.mxu1 %v11863_v0 }
 0x360   :  { %10338 = vmatpush3.bf16.msra.mxu0 %v11624_v63  ;;  %10518 = vmatpush3.bf16.msra.mxu1 %v11625_v1  ;;  %v11679_v63 = vld [vmem:[#allocation4 + $0x80] sm:$0xff]   ;;  %v7009_v1 = vrot.slane %v11680_v60, 2  ;;  %v11733_v60 = vld [vmem:[#allocation4 + $0x148] sm:$0xff]  }
 0x361   :  { %10339 = vmatprep.subr.bf16.mxu0 %v11863_v0  ;;  %10519 = vmatprep.subr.bf16.mxu1 %v11863_v0 }
 0x364   :  { %10340 = vmatpush3.bf16.msra.mxu0 %v11626_v3  ;;  %10520 = vmatpush3.bf16.msra.mxu1 %v11627_v4  ;;  %v11682_v3 = vld [vmem:[#allocation4 + $0x88] sm:$0xff]  }
 0x365   :  { %10345 = vmatprep.subr.bf16.mxu0 %v11863_v0  ;;  %10525 = vmatprep.subr.bf16.mxu1 %v11863_v0  ;;  %v11683_v4 = vld [vmem:[#allocation4 + $0x88] sm:$0xff]  }
 0x367   :  { %10342 = vmatmul.mubr.bf16.vlgmr.msra.gmra.mrb[8].mxu0 %v4735_v5  ;;  %10522 = vmatmul.mubr.bf16.vlgmr.msra.gmra.mrb[8].mxu1 %v5698_v7  ;;  %v11684_v5 = vld [vmem:[#allocation4 + $0x90] sm:$0xff]   ;;  %v11686_v7 = vld [vmem:[#allocation4 + $0x98] sm:$0xff]  }
 0x368   :  { %10346 = vmatpush3.bf16.msra.mxu0 %v11629_v6  ;;  %10526 = vmatpush3.bf16.msra.mxu1 %v11630_v8  ;;  %v11685_v6 = vld [vmem:[#allocation4 + $0x90] sm:$0xff]   ;;  %v11687_v8 = vld [vmem:[#allocation4 + $0x98] sm:$0xff]  }
 0x369   :  { %10347 = vmatprep.subr.bf16.mxu0 %v11863_v0  ;;  %10527 = vmatprep.subr.bf16.mxu1 %v11863_v0 }
 0x36a   :  { %10361 = vmatprep.mubr.msk.bf16.mxu0 %vm11864_vm0, %v11863_v0  ;;  %10541 = vmatprep.mubr.msk.bf16.mxu1 %vm11864_vm0, %v11863_v0 }
 0x36c   :  { %10348 = vmatpush3.bf16.msra.mxu0 %v11631_v9  ;;  %10528 = vmatpush3.bf16.msra.mxu1 %v11632_v10  ;;  %v11688_v9 = vld [vmem:[#allocation4 + $0xa0] sm:$0xff]  }
 0x36d   :  { %10349 = vmatprep.subr.bf16.mxu0 %v11863_v0  ;;  %10529 = vmatprep.subr.bf16.mxu1 %v11863_v0  ;;  %v11689_v10 = vld [vmem:[#allocation4 + $0xa0] sm:$0xff]  }
 0x370   :  { %10350 = vmatpush3.bf16.msra.mxu0 %v11633_v11  ;;  %10530 = vmatpush3.bf16.msra.mxu1 %v11634_v12  ;;  %v11690_v11 = vld [vmem:[#allocation4 + $0xa8] sm:$0xff]  }
 0x371   :  { %10351 = vmatprep.subr.bf16.mxu0 %v11863_v0  ;;  %10531 = vmatprep.subr.bf16.mxu1 %v11863_v0  ;;  %v11691_v12 = vld [vmem:[#allocation4 + $0xa8] sm:$0xff]  }
 0x374   :  { %10352 = vmatpush3.bf16.msra.mxu0 %v11635_v13  ;;  %10532 = vmatpush3.bf16.msra.mxu1 %v11636_v14  ;;  %v11692_v13 = vld [vmem:[#allocation4 + $0xb0] sm:$0xff]  }
 0x375   :  { %10353 = vmatprep.subr.bf16.mxu0 %v11863_v0  ;;  %10533 = vmatprep.subr.bf16.mxu1 %v11863_v0  ;;  %v11693_v14 = vld [vmem:[#allocation4 + $0xb0] sm:$0xff]  }
 0x378   :  { %10354 = vmatpush3.bf16.msra.mxu0 %v11637_v15  ;;  %10534 = vmatpush3.bf16.msra.mxu1 %v11638_v16  ;;  %v11694_v15 = vld [vmem:[#allocation4 + $0xb8] sm:$0xff]  }
 0x379   :  { %10355 = vmatprep.subr.bf16.mxu0 %v11863_v0  ;;  %10535 = vmatprep.subr.bf16.mxu1 %v11863_v0  ;;  %v11697_v16 = vld [vmem:[%s12883_s0 + $0x5c] ss:$0 sps:$4 sm:$0xcc]  }
 0x37c   :  { %10356 = vmatpush3.bf16.msra.mxu0 %v11639_v17  ;;  %10536 = vmatpush3.bf16.msra.mxu1 %v11640_v18  ;;  %v11695_v17 = vld [vmem:[#allocation4 + $0xb8] sm:$0xff]  }
 0x37d   :  { %10357 = vmatprep.subr.bf16.mxu0 %v11863_v0  ;;  %10537 = vmatprep.subr.bf16.mxu1 %v11863_v0  ;;  %v6131_v18 = vld [vmem:[%s12883_s0 + $0x58] sm:$0x3] }
 0x380   :  { %10358 = vmatpush3.bf16.msra.mxu0 %v11641_v19  ;;  %10538 = vmatpush3.bf16.msra.mxu1 %v11642_v20  ;;  %v11696_v19 = vld [vmem:[#allocation4 + $0xc0] sm:$0xff]   ;;  %v7119_v20 = vrot.slane %v11697_v16, 2  ;;  %v11750_v16 = vld [vmem:[#allocation4 + $0x188] sm:$0xff]  }
 0x381   :  { %10359 = vmatprep.subr.bf16.mxu0 %v11863_v0  ;;  %10539 = vmatprep.subr.bf16.mxu1 %v11863_v0 }
 0x384   :  { %10360 = vmatpush3.bf16.msra.mxu0 %v11643_v21  ;;  %10540 = vmatpush3.bf16.msra.mxu1 %v11644_v23  ;;  %v11698_v21 = vld [vmem:[#allocation4 + $0xc0] sm:$0xff]   ;;  %v11700_v23 = vld [vmem:[#allocation4 + $0xc8] sm:$0xff]  }
 0x385   :  { %10545 = vmatprep.subr.bf16.mxu0 %v11863_v0  ;;  %10725 = vmatprep.subr.bf16.mxu1 %v11863_v0 }
 0x387   :  { %10362 = vmatmul.mubr.bf16.vlgmr.msra.gmra.mrb[8].mxu0 %v4826_v24  ;;  %10542 = vmatmul.mubr.bf16.vlgmr.msra.gmra.mrb[8].mxu1 %v5824_v25  ;;  %v11701_v24 = vld [vmem:[#allocation4 + $0xd0] sm:$0xff]  }
 0x388   :  { %10546 = vmatpush3.bf16.msra.mxu0 %v11646_v26  ;;  %10726 = vmatpush3.bf16.msra.mxu1 %v11647_v27  ;;  %v11702_v25 = vld [vmem:[#allocation4 + $0xd0] sm:$0xff]   ;;  %v11703_v26 = vld [vmem:[#allocation4 + $0xd8] sm:$0xff]  }
 0x389   :  { %10547 = vmatprep.subr.bf16.mxu0 %v11863_v0  ;;  %10727 = vmatprep.subr.bf16.mxu1 %v11863_v0  ;;  %v11704_v27 = vld [vmem:[#allocation4 + $0xd8] sm:$0xff]  }
 0x38a   :  { %10561 = vmatprep.mubr.msk.bf16.mxu0 %vm11864_vm0, %v11863_v0  ;;  %10741 = vmatprep.mubr.msk.bf16.mxu1 %vm11864_vm0, %v11863_v0 }
 0x38c   :  { %10548 = vmatpush3.bf16.msra.mxu0 %v11648_v28  ;;  %10728 = vmatpush3.bf16.msra.mxu1 %v11649_v29  ;;  %v11705_v28 = vld [vmem:[#allocation4 + $0xe0] sm:$0xff]  }
 0x38d   :  { %10549 = vmatprep.subr.bf16.mxu0 %v11863_v0  ;;  %10729 = vmatprep.subr.bf16.mxu1 %v11863_v0  ;;  %v11706_v29 = vld [vmem:[#allocation4 + $0xe0] sm:$0xff]  }
 0x390   :  { %10550 = vmatpush3.bf16.msra.mxu0 %v11650_v30  ;;  %10730 = vmatpush3.bf16.msra.mxu1 %v11651_v31  ;;  %v11707_v30 = vld [vmem:[#allocation4 + $0xe8] sm:$0xff]  }
 0x391   :  { %10551 = vmatprep.subr.bf16.mxu0 %v11863_v0  ;;  %10731 = vmatprep.subr.bf16.mxu1 %v11863_v0  ;;  %v11708_v31 = vld [vmem:[#allocation4 + $0xe8] sm:$0xff]  }
 0x394   :  { %10552 = vmatpush3.bf16.msra.mxu0 %v11652_v32  ;;  %10732 = vmatpush3.bf16.msra.mxu1 %v11653_v33  ;;  %v11709_v32 = vld [vmem:[#allocation4 + $0xf0] sm:$0xff]  }
 0x395   :  { %10553 = vmatprep.subr.bf16.mxu0 %v11863_v0  ;;  %10733 = vmatprep.subr.bf16.mxu1 %v11863_v0  ;;  %v11710_v33 = vld [vmem:[#allocation4 + $0xf0] sm:$0xff]  }
 0x398   :  { %10554 = vmatpush3.bf16.msra.mxu0 %v11654_v34  ;;  %10734 = vmatpush3.bf16.msra.mxu1 %v11655_v35  ;;  %v11711_v34 = vld [vmem:[#allocation4 + $0xf8] sm:$0xff]   ;;  %v11714_v35 = vld [vmem:[%s12883_s0 + $0x70] ss:$0 sps:$4 sm:$0xcc]  }
 0x399   :  { %10555 = vmatprep.subr.bf16.mxu0 %v11863_v0  ;;  %10735 = vmatprep.subr.bf16.mxu1 %v11863_v0 }
 0x39c   :  { %10556 = vmatpush3.bf16.msra.mxu0 %v11656_v36  ;;  %10736 = vmatpush3.bf16.msra.mxu1 %v11657_v37  ;;  %v11712_v36 = vld [vmem:[#allocation4 + $0xf8] sm:$0xff]   ;;  %v6237_v37 = vld [vmem:[%s12883_s0 + $0x6c] sm:$0x3] }
 0x39d   :  { %10557 = vmatprep.subr.bf16.mxu0 %v11863_v0  ;;  %10737 = vmatprep.subr.bf16.mxu1 %v11863_v0 }
 0x3a0   :  { %10558 = vmatpush3.bf16.msra.mxu0 %v11658_v38  ;;  %10738 = vmatpush3.bf16.msra.mxu1 %v11659_v39  ;;  %v11713_v38 = vld [vmem:[#allocation4 + $0x100] sm:$0xff]   ;;  %v7230_v39 = vrot.slane %v11714_v35, 2 }
 0x3a1   :  { %10559 = vmatprep.subr.bf16.mxu0 %v11863_v0  ;;  %10739 = vmatprep.subr.bf16.mxu1 %v11863_v0 }
 0x3a4   :  { %10560 = vmatpush3.bf16.msra.mxu0 %v11660_v41  ;;  %10740 = vmatpush3.bf16.msra.mxu1 %v11661_v42  ;;  %v11716_v41 = vld [vmem:[#allocation4 + $0x108] sm:$0xff]  }
 0x3a5   :  { %10565 = vmatprep.subr.bf16.mxu0 %v11863_v0  ;;  %10745 = vmatprep.subr.bf16.mxu1 %v11863_v0  ;;  %v11717_v42 = vld [vmem:[#allocation4 + $0x108] sm:$0xff]  }
 0x3a7   :  { %10562 = vmatmul.mubr.bf16.vlgmr.msra.gmra.mrb[12].mxu0 %v5953_v43  ;;  %10742 = vmatmul.mubr.bf16.vlgmr.msra.gmra.mrb[12].mxu1 %v6901_v45  ;;  %v11718_v43 = vld [vmem:[#allocation4 + $0x110] sm:$0xff]   ;;  %v11720_v45 = vld [vmem:[#allocation4 + $0x118] sm:$0xff]  }
 0x3a8   :  { %10566 = vmatpush3.bf16.msra.mxu0 %v11663_v44  ;;  %10746 = vmatpush3.bf16.msra.mxu1 %v11664_v46  ;;  %v11719_v44 = vld [vmem:[#allocation4 + $0x110] sm:$0xff]   ;;  %v11721_v46 = vld [vmem:[#allocation4 + $0x118] sm:$0xff]  }
 0x3a9   :  { %10567 = vmatprep.subr.bf16.mxu0 %v11863_v0  ;;  %10747 = vmatprep.subr.bf16.mxu1 %v11863_v0 }
 0x3aa   :  { %10581 = vmatprep.mubr.msk.bf16.mxu0 %vm11864_vm0, %v11863_v0  ;;  %10761 = vmatprep.mubr.msk.bf16.mxu1 %vm11864_vm0, %v11863_v0 }
 0x3ac   :  { %10568 = vmatpush3.bf16.msra.mxu0 %v11665_v47  ;;  %10748 = vmatpush3.bf16.msra.mxu1 %v11666_v48  ;;  %v11722_v47 = vld [vmem:[#allocation4 + $0x120] sm:$0xff]  }
 0x3ad   :  { %10569 = vmatprep.subr.bf16.mxu0 %v11863_v0  ;;  %10749 = vmatprep.subr.bf16.mxu1 %v11863_v0  ;;  %v11723_v48 = vld [vmem:[#allocation4 + $0x120] sm:$0xff]  }
 0x3b0   :  { %10570 = vmatpush3.bf16.msra.mxu0 %v11667_v49  ;;  %10750 = vmatpush3.bf16.msra.mxu1 %v11668_v50  ;;  %v11724_v49 = vld [vmem:[#allocation4 + $0x128] sm:$0xff]  }
 0x3b1   :  { %10571 = vmatprep.subr.bf16.mxu0 %v11863_v0  ;;  %10751 = vmatprep.subr.bf16.mxu1 %v11863_v0  ;;  %v11725_v50 = vld [vmem:[#allocation4 + $0x128] sm:$0xff]  }
 0x3b4   :  { %10572 = vmatpush3.bf16.msra.mxu0 %v11669_v51  ;;  %10752 = vmatpush3.bf16.msra.mxu1 %v11670_v52  ;;  %v11726_v51 = vld [vmem:[#allocation4 + $0x130] sm:$0xff]  }
 0x3b5   :  { %10573 = vmatprep.subr.bf16.mxu0 %v11863_v0  ;;  %10753 = vmatprep.subr.bf16.mxu1 %v11863_v0  ;;  %v11727_v52 = vld [vmem:[#allocation4 + $0x130] sm:$0xff]  }
 0x3b8   :  { %10574 = vmatpush3.bf16.msra.mxu0 %v11671_v53  ;;  %10754 = vmatpush3.bf16.msra.mxu1 %v11672_v54  ;;  %v11730_v53 = vld [vmem:[%s12883_s0 + $0x6c] ss:$0 sps:$4 sm:$0xcc]   ;;  %v11728_v54 = vld [vmem:[#allocation4 + $0x138] sm:$0xff]  }
 0x3b9   :  { %10575 = vmatprep.subr.bf16.mxu0 %v11863_v0  ;;  %10755 = vmatprep.subr.bf16.mxu1 %v11863_v0 }
 0x3bc   :  { %10576 = vmatpush3.bf16.msra.mxu0 %v11673_v55  ;;  %10756 = vmatpush3.bf16.msra.mxu1 %v11674_v56  ;;  %v11729_v55 = vld [vmem:[#allocation4 + $0x138] sm:$0xff]   ;;  %v6363_v56 = vrot.slane %v11730_v53, 2  ;;  %v11777_v53 = vld [vmem:[#allocation4 + $0x1f0] sm:$0xff]  }
 0x3bd   :  { %10577 = vmatprep.subr.bf16.mxu0 %v11863_v0  ;;  %10757 = vmatprep.subr.bf16.mxu1 %v11863_v0 }
 0x3c0   :  { %10578 = vmatpush3.bf16.msra.mxu0 %v11675_v57  ;;  %10758 = vmatpush3.bf16.msra.mxu1 %v11676_v58  ;;  %v11731_v57 = vld [vmem:[#allocation4 + $0x140] sm:$0xff]   ;;  %v7321_v58 = vld [vmem:[%s12883_s0 + $0x74] sm:$0x3] }
 0x3c1   :  { %10579 = vmatprep.subr.bf16.mxu0 %v11863_v0  ;;  %10759 = vmatprep.subr.bf16.mxu1 %v11863_v0 }
 0x3c4   :  { %10580 = vmatpush3.bf16.msra.mxu0 %v11677_v59  ;;  %10760 = vmatpush3.bf16.msra.mxu1 %v11678_v61  ;;  %v11732_v59 = vld [vmem:[#allocation4 + $0x140] sm:$0xff]   ;;  %v11734_v61 = vld [vmem:[#allocation4 + $0x148] sm:$0xff]  }
 0x3c5   :  { %10585 = vmatprep.subr.bf16.mxu0 %v11863_v0  ;;  %10765 = vmatprep.subr.bf16.mxu1 %v11863_v0 }
 0x3c7   :  { %10582 = vmatmul.mubr.bf16.vlgmr.msra.gmra.mrb[12].mxu0 %v5916_v62  ;;  %10762 = vmatmul.mubr.bf16.vlgmr.msra.gmra.mrb[12].mxu1 %v7009_v1  ;;  %v11735_v62 = vld [vmem:[#allocation4 + $0x150] sm:$0xff]   ;;  %v11737_v1 = vld [vmem:[#allocation4 + $0x158] sm:$0xff]  }
 0x3c8   :  { %10586 = vmatpush3.bf16.msra.mxu0 %v11679_v63  ;;  %10766 = vmatpush3.bf16.msra.mxu1 %v11681_v2  ;;  %v11736_v63 = vld [vmem:[#allocation4 + $0x150] sm:$0xff]   ;;  %v11738_v2 = vld [vmem:[#allocation4 + $0x158] sm:$0xff]  }
 0x3c9   :  { %10587 = vmatprep.subr.bf16.mxu0 %v11863_v0  ;;  %10767 = vmatprep.subr.bf16.mxu1 %v11863_v0 }
 0x3ca   :  { %10601 = vmatprep.mubr.msk.bf16.mxu0 %vm11864_vm0, %v11863_v0  ;;  %10781 = vmatprep.mubr.msk.bf16.mxu1 %vm11864_vm0, %v11863_v0 }
 0x3cc   :  { %10588 = vmatpush3.bf16.msra.mxu0 %v11682_v3  ;;  %10768 = vmatpush3.bf16.msra.mxu1 %v11683_v4  ;;  %v11739_v3 = vld [vmem:[#allocation4 + $0x160] sm:$0xff]  }
 0x3cd   :  { %10589 = vmatprep.subr.bf16.mxu0 %v11863_v0  ;;  %10769 = vmatprep.subr.bf16.mxu1 %v11863_v0  ;;  %v11740_v4 = vld [vmem:[#allocation4 + $0x160] sm:$0xff]  }
 0x3d0   :  { %10590 = vmatpush3.bf16.msra.mxu0 %v11684_v5  ;;  %10770 = vmatpush3.bf16.msra.mxu1 %v11685_v6  ;;  %v11741_v5 = vld [vmem:[#allocation4 + $0x168] sm:$0xff]  }
 0x3d1   :  { %10591 = vmatprep.subr.bf16.mxu0 %v11863_v0  ;;  %10771 = vmatprep.subr.bf16.mxu1 %v11863_v0  ;;  %v11742_v6 = vld [vmem:[#allocation4 + $0x168] sm:$0xff]  }
 0x3d4   :  { %10592 = vmatpush3.bf16.msra.mxu0 %v11686_v7  ;;  %10772 = vmatpush3.bf16.msra.mxu1 %v11687_v8  ;;  %v11743_v7 = vld [vmem:[#allocation4 + $0x170] sm:$0xff]  }
 0x3d5   :  { %10593 = vmatprep.subr.bf16.mxu0 %v11863_v0  ;;  %10773 = vmatprep.subr.bf16.mxu1 %v11863_v0  ;;  %v11744_v8 = vld [vmem:[#allocation4 + $0x170] sm:$0xff]  }
 0x3d8   :  { %10594 = vmatpush3.bf16.msra.mxu0 %v11688_v9  ;;  %10774 = vmatpush3.bf16.msra.mxu1 %v11689_v10  ;;  %v11745_v9 = vld [vmem:[#allocation4 + $0x178] sm:$0xff]   ;;  %v11748_v10 = vld [vmem:[%s12883_s0 + $0x74] ss:$0 sps:$4 sm:$0xcc]  }
 0x3d9   :  { %10595 = vmatprep.subr.bf16.mxu0 %v11863_v0  ;;  %10775 = vmatprep.subr.bf16.mxu1 %v11863_v0 }
 0x3dc   :  { %10596 = vmatpush3.bf16.msra.mxu0 %v11690_v11  ;;  %10776 = vmatpush3.bf16.msra.mxu1 %v11691_v12  ;;  %v11746_v11 = vld [vmem:[#allocation4 + $0x178] sm:$0xff]   ;;  %v6454_v12 = vld [vmem:[%s12883_s0 + $0x70] sm:$0x3] }
 0x3dd   :  { %10597 = vmatprep.subr.bf16.mxu0 %v11863_v0  ;;  %10777 = vmatprep.subr.bf16.mxu1 %v11863_v0 }
 0x3e0   :  { %10598 = vmatpush3.bf16.msra.mxu0 %v11692_v13  ;;  %10778 = vmatpush3.bf16.msra.mxu1 %v11693_v14  ;;  %v11747_v13 = vld [vmem:[#allocation4 + $0x180] sm:$0xff]   ;;  %v7447_v14 = vrot.slane %v11748_v10, 2  ;;  %v11795_v10 = vld [vmem:[#allocation4 + $0x230] sm:$0xff]  }
 0x3e1   :  { %10599 = vmatprep.subr.bf16.mxu0 %v11863_v0  ;;  %10779 = vmatprep.subr.bf16.mxu1 %v11863_v0 }
 0x3e4   :  { %10600 = vmatpush3.bf16.msra.mxu0 %v11694_v15  ;;  %10780 = vmatpush3.bf16.msra.mxu1 %v11695_v17  ;;  %v11749_v15 = vld [vmem:[#allocation4 + $0x180] sm:$0xff]   ;;  %v11751_v17 = vld [vmem:[#allocation4 + $0x188] sm:$0xff]  }
 0x3e5   :  { %10605 = vmatprep.subr.bf16.mxu0 %v11863_v0  ;;  %10785 = vmatprep.subr.bf16.mxu1 %v11863_v0 }
 0x3e7   :  { %10602 = vmatmul.mubr.bf16.vlgmr.msra.gmra.mrb[12].mxu0 %v6131_v18  ;;  %10782 = vmatmul.mubr.bf16.vlgmr.msra.gmra.mrb[12].mxu1 %v7119_v20  ;;  %v11752_v18 = vld [vmem:[#allocation4 + $0x190] sm:$0xff]   ;;  %v11754_v20 = vld [vmem:[#allocation4 + $0x198] sm:$0xff]  }
 0x3e8   :  { %10606 = vmatpush3.bf16.msra.mxu0 %v11696_v19  ;;  %10786 = vmatpush3.bf16.msra.mxu1 %v11698_v21  ;;  %v11753_v19 = vld [vmem:[#allocation4 + $0x190] sm:$0xff]   ;;  %v11755_v21 = vld [vmem:[#allocation4 + $0x198] sm:$0xff]  }
 0x3e9   :  { %10607 = vmatprep.subr.bf16.mxu0 %v11863_v0  ;;  %10787 = vmatprep.subr.bf16.mxu1 %v11863_v0 }
 0x3ea   :  { %10621 = vmatprep.mubr.msk.bf16.mxu0 %vm11864_vm0, %v11863_v0  ;;  %10801 = vmatprep.mubr.msk.bf16.mxu1 %vm11864_vm0, %v11863_v0 }
 0x3ec   :  { %10608 = vmatpush3.bf16.msra.mxu0 %v11699_v22  ;;  %10788 = vmatpush3.bf16.msra.mxu1 %v11700_v23  ;;  %v11756_v22 = vld [vmem:[#allocation4 + $0x1a0] sm:$0xff]  }
 0x3ed   :  { %10609 = vmatprep.subr.bf16.mxu0 %v11863_v0  ;;  %10789 = vmatprep.subr.bf16.mxu1 %v11863_v0  ;;  %v11757_v23 = vld [vmem:[#allocation4 + $0x1a0] sm:$0xff]  }
 0x3f0   :  { %10610 = vmatpush3.bf16.msra.mxu0 %v11701_v24  ;;  %10790 = vmatpush3.bf16.msra.mxu1 %v11702_v25  ;;  %v11758_v24 = vld [vmem:[#allocation4 + $0x1a8] sm:$0xff]  }
 0x3f1   :  { %10611 = vmatprep.subr.bf16.mxu0 %v11863_v0  ;;  %10791 = vmatprep.subr.bf16.mxu1 %v11863_v0  ;;  %v11759_v25 = vld [vmem:[#allocation4 + $0x1a8] sm:$0xff]  }
 0x3f4   :  { %10612 = vmatpush3.bf16.msra.mxu0 %v11703_v26  ;;  %10792 = vmatpush3.bf16.msra.mxu1 %v11704_v27 }
 0x3f5   :  { %10613 = vmatprep.subr.bf16.mxu0 %v11863_v0  ;;  %10793 = vmatprep.subr.bf16.mxu1 %v11863_v0 }
 0x3f8   :  { %10614 = vmatpush3.bf16.msra.mxu0 %v11705_v28  ;;  %10794 = vmatpush3.bf16.msra.mxu1 %v11706_v29 }
 0x3f9   :  { %10615 = vmatprep.subr.bf16.mxu0 %v11863_v0  ;;  %10795 = vmatprep.subr.bf16.mxu1 %v11863_v0 }
 0x3fc   :  { %10616 = vmatpush3.bf16.msra.mxu0 %v11707_v30  ;;  %10796 = vmatpush3.bf16.msra.mxu1 %v11708_v31  ;;  %v11760_v31 = vld [vmem:[#allocation4 + $0x1b0] sm:$0xff]  }
 0x3fd   :  { %10617 = vmatprep.subr.bf16.mxu0 %v11863_v0  ;;  %10797 = vmatprep.subr.bf16.mxu1 %v11863_v0 }
 0x400   :  { %10618 = vmatpush3.bf16.msra.mxu0 %v11709_v32  ;;  %10798 = vmatpush3.bf16.msra.mxu1 %v11710_v33 }
 0x401   :  { %10619 = vmatprep.subr.bf16.mxu0 %v11863_v0  ;;  %10799 = vmatprep.subr.bf16.mxu1 %v11863_v0 }
 0x404   :  { %10620 = vmatpush3.bf16.msra.mxu0 %v11711_v34  ;;  %10800 = vmatpush3.bf16.msra.mxu1 %v11712_v36  ;;  %v11761_v34 = vld [vmem:[#allocation4 + $0x1b0] sm:$0xff]   ;;  %v11762_v36 = vld [vmem:[#allocation4 + $0x1b8] sm:$0xff]  }
 0x405   :  { %10625 = vmatprep.subr.bf16.mxu0 %v11863_v0  ;;  %10805 = vmatprep.subr.bf16.mxu1 %v11863_v0 }
 0x407   :  { %10622 = vmatmul.mubr.bf16.vlgmr.msra.gmra.mrb[12].mxu0 %v6237_v37  ;;  %10802 = vmatmul.mubr.bf16.vlgmr.msra.gmra.mrb[12].mxu1 %v7230_v39  ;;  %v11765_v37 = vld [vmem:[%s12883_s0 + $0x88] ss:$0 sps:$4 sm:$0xcc]   ;;  %v6560_v39 = vld [vmem:[%s12883_s0 + $0x84] sm:$0x3] }
 0x408   :  { %10626 = vmatpush3.bf16.msra.mxu0 %v11713_v38  ;;  %10806 = vmatpush3.bf16.msra.mxu1 %v11715_v40  ;;  %v11763_v38 = vld [vmem:[#allocation4 + $0x1b8] sm:$0xff]   ;;  %v11764_v40 = vld [vmem:[#allocation4 + $0x1c0] sm:$0xff]  }
 0x409   :  { %10627 = vmatprep.subr.bf16.mxu0 %v11863_v0  ;;  %10807 = vmatprep.subr.bf16.mxu1 %v11863_v0 }
 0x40a   :  { %10641 = vmatprep.mubr.msk.bf16.mxu0 %vm11864_vm0, %v11863_v0  ;;  %10821 = vmatprep.mubr.msk.bf16.mxu1 %vm11864_vm0, %v11863_v0 }
 0x40c   :  { %10628 = vmatpush3.bf16.msra.mxu0 %v11716_v41  ;;  %10808 = vmatpush3.bf16.msra.mxu1 %v11717_v42  ;;  %v7558_v41 = vrot.slane %v11765_v37, 2  ;;  %v11766_v42 = vld [vmem:[#allocation4 + $0x1c0] sm:$0xff]  }
 0x40d   :  { %10629 = vmatprep.subr.bf16.mxu0 %v11863_v0  ;;  %10809 = vmatprep.subr.bf16.mxu1 %v11863_v0 }
 0x410   :  { %10630 = vmatpush3.bf16.msra.mxu0 %v11718_v43  ;;  %10810 = vmatpush3.bf16.msra.mxu1 %v11719_v44  ;;  %v11767_v43 = vld [vmem:[#allocation4 + $0x1c8] sm:$0xff]  }
 0x411   :  { %10631 = vmatprep.subr.bf16.mxu0 %v11863_v0  ;;  %10811 = vmatprep.subr.bf16.mxu1 %v11863_v0  ;;  %v11768_v44 = vld [vmem:[#allocation4 + $0x1c8] sm:$0xff]  }
 0x414   :  { %10632 = vmatpush3.bf16.msra.mxu0 %v11720_v45  ;;  %10812 = vmatpush3.bf16.msra.mxu1 %v11721_v46  ;;  %v11769_v45 = vld [vmem:[#allocation4 + $0x1d0] sm:$0xff]  }
 0x415   :  { %10633 = vmatprep.subr.bf16.mxu0 %v11863_v0  ;;  %10813 = vmatprep.subr.bf16.mxu1 %v11863_v0  ;;  %v11770_v46 = vld [vmem:[#allocation4 + $0x1d0] sm:$0xff]  }
 0x418   :  { %10634 = vmatpush3.bf16.msra.mxu0 %v11722_v47  ;;  %10814 = vmatpush3.bf16.msra.mxu1 %v11723_v48  ;;  %v11771_v47 = vld [vmem:[#allocation4 + $0x1d8] sm:$0xff]  }
 0x419   :  { %10635 = vmatprep.subr.bf16.mxu0 %v11863_v0  ;;  %10815 = vmatprep.subr.bf16.mxu1 %v11863_v0  ;;  %v11772_v48 = vld [vmem:[#allocation4 + $0x1d8] sm:$0xff]  }
 0x41c   :  { %10636 = vmatpush3.bf16.msra.mxu0 %v11724_v49  ;;  %10816 = vmatpush3.bf16.msra.mxu1 %v11725_v50  ;;  %v11773_v49 = vld [vmem:[#allocation4 + $0x1e0] sm:$0xff]  }
 0x41d   :  { %10637 = vmatprep.subr.bf16.mxu0 %v11863_v0  ;;  %10817 = vmatprep.subr.bf16.mxu1 %v11863_v0  ;;  %v11774_v50 = vld [vmem:[#allocation4 + $0x1e0] sm:$0xff]  }
 0x420   :  { %10638 = vmatpush3.bf16.msra.mxu0 %v11726_v51  ;;  %10818 = vmatpush3.bf16.msra.mxu1 %v11727_v52  ;;  %v11775_v51 = vld [vmem:[#allocation4 + $0x1e8] sm:$0xff]  }
 0x421   :  { %10639 = vmatprep.subr.bf16.mxu0 %v11863_v0  ;;  %10819 = vmatprep.subr.bf16.mxu1 %v11863_v0  ;;  %v11776_v52 = vld [vmem:[#allocation4 + $0x1e8] sm:$0xff]  }
 0x424   :  { %10640 = vmatpush3.bf16.msra.mxu0 %v11728_v54  ;;  %10820 = vmatpush3.bf16.msra.mxu1 %v11729_v55  ;;  %v11778_v54 = vld [vmem:[#allocation4 + $0x1f0] sm:$0xff]   ;;  %v11781_v55 = vld [vmem:[%s12883_s0 + $0x84] ss:$0 sps:$4 sm:$0xcc]  }
 0x425   :  { %10645 = vmatprep.subr.bf16.mxu0 %v11863_v0  ;;  %10825 = vmatprep.subr.bf16.mxu1 %v11863_v0 }
 0x427   :  { %10642 = vmatmul.mubr.bf16.vlgmr.msra.gmra.mrb[12].mxu0 %v6363_v56  ;;  %10822 = vmatmul.mubr.bf16.vlgmr.msra.gmra.mrb[12].mxu1 %v7321_v58  ;;  %v11779_v56 = vld [vmem:[#allocation4 + $0x1f8] sm:$0xff]   ;;  %v6686_v58 = vrot.slane %v11781_v55, 2 }
 0x428   :  { %10646 = vmatpush3.bf16.msra.mxu0 %v11731_v57  ;;  %10826 = vmatpush3.bf16.msra.mxu1 %v11732_v59  ;;  %v11780_v57 = vld [vmem:[#allocation4 + $0x1f8] sm:$0xff]   ;;  %v11782_v59 = vld [vmem:[#allocation4 + $0x200] sm:$0xff]  }
 0x429   :  { %10647 = vmatprep.subr.bf16.mxu0 %v11863_v0  ;;  %10827 = vmatprep.subr.bf16.mxu1 %v11863_v0 }
 0x42a   :  { %10661 = vmatprep.mubr.msk.bf16.mxu0 %vm11864_vm0, %v11863_v0  ;;  %10841 = vmatprep.mubr.msk.bf16.mxu1 %vm11864_vm0, %v11863_v0 }
 0x42c   :  { %10648 = vmatpush3.bf16.msra.mxu0 %v11733_v60  ;;  %10828 = vmatpush3.bf16.msra.mxu1 %v11734_v61  ;;  %v7649_v60 = vld [vmem:[%s12883_s0 + $0x8c] sm:$0x3]  ;;  %v11783_v61 = vld [vmem:[#allocation4 + $0x200] sm:$0xff]  }
 0x42d   :  { %10649 = vmatprep.subr.bf16.mxu0 %v11863_v0  ;;  %10829 = vmatprep.subr.bf16.mxu1 %v11863_v0 }
 0x430   :  { %10650 = vmatpush3.bf16.msra.mxu0 %v11735_v62  ;;  %10830 = vmatpush3.bf16.msra.mxu1 %v11736_v63  ;;  %v11784_v62 = vld [vmem:[#allocation4 + $0x208] sm:$0xff]  }
 0x431   :  { %10651 = vmatprep.subr.bf16.mxu0 %v11863_v0  ;;  %10831 = vmatprep.subr.bf16.mxu1 %v11863_v0  ;;  %v11785_v63 = vld [vmem:[#allocation4 + $0x208] sm:$0xff]  }
 0x434   :  { %10652 = vmatpush3.bf16.msra.mxu0 %v11737_v1  ;;  %10832 = vmatpush3.bf16.msra.mxu1 %v11738_v2  ;;  %v11786_v1 = vld [vmem:[#allocation4 + $0x210] sm:$0xff]  }
 0x435   :  { %10653 = vmatprep.subr.bf16.mxu0 %v11863_v0  ;;  %10833 = vmatprep.subr.bf16.mxu1 %v11863_v0  ;;  %v11787_v2 = vld [vmem:[#allocation4 + $0x210] sm:$0xff]  }
 0x438   :  { %10654 = vmatpush3.bf16.msra.mxu0 %v11739_v3  ;;  %10834 = vmatpush3.bf16.msra.mxu1 %v11740_v4  ;;  %v11788_v3 = vld [vmem:[#allocation4 + $0x218] sm:$0xff]  }
 0x439   :  { %10655 = vmatprep.subr.bf16.mxu0 %v11863_v0  ;;  %10835 = vmatprep.subr.bf16.mxu1 %v11863_v0  ;;  %v11789_v4 = vld [vmem:[#allocation4 + $0x218] sm:$0xff]  }
 0x43c   :  { %10656 = vmatpush3.bf16.msra.mxu0 %v11741_v5  ;;  %10836 = vmatpush3.bf16.msra.mxu1 %v11742_v6  ;;  %v11790_v5 = vld [vmem:[#allocation4 + $0x220] sm:$0xff]  }
 0x43d   :  { %10657 = vmatprep.subr.bf16.mxu0 %v11863_v0  ;;  %10837 = vmatprep.subr.bf16.mxu1 %v11863_v0  ;;  %v11791_v6 = vld [vmem:[#allocation4 + $0x220] sm:$0xff]  }
 0x440   :  { %10658 = vmatpush3.bf16.msra.mxu0 %v11743_v7  ;;  %10838 = vmatpush3.bf16.msra.mxu1 %v11744_v8  ;;  %v11792_v7 = vld [vmem:[#allocation4 + $0x228] sm:$0xff]  }
 0x441   :  { %10659 = vmatprep.subr.bf16.mxu0 %v11863_v0  ;;  %10839 = vmatprep.subr.bf16.mxu1 %v11863_v0  ;;  %v11793_v8 = vld [vmem:[#allocation4 + $0x228] sm:$0xff]  }
 0x444   :  { %10660 = vmatpush3.bf16.msra.mxu0 %v11745_v9  ;;  %10840 = vmatpush3.bf16.msra.mxu1 %v11746_v11  ;;  %v11794_v9 = vld [vmem:[#allocation4 + $0x230] sm:$0xff]   ;;  %v11796_v11 = vld [vmem:[#allocation4 + $0x238] sm:$0xff]  }
 0x445   :  { %10665 = vmatprep.subr.bf16.mxu0 %v11863_v0  ;;  %10845 = vmatprep.subr.bf16.mxu1 %v11863_v0 }
 0x447   :  { %10662 = vmatmul.mubr.bf16.vlgmr.msra.gmra.mrb[12].mxu0 %v6454_v12  ;;  %10842 = vmatmul.mubr.bf16.vlgmr.msra.gmra.mrb[12].mxu1 %v7447_v14  ;;  %v11798_v12 = vld [vmem:[%s12883_s0 + $0x8c] ss:$0 sps:$4 sm:$0xcc]   ;;  %v6777_v14 = vld [vmem:[%s12883_s0 + $0x88] sm:$0x3] }
 0x448   :  { %10666 = vmatpush3.bf16.msra.mxu0 %v11747_v13  ;;  %10846 = vmatpush3.bf16.msra.mxu1 %v11749_v15  ;;  %v11797_v13 = vld [vmem:[#allocation4 + $0x238] sm:$0xff]   ;;  %v7775_v15 = vrot.slane %v11798_v12, 2 }
 0x449   :  { %10667 = vmatprep.subr.bf16.mxu0 %v11863_v0  ;;  %10847 = vmatprep.subr.bf16.mxu1 %v11863_v0 }
 0x44a   :  { %10681 = vmatprep.mubr.msk.bf16.mxu0 %vm11864_vm0, %v11863_v0  ;;  %10861 = vmatprep.mubr.msk.bf16.mxu1 %vm11864_vm0, %v11863_v0 }
 0x44c   :  { %10668 = vmatpush3.bf16.msra.mxu0 %v11750_v16  ;;  %10848 = vmatpush3.bf16.msra.mxu1 %v11751_v17  ;;  %v11799_v16 = vld [vmem:[#allocation6] sm:$0xff]   ;;  %v11800_v17 = vld [vmem:[#allocation6 + $0x8] sm:$0xff]  }
 0x44d   :  { %10669 = vmatprep.subr.bf16.mxu0 %v11863_v0  ;;  %10849 = vmatprep.subr.bf16.mxu1 %v11863_v0 }
 0x450   :  { %10670 = vmatpush3.bf16.msra.mxu0 %v11752_v18  ;;  %10850 = vmatpush3.bf16.msra.mxu1 %v11753_v19  ;;  %v11801_v18 = vld [vmem:[#allocation6 + $0x10] sm:$0xff]   ;;  %v11802_v19 = vld [vmem:[#allocation6 + $0x18] sm:$0xff]  }
 0x451   :  { %10671 = vmatprep.subr.bf16.mxu0 %v11863_v0  ;;  %10851 = vmatprep.subr.bf16.mxu1 %v11863_v0 }
 0x454   :  { %10672 = vmatpush3.bf16.msra.mxu0 %v11754_v20  ;;  %10852 = vmatpush3.bf16.msra.mxu1 %v11755_v21  ;;  %v11804_v20 = vld [vmem:[#allocation6 + $0x28] sm:$0xff]   ;;  %v11805_v21 = vld [vmem:[#allocation6 + $0x30] sm:$0xff]  }
 0x455   :  { %10673 = vmatprep.subr.bf16.mxu0 %v11863_v0  ;;  %10853 = vmatprep.subr.bf16.mxu1 %v11863_v0 }
 0x458   :  { %10674 = vmatpush3.bf16.msra.mxu0 %v11756_v22  ;;  %10854 = vmatpush3.bf16.msra.mxu1 %v11757_v23  ;;  %v11806_v22 = vld [vmem:[#allocation6 + $0x38] sm:$0xff]  }
 0x459   :  { %10675 = vmatprep.subr.bf16.mxu0 %v11863_v0  ;;  %10855 = vmatprep.subr.bf16.mxu1 %v11863_v0 }
 0x45a   :  { %v4925_v26 = vpop.f32.mrb[8].mxu0  ;;  %v5908_v27 = vpop.f32.mrb[8].mxu1 }
 0x45b   :  { %4932 = vst [vmem:[#allocation2 + $0x10] sm:$0xf] %v4925_v26  ;;  %v10363_v28 = vpop.f32.mrb[9].mxu0  ;;  %5915 = vst [vmem:[#allocation2 + $0x14] sm:$0xf] %v5908_v27  ;;  %v10543_v29 = vpop.f32.mrb[9].mxu1 }
 0x45c   :  { %v4928_v30 = vpop.f32.mrb[10].mxu0  ;;  %10676 = vmatpush3.bf16.msra.mxu0 %v11758_v24  ;;  %v5911_v32 = vpop.f32.mrb[10].mxu1  ;;  %10856 = vmatpush3.bf16.msra.mxu1 %v11759_v25 }
 0x45d   :  { %v10364_v33 = vpop.f32.mrb[11].mxu0  ;;  %10677 = vmatprep.subr.bf16.mxu0 %v11863_v0  ;;  %v10544_v35 = vpop.f32.mrb[11].mxu1  ;;  %10857 = vmatprep.subr.bf16.mxu1 %v11863_v0  ;;  %v7868_v30 = vld [vmem:[#allocation2 + $0x8] sm:$0xff]  ;;  %v7867_v32 = vld [vmem:[#allocation2] sm:$0xff] }
 0x460   :  { %10678 = vmatpush3.bf16.msra.mxu0 %v11760_v31  ;;  %10858 = vmatpush3.bf16.msra.mxu1 %v11761_v34  ;;  %v7871_v34 = vadd.f32 %v7868_v30, %v7867_v32 }
 0x461   :  { %10679 = vmatprep.subr.bf16.mxu0 %v11863_v0  ;;  %10859 = vmatprep.subr.bf16.mxu1 %v11863_v0 }
 0x462   :  { %v7869_v33 = vld [vmem:[#allocation2 + $0x10] sm:$0xff] }
 0x463   :  { %v7872_v35 = vadd.f32 %v7871_v34, %v7869_v33 }
 0x464   :  { %10680 = vmatpush3.bf16.msra.mxu0 %v11762_v36  ;;  %10860 = vmatpush3.bf16.msra.mxu1 %v11763_v38 }
 0x465   :  { %10685 = vmatprep.subr.bf16.mxu0 %v11863_v0  ;;  %10865 = vmatprep.subr.bf16.mxu1 %v11863_v0 }
 0x467   :  { %10682 = vmatmul.mubr.bf16.vlgmr.msra.gmra.mrb[12].mxu0 %v6560_v39  ;;  %10862 = vmatmul.mubr.bf16.vlgmr.msra.gmra.mrb[12].mxu1 %v7558_v41 }
 0x468   :  { %10686 = vmatpush3.bf16.msra.mxu0 %v11764_v40  ;;  %10866 = vmatpush3.bf16.msra.mxu1 %v11766_v42 }
 0x469   :  { %10687 = vmatprep.subr.bf16.mxu0 %v11863_v0  ;;  %10867 = vmatprep.subr.bf16.mxu1 %v11863_v0 }
 0x46a   :  { %10701 = vmatprep.mubr.msk.bf16.mxu0 %vm11864_vm0, %v11863_v0  ;;  %10881 = vmatprep.mubr.msk.bf16.mxu1 %vm11864_vm0, %v11863_v0 }
 0x46c   :  { %10688 = vmatpush3.bf16.msra.mxu0 %v11767_v43  ;;  %10868 = vmatpush3.bf16.msra.mxu1 %v11768_v44 }
 0x46d   :  { %10689 = vmatprep.subr.bf16.mxu0 %v11863_v0  ;;  %10869 = vmatprep.subr.bf16.mxu1 %v11863_v0 }
 0x470   :  { %10690 = vmatpush3.bf16.msra.mxu0 %v11769_v45  ;;  %10870 = vmatpush3.bf16.msra.mxu1 %v11770_v46 }
 0x471   :  { %10691 = vmatprep.subr.bf16.mxu0 %v11863_v0  ;;  %10871 = vmatprep.subr.bf16.mxu1 %v11863_v0 }
 0x474   :  { %10692 = vmatpush3.bf16.msra.mxu0 %v11771_v47  ;;  %10872 = vmatpush3.bf16.msra.mxu1 %v11772_v48 }
 0x475   :  { %10693 = vmatprep.subr.bf16.mxu0 %v11863_v0  ;;  %10873 = vmatprep.subr.bf16.mxu1 %v11863_v0 }
 0x478   :  { %10694 = vmatpush3.bf16.msra.mxu0 %v11773_v49  ;;  %10874 = vmatpush3.bf16.msra.mxu1 %v11774_v50 }
 0x479   :  { %10695 = vmatprep.subr.bf16.mxu0 %v11863_v0  ;;  %10875 = vmatprep.subr.bf16.mxu1 %v11863_v0 }
 0x47c   :  { %10696 = vmatpush3.bf16.msra.mxu0 %v11775_v51  ;;  %10876 = vmatpush3.bf16.msra.mxu1 %v11776_v52 }
 0x47d   :  { %10697 = vmatprep.subr.bf16.mxu0 %v11863_v0  ;;  %10877 = vmatprep.subr.bf16.mxu1 %v11863_v0 }
 0x480   :  { %10698 = vmatpush3.bf16.msra.mxu0 %v11777_v53  ;;  %10878 = vmatpush3.bf16.msra.mxu1 %v11778_v54 }
 0x481   :  { %10699 = vmatprep.subr.bf16.mxu0 %v11863_v0  ;;  %10879 = vmatprep.subr.bf16.mxu1 %v11863_v0 }
 0x484   :  { %10700 = vmatpush3.bf16.msra.mxu0 %v11779_v56  ;;  %10880 = vmatpush3.bf16.msra.mxu1 %v11780_v57 }
 0x485   :  { %10705 = vmatprep.subr.bf16.mxu0 %v11863_v0  ;;  %10885 = vmatprep.subr.bf16.mxu1 %v11863_v0 }
 0x487   :  { %10702 = vmatmul.mubr.bf16.vlgmr.msra.gmra.mrb[12].mxu0 %v6686_v58  ;;  %10882 = vmatmul.mubr.bf16.vlgmr.msra.gmra.mrb[12].mxu1 %v7649_v60 }
 0x488   :  { %10706 = vmatpush3.bf16.msra.mxu0 %v11782_v59  ;;  %10886 = vmatpush3.bf16.msra.mxu1 %v11783_v61 }
 0x489   :  { %10707 = vmatprep.subr.bf16.mxu0 %v11863_v0  ;;  %10887 = vmatprep.subr.bf16.mxu1 %v11863_v0 }
 0x48a   :  { %10721 = vmatprep.mubr.msk.bf16.mxu0 %vm11864_vm0, %v11863_v0  ;;  %10901 = vmatprep.mubr.msk.bf16.mxu1 %vm11864_vm0, %v11863_v0 }
 0x48c   :  { %10708 = vmatpush3.bf16.msra.mxu0 %v11784_v62  ;;  %10888 = vmatpush3.bf16.msra.mxu1 %v11785_v63 }
 0x48d   :  { %10709 = vmatprep.subr.bf16.mxu0 %v11863_v0  ;;  %10889 = vmatprep.subr.bf16.mxu1 %v11863_v0 }
 0x490   :  { %10710 = vmatpush3.bf16.msra.mxu0 %v11786_v1  ;;  %10890 = vmatpush3.bf16.msra.mxu1 %v11787_v2  ;;  %v8776_v2 = vld [vmem:[%s12885_s2] ss:$0 sm:$0xff] }
 0x491   :  { %10711 = vmatprep.subr.bf16.mxu0 %v11863_v0  ;;  %10891 = vmatprep.subr.bf16.mxu1 %v11863_v0 }
 0x494   :  { %10712 = vmatpush3.bf16.msra.mxu0 %v11788_v3  ;;  %10892 = vmatpush3.bf16.msra.mxu1 %v11789_v4 }
 0x495   :  { %10713 = vmatprep.subr.bf16.mxu0 %v11863_v0  ;;  %10893 = vmatprep.subr.bf16.mxu1 %v11863_v0 }
 0x498   :  { %10714 = vmatpush3.bf16.msra.mxu0 %v11790_v5  ;;  %10894 = vmatpush3.bf16.msra.mxu1 %v11791_v6 }
 0x499   :  { %10715 = vmatprep.subr.bf16.mxu0 %v11863_v0  ;;  %10895 = vmatprep.subr.bf16.mxu1 %v11863_v0 }
 0x49c   :  { %10716 = vmatpush3.bf16.msra.mxu0 %v11792_v7  ;;  %10896 = vmatpush3.bf16.msra.mxu1 %v11793_v8  ;;  %v8777_v7 = vld [vmem:[%s12886_s3] ss:$0 sm:$0xff] }
 0x49d   :  { %10717 = vmatprep.subr.bf16.mxu0 %v11863_v0  ;;  %10897 = vmatprep.subr.bf16.mxu1 %v11863_v0 }
 0x4a0   :  { %10718 = vmatpush3.bf16.msra.mxu0 %v11794_v9  ;;  %10898 = vmatpush3.bf16.msra.mxu1 %v11795_v10 }
 0x4a1   :  { %10719 = vmatprep.subr.bf16.mxu0 %v11863_v0  ;;  %10899 = vmatprep.subr.bf16.mxu1 %v11863_v0  ;;  %v11803_v0 = vld [vmem:[#allocation6 + $0x20] sm:$0xff]  }
 0x4a4   :  { %10720 = vmatpush3.bf16.msra.mxu0 %v11796_v11  ;;  %10900 = vmatpush3.bf16.msra.mxu1 %v11797_v13 }
 0x4a5   :  { %10905 = vmatprep.subr.bf16.mxu0 %v11799_v16 }
 0x4a7   :  { %10722 = vmatmul.mubr.bf16.vlgmr.msra.gmra.mrb[12].mxu0 %v6777_v14  ;;  %10902 = vmatmul.mubr.bf16.vlgmr.msra.gmra.mrb[12].mxu1 %v7775_v15 }
 0x4a8   :  { %10906 = vmatpush3.bf16.msra.mxu0 %v11799_v16 }
 0x4a9   :  { %10907 = vmatprep.subr.bf16.mxu0 %v11800_v17 }
 0x4ac   :  { %10908 = vmatpush3.bf16.msra.mxu0 %v11800_v17 }
 0x4ad   :  { %10909 = vmatprep.subr.bf16.mxu0 %v11801_v18 }
 0x4b0   :  { %10910 = vmatpush3.bf16.msra.mxu0 %v11801_v18 }
 0x4b1   :  { %10911 = vmatprep.subr.bf16.mxu0 %v11802_v19 }
 0x4b4   :  { %10912 = vmatpush3.bf16.msra.mxu0 %v11802_v19 }
 0x4b5   :  { %10913 = vmatprep.subr.bf16.mxu0 %v11803_v0 }
 0x4b8   :  { %10914 = vmatpush3.bf16.msra.mxu0 %v11803_v0 }
 0x4b9   :  { %10915 = vmatprep.subr.bf16.mxu0 %v11804_v20 }
 0x4bc   :  { %10916 = vmatpush3.bf16.msra.mxu0 %v11804_v20 }
 0x4bd   :  { %10917 = vmatprep.subr.bf16.mxu0 %v11805_v21 }
 0x4c0   :  { %10918 = vmatpush3.bf16.msra.mxu0 %v11805_v21 }
 0x4c1   :  { %10919 = vmatprep.subr.bf16.mxu0 %v11806_v22 }
 0x4c4   :  { %10920 = vmatpush3.bf16.msra.mxu0 %v11806_v22 }
 0x57a   :  { %v6876_v23 = vpop.f32.mrb[12].mxu0  ;;  %v7859_v24 = vpop.f32.mrb[12].mxu1 }
 0x57b   :  { %6883 = vst [vmem:[#allocation2 + $0x18] sm:$0xf] %v6876_v23  ;;  %v10723_v25 = vpop.f32.mrb[13].mxu0  ;;  %7866 = vst [vmem:[#allocation2 + $0x1c] sm:$0xf] %v7859_v24  ;;  %v10903_v26 = vpop.f32.mrb[13].mxu1 }
 0x57c   :  { %v6879_v27 = vpop.f32.mrb[14].mxu0  ;;  %v7862_v28 = vpop.f32.mrb[14].mxu1 }
 0x57d   :  { %v10724_v29 = vpop.f32.mrb[15].mxu0  ;;  %v10904_v31 = vpop.f32.mrb[15].mxu1 }
 0x582   :  { %v7870_v36 = vld [vmem:[#allocation2 + $0x18] sm:$0xff] }
 0x583   :  { %v7873_v37 = vadd.f32 %v7872_v35, %v7870_v36 }
 0x585   :  { %v7874_v38 = vrot.slane %v7873_v37, 4 }
 0x587   :  { %v7875_v39 = vadd.f32 %v7874_v38, %v7873_v37 }
 0x589   :  { %v7876_v40 = vrot.slane %v7875_v39, 2 }
 0x58b   :  { %v7877_v41 = vadd.f32 %v7876_v40, %v7875_v39 }
 0x58d   :  { %v7878_v42 = vrot.slane %v7877_v41, 1 }
 0x58f   :  { %v7879_v43 = vadd.f32 %v7878_v42, %v7877_v41 }
 0x591   :  { %v7881_v44 = vmul.f32 0.03125, %v7879_v43 }
 0x593   :  { %v7882_v45 = vsub.f32 %v7867_v32, %v7881_v44  ;;  %v7883_v46 = vsub.f32 %v7868_v30, %v7881_v44  ;;  %v7884_v47 = vsub.f32 %v7869_v33, %v7881_v44  ;;  %v7885_v48 = vsub.f32 %v7870_v36, %v7881_v44 }
 0x595   :  { %v7886_v49 = vmul.f32 %v7882_v45, %v7882_v45  ;;  %v7887_v50 = vmul.f32 %v7883_v46, %v7883_v46  ;;  %v7888_v51 = vmul.f32 %v7884_v47, %v7884_v47  ;;  %v7889_v53 = vmul.f32 %v7885_v48, %v7885_v48 }
 0x597   :  { %v7890_v52 = vadd.f32 %v7887_v50, %v7886_v49 }
 0x599   :  { %v7891_v54 = vadd.f32 %v7890_v52, %v7888_v51 }
 0x59b   :  { %v7892_v55 = vadd.f32 %v7891_v54, %v7889_v53 }
 0x59d   :  { %v7893_v56 = vrot.slane %v7892_v55, 4 }
 0x59f   :  { %v7894_v57 = vadd.f32 %v7893_v56, %v7892_v55 }
 0x5a1   :  { %v7895_v58 = vrot.slane %v7894_v57, 2 }
 0x5a3   :  { %v7896_v59 = vadd.f32 %v7895_v58, %v7894_v57 }
 0x5a5   :  { %v7897_v60 = vrot.slane %v7896_v59, 1 }
 0x5a7   :  { %v7898_v61 = vadd.f32 %v7897_v60, %v7896_v59  ;;  %v8786_v59 = vld [vmem:[%s12888_s5] ss:$0 sm:$0xff] }
 0x5a9   :  { %v7899_v62 = vmul.f32 0.03125, %v7898_v61 }
 0x5ab   :  { %v7900_v63 = vadd.f32 1e-05, %v7899_v62 }
 0x5ad   :  { %11807 = vrsqrt.f32 %v7900_v63 }
 0x5b7   :  { %v11808_v1 = vpop.eup %11807 }
 0x5b8   :  { %v7902_v3 = vmul.f32 %v11808_v1, %v7882_v45  ;;  %v7903_v4 = vmul.f32 %v11808_v1, %v7883_v46  ;;  %v7904_v5 = vmul.f32 %v11808_v1, %v7884_v47  ;;  %v7905_v6 = vmul.f32 %v11808_v1, %v7885_v48  ;;  %v8787_v1 = vld [vmem:[%s12889_s6] ss:$0 sm:$0xff] }
 0x5ba   :  { %v7913_v8 = vmul.f32 %v8776_v2, %v7902_v3  ;;  %v7914_v9 = vmul.f32 %v8776_v2, %v7903_v4  ;;  %v7915_v10 = vmul.f32 %v8776_v2, %v7904_v5  ;;  %v7916_v11 = vmul.f32 %v8776_v2, %v7905_v6 }
 0x5bc   :  { %v7924_v12 = vadd.f32 %v8777_v7, %v7913_v8  ;;  %v7925_v13 = vadd.f32 %v8777_v7, %v7914_v9  ;;  %v7926_v14 = vadd.f32 %v8777_v7, %v7915_v10  ;;  %v7927_v15 = vadd.f32 %v8777_v7, %v7916_v11 }
 0x5be   :  { %vm7928_vm1 = vcmp.gt.f32.partialorder %v7924_v12, 0.0  ;;  %vm7929_vm2 = vcmp.gt.f32.partialorder %v7925_v13, 0.0  ;;  %v7932_v16 = vmul.f32 0.2, %v7924_v12  ;;  %v7933_v17 = vmul.f32 0.2, %v7925_v13 }
 0x5bf   :  { %vm7930_vm3 = vcmp.gt.f32.partialorder %v7926_v14, 0.0  ;;  %vm7931_vm4 = vcmp.gt.f32.partialorder %v7927_v15, 0.0  ;;  %v7934_v18 = vmul.f32 0.2, %v7926_v14  ;;  %v7935_v19 = vmul.f32 0.2, %v7927_v15 }
 0x5c0   :  { %v7936_v0 = vsel %vm7928_vm1, %v7924_v12, %v7932_v16  ;;  %v7937_v20 = vsel %vm7929_vm2, %v7925_v13, %v7933_v17 }
 0x5c1   :  { %v7952_v21 = vpack.c.bf16 %v7937_v20, %v7936_v0  ;;  %v7938_v22 = vsel %vm7930_vm3, %v7926_v14, %v7934_v18  ;;  %v7939_v23 = vsel %vm7931_vm4, %v7927_v15, %v7935_v19 }
 0x5c2   :  { %v7953_v24 = vpack.c.bf16 %v7939_v23, %v7938_v22 }
 0x5c3   :  { %10921 = vmatprep.mubr.bf16.mxu0 %v7952_v21 }
 0x5c4   :  { %10922 = vmatmul.mubr.bf16.vlgmr.msra.gmra.mrb[16].mxu0 %v7953_v24 }
 0x697   :  { %v10923_v25 = vpop.f32.mrb[16].mxu0 }
 0x698   :  { %v8052_v26 = vpop.f32.mrb[17].mxu0 }
 0x699   :  { %v10924_v27 = vpop.f32.mrb[18].mxu0 }
 0x69a   :  { %v8055_v28 = vpop.f32.mrb[19].mxu0 }
 0x69b   :  { %v8082_v29 = vadd.f32 %v8055_v28, %v8052_v26 }
 0x69d   :  { %v8083_v30 = vadd.f32 %v10923_v25, %v8082_v29 }
 0x69f   :  { %v8084_v31 = vadd.f32 %v10924_v27, %v8083_v30 }
 0x6a1   :  { %v8085_v32 = vrot.slane %v8084_v31, 4 }
 0x6a3   :  { %v8086_v33 = vadd.f32 %v8085_v32, %v8084_v31 }
 0x6a5   :  { %v8087_v34 = vrot.slane %v8086_v33, 2 }
 0x6a7   :  { %v8088_v35 = vadd.f32 %v8087_v34, %v8086_v33 }
 0x6a9   :  { %v8089_v36 = vrot.slane %v8088_v35, 1 }
 0x6ab   :  { %v8090_v37 = vadd.f32 %v8089_v36, %v8088_v35 }
 0x6ad   :  { %v8091_v38 = vmul.f32 0.03125, %v8090_v37 }
 0x6af   :  { %v8092_v39 = vsub.f32 %v8052_v26, %v8091_v38  ;;  %v8093_v40 = vsub.f32 %v8055_v28, %v8091_v38  ;;  %v8094_v41 = vsub.f32 %v10923_v25, %v8091_v38  ;;  %v8095_v42 = vsub.f32 %v10924_v27, %v8091_v38 }
 0x6b1   :  { %v8096_v43 = vmul.f32 %v8092_v39, %v8092_v39  ;;  %v8097_v44 = vmul.f32 %v8093_v40, %v8093_v40  ;;  %v8098_v45 = vmul.f32 %v8094_v41, %v8094_v41  ;;  %v8099_v47 = vmul.f32 %v8095_v42, %v8095_v42 }
 0x6b3   :  { %v8100_v46 = vadd.f32 %v8097_v44, %v8096_v43 }
 0x6b5   :  { %v8101_v48 = vadd.f32 %v8100_v46, %v8098_v45 }
 0x6b7   :  { %v8102_v49 = vadd.f32 %v8101_v48, %v8099_v47 }
 0x6b9   :  { %v8103_v50 = vrot.slane %v8102_v49, 4 }
 0x6bb   :  { %v8104_v51 = vadd.f32 %v8103_v50, %v8102_v49 }
 0x6bd   :  { %v8105_v52 = vrot.slane %v8104_v51, 2 }
 0x6bf   :  { %v8106_v53 = vadd.f32 %v8105_v52, %v8104_v51 }
 0x6c1   :  { %v8107_v54 = vrot.slane %v8106_v53, 1 }
 0x6c3   :  { %v8108_v55 = vadd.f32 %v8107_v54, %v8106_v53 }
 0x6c5   :  { %v8109_v56 = vmul.f32 0.03125, %v8108_v55 }
 0x6c7   :  { %v8110_v57 = vadd.f32 1e-05, %v8109_v56 }
 0x6c9   :  { %11809 = vrsqrt.f32 %v8110_v57 }
 0x6d3   :  { %v11810_v58 = vpop.eup %11809 }
 0x6d4   :  { %v8112_v60 = vmul.f32 %v11810_v58, %v8092_v39  ;;  %v8113_v61 = vmul.f32 %v11810_v58, %v8093_v40  ;;  %v8114_v62 = vmul.f32 %v11810_v58, %v8094_v41  ;;  %v8115_v63 = vmul.f32 %v11810_v58, %v8095_v42 }
 0x6d6   :  { %v8123_v2 = vmul.f32 %v8786_v59, %v8112_v60  ;;  %v8124_v3 = vmul.f32 %v8786_v59, %v8113_v61  ;;  %v8125_v4 = vmul.f32 %v8786_v59, %v8114_v62  ;;  %v8126_v5 = vmul.f32 %v8786_v59, %v8115_v63 }
 0x6d8   :  { %v8134_v6 = vadd.f32 %v8787_v1, %v8123_v2  ;;  %v8135_v7 = vadd.f32 %v8787_v1, %v8124_v3  ;;  %v8136_v8 = vadd.f32 %v8787_v1, %v8125_v4  ;;  %v8137_v9 = vadd.f32 %v8787_v1, %v8126_v5 }
 0x6da   :  { %v8799_v10 = vpack.c.bf16 %v8135_v7, %v8134_v6  ;;  %v8804_v11 = vpack.c.bf16 %v8137_v9, %v8136_v8 }
 0x6dc   :  { %8800 = vst [vmem:[%s12890_s7] sm:$0xff] %v8799_v10   ;;  %8806 = vst [vmem:[%s12890_s7 + $0x8] sm:$0xff] %v8804_v11  }
 0x6dd   :  { %8162 = vsyncpa [#allocation5], 1 }
 0x6de   :  { %8163 = vsyncpa [#allocation7], 1 }

</bundles_post_ra>
